<compile_context>
chip_gen: v6e
topology: v6e:2x2x1
jax: 0.10.0
libtpu: 0.0.40
codegen_flags: <defaults>
</compile_context>

<pallas_src>
import functools

import jax
import jax.numpy as jnp
from jax.experimental import pallas as pl
from jax.experimental.pallas import tpu as pltpu


def _round_up(x, m):
    return (x + m - 1) // m * m


def _largest_divisor_leq(n, cap):
    for d in range(min(cap, n), 0, -1):
        if n % d == 0:
            return d
    return 1


def _make_cross_attention_kernel(block_b, mxu_dtype):
    """Kernel over a block of `block_b` batch elements.

    VMEM refs per grid step:
      ma_ref  : (block_b, Na, H)    mapped_a  (projection done in XLA)
      mbt_ref : (block_b, H, Nb)    mapped_b^T (pre-transposed in XLA)
      a_ref   : (block_b, Na, Dap)  zero-padded input_a (values for output_b)
      b_ref   : (block_b, Nb, Dbp)  zero-padded input_b (values for output_a)
      oa_ref  : (block_b, Na, Dbp)
      ob_ref  : (block_b, Nb, Dap)
    """

    def kernel(ma_ref, mbt_ref, a_ref, b_ref, oa_ref, ob_ref):
        # Static unroll over the batch block; every matmul below is 2-D, which
        # keeps the Mosaic lowering on the well-supported MXU paths.
        for k in range(block_b):
            ma = ma_ref[k].astype(mxu_dtype)        # (Na, H)
            mbt = mbt_ref[k].astype(mxu_dtype)      # (H, Nb)
            a = a_ref[k]                            # (Na, Dap)
            b = b_ref[k]                            # (Nb, Dbp)

            # scores[i, j] = <mapped_a[i], mapped_b[j]>  (f32 accumulation).
            s = jnp.dot(ma, mbt, preferred_element_type=jnp.float32)  # (Na, Nb)

            # One shared exp() pass for both softmaxes.  A single global
            # stabilizer keeps both the row softmax (axis=-1) and the column
            # softmax (axis=0) exact (softmax is invariant to a constant
            # shift); f32 scores at these magnitudes cannot underflow.
            m_row = jnp.max(s, axis=-1, keepdims=True)      # (Na, 1)
            m_all = jnp.max(m_row, axis=0, keepdims=True)   # (1, 1)
            e = jnp.exp(s - m_all)                          # (Na, Nb), one EUP pass

            inv_row = pl.reciprocal(
                jnp.sum(e, axis=-1, keepdims=True), approx=True)   # (Na, 1)
            inv_col = pl.reciprocal(
                jnp.sum(e, axis=0, keepdims=True), approx=True)    # (1, Nb)

            # output_a = softmax_rows(S) @ input_b
            #          = (E @ input_b) * (1 / rowsum)   (scale after the matmul)
            oa = jnp.dot(e.astype(mxu_dtype), b.astype(mxu_dtype),
                         preferred_element_type=jnp.float32) * inv_row
            oa_ref[k] = oa.astype(oa_ref.dtype)             # (Na, Dbp)

            # output_b[j, d] = sum_i softmax_cols(S)[i, j] * input_a[i, d]
            # Column-normalize E (lane-aligned broadcast) and contract over
            # axis 0 of both operands -- no explicit scores.T / XLU transpose.
            e_c = (e * inv_col).astype(mxu_dtype)           # (Na, Nb)
            ob = jax.lax.dot_general(
                e_c, a.astype(mxu_dtype),
                dimension_numbers=(((0,), (0,)), ((), ())),
                preferred_element_type=jnp.float32)         # (Nb, Dap)
            ob_ref[k] = ob.astype(ob_ref.dtype)

    return kernel


@functools.partial(jax.jit, static_argnames=("block_b", "use_bf16_mxu"))
def cross_attention(input_a, input_b, wa, ba, wb, bb, *,
                    block_b=None, use_bf16_mxu=False):
    B, Na, Da = input_a.shape
    B2, Nb, Db = input_b.shape
    assert B == B2
    H = wa.shape[-1]

    if block_b is None:
        block_b = _largest_divisor_leq(B, 8)
    assert B % block_b == 0
    n_blocks = B // block_b

    mxu_dtype = jnp.bfloat16 if use_bf16_mxu else jnp.float32

    # Projections hoisted to XLA: one (B*Na, Da)@(Da, H) and one
    # (B*Nb, Db)@(Db, H) matmul fill the MXU M dimension.  mapped_b is passed
    # pre-transposed so the in-kernel scores matmul needs no transpose.
    mapped_a = (input_a @ wa + ba).astype(jnp.float32)                      # (B, Na, H)
    mapped_bt = jnp.swapaxes(input_b @ wb + bb, 1, 2).astype(jnp.float32)   # (B, H, Nb)

    # Zero-pad the value feature dims to lane-dense multiples of 128 so every
    # output store is an unmasked vst; padding is exact (zero columns) and is
    # sliced off below.
    Dap = _round_up(Da, 128)
    Dbp = _round_up(Db, 128)
    a_pad = jnp.pad(input_a.astype(jnp.float32),
                    ((0, 0), (0, 0), (0, Dap - Da)))                        # (B, Na, Dap)
    b_pad = jnp.pad(input_b.astype(jnp.float32),
                    ((0, 0), (0, 0), (0, Dbp - Db)))                        # (B, Nb, Dbp)

    out_shape = (
        jax.ShapeDtypeStruct((B, Na, Dbp), jnp.float32),
        jax.ShapeDtypeStruct((B, Nb, Dap), jnp.float32),
    )

    kernel = _make_cross_attention_kernel(block_b, mxu_dtype)

    out_a_pad, out_b_pad = pl.pallas_call(
        kernel,
        out_shape=out_shape,
        grid_spec=pltpu.PrefetchScalarGridSpec(
            num_scalar_prefetch=0,
            grid=(n_blocks,),
            in_specs=[
                pl.BlockSpec((block_b, Na, H), lambda i: (i, 0, 0)),     # mapped_a
                pl.BlockSpec((block_b, H, Nb), lambda i: (i, 0, 0)),     # mapped_b^T
                pl.BlockSpec((block_b, Na, Dap), lambda i: (i, 0, 0)),   # input_a (padded)
                pl.BlockSpec((block_b, Nb, Dbp), lambda i: (i, 0, 0)),   # input_b (padded)
            ],
            out_specs=[
                pl.BlockSpec((block_b, Na, Dbp), lambda i: (i, 0, 0)),
                pl.BlockSpec((block_b, Nb, Dap), lambda i: (i, 0, 0)),
            ],
        ),
        compiler_params=pltpu.CompilerParams(
            dimension_semantics=("parallel",),
            vmem_limit_bytes=48 * 1024 * 1024,
        ),
    )(mapped_a, mapped_bt, a_pad, b_pad)

    # Slice off the lane padding.
    return out_a_pad[..., :Db], out_b_pad[..., :Da]


def cross_attention_ref(input_a, input_b, wa, ba, wb, bb):
    mapped_a = input_a @ wa + ba
    mapped_b = input_b @ wb + bb
    scores = jnp.einsum('bid,bjd->bij', mapped_a, mapped_b)
    attn01 = jax.nn.softmax(scores, axis=-1)
    attn10 = jax.nn.softmax(jnp.swapaxes(scores, -2, -1), axis=-1)
    out_a = jnp.einsum('bij,bjd->bid', attn01, input_b)
    out_b = jnp.einsum('bji,bid->bjd', attn10, input_a)
    return out_a, out_b


if __name__ == "__main__":
    # Shapes from the module spec: input_a (16, 36, 192), input_b (16, 192, 36),
    # hidden_dim = 64.
    B, Na, Da = 16, 36, 192
    Nb, Db = 192, 36
    H = 64

    key = jax.random.PRNGKey(0)
    k_a, k_b, k_wa, k_ba, k_wb, k_bb = jax.random.split(key, 6)

    input_a = jax.random.normal(k_a, (B, Na, Da), dtype=jnp.float32)
    input_b = jax.random.normal(k_b, (B, Nb, Db), dtype=jnp.float32)

    # nn.Linear-style parameters, stored as (in_features, hidden).
    wa = jax.random.normal(k_wa, (Da, H), dtype=jnp.float32) * (Da ** -0.5)
    ba = jax.random.normal(k_ba, (H,), dtype=jnp.float32) * 0.01
    wb = jax.random.normal(k_wb, (Db, H), dtype=jnp.float32) * (Db ** -0.5)
    bb = jax.random.normal(k_bb, (H,), dtype=jnp.float32) * 0.01

    out_a, out_b = cross_attention(input_a, input_b, wa, ba, wb, bb)
    jax.block_until_ready((out_a, out_b))

    ref_a, ref_b = cross_attention_ref(input_a, input_b, wa, ba, wb, bb)
    assert out_a.shape == ref_a.shape and out_b.shape == ref_b.shape
    # Tolerance covers the approximate (EUP) reciprocal in the softmax denom.
    assert jnp.allclose(out_a, ref_a, atol=5e-3, rtol=5e-3), \
        float(jnp.max(jnp.abs(out_a - ref_a)))
    assert jnp.allclose(out_b, ref_b, atol=5e-3, rtol=5e-3), \
        float(jnp.max(jnp.abs(out_b - ref_b)))

    print("KERNEL_OK")
</pallas_src>

<mosaic_0001>
module attributes {stable_mosaic.version = 11 : i64} {
  func.func @kernel(%arg0: i32, %arg1: memref<8x36x64xf32, #tpu.memory_space<vmem>>, %arg2: memref<8x64x192xf32, #tpu.memory_space<vmem>>, %arg3: memref<8x36x256xf32, #tpu.memory_space<vmem>>, %arg4: memref<8x192x128xf32, #tpu.memory_space<vmem>>, %arg5: memref<8x36x128xf32, #tpu.memory_space<vmem>>, %arg6: memref<8x192x256xf32, #tpu.memory_space<vmem>>) attributes {dimension_semantics = [#tpu.dimension_semantics<parallel>], iteration_bounds = array<i64: 2>, scalar_prefetch = 0 : i64, scratch_operands = 0 : i64, tpu.core_type = #tpu.core_type<tc>, window_params = [{transform_indices = @transform_0, window_bounds = array<i64: 8, 36, 64>}, {transform_indices = @transform_1, window_bounds = array<i64: 8, 64, 192>}, {transform_indices = @transform_2, window_bounds = array<i64: 8, 36, 256>}, {transform_indices = @transform_3, window_bounds = array<i64: 8, 192, 128>}, {transform_indices = @transform_4, window_bounds = array<i64: 8, 36, 128>}, {transform_indices = @transform_5, window_bounds = array<i64: 8, 192, 256>}]} {
    %c0 = arith.constant 0 : index
    %c0_0 = arith.constant 0 : index
    %c0_1 = arith.constant 0 : index
    %0 = vector.load %arg1[%c0, %c0_0, %c0_1] : memref<8x36x64xf32, #tpu.memory_space<vmem>>, vector<1x36x64xf32>
    %1 = vector.shape_cast %0 : vector<1x36x64xf32> to vector<36x64xf32>
    %c0_2 = arith.constant 0 : index
    %c0_3 = arith.constant 0 : index
    %c0_4 = arith.constant 0 : index
    %2 = vector.load %arg2[%c0_2, %c0_3, %c0_4] : memref<8x64x192xf32, #tpu.memory_space<vmem>>, vector<1x64x192xf32>
    %3 = vector.shape_cast %2 : vector<1x64x192xf32> to vector<64x192xf32>
    %c0_5 = arith.constant 0 : index
    %c0_6 = arith.constant 0 : index
    %c0_7 = arith.constant 0 : index
    %4 = vector.load %arg3[%c0_5, %c0_6, %c0_7] : memref<8x36x256xf32, #tpu.memory_space<vmem>>, vector<1x36x256xf32>
    %5 = vector.shape_cast %4 : vector<1x36x256xf32> to vector<36x256xf32>
    %c0_8 = arith.constant 0 : index
    %c0_9 = arith.constant 0 : index
    %c0_10 = arith.constant 0 : index
    %6 = vector.load %arg4[%c0_8, %c0_9, %c0_10] : memref<8x192x128xf32, #tpu.memory_space<vmem>>, vector<1x192x128xf32>
    %7 = vector.shape_cast %6 : vector<1x192x128xf32> to vector<192x128xf32>
    %cst = arith.constant dense<0.000000e+00> : vector<36x192xf32>
    %8 = tpu.matmul %1, %3, %cst {dimension_numbers = #tpu.dot_dimension_numbers<[1], [0], [0], [1], [0, 0, 1, 1], [], []>} : vector<36x64xf32>, vector<64x192xf32>, vector<36x192xf32> -> vector<36x192xf32>
    %cst_11 = arith.constant dense<0xFF800000> : vector<36xf32>
    %9 = vector.multi_reduction <maximumf>, %8, %cst_11 [1] : vector<36x192xf32> to vector<36xf32>
    %10 = vector.shape_cast %9 : vector<36xf32> to vector<36x1xf32>
    %cst_12 = arith.constant dense<0xFF800000> : vector<1xf32>
    %11 = vector.multi_reduction <maximumf>, %10, %cst_12 [0] : vector<36x1xf32> to vector<1xf32>
    %12 = vector.shape_cast %11 : vector<1xf32> to vector<1x1xf32>
    %13 = vector.broadcast %12 : vector<1x1xf32> to vector<36x192xf32>
    %14 = arith.subf %8, %13 : vector<36x192xf32>
    %15 = math.exp %14 : vector<36x192xf32>
    %cst_13 = arith.constant dense<0.000000e+00> : vector<36xf32>
    %16 = vector.multi_reduction <add>, %15, %cst_13 [1] : vector<36x192xf32> to vector<36xf32>
    %17 = vector.shape_cast %16 : vector<36xf32> to vector<36x1xf32>
    %18 = tpu.reciprocal %17 {approx = true} : vector<36x1xf32> -> vector<36x1xf32>
    %cst_14 = arith.constant dense<0.000000e+00> : vector<192xf32>
    %19 = vector.multi_reduction <add>, %15, %cst_14 [0] : vector<36x192xf32> to vector<192xf32>
    %20 = vector.shape_cast %19 : vector<192xf32> to vector<1x192xf32>
    %21 = tpu.reciprocal %20 {approx = true} : vector<1x192xf32> -> vector<1x192xf32>
    %cst_15 = arith.constant dense<0.000000e+00> : vector<36x128xf32>
    %22 = tpu.matmul %15, %7, %cst_15 {dimension_numbers = #tpu.dot_dimension_numbers<[1], [0], [0], [1], [0, 0, 1, 1], [], []>} : vector<36x192xf32>, vector<192x128xf32>, vector<36x128xf32> -> vector<36x128xf32>
    %23 = vector.broadcast %18 : vector<36x1xf32> to vector<36x128xf32>
    %24 = arith.mulf %22, %23 : vector<36x128xf32>
    %c0_16 = arith.constant 0 : index
    %c0_17 = arith.constant 0 : index
    %c0_18 = arith.constant 0 : index
    %25 = vector.load %arg5[%c0_16, %c0_17, %c0_18] : memref<8x36x128xf32, #tpu.memory_space<vmem>>, vector<1x36x128xf32>
    %26 = vector.shape_cast %25 : vector<1x36x128xf32> to vector<36x128xf32>
    %27 = vector.shape_cast %24 : vector<36x128xf32> to vector<1x36x128xf32>
    tpu.vector_store %arg5[%c0_16, %c0_17, %c0_18], %27 {strides = array<i32>} : memref<8x36x128xf32, #tpu.memory_space<vmem>>, vector<1x36x128xf32>,
    %28 = vector.broadcast %21 : vector<1x192xf32> to vector<36x192xf32>
    %29 = arith.mulf %15, %28 : vector<36x192xf32>
    %cst_19 = arith.constant dense<0.000000e+00> : vector<192x256xf32>
    %30 = tpu.matmul %29, %5, %cst_19 {dimension_numbers = #tpu.dot_dimension_numbers<[0], [0], [1], [1], [0, 1, 1, 1], [], []>} : vector<36x192xf32>, vector<36x256xf32>, vector<192x256xf32> -> vector<192x256xf32>
    %c0_20 = arith.constant 0 : index
    %c0_21 = arith.constant 0 : index
    %c0_22 = arith.constant 0 : index
    %31 = vector.load %arg6[%c0_20, %c0_21, %c0_22] : memref<8x192x256xf32, #tpu.memory_space<vmem>>, vector<1x192x256xf32>
    %32 = vector.shape_cast %31 : vector<1x192x256xf32> to vector<192x256xf32>
    %33 = vector.shape_cast %30 : vector<192x256xf32> to vector<1x192x256xf32>
    tpu.vector_store %arg6[%c0_20, %c0_21, %c0_22], %33 {strides = array<i32>} : memref<8x192x256xf32, #tpu.memory_space<vmem>>, vector<1x192x256xf32>,
    %c1 = arith.constant 1 : index
    %c0_23 = arith.constant 0 : index
    %c0_24 = arith.constant 0 : index
    %34 = vector.load %arg1[%c1, %c0_23, %c0_24] : memref<8x36x64xf32, #tpu.memory_space<vmem>>, vector<1x36x64xf32>
    %35 = vector.shape_cast %34 : vector<1x36x64xf32> to vector<36x64xf32>
    %c1_25 = arith.constant 1 : index
    %c0_26 = arith.constant 0 : index
    %c0_27 = arith.constant 0 : index
    %36 = vector.load %arg2[%c1_25, %c0_26, %c0_27] : memref<8x64x192xf32, #tpu.memory_space<vmem>>, vector<1x64x192xf32>
    %37 = vector.shape_cast %36 : vector<1x64x192xf32> to vector<64x192xf32>
    %c1_28 = arith.constant 1 : index
    %c0_29 = arith.constant 0 : index
    %c0_30 = arith.constant 0 : index
    %38 = vector.load %arg3[%c1_28, %c0_29, %c0_30] : memref<8x36x256xf32, #tpu.memory_space<vmem>>, vector<1x36x256xf32>
    %39 = vector.shape_cast %38 : vector<1x36x256xf32> to vector<36x256xf32>
    %c1_31 = arith.constant 1 : index
    %c0_32 = arith.constant 0 : index
    %c0_33 = arith.constant 0 : index
    %40 = vector.load %arg4[%c1_31, %c0_32, %c0_33] : memref<8x192x128xf32, #tpu.memory_space<vmem>>, vector<1x192x128xf32>
    %41 = vector.shape_cast %40 : vector<1x192x128xf32> to vector<192x128xf32>
    %cst_34 = arith.constant dense<0.000000e+00> : vector<36x192xf32>
    %42 = tpu.matmul %35, %37, %cst_34 {dimension_numbers = #tpu.dot_dimension_numbers<[1], [0], [0], [1], [0, 0, 1, 1], [], []>} : vector<36x64xf32>, vector<64x192xf32>, vector<36x192xf32> -> vector<36x192xf32>
    %cst_35 = arith.constant dense<0xFF800000> : vector<36xf32>
    %43 = vector.multi_reduction <maximumf>, %42, %cst_35 [1] : vector<36x192xf32> to vector<36xf32>
    %44 = vector.shape_cast %43 : vector<36xf32> to vector<36x1xf32>
    %cst_36 = arith.constant dense<0xFF800000> : vector<1xf32>
    %45 = vector.multi_reduction <maximumf>, %44, %cst_36 [0] : vector<36x1xf32> to vector<1xf32>
    %46 = vector.shape_cast %45 : vector<1xf32> to vector<1x1xf32>
    %47 = vector.broadcast %46 : vector<1x1xf32> to vector<36x192xf32>
    %48 = arith.subf %42, %47 : vector<36x192xf32>
    %49 = math.exp %48 : vector<36x192xf32>
    %cst_37 = arith.constant dense<0.000000e+00> : vector<36xf32>
    %50 = vector.multi_reduction <add>, %49, %cst_37 [1] : vector<36x192xf32> to vector<36xf32>
    %51 = vector.shape_cast %50 : vector<36xf32> to vector<36x1xf32>
    %52 = tpu.reciprocal %51 {approx = true} : vector<36x1xf32> -> vector<36x1xf32>
    %cst_38 = arith.constant dense<0.000000e+00> : vector<192xf32>
    %53 = vector.multi_reduction <add>, %49, %cst_38 [0] : vector<36x192xf32> to vector<192xf32>
    %54 = vector.shape_cast %53 : vector<192xf32> to vector<1x192xf32>
    %55 = tpu.reciprocal %54 {approx = true} : vector<1x192xf32> -> vector<1x192xf32>
    %cst_39 = arith.constant dense<0.000000e+00> : vector<36x128xf32>
    %56 = tpu.matmul %49, %41, %cst_39 {dimension_numbers = #tpu.dot_dimension_numbers<[1], [0], [0], [1], [0, 0, 1, 1], [], []>} : vector<36x192xf32>, vector<192x128xf32>, vector<36x128xf32> -> vector<36x128xf32>
    %57 = vector.broadcast %52 : vector<36x1xf32> to vector<36x128xf32>
    %58 = arith.mulf %56, %57 : vector<36x128xf32>
    %c1_40 = arith.constant 1 : index
    %c0_41 = arith.constant 0 : index
    %c0_42 = arith.constant 0 : index
    %59 = vector.load %arg5[%c1_40, %c0_41, %c0_42] : memref<8x36x128xf32, #tpu.memory_space<vmem>>, vector<1x36x128xf32>
    %60 = vector.shape_cast %59 : vector<1x36x128xf32> to vector<36x128xf32>
    %61 = vector.shape_cast %58 : vector<36x128xf32> to vector<1x36x128xf32>
    tpu.vector_store %arg5[%c1_40, %c0_41, %c0_42], %61 {strides = array<i32>} : memref<8x36x128xf32, #tpu.memory_space<vmem>>, vector<1x36x128xf32>,
    %62 = vector.broadcast %55 : vector<1x192xf32> to vector<36x192xf32>
    %63 = arith.mulf %49, %62 : vector<36x192xf32>
    %cst_43 = arith.constant dense<0.000000e+00> : vector<192x256xf32>
    %64 = tpu.matmul %63, %39, %cst_43 {dimension_numbers = #tpu.dot_dimension_numbers<[0], [0], [1], [1], [0, 1, 1, 1], [], []>} : vector<36x192xf32>, vector<36x256xf32>, vector<192x256xf32> -> vector<192x256xf32>
    %c1_44 = arith.constant 1 : index
    %c0_45 = arith.constant 0 : index
    %c0_46 = arith.constant 0 : index
    %65 = vector.load %arg6[%c1_44, %c0_45, %c0_46] : memref<8x192x256xf32, #tpu.memory_space<vmem>>, vector<1x192x256xf32>
    %66 = vector.shape_cast %65 : vector<1x192x256xf32> to vector<192x256xf32>
    %67 = vector.shape_cast %64 : vector<192x256xf32> to vector<1x192x256xf32>
    tpu.vector_store %arg6[%c1_44, %c0_45, %c0_46], %67 {strides = array<i32>} : memref<8x192x256xf32, #tpu.memory_space<vmem>>, vector<1x192x256xf32>,
    %c2 = arith.constant 2 : index
    %c0_47 = arith.constant 0 : index
    %c0_48 = arith.constant 0 : index
    %68 = vector.load %arg1[%c2, %c0_47, %c0_48] : memref<8x36x64xf32, #tpu.memory_space<vmem>>, vector<1x36x64xf32>
    %69 = vector.shape_cast %68 : vector<1x36x64xf32> to vector<36x64xf32>
    %c2_49 = arith.constant 2 : index
    %c0_50 = arith.constant 0 : index
    %c0_51 = arith.constant 0 : index
    %70 = vector.load %arg2[%c2_49, %c0_50, %c0_51] : memref<8x64x192xf32, #tpu.memory_space<vmem>>, vector<1x64x192xf32>
    %71 = vector.shape_cast %70 : vector<1x64x192xf32> to vector<64x192xf32>
    %c2_52 = arith.constant 2 : index
    %c0_53 = arith.constant 0 : index
    %c0_54 = arith.constant 0 : index
    %72 = vector.load %arg3[%c2_52, %c0_53, %c0_54] : memref<8x36x256xf32, #tpu.memory_space<vmem>>, vector<1x36x256xf32>
    %73 = vector.shape_cast %72 : vector<1x36x256xf32> to vector<36x256xf32>
    %c2_55 = arith.constant 2 : index
    %c0_56 = arith.constant 0 : index
    %c0_57 = arith.constant 0 : index
    %74 = vector.load %arg4[%c2_55, %c0_56, %c0_57] : memref<8x192x128xf32, #tpu.memory_space<vmem>>, vector<1x192x128xf32>
    %75 = vector.shape_cast %74 : vector<1x192x128xf32> to vector<192x128xf32>
    %cst_58 = arith.constant dense<0.000000e+00> : vector<36x192xf32>
    %76 = tpu.matmul %69, %71, %cst_58 {dimension_numbers = #tpu.dot_dimension_numbers<[1], [0], [0], [1], [0, 0, 1, 1], [], []>} : vector<36x64xf32>, vector<64x192xf32>, vector<36x192xf32> -> vector<36x192xf32>
    %cst_59 = arith.constant dense<0xFF800000> : vector<36xf32>
    %77 = vector.multi_reduction <maximumf>, %76, %cst_59 [1] : vector<36x192xf32> to vector<36xf32>
    %78 = vector.shape_cast %77 : vector<36xf32> to vector<36x1xf32>
    %cst_60 = arith.constant dense<0xFF800000> : vector<1xf32>
    %79 = vector.multi_reduction <maximumf>, %78, %cst_60 [0] : vector<36x1xf32> to vector<1xf32>
    %80 = vector.shape_cast %79 : vector<1xf32> to vector<1x1xf32>
    %81 = vector.broadcast %80 : vector<1x1xf32> to vector<36x192xf32>
    %82 = arith.subf %76, %81 : vector<36x192xf32>
    %83 = math.exp %82 : vector<36x192xf32>
    %cst_61 = arith.constant dense<0.000000e+00> : vector<36xf32>
    %84 = vector.multi_reduction <add>, %83, %cst_61 [1] : vector<36x192xf32> to vector<36xf32>
    %85 = vector.shape_cast %84 : vector<36xf32> to vector<36x1xf32>
    %86 = tpu.reciprocal %85 {approx = true} : vector<36x1xf32> -> vector<36x1xf32>
    %cst_62 = arith.constant dense<0.000000e+00> : vector<192xf32>
    %87 = vector.multi_reduction <add>, %83, %cst_62 [0] : vector<36x192xf32> to vector<192xf32>
    %88 = vector.shape_cast %87 : vector<192xf32> to vector<1x192xf32>
    %89 = tpu.reciprocal %88 {approx = true} : vector<1x192xf32> -> vector<1x192xf32>
    %cst_63 = arith.constant dense<0.000000e+00> : vector<36x128xf32>
    %90 = tpu.matmul %83, %75, %cst_63 {dimension_numbers = #tpu.dot_dimension_numbers<[1], [0], [0], [1], [0, 0, 1, 1], [], []>} : vector<36x192xf32>, vector<192x128xf32>, vector<36x128xf32> -> vector<36x128xf32>
    %91 = vector.broadcast %86 : vector<36x1xf32> to vector<36x128xf32>
    %92 = arith.mulf %90, %91 : vector<36x128xf32>
    %c2_64 = arith.constant 2 : index
    %c0_65 = arith.constant 0 : index
    %c0_66 = arith.constant 0 : index
    %93 = vector.load %arg5[%c2_64, %c0_65, %c0_66] : memref<8x36x128xf32, #tpu.memory_space<vmem>>, vector<1x36x128xf32>
    %94 = vector.shape_cast %93 : vector<1x36x128xf32> to vector<36x128xf32>
    %95 = vector.shape_cast %92 : vector<36x128xf32> to vector<1x36x128xf32>
    tpu.vector_store %arg5[%c2_64, %c0_65, %c0_66], %95 {strides = array<i32>} : memref<8x36x128xf32, #tpu.memory_space<vmem>>, vector<1x36x128xf32>,
    %96 = vector.broadcast %89 : vector<1x192xf32> to vector<36x192xf32>
    %97 = arith.mulf %83, %96 : vector<36x192xf32>
    %cst_67 = arith.constant dense<0.000000e+00> : vector<192x256xf32>
    %98 = tpu.matmul %97, %73, %cst_67 {dimension_numbers = #tpu.dot_dimension_numbers<[0], [0], [1], [1], [0, 1, 1, 1], [], []>} : vector<36x192xf32>, vector<36x256xf32>, vector<192x256xf32> -> vector<192x256xf32>
    %c2_68 = arith.constant 2 : index
    %c0_69 = arith.constant 0 : index
    %c0_70 = arith.constant 0 : index
    %99 = vector.load %arg6[%c2_68, %c0_69, %c0_70] : memref<8x192x256xf32, #tpu.memory_space<vmem>>, vector<1x192x256xf32>
    %100 = vector.shape_cast %99 : vector<1x192x256xf32> to vector<192x256xf32>
    %101 = vector.shape_cast %98 : vector<192x256xf32> to vector<1x192x256xf32>
    tpu.vector_store %arg6[%c2_68, %c0_69, %c0_70], %101 {strides = array<i32>} : memref<8x192x256xf32, #tpu.memory_space<vmem>>, vector<1x192x256xf32>,
    %c3 = arith.constant 3 : index
    %c0_71 = arith.constant 0 : index
    %c0_72 = arith.constant 0 : index
    %102 = vector.load %arg1[%c3, %c0_71, %c0_72] : memref<8x36x64xf32, #tpu.memory_space<vmem>>, vector<1x36x64xf32>
    %103 = vector.shape_cast %102 : vector<1x36x64xf32> to vector<36x64xf32>
    %c3_73 = arith.constant 3 : index
    %c0_74 = arith.constant 0 : index
    %c0_75 = arith.constant 0 : index
    %104 = vector.load %arg2[%c3_73, %c0_74, %c0_75] : memref<8x64x192xf32, #tpu.memory_space<vmem>>, vector<1x64x192xf32>
    %105 = vector.shape_cast %104 : vector<1x64x192xf32> to vector<64x192xf32>
    %c3_76 = arith.constant 3 : index
    %c0_77 = arith.constant 0 : index
    %c0_78 = arith.constant 0 : index
    %106 = vector.load %arg3[%c3_76, %c0_77, %c0_78] : memref<8x36x256xf32, #tpu.memory_space<vmem>>, vector<1x36x256xf32>
    %107 = vector.shape_cast %106 : vector<1x36x256xf32> to vector<36x256xf32>
    %c3_79 = arith.constant 3 : index
    %c0_80 = arith.constant 0 : index
    %c0_81 = arith.constant 0 : index
    %108 = vector.load %arg4[%c3_79, %c0_80, %c0_81] : memref<8x192x128xf32, #tpu.memory_space<vmem>>, vector<1x192x128xf32>
    %109 = vector.shape_cast %108 : vector<1x192x128xf32> to vector<192x128xf32>
    %cst_82 = arith.constant dense<0.000000e+00> : vector<36x192xf32>
    %110 = tpu.matmul %103, %105, %cst_82 {dimension_numbers = #tpu.dot_dimension_numbers<[1], [0], [0], [1], [0, 0, 1, 1], [], []>} : vector<36x64xf32>, vector<64x192xf32>, vector<36x192xf32> -> vector<36x192xf32>
    %cst_83 = arith.constant dense<0xFF800000> : vector<36xf32>
    %111 = vector.multi_reduction <maximumf>, %110, %cst_83 [1] : vector<36x192xf32> to vector<36xf32>
    %112 = vector.shape_cast %111 : vector<36xf32> to vector<36x1xf32>
    %cst_84 = arith.constant dense<0xFF800000> : vector<1xf32>
    %113 = vector.multi_reduction <maximumf>, %112, %cst_84 [0] : vector<36x1xf32> to vector<1xf32>
    %114 = vector.shape_cast %113 : vector<1xf32> to vector<1x1xf32>
    %115 = vector.broadcast %114 : vector<1x1xf32> to vector<36x192xf32>
    %116 = arith.subf %110, %115 : vector<36x192xf32>
    %117 = math.exp %116 : vector<36x192xf32>
    %cst_85 = arith.constant dense<0.000000e+00> : vector<36xf32>
    %118 = vector.multi_reduction <add>, %117, %cst_85 [1] : vector<36x192xf32> to vector<36xf32>
    %119 = vector.shape_cast %118 : vector<36xf32> to vector<36x1xf32>
    %120 = tpu.reciprocal %119 {approx = true} : vector<36x1xf32> -> vector<36x1xf32>
    %cst_86 = arith.constant dense<0.000000e+00> : vector<192xf32>
    %121 = vector.multi_reduction <add>, %117, %cst_86 [0] : vector<36x192xf32> to vector<192xf32>
    %122 = vector.shape_cast %121 : vector<192xf32> to vector<1x192xf32>
    %123 = tpu.reciprocal %122 {approx = true} : vector<1x192xf32> -> vector<1x192xf32>
    %cst_87 = arith.constant dense<0.000000e+00> : vector<36x128xf32>
    %124 = tpu.matmul %117, %109, %cst_87 {dimension_numbers = #tpu.dot_dimension_numbers<[1], [0], [0], [1], [0, 0, 1, 1], [], []>} : vector<36x192xf32>, vector<192x128xf32>, vector<36x128xf32> -> vector<36x128xf32>
    %125 = vector.broadcast %120 : vector<36x1xf32> to vector<36x128xf32>
    %126 = arith.mulf %124, %125 : vector<36x128xf32>
    %c3_88 = arith.constant 3 : index
    %c0_89 = arith.constant 0 : index
    %c0_90 = arith.constant 0 : index
    %127 = vector.load %arg5[%c3_88, %c0_89, %c0_90] : memref<8x36x128xf32, #tpu.memory_space<vmem>>, vector<1x36x128xf32>
    %128 = vector.shape_cast %127 : vector<1x36x128xf32> to vector<36x128xf32>
    %129 = vector.shape_cast %126 : vector<36x128xf32> to vector<1x36x128xf32>
    tpu.vector_store %arg5[%c3_88, %c0_89, %c0_90], %129 {strides = array<i32>} : memref<8x36x128xf32, #tpu.memory_space<vmem>>, vector<1x36x128xf32>,
    %130 = vector.broadcast %123 : vector<1x192xf32> to vector<36x192xf32>
    %131 = arith.mulf %117, %130 : vector<36x192xf32>
    %cst_91 = arith.constant dense<0.000000e+00> : vector<192x256xf32>
    %132 = tpu.matmul %131, %107, %cst_91 {dimension_numbers = #tpu.dot_dimension_numbers<[0], [0], [1], [1], [0, 1, 1, 1], [], []>} : vector<36x192xf32>, vector<36x256xf32>, vector<192x256xf32> -> vector<192x256xf32>
    %c3_92 = arith.constant 3 : index
    %c0_93 = arith.constant 0 : index
    %c0_94 = arith.constant 0 : index
    %133 = vector.load %arg6[%c3_92, %c0_93, %c0_94] : memref<8x192x256xf32, #tpu.memory_space<vmem>>, vector<1x192x256xf32>
    %134 = vector.shape_cast %133 : vector<1x192x256xf32> to vector<192x256xf32>
    %135 = vector.shape_cast %132 : vector<192x256xf32> to vector<1x192x256xf32>
    tpu.vector_store %arg6[%c3_92, %c0_93, %c0_94], %135 {strides = array<i32>} : memref<8x192x256xf32, #tpu.memory_space<vmem>>, vector<1x192x256xf32>,
    %c4 = arith.constant 4 : index
    %c0_95 = arith.constant 0 : index
    %c0_96 = arith.constant 0 : index
    %136 = vector.load %arg1[%c4, %c0_95, %c0_96] : memref<8x36x64xf32, #tpu.memory_space<vmem>>, vector<1x36x64xf32>
    %137 = vector.shape_cast %136 : vector<1x36x64xf32> to vector<36x64xf32>
    %c4_97 = arith.constant 4 : index
    %c0_98 = arith.constant 0 : index
    %c0_99 = arith.constant 0 : index
    %138 = vector.load %arg2[%c4_97, %c0_98, %c0_99] : memref<8x64x192xf32, #tpu.memory_space<vmem>>, vector<1x64x192xf32>
    %139 = vector.shape_cast %138 : vector<1x64x192xf32> to vector<64x192xf32>
    %c4_100 = arith.constant 4 : index
    %c0_101 = arith.constant 0 : index
    %c0_102 = arith.constant 0 : index
    %140 = vector.load %arg3[%c4_100, %c0_101, %c0_102] : memref<8x36x256xf32, #tpu.memory_space<vmem>>, vector<1x36x256xf32>
    %141 = vector.shape_cast %140 : vector<1x36x256xf32> to vector<36x256xf32>
    %c4_103 = arith.constant 4 : index
    %c0_104 = arith.constant 0 : index
    %c0_105 = arith.constant 0 : index
    %142 = vector.load %arg4[%c4_103, %c0_104, %c0_105] : memref<8x192x128xf32, #tpu.memory_space<vmem>>, vector<1x192x128xf32>
    %143 = vector.shape_cast %142 : vector<1x192x128xf32> to vector<192x128xf32>
    %cst_106 = arith.constant dense<0.000000e+00> : vector<36x192xf32>
    %144 = tpu.matmul %137, %139, %cst_106 {dimension_numbers = #tpu.dot_dimension_numbers<[1], [0], [0], [1], [0, 0, 1, 1], [], []>} : vector<36x64xf32>, vector<64x192xf32>, vector<36x192xf32> -> vector<36x192xf32>
    %cst_107 = arith.constant dense<0xFF800000> : vector<36xf32>
    %145 = vector.multi_reduction <maximumf>, %144, %cst_107 [1] : vector<36x192xf32> to vector<36xf32>
    %146 = vector.shape_cast %145 : vector<36xf32> to vector<36x1xf32>
    %cst_108 = arith.constant dense<0xFF800000> : vector<1xf32>
    %147 = vector.multi_reduction <maximumf>, %146, %cst_108 [0] : vector<36x1xf32> to vector<1xf32>
    %148 = vector.shape_cast %147 : vector<1xf32> to vector<1x1xf32>
    %149 = vector.broadcast %148 : vector<1x1xf32> to vector<36x192xf32>
    %150 = arith.subf %144, %149 : vector<36x192xf32>
    %151 = math.exp %150 : vector<36x192xf32>
    %cst_109 = arith.constant dense<0.000000e+00> : vector<36xf32>
    %152 = vector.multi_reduction <add>, %151, %cst_109 [1] : vector<36x192xf32> to vector<36xf32>
    %153 = vector.shape_cast %152 : vector<36xf32> to vector<36x1xf32>
    %154 = tpu.reciprocal %153 {approx = true} : vector<36x1xf32> -> vector<36x1xf32>
    %cst_110 = arith.constant dense<0.000000e+00> : vector<192xf32>
    %155 = vector.multi_reduction <add>, %151, %cst_110 [0] : vector<36x192xf32> to vector<192xf32>
    %156 = vector.shape_cast %155 : vector<192xf32> to vector<1x192xf32>
    %157 = tpu.reciprocal %156 {approx = true} : vector<1x192xf32> -> vector<1x192xf32>
    %cst_111 = arith.constant dense<0.000000e+00> : vector<36x128xf32>
    %158 = tpu.matmul %151, %143, %cst_111 {dimension_numbers = #tpu.dot_dimension_numbers<[1], [0], [0], [1], [0, 0, 1, 1], [], []>} : vector<36x192xf32>, vector<192x128xf32>, vector<36x128xf32> -> vector<36x128xf32>
    %159 = vector.broadcast %154 : vector<36x1xf32> to vector<36x128xf32>
    %160 = arith.mulf %158, %159 : vector<36x128xf32>
    %c4_112 = arith.constant 4 : index
    %c0_113 = arith.constant 0 : index
    %c0_114 = arith.constant 0 : index
    %161 = vector.load %arg5[%c4_112, %c0_113, %c0_114] : memref<8x36x128xf32, #tpu.memory_space<vmem>>, vector<1x36x128xf32>
    %162 = vector.shape_cast %161 : vector<1x36x128xf32> to vector<36x128xf32>
    %163 = vector.shape_cast %160 : vector<36x128xf32> to vector<1x36x128xf32>
    tpu.vector_store %arg5[%c4_112, %c0_113, %c0_114], %163 {strides = array<i32>} : memref<8x36x128xf32, #tpu.memory_space<vmem>>, vector<1x36x128xf32>,
    %164 = vector.broadcast %157 : vector<1x192xf32> to vector<36x192xf32>
    %165 = arith.mulf %151, %164 : vector<36x192xf32>
    %cst_115 = arith.constant dense<0.000000e+00> : vector<192x256xf32>
    %166 = tpu.matmul %165, %141, %cst_115 {dimension_numbers = #tpu.dot_dimension_numbers<[0], [0], [1], [1], [0, 1, 1, 1], [], []>} : vector<36x192xf32>, vector<36x256xf32>, vector<192x256xf32> -> vector<192x256xf32>
    %c4_116 = arith.constant 4 : index
    %c0_117 = arith.constant 0 : index
    %c0_118 = arith.constant 0 : index
    %167 = vector.load %arg6[%c4_116, %c0_117, %c0_118] : memref<8x192x256xf32, #tpu.memory_space<vmem>>, vector<1x192x256xf32>
    %168 = vector.shape_cast %167 : vector<1x192x256xf32> to vector<192x256xf32>
    %169 = vector.shape_cast %166 : vector<192x256xf32> to vector<1x192x256xf32>
    tpu.vector_store %arg6[%c4_116, %c0_117, %c0_118], %169 {strides = array<i32>} : memref<8x192x256xf32, #tpu.memory_space<vmem>>, vector<1x192x256xf32>,
    %c5 = arith.constant 5 : index
    %c0_119 = arith.constant 0 : index
    %c0_120 = arith.constant 0 : index
    %170 = vector.load %arg1[%c5, %c0_119, %c0_120] : memref<8x36x64xf32, #tpu.memory_space<vmem>>, vector<1x36x64xf32>
    %171 = vector.shape_cast %170 : vector<1x36x64xf32> to vector<36x64xf32>
    %c5_121 = arith.constant 5 : index
    %c0_122 = arith.constant 0 : index
    %c0_123 = arith.constant 0 : index
    %172 = vector.load %arg2[%c5_121, %c0_122, %c0_123] : memref<8x64x192xf32, #tpu.memory_space<vmem>>, vector<1x64x192xf32>
    %173 = vector.shape_cast %172 : vector<1x64x192xf32> to vector<64x192xf32>
    %c5_124 = arith.constant 5 : index
    %c0_125 = arith.constant 0 : index
    %c0_126 = arith.constant 0 : index
    %174 = vector.load %arg3[%c5_124, %c0_125, %c0_126] : memref<8x36x256xf32, #tpu.memory_space<vmem>>, vector<1x36x256xf32>
    %175 = vector.shape_cast %174 : vector<1x36x256xf32> to vector<36x256xf32>
    %c5_127 = arith.constant 5 : index
    %c0_128 = arith.constant 0 : index
    %c0_129 = arith.constant 0 : index
    %176 = vector.load %arg4[%c5_127, %c0_128, %c0_129] : memref<8x192x128xf32, #tpu.memory_space<vmem>>, vector<1x192x128xf32>
    %177 = vector.shape_cast %176 : vector<1x192x128xf32> to vector<192x128xf32>
    %cst_130 = arith.constant dense<0.000000e+00> : vector<36x192xf32>
    %178 = tpu.matmul %171, %173, %cst_130 {dimension_numbers = #tpu.dot_dimension_numbers<[1], [0], [0], [1], [0, 0, 1, 1], [], []>} : vector<36x64xf32>, vector<64x192xf32>, vector<36x192xf32> -> vector<36x192xf32>
    %cst_131 = arith.constant dense<0xFF800000> : vector<36xf32>
    %179 = vector.multi_reduction <maximumf>, %178, %cst_131 [1] : vector<36x192xf32> to vector<36xf32>
    %180 = vector.shape_cast %179 : vector<36xf32> to vector<36x1xf32>
    %cst_132 = arith.constant dense<0xFF800000> : vector<1xf32>
    %181 = vector.multi_reduction <maximumf>, %180, %cst_132 [0] : vector<36x1xf32> to vector<1xf32>
    %182 = vector.shape_cast %181 : vector<1xf32> to vector<1x1xf32>
    %183 = vector.broadcast %182 : vector<1x1xf32> to vector<36x192xf32>
    %184 = arith.subf %178, %183 : vector<36x192xf32>
    %185 = math.exp %184 : vector<36x192xf32>
    %cst_133 = arith.constant dense<0.000000e+00> : vector<36xf32>
    %186 = vector.multi_reduction <add>, %185, %cst_133 [1] : vector<36x192xf32> to vector<36xf32>
    %187 = vector.shape_cast %186 : vector<36xf32> to vector<36x1xf32>
    %188 = tpu.reciprocal %187 {approx = true} : vector<36x1xf32> -> vector<36x1xf32>
    %cst_134 = arith.constant dense<0.000000e+00> : vector<192xf32>
    %189 = vector.multi_reduction <add>, %185, %cst_134 [0] : vector<36x192xf32> to vector<192xf32>
    %190 = vector.shape_cast %189 : vector<192xf32> to vector<1x192xf32>
    %191 = tpu.reciprocal %190 {approx = true} : vector<1x192xf32> -> vector<1x192xf32>
    %cst_135 = arith.constant dense<0.000000e+00> : vector<36x128xf32>
    %192 = tpu.matmul %185, %177, %cst_135 {dimension_numbers = #tpu.dot_dimension_numbers<[1], [0], [0], [1], [0, 0, 1, 1], [], []>} : vector<36x192xf32>, vector<192x128xf32>, vector<36x128xf32> -> vector<36x128xf32>
    %193 = vector.broadcast %188 : vector<36x1xf32> to vector<36x128xf32>
    %194 = arith.mulf %192, %193 : vector<36x128xf32>
    %c5_136 = arith.constant 5 : index
    %c0_137 = arith.constant 0 : index
    %c0_138 = arith.constant 0 : index
    %195 = vector.load %arg5[%c5_136, %c0_137, %c0_138] : memref<8x36x128xf32, #tpu.memory_space<vmem>>, vector<1x36x128xf32>
    %196 = vector.shape_cast %195 : vector<1x36x128xf32> to vector<36x128xf32>
    %197 = vector.shape_cast %194 : vector<36x128xf32> to vector<1x36x128xf32>
    tpu.vector_store %arg5[%c5_136, %c0_137, %c0_138], %197 {strides = array<i32>} : memref<8x36x128xf32, #tpu.memory_space<vmem>>, vector<1x36x128xf32>,
    %198 = vector.broadcast %191 : vector<1x192xf32> to vector<36x192xf32>
    %199 = arith.mulf %185, %198 : vector<36x192xf32>
    %cst_139 = arith.constant dense<0.000000e+00> : vector<192x256xf32>
    %200 = tpu.matmul %199, %175, %cst_139 {dimension_numbers = #tpu.dot_dimension_numbers<[0], [0], [1], [1], [0, 1, 1, 1], [], []>} : vector<36x192xf32>, vector<36x256xf32>, vector<192x256xf32> -> vector<192x256xf32>
    %c5_140 = arith.constant 5 : index
    %c0_141 = arith.constant 0 : index
    %c0_142 = arith.constant 0 : index
    %201 = vector.load %arg6[%c5_140, %c0_141, %c0_142] : memref<8x192x256xf32, #tpu.memory_space<vmem>>, vector<1x192x256xf32>
    %202 = vector.shape_cast %201 : vector<1x192x256xf32> to vector<192x256xf32>
    %203 = vector.shape_cast %200 : vector<192x256xf32> to vector<1x192x256xf32>
    tpu.vector_store %arg6[%c5_140, %c0_141, %c0_142], %203 {strides = array<i32>} : memref<8x192x256xf32, #tpu.memory_space<vmem>>, vector<1x192x256xf32>,
    %c6 = arith.constant 6 : index
    %c0_143 = arith.constant 0 : index
    %c0_144 = arith.constant 0 : index
    %204 = vector.load %arg1[%c6, %c0_143, %c0_144] : memref<8x36x64xf32, #tpu.memory_space<vmem>>, vector<1x36x64xf32>
    %205 = vector.shape_cast %204 : vector<1x36x64xf32> to vector<36x64xf32>
    %c6_145 = arith.constant 6 : index
    %c0_146 = arith.constant 0 : index
    %c0_147 = arith.constant 0 : index
    %206 = vector.load %arg2[%c6_145, %c0_146, %c0_147] : memref<8x64x192xf32, #tpu.memory_space<vmem>>, vector<1x64x192xf32>
    %207 = vector.shape_cast %206 : vector<1x64x192xf32> to vector<64x192xf32>
    %c6_148 = arith.constant 6 : index
    %c0_149 = arith.constant 0 : index
    %c0_150 = arith.constant 0 : index
    %208 = vector.load %arg3[%c6_148, %c0_149, %c0_150] : memref<8x36x256xf32, #tpu.memory_space<vmem>>, vector<1x36x256xf32>
    %209 = vector.shape_cast %208 : vector<1x36x256xf32> to vector<36x256xf32>
    %c6_151 = arith.constant 6 : index
    %c0_152 = arith.constant 0 : index
    %c0_153 = arith.constant 0 : index
    %210 = vector.load %arg4[%c6_151, %c0_152, %c0_153] : memref<8x192x128xf32, #tpu.memory_space<vmem>>, vector<1x192x128xf32>
    %211 = vector.shape_cast %210 : vector<1x192x128xf32> to vector<192x128xf32>
    %cst_154 = arith.constant dense<0.000000e+00> : vector<36x192xf32>
    %212 = tpu.matmul %205, %207, %cst_154 {dimension_numbers = #tpu.dot_dimension_numbers<[1], [0], [0], [1], [0, 0, 1, 1], [], []>} : vector<36x64xf32>, vector<64x192xf32>, vector<36x192xf32> -> vector<36x192xf32>
    %cst_155 = arith.constant dense<0xFF800000> : vector<36xf32>
    %213 = vector.multi_reduction <maximumf>, %212, %cst_155 [1] : vector<36x192xf32> to vector<36xf32>
    %214 = vector.shape_cast %213 : vector<36xf32> to vector<36x1xf32>
    %cst_156 = arith.constant dense<0xFF800000> : vector<1xf32>
    %215 = vector.multi_reduction <maximumf>, %214, %cst_156 [0] : vector<36x1xf32> to vector<1xf32>
    %216 = vector.shape_cast %215 : vector<1xf32> to vector<1x1xf32>
    %217 = vector.broadcast %216 : vector<1x1xf32> to vector<36x192xf32>
    %218 = arith.subf %212, %217 : vector<36x192xf32>
    %219 = math.exp %218 : vector<36x192xf32>
    %cst_157 = arith.constant dense<0.000000e+00> : vector<36xf32>
    %220 = vector.multi_reduction <add>, %219, %cst_157 [1] : vector<36x192xf32> to vector<36xf32>
    %221 = vector.shape_cast %220 : vector<36xf32> to vector<36x1xf32>
    %222 = tpu.reciprocal %221 {approx = true} : vector<36x1xf32> -> vector<36x1xf32>
    %cst_158 = arith.constant dense<0.000000e+00> : vector<192xf32>
    %223 = vector.multi_reduction <add>, %219, %cst_158 [0] : vector<36x192xf32> to vector<192xf32>
    %224 = vector.shape_cast %223 : vector<192xf32> to vector<1x192xf32>
    %225 = tpu.reciprocal %224 {approx = true} : vector<1x192xf32> -> vector<1x192xf32>
    %cst_159 = arith.constant dense<0.000000e+00> : vector<36x128xf32>
    %226 = tpu.matmul %219, %211, %cst_159 {dimension_numbers = #tpu.dot_dimension_numbers<[1], [0], [0], [1], [0, 0, 1, 1], [], []>} : vector<36x192xf32>, vector<192x128xf32>, vector<36x128xf32> -> vector<36x128xf32>
    %227 = vector.broadcast %222 : vector<36x1xf32> to vector<36x128xf32>
    %228 = arith.mulf %226, %227 : vector<36x128xf32>
    %c6_160 = arith.constant 6 : index
    %c0_161 = arith.constant 0 : index
    %c0_162 = arith.constant 0 : index
    %229 = vector.load %arg5[%c6_160, %c0_161, %c0_162] : memref<8x36x128xf32, #tpu.memory_space<vmem>>, vector<1x36x128xf32>
    %230 = vector.shape_cast %229 : vector<1x36x128xf32> to vector<36x128xf32>
    %231 = vector.shape_cast %228 : vector<36x128xf32> to vector<1x36x128xf32>
    tpu.vector_store %arg5[%c6_160, %c0_161, %c0_162], %231 {strides = array<i32>} : memref<8x36x128xf32, #tpu.memory_space<vmem>>, vector<1x36x128xf32>,
    %232 = vector.broadcast %225 : vector<1x192xf32> to vector<36x192xf32>
    %233 = arith.mulf %219, %232 : vector<36x192xf32>
    %cst_163 = arith.constant dense<0.000000e+00> : vector<192x256xf32>
    %234 = tpu.matmul %233, %209, %cst_163 {dimension_numbers = #tpu.dot_dimension_numbers<[0], [0], [1], [1], [0, 1, 1, 1], [], []>} : vector<36x192xf32>, vector<36x256xf32>, vector<192x256xf32> -> vector<192x256xf32>
    %c6_164 = arith.constant 6 : index
    %c0_165 = arith.constant 0 : index
    %c0_166 = arith.constant 0 : index
    %235 = vector.load %arg6[%c6_164, %c0_165, %c0_166] : memref<8x192x256xf32, #tpu.memory_space<vmem>>, vector<1x192x256xf32>
    %236 = vector.shape_cast %235 : vector<1x192x256xf32> to vector<192x256xf32>
    %237 = vector.shape_cast %234 : vector<192x256xf32> to vector<1x192x256xf32>
    tpu.vector_store %arg6[%c6_164, %c0_165, %c0_166], %237 {strides = array<i32>} : memref<8x192x256xf32, #tpu.memory_space<vmem>>, vector<1x192x256xf32>,
    %c7 = arith.constant 7 : index
    %c0_167 = arith.constant 0 : index
    %c0_168 = arith.constant 0 : index
    %238 = vector.load %arg1[%c7, %c0_167, %c0_168] : memref<8x36x64xf32, #tpu.memory_space<vmem>>, vector<1x36x64xf32>
    %239 = vector.shape_cast %238 : vector<1x36x64xf32> to vector<36x64xf32>
    %c7_169 = arith.constant 7 : index
    %c0_170 = arith.constant 0 : index
    %c0_171 = arith.constant 0 : index
    %240 = vector.load %arg2[%c7_169, %c0_170, %c0_171] : memref<8x64x192xf32, #tpu.memory_space<vmem>>, vector<1x64x192xf32>
    %241 = vector.shape_cast %240 : vector<1x64x192xf32> to vector<64x192xf32>
    %c7_172 = arith.constant 7 : index
    %c0_173 = arith.constant 0 : index
    %c0_174 = arith.constant 0 : index
    %242 = vector.load %arg3[%c7_172, %c0_173, %c0_174] : memref<8x36x256xf32, #tpu.memory_space<vmem>>, vector<1x36x256xf32>
    %243 = vector.shape_cast %242 : vector<1x36x256xf32> to vector<36x256xf32>
    %c7_175 = arith.constant 7 : index
    %c0_176 = arith.constant 0 : index
    %c0_177 = arith.constant 0 : index
    %244 = vector.load %arg4[%c7_175, %c0_176, %c0_177] : memref<8x192x128xf32, #tpu.memory_space<vmem>>, vector<1x192x128xf32>
    %245 = vector.shape_cast %244 : vector<1x192x128xf32> to vector<192x128xf32>
    %cst_178 = arith.constant dense<0.000000e+00> : vector<36x192xf32>
    %246 = tpu.matmul %239, %241, %cst_178 {dimension_numbers = #tpu.dot_dimension_numbers<[1], [0], [0], [1], [0, 0, 1, 1], [], []>} : vector<36x64xf32>, vector<64x192xf32>, vector<36x192xf32> -> vector<36x192xf32>
    %cst_179 = arith.constant dense<0xFF800000> : vector<36xf32>
    %247 = vector.multi_reduction <maximumf>, %246, %cst_179 [1] : vector<36x192xf32> to vector<36xf32>
    %248 = vector.shape_cast %247 : vector<36xf32> to vector<36x1xf32>
    %cst_180 = arith.constant dense<0xFF800000> : vector<1xf32>
    %249 = vector.multi_reduction <maximumf>, %248, %cst_180 [0] : vector<36x1xf32> to vector<1xf32>
    %250 = vector.shape_cast %249 : vector<1xf32> to vector<1x1xf32>
    %251 = vector.broadcast %250 : vector<1x1xf32> to vector<36x192xf32>
    %252 = arith.subf %246, %251 : vector<36x192xf32>
    %253 = math.exp %252 : vector<36x192xf32>
    %cst_181 = arith.constant dense<0.000000e+00> : vector<36xf32>
    %254 = vector.multi_reduction <add>, %253, %cst_181 [1] : vector<36x192xf32> to vector<36xf32>
    %255 = vector.shape_cast %254 : vector<36xf32> to vector<36x1xf32>
    %256 = tpu.reciprocal %255 {approx = true} : vector<36x1xf32> -> vector<36x1xf32>
    %cst_182 = arith.constant dense<0.000000e+00> : vector<192xf32>
    %257 = vector.multi_reduction <add>, %253, %cst_182 [0] : vector<36x192xf32> to vector<192xf32>
    %258 = vector.shape_cast %257 : vector<192xf32> to vector<1x192xf32>
    %259 = tpu.reciprocal %258 {approx = true} : vector<1x192xf32> -> vector<1x192xf32>
    %cst_183 = arith.constant dense<0.000000e+00> : vector<36x128xf32>
    %260 = tpu.matmul %253, %245, %cst_183 {dimension_numbers = #tpu.dot_dimension_numbers<[1], [0], [0], [1], [0, 0, 1, 1], [], []>} : vector<36x192xf32>, vector<192x128xf32>, vector<36x128xf32> -> vector<36x128xf32>
    %261 = vector.broadcast %256 : vector<36x1xf32> to vector<36x128xf32>
    %262 = arith.mulf %260, %261 : vector<36x128xf32>
    %c7_184 = arith.constant 7 : index
    %c0_185 = arith.constant 0 : index
    %c0_186 = arith.constant 0 : index
    %263 = vector.load %arg5[%c7_184, %c0_185, %c0_186] : memref<8x36x128xf32, #tpu.memory_space<vmem>>, vector<1x36x128xf32>
    %264 = vector.shape_cast %263 : vector<1x36x128xf32> to vector<36x128xf32>
    %265 = vector.shape_cast %262 : vector<36x128xf32> to vector<1x36x128xf32>
    tpu.vector_store %arg5[%c7_184, %c0_185, %c0_186], %265 {strides = array<i32>} : memref<8x36x128xf32, #tpu.memory_space<vmem>>, vector<1x36x128xf32>,
    %266 = vector.broadcast %259 : vector<1x192xf32> to vector<36x192xf32>
    %267 = arith.mulf %253, %266 : vector<36x192xf32>
    %cst_187 = arith.constant dense<0.000000e+00> : vector<192x256xf32>
    %268 = tpu.matmul %267, %243, %cst_187 {dimension_numbers = #tpu.dot_dimension_numbers<[0], [0], [1], [1], [0, 1, 1, 1], [], []>} : vector<36x192xf32>, vector<36x256xf32>, vector<192x256xf32> -> vector<192x256xf32>
    %c7_188 = arith.constant 7 : index
    %c0_189 = arith.constant 0 : index
    %c0_190 = arith.constant 0 : index
    %269 = vector.load %arg6[%c7_188, %c0_189, %c0_190] : memref<8x192x256xf32, #tpu.memory_space<vmem>>, vector<1x192x256xf32>
    %270 = vector.shape_cast %269 : vector<1x192x256xf32> to vector<192x256xf32>
    %271 = vector.shape_cast %268 : vector<192x256xf32> to vector<1x192x256xf32>
    tpu.vector_store %arg6[%c7_188, %c0_189, %c0_190], %271 {strides = array<i32>} : memref<8x192x256xf32, #tpu.memory_space<vmem>>, vector<1x192x256xf32>,
    return
  }
  func.func @transform_0(%arg0: i32) -> (i32, i32, i32) {
    %c0_i32 = arith.constant 0 : i32
    %c0_i32_0 = arith.constant 0 : i32
    %c0_i32_1 = arith.constant 0 : i32
    return %arg0, %c0_i32, %c0_i32_0 : i32, i32, i32
  }
  func.func @transform_1(%arg0: i32) -> (i32, i32, i32) {
    %c0_i32 = arith.constant 0 : i32
    %c0_i32_0 = arith.constant 0 : i32
    %c0_i32_1 = arith.constant 0 : i32
    return %arg0, %c0_i32, %c0_i32_0 : i32, i32, i32
  }
  func.func @transform_2(%arg0: i32) -> (i32, i32, i32) {
    %c0_i32 = arith.constant 0 : i32
    %c0_i32_0 = arith.constant 0 : i32
    %c0_i32_1 = arith.constant 0 : i32
    return %arg0, %c0_i32, %c0_i32_0 : i32, i32, i32
  }
  func.func @transform_3(%arg0: i32) -> (i32, i32, i32) {
    %c0_i32 = arith.constant 0 : i32
    %c0_i32_0 = arith.constant 0 : i32
    %c0_i32_1 = arith.constant 0 : i32
    return %arg0, %c0_i32, %c0_i32_0 : i32, i32, i32
  }
  func.func @transform_4(%arg0: i32) -> (i32, i32, i32) {
    %c0_i32 = arith.constant 0 : i32
    %c0_i32_0 = arith.constant 0 : i32
    %c0_i32_1 = arith.constant 0 : i32
    return %arg0, %c0_i32, %c0_i32_0 : i32, i32, i32
  }
  func.func @transform_5(%arg0: i32) -> (i32, i32, i32) {
    %c0_i32 = arith.constant 0 : i32
    %c0_i32_0 = arith.constant 0 : i32
    %c0_i32_1 = arith.constant 0 : i32
    return %arg0, %c0_i32, %c0_i32_0 : i32, i32, i32
  }
}

</mosaic_0001>

<bundles_post_ra>
// kernel: cross_attention.1
= control target key start
LH: loop header
LB: loop body
LE: loop exit
PB: predicated region body
PF: predicated region fallthrough
CT: control target
= control target key end

     0   :  { %11 = vsyncpa [#allocation3], 0  ;;  %s11302_s0 = inlined_call_operand.vmem [shape: f32[16,36,64], index: 0, kind: input, shape index: {}]   ;;  %s11303_s1 = inlined_call_operand.vmem [shape: f32[16,64,192], index: 1, kind: input, shape index: {}]   ;;  %s11304_s2 = inlined_call_operand.vmem [shape: f32[16,36,256], index: 2, kind: input, shape index: {}]   ;;  %s11305_s3 = inlined_call_operand.vmem [shape: f32[16,192,128], index: 3, kind: input, shape index: {}]   ;;  %s11306_s4 = inlined_call_operand.vmem [shape: f32[16,36,128], index: 4, kind: output, shape index: {0}]   ;;  %s11307_s5 = inlined_call_operand.hbm [shape: f32[16,192,256], index: 5, kind: output, shape index: {1}]  }
   0x1   :  { %13 = vsyncpa [#allocation3 + $0x1], 0  ;;  %s8397_s18 = smov 0   ;;  %s8399_s19 = smov 0  }
   0x2   :  { %s8401_s20 = smov 0   ;;  %s8403_s21 = smov 0  }
   0x3 LB: > { %s8418_s22 = sadd.s32 4294967295, %s8361_s21   ;;  %s6907_s23 = sadd.s32 4294967294, %s8361_s21   ;;  %s8361_s21 = sphi %s8403_s21, %s11398_s21   ;;  %s8357_s20 = sphi %s8401_s20, %s11397_s20   ;;  %s8353_s19 = sphi %s8399_s19, %s11396_s19   ;;  %s8349_s18 = sphi %s8397_s18, %s11395_s18  }
   0x4   : > { %s8422_s24 = sadd.s32 1, %s8361_s21   ;;  %s156_s25 = sadd.s32 1, %s8357_s20 }
   0x5   : > { %s153_s26 = ssub.s32 %s8361_s21, %s8422_s24  ;;  %p166_p0 = scmp.ne.s32.totalorder %s8357_s20, %s8353_s19 }
   0x6   : > { %p154_p1 = scmp.eq.s32.totalorder %s153_s26, 0  ;;  %p167_p2 = scmp.eq.s32.totalorder %s8418_s22, 1 }
   0x7   : > { %p172_p3 = scmp.ne.s32.totalorder %s8353_s19, %s8349_s18  ;;  %p173_p4 = scmp.eq.s32.totalorder %s6907_s23, 1 }
   0x8   : > { %s8433_s27 = scalar_select %p154_p1, %s8357_s20, %s156_s25  }
   0x9   : > { %p8435_p5 = por %p167_p2, %p166_p0  ;;  %p8439_p6 = por %p173_p4, %p172_p3 }
   0xa   : > { %p6910_p7 = scmp.ge.s32.totalorder %s8361_s21, 1  ;;  %p231_p8 = scmp.lt.s32.totalorder %s8361_s21, 3 }
   0xc   : > { %p232_p9 = pnand %p6910_p7, %p231_p8 }
   0xe   : > { %235 = sbr.rel (%p232_p9) target bundleno = 3676 (0xe5c), region = 36 }
  0x13   : > { %s6911_s30 = sshll.u32 %s8418_s22, 3  ;;  %v11308_v0 = vmov 0.0   ;;  %vm375_vm0 = vcmask 523264   ;;  %vm502_vm1 = vcmask 1043456   ;;  %vm504_vm2 = vcmask 519168   ;;  %s281_s7 = sand.u32 1, %s8353_s19  }
  0x14   : > { %p285_p10 = scmp.lt.s32.totalorder %s6911_s30, 15  ;;  %455 = vmatprep.mubr.f32.mxu0 %v11308_v0  ;;  %613 = vmatprep.subr.mxu1 %v11308_v0  ;;  %vm787_vm3 = vcmask 293888   ;;  %s7982_s8 = smul.u32 3072, %s281_s7 }
  0x16   : > { %s11400_s30 = smov (!%p285_p10, %s6911_s30), 15  ;;  %s9232_s11 = scalar_lea.vmem [#allocation2], %s7982_s8 }
  0x17   : > { %s7971_s6 = sshll.u32 %s11400_s30, 7  ;;  %s7983_s10 = smul.u32 40, %s11400_s30 }
  0x18   : > { %s8454_s9 = scalar_lea.vmem %s11303_s1, %s7971_s6  ;;  %s7985_s14 = smul.u32 192, %s11400_s30 }
  0x19   : > { %v340_v1 = vld [vmem:[%s8454_s9 + $0x78] sm:$0xff]  ;;  %v339_v2 = vld [vmem:[%s8454_s9 + $0x70] sm:$0xff]  ;;  %v338_v3 = vld [vmem:[%s8454_s9 + $0x68] sm:$0xff]  ;;  %s8476_s13 = scalar_lea.vmem %s11302_s0, %s7983_s10  ;;  %s7984_s23 = smul.u32 80, %s11400_s30 }
  0x1a   : > { %407 = vmatprep.subr.mxu0 %v340_v1  ;;  %v337_v4 = vld [vmem:[%s8454_s9 + $0x60] sm:$0xff]  ;;  %v336_v5 = vld [vmem:[%s8454_s9 + $0x58] sm:$0xff]  ;;  %v335_v6 = vld [vmem:[%s8454_s9 + $0x50] sm:$0xff]  ;;  %s8524_s17 = scalar_lea.vmem %s11305_s3, %s7985_s14  ;;  %s7986_s30 = smul.u32 49152, %s8418_s22 }
  0x1b   : > { %408 = vmatpush1.msra.mxu0 %v339_v2  ;;  %v334_v7 = vld [vmem:[%s8454_s9 + $0x48] sm:$0xff]  ;;  %v333_v8 = vld [vmem:[%s8454_s9 + $0x40] sm:$0xff]  ;;  %v332_v9 = vld [vmem:[%s8454_s9 + $0x38] sm:$0xff]  ;;  %s9050_s6 = scalar_lea.vmem %s11304_s2, %s7984_s23  ;;  %s11262_s22 = scalar_lea.sflag [#allocation3], %s281_s7 }
  0x1c   : > { %409 = vmatprep.subr.mxu0 %v338_v3  ;;  %v331_v10 = vld [vmem:[%s8454_s9 + $0x30] sm:$0xff]  ;;  %v330_v11 = vld [vmem:[%s8454_s9 + $0x28] sm:$0xff]  ;;  %v329_v12 = vld [vmem:[%s8454_s9 + $0x20] sm:$0xff]  ;;  %s11254_s16 = scalar_lea.hbm %s11307_s5, %s7986_s30  ;;  %s8364_s23 = smov [#allocation2]  }
  0x1d   : > { %410 = vmatpush1.msra.mxu0 %v337_v4  ;;  %v328_v13 = vld [vmem:[%s8454_s9 + $0x18] sm:$0xff]  ;;  %v327_v14 = vld [vmem:[%s8454_s9 + $0x10] sm:$0xff]  ;;  %v326_v15 = vld [vmem:[%s8454_s9 + $0x8] sm:$0xff]  ;;  %s8305_s25 = sshll.u32 %s8364_s23, 4  ;;  %s8306_s25 = int_to_ptr.vmem [resolvable:$false] %s8305_s25 }
  0x1e   : > { %411 = vmatprep.subr.mxu0 %v336_v5  ;;  %v325_v16 = vld [vmem:[%s8454_s9] sm:$0xff]  ;;  %v321_v18 = vld [vmem:[%s8476_s13 + $0x8] sm:$0xff]  ;;  %v322_v19 = vld [vmem:[%s8476_s13 + $0x10] sm:$0xff]  ;;  %s8307_s26 = scalar_lea.vmem %s8306_s25, 98304 }
  0x1f   : > { %412 = vmatpush1.msra.mxu0 %v335_v6  ;;  %v320_v17 = vld [vmem:[%s8476_s13] sm:$0xff]  ;;  %v323_v20 = vld [vmem:[%s8476_s13 + $0x18] sm:$0xff]  ;;  %v365_v43 = vld [vmem:[%s8524_s17 + $0x70] sm:$0xff] }
  0x20   : > { %413 = vmatprep.subr.mxu0 %v334_v7  ;;  %v324_v21 = vld [vmem:[%s8476_s13 + $0x20] sm:$0xf]  ;;  %v366_v40 = vld [vmem:[%s8524_s17 + $0x78] sm:$0xff]  ;;  %v364_v44 = vld [vmem:[%s8524_s17 + $0x68] sm:$0xff] }
  0x21   : > { %414 = vmatpush1.msra.mxu0 %v333_v8  ;;  %614 = vmatpush1.msra.mxu1 %v366_v40  ;;  %v363_v46 = vld [vmem:[%s8524_s17 + $0x60] sm:$0xff]  ;;  %v362_v47 = vld [vmem:[%s8524_s17 + $0x58] sm:$0xff]  ;;  %v361_v48 = vld [vmem:[%s8524_s17 + $0x50] sm:$0xff] }
  0x22   : > { %415 = vmatprep.subr.mxu0 %v332_v9  ;;  %615 = vmatprep.subr.mxu1 %v11308_v0  ;;  %v360_v49 = vld [vmem:[%s8524_s17 + $0x48] sm:$0xff]  ;;  %v359_v50 = vld [vmem:[%s8524_s17 + $0x40] sm:$0xff]  ;;  %v358_v51 = vld [vmem:[%s8524_s17 + $0x38] sm:$0xff] }
  0x23   : > { %416 = vmatpush1.msra.mxu0 %v331_v10  ;;  %616 = vmatpush1.msra.mxu1 %v365_v43  ;;  %v357_v52 = vld [vmem:[%s8524_s17 + $0x30] sm:$0xff]  ;;  %v356_v53 = vld [vmem:[%s8524_s17 + $0x28] sm:$0xff]  ;;  %v355_v54 = vld [vmem:[%s8524_s17 + $0x20] sm:$0xff] }
  0x24   : > { %417 = vmatprep.subr.mxu0 %v330_v11  ;;  %617 = vmatprep.subr.mxu1 %v11308_v0  ;;  %v354_v55 = vld [vmem:[%s8524_s17 + $0x18] sm:$0xff]  ;;  %v353_v56 = vld [vmem:[%s8524_s17 + $0x10] sm:$0xff]  ;;  %v352_v57 = vld [vmem:[%s8524_s17 + $0x8] sm:$0xff] }
  0x25   : > { %418 = vmatpush1.msra.mxu0 %v329_v12  ;;  %618 = vmatpush1.msra.mxu1 %v364_v44  ;;  %v351_v58 = vld [vmem:[%s8524_s17] sm:$0xff]  ;;  %v374_v59 = vld [vmem:[%s8524_s17 + $0xb8] sm:$0xff]  ;;  %v373_v60 = vld [vmem:[%s8524_s17 + $0xb0] sm:$0xff] }
  0x26   : > { %419 = vmatprep.subr.mxu0 %v328_v13  ;;  %619 = vmatprep.subr.mxu1 %v11308_v0  ;;  %v372_v61 = vld [vmem:[%s8524_s17 + $0xa8] sm:$0xff]  ;;  %v371_v62 = vld [vmem:[%s8524_s17 + $0xa0] sm:$0xff]  ;;  %v370_v63 = vld [vmem:[%s8524_s17 + $0x98] sm:$0xff] }
  0x27   : > { %420 = vmatpush1.msra.mxu0 %v327_v14  ;;  %620 = vmatpush1.msra.mxu1 %v363_v46  ;;  %v369_v1 = vld [vmem:[%s8524_s17 + $0x90] sm:$0xff]  ;;  %v368_v2 = vld [vmem:[%s8524_s17 + $0x88] sm:$0xff]  ;;  %v367_v3 = vld [vmem:[%s8524_s17 + $0x80] sm:$0xff] }
  0x28   : > { %421 = vmatprep.subr.mxu0 %v326_v15  ;;  %621 = vmatprep.subr.mxu1 %v11308_v0  ;;  %v6978_v4 = vld [vmem:[%s8454_s9 + $0xf8] sm:$0xff] }
  0x29   : > { %422 = vmatpush1.msra.mxu0 %v325_v16  ;;  %622 = vmatpush1.msra.mxu1 %v362_v47  ;;  %v6975_v47 = vld [vmem:[%s8454_s9 + $0xe0] sm:$0xff] }
  0x2a   : > { %6922 = vmatmul.mubr.msk.f32.vlgmr.msra.gmra.mxu0 %vm375_vm0, %v320_v17  ;;  %623 = vmatprep.subr.mxu1 %v11308_v0 }
  0x2b   : > { %461 = vmatprep.mubr.f32.mxu0 %v11308_v0  ;;  %624 = vmatpush1.msra.mxu1 %v361_v48 }
  0x2c   : > { %625 = vmatprep.subr.mxu1 %v11308_v0 }
  0x2d   : > { %626 = vmatpush1.msra.mxu1 %v360_v49 }
  0x2e   : > { %6923 = vmatmul.mubr.msk.f32.gmra.mxu0 %vm375_vm0, %v321_v18  ;;  %627 = vmatprep.subr.mxu1 %v11308_v0 }
  0x2f   : > { %467 = vmatprep.mubr.f32.mxu0 %v11308_v0  ;;  %628 = vmatpush1.msra.mxu1 %v359_v50 }
  0x30   : > { %629 = vmatprep.subr.mxu1 %v11308_v0 }
  0x31   : > { %630 = vmatpush1.msra.mxu1 %v358_v51  ;;  %v6974_v51 = vld [vmem:[%s8454_s9 + $0xd8] sm:$0xff] }
  0x32   : > { %6924 = vmatmul.mubr.msk.f32.gmra.mxu0 %vm375_vm0, %v322_v19  ;;  %631 = vmatprep.subr.mxu1 %v11308_v0 }
  0x33   : > { %473 = vmatprep.mubr.f32.mxu0 %v11308_v0  ;;  %632 = vmatpush1.msra.mxu1 %v357_v52 }
  0x34   : > { %633 = vmatprep.subr.mxu1 %v11308_v0 }
  0x35   : > { %634 = vmatpush1.msra.mxu1 %v356_v53 }
  0x36   : > { %6925 = vmatmul.mubr.msk.f32.gmra.mxu0 %vm375_vm0, %v323_v20  ;;  %635 = vmatprep.subr.mxu1 %v11308_v0 }
  0x37   : > { %479 = vmatprep.mubr.f32.mxu0 %v11308_v0  ;;  %636 = vmatpush1.msra.mxu1 %v355_v54  ;;  %v6973_v54 = vld [vmem:[%s8454_s9 + $0xd0] sm:$0xff] }
  0x38   : > { %637 = vmatprep.subr.mxu1 %v11308_v0 }
  0x39   : > { %638 = vmatpush1.msra.mxu1 %v354_v55 }
  0x3a   : > { %6926 = vmatmul.mubr.msk.f32.gmra.mxu0 %vm375_vm0, %v324_v21  ;;  %639 = vmatprep.subr.mxu1 %v11308_v0 }
  0x3b   : > { %930 = vmatprep.mubr.f32.mxu0 %v11308_v0  ;;  %640 = vmatpush1.msra.mxu1 %v353_v56 }
  0x3c   : > { %641 = vmatprep.subr.mxu1 %v11308_v0 }
  0x3d   : > { %642 = vmatpush1.msra.mxu1 %v352_v57 }
  0x3e   : > { %643 = vmatprep.subr.mxu1 %v11308_v0 }
  0x3f   : > { %644 = vmatpush1.msra.mxu1 %v351_v58 }
  0x40   : > { %661 = vmatprep.subr.mxu1 %v11308_v0 }
  0x41   : > { %662 = vmatpush2.msra.mxu1 %v374_v59  ;;  %v6972_v59 = vld [vmem:[%s8454_s9 + $0xc8] sm:$0xff] }
  0x42   : > { %663 = vmatprep.subr.mxu1 %v11308_v0 }
  0x43   : > { %664 = vmatpush2.msra.mxu1 %v373_v60 }
  0x44   : > { %665 = vmatprep.subr.mxu1 %v11308_v0 }
  0x45   : > { %666 = vmatpush2.msra.mxu1 %v372_v61 }
  0x46   : > { %667 = vmatprep.subr.mxu1 %v11308_v0 }
  0x47   : > { %668 = vmatpush2.msra.mxu1 %v371_v62  ;;  %v6971_v62 = vld [vmem:[%s8454_s9 + $0xc0] sm:$0xff] }
  0x48   : > { %669 = vmatprep.subr.mxu1 %v11308_v0 }
  0x49   : > { %670 = vmatpush2.msra.mxu1 %v370_v63 }
  0x4a   : > { %671 = vmatprep.subr.mxu1 %v11308_v0 }
  0x4b   : > { %672 = vmatpush2.msra.mxu1 %v369_v1 }
  0x4c   : > { %673 = vmatprep.subr.mxu1 %v11308_v0 }
  0x4d   : > { %674 = vmatpush2.msra.mxu1 %v368_v2 }
  0x4e   : > { %675 = vmatprep.subr.mxu1 %v11308_v0 }
  0x4f   : > { %676 = vmatpush2.msra.mxu1 %v367_v3 }
  0x50   : > { %1213 = vmatprep.subr.mxu1 %v6978_v4  ;;  %v6970_v4 = vld [vmem:[%s8454_s9 + $0xb8] sm:$0xff] }
  0xea   : > { %v8495_v22 = vpop.f32.mrf.mxu0 }
  0xec   : > { %v8497_v23 = vpop.f32.mrf.mxu0 }
  0xed   : > { %v486_v24 = vsel %vm375_vm0, %v8497_v23, -inf }
  0xee   : > { %v8501_v25 = vpop.f32.mrf.mxu0  ;;  %v487_v26 = vmax.f32 %v8495_v22, %v486_v24 }
  0xf0   : > { %488 = vmax.xlane.f32.xlu0 %v487_v26  ;;  %v8504_v27 = vpop.f32.mrf.mxu0 }
  0xf1   : > { %v490_v28 = vsel %vm375_vm0, %v8504_v27, -inf }
  0xf2   : > { %v8508_v29 = vpop.f32.mrf.mxu0  ;;  %v491_v30 = vmax.f32 %v8501_v25, %v490_v28 }
  0xf4   : > { %492 = vmax.xlane.f32.xlu1 %v491_v30  ;;  %v8511_v31 = vpop.f32.mrf.mxu0 }
  0xf5   : > { %v494_v32 = vsel %vm375_vm0, %v8511_v31, -inf }
  0xf6   : > { %v8516_v33 = vpop.f32.mrf.mxu0  ;;  %v495_v34 = vmax.f32 %v8508_v29, %v494_v32 }
  0xf8   : > { %496 = vmax.xlane.f32.xlu1 %v495_v34  ;;  %v8519_v35 = vpop.f32.mrf.mxu0 }
  0xf9   : > { %v498_v42 = vsel %vm375_vm0, %v8519_v35, -inf }
  0xfa   : > { %v8526_v36 = vpop.f32.mrf.mxu0  ;;  %v499_v45 = vmax.f32 %v8516_v33, %v498_v42 }
  0xfb   : > { %v503_v38 = vsel %vm502_vm1, %v8526_v36, -inf }
  0xfc   : > { %v8528_v37 = vpop.f32.mrf.mxu0 }
  0xfd   : > { %v505_v39 = vsel %vm504_vm2, %v8528_v37, -inf }
  0xfe   : > { %v506_v41 = vmax.f32 %v503_v38, %v505_v39 }
 0x100   : > { %507 = vmax.xlane.f32.xlu0 %v506_v41 }
 0x104   : > { %500 = vmax.xlane.f32.xlu0 %v499_v45  ;;  %v6976_v45 = vld [vmem:[%s8454_s9 + $0xe8] sm:$0xff] }
 0x179   : > { %v489_v5 = vpop.xlane.xlu0 %488 }
 0x17d   : > { %v493_v6 = vpop.xlane.xlu1 %492 }
 0x181   : > { %v497_v10 = vpop.xlane.xlu1 %496 }
 0x189   : > { %v508_v7 = vpop.xlane.xlu0 %507 }
 0x18a   : > { %v509_v8 = vsel %vm502_vm1, %v508_v7, -inf  ;;  %v6969_v7 = vld [vmem:[%s8454_s9 + $0xb0] sm:$0xff] }
 0x18b   : > { %v510_v9 = vmax.f32 %v489_v5, %v509_v8 }
 0x18d   : > { %v511_v11 = vmax.f32 %v510_v9, %v493_v6  ;;  %v501_v12 = vpop.xlane.xlu0 %500 }
 0x18e   : > { %v512_v13 = vmax.f32 %v497_v10, %v501_v12 }
 0x190   : > { %v513_v14 = vmax.f32 %v511_v11, %v512_v13  ;;  %v6968_v11 = vld [vmem:[%s8454_s9 + $0xa8] sm:$0xff] }
 0x192   : > { %v514_v15 = vrot.slane %v513_v14, 4 }
 0x194   : > { %v515_v16 = vmax.f32 %v513_v14, %v514_v15  ;;  %v6967_v14 = vld [vmem:[%s8454_s9 + $0xa0] sm:$0xff] }
 0x196   : > { %v516_v17 = vrot.slane %v515_v16, 2 }
 0x198   : > { %v517_v18 = vmax.f32 %v515_v16, %v516_v17  ;;  %v6966_v16 = vld [vmem:[%s8454_s9 + $0x98] sm:$0xff] }
 0x19a   : > { %v518_v19 = vrot.slane %v517_v18, 1 }
 0x19c   : > { %v519_v20 = vmax.f32 %v517_v18, %v518_v19 }
 0x19e   : > { %v521_v21 = vsub.f32 %v8497_v23, %v519_v20  ;;  %v520_v24 = vsub.f32 %v8495_v22, %v519_v20  ;;  %v523_v26 = vsub.f32 %v8504_v27, %v519_v20  ;;  %v522_v28 = vsub.f32 %v8501_v25, %v519_v20 }
 0x19f   : > { %v525_v30 = vsub.f32 %v8511_v31, %v519_v20  ;;  %v524_v32 = vsub.f32 %v8508_v29, %v519_v20  ;;  %v527_v40 = vsub.f32 %v8519_v35, %v519_v20  ;;  %v526_v42 = vsub.f32 %v8516_v33, %v519_v20 }
 0x1a0   : > { %v532_v34 = vmul.f32 1.442695, %v521_v21  ;;  %v530_v38 = vmul.f32 1.442695, %v520_v24  ;;  %v536_v39 = vmul.f32 1.442695, %v523_v26  ;;  %v529_v22 = vsub.f32 %v8528_v37, %v519_v20 }
 0x1a1   : > { %v534_v41 = vmul.f32 1.442695, %v522_v28  ;;  %v540_v23 = vmul.f32 1.442695, %v525_v30  ;;  %v538_v27 = vmul.f32 1.442695, %v524_v32  ;;  %v528_v25 = vsub.f32 %v8526_v36, %v519_v20 }
 0x1a2   : > { %8029 = vpow2.f32 %v532_v34  ;;  %v544_v31 = vmul.f32 1.442695, %v527_v40  ;;  %v542_v29 = vmul.f32 1.442695, %v526_v42  ;;  %v548_v35 = vmul.f32 1.442695, %v529_v22 }
 0x1a3   : > { %8031 = vpow2.f32 %v530_v38  ;;  %v546_v43 = vmul.f32 1.442695, %v528_v25  ;;  %v6977_v37 = vld [vmem:[%s8454_s9 + $0xf0] sm:$0xff]  ;;  %v6964_v24 = vld [vmem:[%s8454_s9 + $0x88] sm:$0xff]  ;;  %v6963_v28 = vld [vmem:[%s8454_s9 + $0x80] sm:$0xff] }
 0x1a4   : > { %8033 = vpow2.f32 %v536_v39  ;;  %v6965_v20 = vld [vmem:[%s8454_s9 + $0x90] sm:$0xff]  ;;  %v6958_v40 = vld [vmem:[%s8476_s13 + $0x28] sm:$0xff]  ;;  %v6960_v25 = vld [vmem:[%s8476_s13 + $0x38] sm:$0xff] }
 0x1a5   : > { %8035 = vpow2.f32 %v534_v41 }
 0x1a6   : > { %8037 = vpow2.f32 %v540_v23 }
 0x1a7   : > { %8039 = vpow2.f32 %v538_v27  ;;  %v6959_v27 = vld [vmem:[%s8476_s13 + $0x30] sm:$0xff] }
 0x1a8   : > { %8041 = vpow2.f32 %v544_v31  ;;  %v6961_v31 = vld [vmem:[%s8476_s13 + $0x40] sm:$0xff] }
 0x1a9   : > { %8043 = vpow2.f32 %v542_v29  ;;  %v6962_v29 = vld [vmem:[%s8476_s13 + $0x48] sm:$0xf] }
 0x1aa   : > { %8045 = vpow2.f32 %v548_v35 }
 0x1ab   : > { %8047 = vpow2.f32 %v546_v43 }
 0x1af   : > { %v8596_v33 = vpop.eup %8029 }
 0x1b0   : > { %v8599_v44 = vpop.eup %8031  ;;  %v550_v36 = vsel %vm375_vm0, %v8596_v33, 0.0  ;;  %6927 = vmatprep.mubr.msk.f32.mxu1 %vm375_vm0, %v8596_v33 }
 0x1b1   : > { %v8606_v46 = vpop.eup %8033  ;;  %678 = vmatmul.mubr.f32.vlgmr.msra.gmra.mxu1 %v8599_v44  ;;  %v8611_v48 = vadd.f32 %v8599_v44, %v550_v36 }
 0x1b2   : > { %v8613_v49 = vpop.eup %8035  ;;  %1214 = vmatpush1.msra.mxu1 %v6977_v37  ;;  %v554_v50 = vsel %vm375_vm0, %v8606_v46, 0.0  ;;  %6928 = vmatprep.mubr.msk.f32.mxu1 %vm375_vm0, %v8606_v46 }
 0x1b3   : > { %v8620_v52 = vpop.eup %8037  ;;  %v586_v53 = vadd.f32 %v554_v50, %v550_v36  ;;  %1215 = vmatprep.subr.mxu1 %v6976_v45  ;;  %v576_v55 = vadd.f32 %v8613_v49, %v8599_v44  ;;  %v8626_v56 = vadd.f32 %v8613_v49, %v554_v50 }
 0x1b4   : > { %v8628_v57 = vpop.eup %8039  ;;  %1216 = vmatpush1.msra.mxu1 %v6975_v47  ;;  %v558_v58 = vsel %vm375_vm0, %v8620_v52, 0.0 }
 0x1b5   : > { %v8633_v60 = vpop.eup %8041  ;;  %683 = vmatmul.mubr.f32.gmra.mxu1 %v8613_v49  ;;  %1217 = vmatprep.subr.mxu1 %v6974_v51  ;;  %v587_v61 = vadd.f32 %v586_v53, %v558_v58  ;;  %v577_v63 = vadd.f32 %v8628_v57, %v576_v55  ;;  %v8639_v1 = vadd.f32 %v8628_v57, %v558_v58 }
 0x1b6   : > { %v8641_v2 = vpop.eup %8043  ;;  %6929 = vmatprep.mubr.msk.f32.mxu1 %vm375_vm0, %v8620_v52  ;;  %1218 = vmatpush1.msra.mxu1 %v6973_v54  ;;  %v562_v3 = vsel %vm375_vm0, %v8633_v60, 0.0 }
 0x1b7   : > { %v8648_v5 = vpop.eup %8045  ;;  %1219 = vmatprep.subr.mxu1 %v6972_v59  ;;  %v588_v6 = vadd.f32 %v587_v61, %v562_v3  ;;  %v578_v8 = vadd.f32 %v8641_v2, %v577_v63  ;;  %v8653_v9 = vadd.f32 %v8641_v2, %v562_v3 }
 0x1b8   : > { %v8655_v10 = vpop.eup %8047  ;;  %1220 = vmatpush1.msra.mxu1 %v6971_v62  ;;  %v567_v12 = vsel %vm504_vm2, %v8648_v5, 0.0 }
 0x1b9   : > { %688 = vmatmul.mubr.f32.gmra.mxu1 %v8628_v57  ;;  %1221 = vmatprep.subr.mxu1 %v6970_v4  ;;  %v589_v13 = vadd.f32 %v588_v6, %v567_v12  ;;  %v566_v15 = vsel %vm502_vm1, %v8655_v10, 0.0 }
 0x1ba   : > { %6930 = vmatprep.mubr.msk.f32.mxu1 %vm375_vm0, %v8633_v60  ;;  %1222 = vmatpush1.msra.mxu1 %v6969_v7  ;;  %v579_v17 = vadd.f32 %v578_v8, %v566_v15  ;;  %v8667_v18 = vadd.f32 %v567_v12, %v566_v15 }
 0x1bb   : > { %1223 = vmatprep.subr.mxu1 %v6968_v11  ;;  %v590_v19 = vrot.slane %v589_v13, 4 }
 0x1bc   : > { %1224 = vmatpush1.msra.mxu1 %v6967_v14  ;;  %v580_v21 = vrot.slane %v579_v17, 4 }
 0x1bd   : > { %693 = vmatmul.mubr.f32.gmra.mxu1 %v8641_v2  ;;  %v591_v26 = vadd.f32 %v590_v19, %v589_v13  ;;  %1225 = vmatprep.subr.mxu1 %v6966_v16 }
 0x1be   : > { %6931 = vmatprep.mubr.msk.f32.mxu1 %vm375_vm0, %v8648_v5  ;;  %1226 = vmatpush1.msra.mxu1 %v6965_v20  ;;  %v581_v30 = vadd.f32 %v580_v21, %v579_v17  ;;  %v7004_v21 = vld [vmem:[%s8524_s17 + $0x138] sm:$0xff] }
 0x1bf   : > { %v592_v32 = vrot.slane %v591_v26, 2  ;;  %1227 = vmatprep.subr.mxu1 %v6964_v24 }
 0x1c0   : > { %v582_v34 = vrot.slane %v581_v30, 2  ;;  %1228 = vmatpush1.msra.mxu1 %v6963_v28  ;;  %v7003_v28 = vld [vmem:[%s8524_s17 + $0x130] sm:$0xff] }
 0x1c1   : > { %v593_v38 = vadd.f32 %v592_v32, %v591_v26  ;;  %698 = vmatmul.mubr.f32.gmra.mxu1 %v8655_v10  ;;  %1417 = vmatprep.subr.mxu1 %v11308_v0 }
 0x1c2   : > { %v583_v39 = vadd.f32 %v582_v34, %v581_v30  ;;  %1261 = vmatprep.mubr.f32.mxu1 %v11308_v0  ;;  %v7002_v30 = vld [vmem:[%s8524_s17 + $0x128] sm:$0xff]  ;;  %v7001_v34 = vld [vmem:[%s8524_s17 + $0x120] sm:$0xff] }
 0x1c3   : > { %v594_v41 = vrot.slane %v593_v38, 1 }
 0x1c4   : > { %v584_v42 = vrot.slane %v583_v39, 1 }
 0x1c5   : > { %7013 = vmatmul.mubr.msk.f32.vlgmr.msra.gmra.mxu1 %vm375_vm0, %v6958_v40  ;;  %v595_v23 = vadd.f32 %v594_v41, %v593_v38  ;;  %v7000_v38 = vld [vmem:[%s8524_s17 + $0x118] sm:$0xff]  ;;  %v6998_v40 = vld [vmem:[%s8524_s17 + $0x108] sm:$0xff]  ;;  %v6997_v41 = vld [vmem:[%s8524_s17 + $0x100] sm:$0xff] }
 0x1c6   : > { %v585_v22 = vadd.f32 %v584_v42, %v583_v39  ;;  %1267 = vmatprep.mubr.f32.mxu1 %v11308_v0  ;;  %1418 = vmatpush1.msra.mxu1 %v7004_v21  ;;  %v6999_v39 = vld [vmem:[%s8524_s17 + $0x110] sm:$0xff]  ;;  %v6996_v42 = vld [vmem:[%s8524_s17 + $0xf8] sm:$0xff] }
 0x1c7   : > { %8049 = vrcp.f32 %v595_v23  ;;  %1419 = vmatprep.subr.mxu1 %v11308_v0  ;;  %v6995_v23 = vld [vmem:[%s8524_s17 + $0xf0] sm:$0xff] }
 0x1c8   : > { %8051 = vrcp.f32 %v585_v22  ;;  %1420 = vmatpush1.msra.mxu1 %v7003_v28  ;;  %v6994_v22 = vld [vmem:[%s8524_s17 + $0xe8] sm:$0xff] }
 0x1c9   : > { %7014 = vmatmul.mubr.msk.f32.gmra.mxu1 %vm375_vm0, %v6959_v27  ;;  %1421 = vmatprep.subr.mxu1 %v11308_v0  ;;  %v6993_v27 = vld [vmem:[%s8524_s17 + $0xe0] sm:$0xff] }
 0x1ca   : > { %1273 = vmatprep.mubr.f32.mxu1 %v11308_v0  ;;  %1422 = vmatpush1.msra.mxu1 %v7002_v30 }
 0x1cb   : > { %1423 = vmatprep.subr.mxu1 %v11308_v0 }
 0x1cc   : > { %1424 = vmatpush1.msra.mxu1 %v7001_v34 }
 0x1cd   : > { %7015 = vmatmul.mubr.msk.f32.gmra.mxu1 %vm375_vm0, %v6960_v25  ;;  %1425 = vmatprep.subr.mxu1 %v11308_v0  ;;  %v6992_v25 = vld [vmem:[%s8524_s17 + $0xd8] sm:$0xff] }
 0x1ce   : > { %1279 = vmatprep.mubr.f32.mxu1 %v11308_v0  ;;  %1426 = vmatpush1.msra.mxu1 %v7000_v38 }
 0x1cf   : > { %1427 = vmatprep.subr.mxu1 %v11308_v0 }
 0x1d0   : > { %1428 = vmatpush1.msra.mxu1 %v6999_v39 }
 0x1d1   : > { %7016 = vmatmul.mubr.msk.f32.gmra.mxu1 %vm375_vm0, %v6961_v31  ;;  %1429 = vmatprep.subr.mxu1 %v11308_v0  ;;  %v6991_v31 = vld [vmem:[%s8524_s17 + $0xd0] sm:$0xff] }
 0x1d2   : > { %1285 = vmatprep.mubr.f32.mxu1 %v11308_v0  ;;  %1430 = vmatpush1.msra.mxu1 %v6998_v40 }
 0x1d3   : > { %1431 = vmatprep.subr.mxu1 %v11308_v0 }
 0x1d4   : > { %v8050_v35 = vpop.eup %8049  ;;  %1432 = vmatpush1.msra.mxu1 %v6997_v41 }
 0x1d5   : > { %v8052_v43 = vpop.eup %8051  ;;  %7017 = vmatmul.mubr.msk.f32.gmra.mxu1 %vm375_vm0, %v6962_v29  ;;  %v8693_v37 = vmul.f32 %v8050_v35, %v8596_v33  ;;  %v8696_v36 = vmul.f32 %v8050_v35, %v8606_v46  ;;  %v8699_v45 = vmul.f32 %v8050_v35, %v8620_v52  ;;  %v8702_v47 = vmul.f32 %v8050_v35, %v8633_v60  ;;  %v6990_v29 = vld [vmem:[%s8524_s17 + $0xc8] sm:$0xff] }
 0x1d6   : > { %v8705_v50 = vmul.f32 %v8052_v43, %v8599_v44  ;;  %v8708_v51 = vmul.f32 %v8052_v43, %v8613_v49  ;;  %v8711_v53 = vmul.f32 %v8052_v43, %v8628_v57  ;;  %v8714_v33 = vmul.f32 %v8052_v43, %v8641_v2  ;;  %1433 = vmatprep.subr.mxu1 %v11308_v0 }
 0x1d7   : > { %v8717_v46 = vmul.f32 %v8052_v43, %v8655_v10  ;;  %v8720_v52 = vmul.f32 %v8050_v35, %v8648_v5  ;;  %1434 = vmatpush1.msra.mxu1 %v6996_v42  ;;  %v6989_v35 = vld [vmem:[%s8524_s17 + $0xc0] sm:$0xff]  ;;  %v7012_v43 = vld [vmem:[%s8524_s17 + $0x178] sm:$0xff] }
 0x1d8   : > { %1435 = vmatprep.subr.mxu1 %v11308_v0 }
 0x1d9   : > { %1436 = vmatpush1.msra.mxu1 %v6995_v23 }
 0x1da   : > { %1437 = vmatprep.subr.mxu1 %v11308_v0 }
 0x1db   : > { %1438 = vmatpush1.msra.mxu1 %v6994_v22 }
 0x1dc   : > { %1439 = vmatprep.subr.mxu1 %v11308_v0 }
 0x1dd   : > { %1440 = vmatpush1.msra.mxu1 %v6993_v27 }
 0x1de   : > { %1441 = vmatprep.subr.mxu1 %v11308_v0 }
 0x1df   : > { %1442 = vmatpush1.msra.mxu1 %v6992_v25 }
 0x1e0   : > { %1443 = vmatprep.subr.mxu1 %v11308_v0 }
 0x1e1   : > { %1444 = vmatpush1.msra.mxu1 %v6991_v31 }
 0x1e2   : > { %1445 = vmatprep.subr.mxu1 %v11308_v0 }
 0x1e3   : > { %1446 = vmatpush1.msra.mxu1 %v6990_v29 }
 0x1e4   : > { %1447 = vmatprep.subr.mxu1 %v11308_v0 }
 0x1e5   : > { %1448 = vmatpush1.msra.mxu1 %v6989_v35 }
 0x1e6   : > { %1465 = vmatprep.subr.mxu1 %v11308_v0 }
 0x1e7   : > { %1466 = vmatpush2.msra.mxu1 %v7012_v43 }
 0x1e8   : > { %1467 = vmatprep.subr.mxu1 %v11308_v0 }
 0x271   : > { %v8722_v54 = vpop.f32.mrf.mxu1 }
 0x273   : > { %v681_v55 = vpop.f32.mrf.mxu1 }
 0x274   : > { %v7011_v55 = vld [vmem:[%s8524_s17 + $0x170] sm:$0xff] }
 0x275   : > { %v8724_v44 = vpop.f32.mrf.mxu1  ;;  %1468 = vmatpush2.msra.mxu1 %v7011_v55 }
 0x276   : > { %11316 = vst [vmem:[#allocation5_spill] sm:$0xff] %v8724_v44  ;;  %1469 = vmatprep.subr.mxu1 %v11308_v0 }
 0x277   : > { %v686_v58 = vpop.f32.mrf.mxu1 }
 0x278   : > { %v7010_v58 = vld [vmem:[%s8524_s17 + $0x168] sm:$0xff] }
 0x279   : > { %v8726_v49 = vpop.f32.mrf.mxu1  ;;  %1470 = vmatpush2.msra.mxu1 %v7010_v58 }
 0x27a   : > { %1471 = vmatprep.subr.mxu1 %v11308_v0 }
 0x27b   : > { %v691_v59 = vpop.f32.mrf.mxu1 }
 0x27c   : > { %v7009_v59 = vld [vmem:[%s8524_s17 + $0x160] sm:$0xff] }
 0x27d   : > { %v8728_v57 = vpop.f32.mrf.mxu1  ;;  %1472 = vmatpush2.msra.mxu1 %v7009_v59 }
 0x27e   : > { %11317 = vst [vmem:[#allocation6_spill] sm:$0xff] %v8728_v57  ;;  %1473 = vmatprep.subr.mxu1 %v11308_v0 }
 0x27f   : > { %v696_v60 = vpop.f32.mrf.mxu1 }
 0x280   : > { %v7008_v60 = vld [vmem:[%s8524_s17 + $0x158] sm:$0xff] }
 0x281   : > { %v8730_v61 = vpop.f32.mrf.mxu1  ;;  %1474 = vmatpush2.msra.mxu1 %v7008_v60 }
 0x282   : > { %1475 = vmatprep.subr.mxu1 %v11308_v0 }
 0x283   : > { %v701_v62 = vpop.f32.mrf.mxu1 }
 0x284   : > { %v7007_v62 = vld [vmem:[%s8524_s17 + $0x150] sm:$0xff] }
 0x285   : > { %v8732_v63 = vpop.f32.mrf.mxu1  ;;  %1476 = vmatpush2.msra.mxu1 %v7007_v62 }
 0x286   : > { %1477 = vmatprep.subr.mxu1 %v11308_v0 }
 0x287   : > { %v8734_v2 = vpop.f32.mrf.mxu1 }
 0x288   : > { %v1292_v3 = vsel %vm375_vm0, %v8734_v2, -inf }
 0x289   : > { %v8738_v4 = vpop.f32.mrf.mxu1  ;;  %v1293_v5 = vmax.f32 %v8732_v63, %v1292_v3  ;;  %v7006_v3 = vld [vmem:[%s8524_s17 + $0x148] sm:$0xff] }
 0x28a   : > { %1478 = vmatpush2.msra.mxu1 %v7006_v3 }
 0x28b   : > { %1294 = vmax.xlane.f32.xlu0 %v1293_v5  ;;  %v8741_v6 = vpop.f32.mrf.mxu1  ;;  %v7005_v5 = vld [vmem:[%s8524_s17 + $0x140] sm:$0xff]  ;;  %1479 = vmatprep.subr.mxu1 %v11308_v0 }
 0x28c   : > { %v1296_v7 = vsel %vm375_vm0, %v8741_v6, -inf  ;;  %1480 = vmatpush2.msra.mxu1 %v7005_v5  ;;  %v7120_v5 = vld [vmem:[%s8454_s9 + $0x168] sm:$0xff] }
 0x28d   : > { %v8745_v8 = vpop.f32.mrf.mxu1  ;;  %v1297_v10 = vmax.f32 %v8738_v4, %v1296_v7  ;;  %v7122_v7 = vld [vmem:[%s8454_s9 + $0x178] sm:$0xff] }
 0x28e   : > { %2018 = vmatprep.subr.mxu1 %v7122_v7 }
 0x28f   : > { %1298 = vmax.xlane.f32.xlu1 %v1297_v10  ;;  %v8748_v11 = vpop.f32.mrf.mxu1 }
 0x290   : > { %v1300_v12 = vsel %vm375_vm0, %v8748_v11, -inf }
 0x291   : > { %v8752_v13 = vpop.f32.mrf.mxu1  ;;  %v1301_v14 = vmax.f32 %v8745_v8, %v1300_v12 }
 0x293   : > { %1302 = vmax.xlane.f32.xlu0 %v1301_v14  ;;  %v8755_v15 = vpop.f32.mrf.mxu1 }
 0x294   : > { %v1304_v26 = vsel %vm375_vm0, %v8755_v15, -inf }
 0x295   : > { %v8757_v16 = vpop.f32.mrf.mxu1  ;;  %v1305_v32 = vmax.f32 %v8752_v13, %v1304_v26 }
 0x296   : > { %v1308_v19 = vsel %vm502_vm1, %v8757_v16, -inf }
 0x297   : > { %v8759_v17 = vpop.f32.mrf.mxu1 }
 0x298   : > { %v1309_v20 = vsel %vm504_vm2, %v8759_v17, -inf }
 0x299   : > { %v1310_v24 = vmax.f32 %v1308_v19, %v1309_v20 }
 0x29b   : > { %1311 = vmax.xlane.f32.xlu1 %v1310_v24 }
 0x29f   : > { %1306 = vmax.xlane.f32.xlu1 %v1305_v32 }
 0x314   : > { %v1295_v12 = vpop.xlane.xlu0 %1294 }
 0x318   : > { %v1299_v10 = vpop.xlane.xlu1 %1298 }
 0x31c   : > { %v1303_v21 = vpop.xlane.xlu0 %1302 }
 0x324   : > { %v1312_v14 = vpop.xlane.xlu1 %1311 }
 0x325   : > { %v1313_v19 = vsel %vm502_vm1, %v1312_v14, -inf }
 0x326   : > { %v1314_v20 = vmax.f32 %v1295_v12, %v1313_v19  ;;  %v7119_v12 = vld [vmem:[%s8454_s9 + $0x160] sm:$0xff] }
 0x328   : > { %v1315_v24 = vmax.f32 %v1314_v20, %v1299_v10  ;;  %v1307_v26 = vpop.xlane.xlu1 %1306 }
 0x329   : > { %v1316_v28 = vmax.f32 %v1303_v21, %v1307_v26  ;;  %v7118_v21 = vld [vmem:[%s8454_s9 + $0x158] sm:$0xff] }
 0x32b   : > { %v1317_v30 = vmax.f32 %v1315_v24, %v1316_v28 }
 0x32d   : > { %v1318_v32 = vrot.slane %v1317_v30, 4 }
 0x32f   : > { %v1319_v34 = vmax.f32 %v1317_v30, %v1318_v32  ;;  %v7117_v32 = vld [vmem:[%s8454_s9 + $0x150] sm:$0xff] }
 0x331   : > { %v1320_v38 = vrot.slane %v1319_v34, 2 }
 0x333   : > { %v1321_v39 = vmax.f32 %v1319_v34, %v1320_v38 }
 0x335   : > { %v1322_v40 = vrot.slane %v1321_v39, 1 }
 0x337   : > { %v1323_v41 = vmax.f32 %v1321_v39, %v1322_v40  ;;  %v7116_v39 = vld [vmem:[%s8454_s9 + $0x148] sm:$0xff] }
 0x339   : > { %v1324_v42 = vsub.f32 %v8732_v63, %v1323_v41  ;;  %v1325_v23 = vsub.f32 %v8734_v2, %v1323_v41  ;;  %v1327_v22 = vsub.f32 %v8741_v6, %v1323_v41  ;;  %v1326_v27 = vsub.f32 %v8738_v4, %v1323_v41 }
 0x33a   : > { %v1329_v25 = vsub.f32 %v8748_v11, %v1323_v41  ;;  %v1328_v31 = vsub.f32 %v8745_v8, %v1323_v41  ;;  %v1331_v55 = vsub.f32 %v8755_v15, %v1323_v41  ;;  %v1330_v59 = vsub.f32 %v8752_v13, %v1323_v41 }
 0x33b   : > { %v1334_v29 = vmul.f32 1.442695, %v1324_v42  ;;  %v1336_v35 = vmul.f32 1.442695, %v1325_v23  ;;  %v1340_v43 = vmul.f32 1.442695, %v1327_v22  ;;  %v1333_v2 = vsub.f32 %v8759_v17, %v1323_v41 }
 0x33c   : > { %v1338_v58 = vmul.f32 1.442695, %v1326_v27  ;;  %v1344_v63 = vmul.f32 1.442695, %v1329_v25  ;;  %v1342_v6 = vmul.f32 1.442695, %v1328_v31  ;;  %v1332_v4 = vsub.f32 %v8757_v16, %v1323_v41 }
 0x33d   : > { %8053 = vpow2.f32 %v1334_v29  ;;  %v1348_v11 = vmul.f32 1.442695, %v1331_v55  ;;  %v1346_v8 = vmul.f32 1.442695, %v1330_v59  ;;  %v1352_v60 = vmul.f32 1.442695, %v1333_v2 }
 0x33e   : > { %8055 = vpow2.f32 %v1336_v35  ;;  %v1350_v15 = vmul.f32 1.442695, %v1332_v4  ;;  %v7121_v16 = vld [vmem:[%s8454_s9 + $0x170] sm:$0xff]  ;;  %v7115_v23 = vld [vmem:[%s8454_s9 + $0x140] sm:$0xff]  ;;  %v7114_v31 = vld [vmem:[%s8454_s9 + $0x138] sm:$0xff] }
 0x33f   : > { %8057 = vpow2.f32 %v1340_v43  ;;  %v7113_v55 = vld [vmem:[%s8454_s9 + $0x130] sm:$0xff]  ;;  %v7112_v59 = vld [vmem:[%s8454_s9 + $0x128] sm:$0xff] }
 0x340   : > { %8059 = vpow2.f32 %v1338_v58 }
 0x341   : > { %8061 = vpow2.f32 %v1344_v63 }
 0x342   : > { %8063 = vpow2.f32 %v1342_v6  ;;  %v7111_v6 = vld [vmem:[%s8454_s9 + $0x120] sm:$0xff] }
 0x343   : > { %8065 = vpow2.f32 %v1348_v11 }
 0x344   : > { %8067 = vpow2.f32 %v1346_v8 }
 0x345   : > { %8069 = vpow2.f32 %v1352_v60  ;;  %v7110_v60 = vld [vmem:[%s8454_s9 + $0x118] sm:$0xff] }
 0x346   : > { %8071 = vpow2.f32 %v1350_v15  ;;  %v7109_v15 = vld [vmem:[%s8454_s9 + $0x110] sm:$0xff] }
 0x34a   : > { %v8827_v13 = vpop.eup %8053 }
 0x34b   : > { %v8829_v17 = vpop.eup %8055 }
 0x34c   : > { %v8832_v62 = vpop.eup %8057  ;;  %v1354_v3 = vsel %vm375_vm0, %v8829_v17, 0.0  ;;  %7018 = vmatprep.mubr.msk.f32.mxu1 %vm375_vm0, %v8829_v17 }
 0x34d   : > { %v8839_v7 = vpop.eup %8059  ;;  %1482 = vmatmul.mubr.f32.vlgmr.msra.gmra.mxu1 %v8827_v13  ;;  %v1358_v10 = vsel %vm375_vm0, %v8832_v62, 0.0  ;;  %v8846_v14 = vadd.f32 %v8827_v13, %v1354_v3 }
 0x34e   : > { %v8848_v19 = vpop.eup %8061  ;;  %2019 = vmatpush1.msra.mxu1 %v7121_v16  ;;  %v1390_v20 = vadd.f32 %v1358_v10, %v1354_v3  ;;  %7019 = vmatprep.mubr.msk.f32.mxu1 %vm375_vm0, %v8832_v62  ;;  %v1380_v24 = vadd.f32 %v8839_v7, %v8827_v13  ;;  %v8856_v26 = vadd.f32 %v8839_v7, %v1358_v10 }
 0x34f   : > { %v8858_v28 = vpop.eup %8063  ;;  %2020 = vmatprep.subr.mxu1 %v7120_v5  ;;  %v1362_v30 = vsel %vm375_vm0, %v8848_v19, 0.0  ;;  %v7108_v5 = vld [vmem:[%s8454_s9 + $0x108] sm:$0xff] }
 0x350   : > { %v8863_v34 = vpop.eup %8065  ;;  %2021 = vmatpush1.msra.mxu1 %v7119_v12  ;;  %v1391_v38 = vadd.f32 %v1390_v20, %v1362_v30  ;;  %v1381_v40 = vadd.f32 %v8858_v28, %v1380_v24  ;;  %v8868_v41 = vadd.f32 %v8858_v28, %v1362_v30  ;;  %v7107_v12 = vld [vmem:[%s8454_s9 + $0x100] sm:$0xff] }
 0x351   : > { %v8870_v42 = vpop.eup %8067  ;;  %1487 = vmatmul.mubr.f32.gmra.mxu1 %v8839_v7  ;;  %2022 = vmatprep.subr.mxu1 %v7118_v21  ;;  %v1366_v22 = vsel %vm375_vm0, %v8863_v34, 0.0 }
 0x352   : > { %11318 = vst [vmem:[#allocation7_spill] sm:$0xff] %v8868_v41  ;;  %v8876_v27 = vpop.eup %8069  ;;  %7020 = vmatprep.mubr.msk.f32.mxu1 %vm375_vm0, %v8848_v19  ;;  %2023 = vmatpush1.msra.mxu1 %v7117_v32  ;;  %v1392_v25 = vadd.f32 %v1391_v38, %v1366_v22  ;;  %v1382_v29 = vadd.f32 %v8870_v42, %v1381_v40  ;;  %v7102_v32 = vld [vmem:[%s8476_s13 + $0x50] sm:$0xff]  ;;  %v7862_v41 = vld [vmem:[%s8524_s17 + $0x588] sm:$0xff] }
 0x353   : > { %v8883_v35 = vadd.f32 %v8870_v42, %v1366_v22  ;;  %v8885_v43 = vpop.eup %8071  ;;  %2024 = vmatprep.subr.mxu1 %v7116_v39  ;;  %v1371_v58 = vsel %vm504_vm2, %v8876_v27, 0.0  ;;  %v7103_v22 = vld [vmem:[%s8476_s13 + $0x58] sm:$0xff] }
 0x354   : > { %2025 = vmatpush1.msra.mxu1 %v7115_v23  ;;  %v1393_v63 = vadd.f32 %v1392_v25, %v1371_v58  ;;  %v1370_v2 = vsel %vm502_vm1, %v8885_v43, 0.0  ;;  %v7104_v25 = vld [vmem:[%s8476_s13 + $0x60] sm:$0xff] }
 0x355   : > { %1492 = vmatmul.mubr.f32.gmra.mxu1 %v8858_v28  ;;  %2026 = vmatprep.subr.mxu1 %v7114_v31  ;;  %v1383_v4 = vadd.f32 %v1382_v29, %v1370_v2  ;;  %v8895_v11 = vadd.f32 %v1371_v58, %v1370_v2  ;;  %v7105_v31 = vld [vmem:[%s8476_s13 + $0x68] sm:$0xff]  ;;  %v7106_v29 = vld [vmem:[%s8476_s13 + $0x70] sm:$0xf] }
 0x356   : > { %7021 = vmatprep.mubr.msk.f32.mxu1 %vm375_vm0, %v8863_v34  ;;  %2027 = vmatpush1.msra.mxu1 %v7113_v55  ;;  %v1394_v8 = vrot.slane %v1393_v63, 4 }
 0x357   : > { %11319 = vst [vmem:[#allocation8_spill] sm:$0xff] %v8895_v11  ;;  %2028 = vmatprep.subr.mxu1 %v7112_v59  ;;  %v1384_v16 = vrot.slane %v1383_v4, 4 }
 0x358   : > { %v1395_v3 = vadd.f32 %v1394_v8, %v1393_v63  ;;  %2029 = vmatpush1.msra.mxu1 %v7111_v6 }
 0x359   : > { %1497 = vmatmul.mubr.f32.gmra.mxu1 %v8870_v42  ;;  %2030 = vmatprep.subr.mxu1 %v7110_v60  ;;  %v1385_v10 = vadd.f32 %v1384_v16, %v1383_v4 }
 0x35a   : > { %v1396_v20 = vrot.slane %v1395_v3, 2  ;;  %7022 = vmatprep.mubr.msk.f32.mxu1 %vm375_vm0, %v8876_v27  ;;  %2031 = vmatpush1.msra.mxu1 %v7109_v15 }
 0x35b   : > { %v1386_v21 = vrot.slane %v1385_v10, 2  ;;  %2032 = vmatprep.subr.mxu1 %v7108_v5 }
 0x35c   : > { %2033 = vmatpush1.msra.mxu1 %v7107_v12  ;;  %v1397_v24 = vadd.f32 %v1396_v20, %v1395_v3 }
 0x35d   : > { %v1387_v30 = vadd.f32 %v1386_v21, %v1385_v10  ;;  %1502 = vmatmul.mubr.f32.gmra.mxu1 %v8885_v43  ;;  %2222 = vmatprep.subr.mxu1 %v11308_v0 }
 0x35e   : > { %2066 = vmatprep.mubr.f32.mxu1 %v11308_v0  ;;  %v1398_v38 = vrot.slane %v1397_v24, 1 }
 0x35f   : > { %v1388_v39 = vrot.slane %v1387_v30, 1 }
 0x360   : > { %v1399_v40 = vadd.f32 %v1398_v38, %v1397_v24 }
 0x361   : > { %v1389_v23 = vadd.f32 %v1388_v39, %v1387_v30  ;;  %7157 = vmatmul.mubr.msk.f32.vlgmr.msra.gmra.mxu1 %vm375_vm0, %v7102_v32 }
 0x362   : > { %2072 = vmatprep.mubr.f32.mxu1 %v11308_v0  ;;  %8073 = vrcp.f32 %v1399_v40 }
 0x363   : > { %8075 = vrcp.f32 %v1389_v23 }
 0x365   : > { %7158 = vmatmul.mubr.msk.f32.gmra.mxu1 %vm375_vm0, %v7103_v22 }
 0x366   : > { %2078 = vmatprep.mubr.f32.mxu1 %v11308_v0 }
 0x369   : > { %7159 = vmatmul.mubr.msk.f32.gmra.mxu1 %vm375_vm0, %v7104_v25 }
 0x36a   : > { %2084 = vmatprep.mubr.f32.mxu1 %v11308_v0 }
 0x36d   : > { %7160 = vmatmul.mubr.msk.f32.gmra.mxu1 %vm375_vm0, %v7105_v31 }
 0x36e   : > { %2090 = vmatprep.mubr.f32.mxu1 %v11308_v0 }
 0x36f   : > { %v8074_v55 = vpop.eup %8073 }
 0x370   : > { %v8076_v58 = vpop.eup %8075  ;;  %v8923_v59 = vmul.f32 %v8074_v55, %v8829_v17  ;;  %v8926_v63 = vmul.f32 %v8074_v55, %v8832_v62  ;;  %v8929_v2 = vmul.f32 %v8074_v55, %v8848_v19  ;;  %v8932_v6 = vmul.f32 %v8074_v55, %v8863_v34 }
 0x371   : > { %7161 = vmatmul.mubr.msk.f32.gmra.mxu1 %vm375_vm0, %v7106_v29  ;;  %v8936_v4 = vmul.f32 %v8076_v58, %v8827_v13  ;;  %v8939_v8 = vmul.f32 %v8076_v58, %v8839_v7  ;;  %v8942_v17 = vmul.f32 %v8076_v58, %v8858_v28  ;;  %v8945_v62 = vmul.f32 %v8076_v58, %v8870_v42 }
 0x372   : > { %v8948_v19 = vmul.f32 %v8076_v58, %v8885_v43  ;;  %v8951_v34 = vmul.f32 %v8074_v55, %v8876_v27 }
 0x40d   : > { %v8953_v60 = vpop.f32.mrf.mxu1 }
 0x40e   : > { %11320 = vst [vmem:[#allocation9_spill] sm:$0xff] %v8953_v60 }
 0x40f   : > { %v1485_v15 = vpop.f32.mrf.mxu1 }
 0x411   : > { %v8955_v13 = vpop.f32.mrf.mxu1 }
 0x413   : > { %v1490_v16 = vpop.f32.mrf.mxu1 }
 0x415   : > { %v8957_v7 = vpop.f32.mrf.mxu1 }
 0x416   : > { %11321 = vst [vmem:[#allocation10_spill] sm:$0xff] %v8957_v7 }
 0x417   : > { %v1495_v3 = vpop.f32.mrf.mxu1 }
 0x418   : > { %v7148_v3 = vld [vmem:[%s8524_s17 + $0x1f8] sm:$0xff] }
 0x419   : > { %v8959_v28 = vpop.f32.mrf.mxu1  ;;  %2223 = vmatpush1.msra.mxu1 %v7148_v3  ;;  %v7136_v3 = vld [vmem:[%s8524_s17 + $0x198] sm:$0xff] }
 0x41a   : > { %2224 = vmatprep.subr.mxu1 %v11308_v0 }
 0x41b   : > { %v1500_v5 = vpop.f32.mrf.mxu1 }
 0x41c   : > { %v7147_v5 = vld [vmem:[%s8524_s17 + $0x1f0] sm:$0xff] }
 0x41d   : > { %v8961_v42 = vpop.f32.mrf.mxu1  ;;  %2225 = vmatpush1.msra.mxu1 %v7147_v5  ;;  %v7135_v5 = vld [vmem:[%s8524_s17 + $0x190] sm:$0xff] }
 0x41e   : > { %11322 = vst [vmem:[#allocation11_spill] sm:$0xff] %v8961_v42  ;;  %2226 = vmatprep.subr.mxu1 %v11308_v0 }
 0x41f   : > { %v1505_v10 = vpop.f32.mrf.mxu1 }
 0x421   : > { %v8963_v43 = vpop.f32.mrf.mxu1 }
 0x423   : > { %v8965_v12 = vpop.f32.mrf.mxu1 }
 0x424   : > { %v2097_v27 = vsel %vm375_vm0, %v8965_v12, -inf }
 0x425   : > { %v8969_v20 = vpop.f32.mrf.mxu1  ;;  %v2098_v21 = vmax.f32 %v8963_v43, %v2097_v27  ;;  %v7146_v27 = vld [vmem:[%s8524_s17 + $0x1e8] sm:$0xff] }
 0x426   : > { %2227 = vmatpush1.msra.mxu1 %v7146_v27  ;;  %v7133_v27 = vld [vmem:[%s8524_s17 + $0x180] sm:$0xff] }
 0x427   : > { %2099 = vmax.xlane.f32.xlu1 %v2098_v21  ;;  %v8972_v24 = vpop.f32.mrf.mxu1  ;;  %v7145_v21 = vld [vmem:[%s8524_s17 + $0x1e0] sm:$0xff]  ;;  %2228 = vmatprep.subr.mxu1 %v11308_v0 }
 0x428   : > { %v2101_v30 = vsel %vm375_vm0, %v8972_v24, -inf  ;;  %2229 = vmatpush1.msra.mxu1 %v7145_v21  ;;  %v7156_v21 = vld [vmem:[%s8524_s17 + $0x238] sm:$0xff] }
 0x429   : > { %v8976_v32 = vpop.f32.mrf.mxu1  ;;  %v2102_v38 = vmax.f32 %v8969_v20, %v2101_v30  ;;  %2230 = vmatprep.subr.mxu1 %v11308_v0  ;;  %v7144_v30 = vld [vmem:[%s8524_s17 + $0x1d8] sm:$0xff] }
 0x42a   : > { %2231 = vmatpush1.msra.mxu1 %v7144_v30  ;;  %v7155_v30 = vld [vmem:[%s8524_s17 + $0x230] sm:$0xff] }
 0x42b   : > { %2103 = vmax.xlane.f32.xlu0 %v2102_v38  ;;  %v8979_v39 = vpop.f32.mrf.mxu1  ;;  %v7143_v38 = vld [vmem:[%s8524_s17 + $0x1d0] sm:$0xff]  ;;  %2232 = vmatprep.subr.mxu1 %v11308_v0 }
 0x42c   : > { %v2105_v40 = vsel %vm375_vm0, %v8979_v39, -inf  ;;  %2233 = vmatpush1.msra.mxu1 %v7143_v38  ;;  %v7154_v38 = vld [vmem:[%s8524_s17 + $0x228] sm:$0xff] }
 0x42d   : > { %v8983_v23 = vpop.f32.mrf.mxu1  ;;  %v2106_v22 = vmax.f32 %v8976_v32, %v2105_v40  ;;  %2234 = vmatprep.subr.mxu1 %v11308_v0  ;;  %v7142_v40 = vld [vmem:[%s8524_s17 + $0x1c8] sm:$0xff] }
 0x42e   : > { %2235 = vmatpush1.msra.mxu1 %v7142_v40  ;;  %v7153_v40 = vld [vmem:[%s8524_s17 + $0x220] sm:$0xff] }
 0x42f   : > { %2107 = vmax.xlane.f32.xlu1 %v2106_v22  ;;  %v8986_v25 = vpop.f32.mrf.mxu1  ;;  %2236 = vmatprep.subr.mxu1 %v11308_v0  ;;  %v7141_v22 = vld [vmem:[%s8524_s17 + $0x1c0] sm:$0xff] }
 0x430   : > { %v2109_v16 = vsel %vm375_vm0, %v8986_v25, -inf  ;;  %2237 = vmatpush1.msra.mxu1 %v7141_v22  ;;  %v7152_v22 = vld [vmem:[%s8524_s17 + $0x218] sm:$0xff] }
 0x431   : > { %v8988_v31 = vpop.f32.mrf.mxu1  ;;  %v2110_v10 = vmax.f32 %v8983_v23, %v2109_v16  ;;  %2238 = vmatprep.subr.mxu1 %v11308_v0  ;;  %v7137_v16 = vld [vmem:[%s8524_s17 + $0x1a0] sm:$0xff] }
 0x432   : > { %v2113_v55 = vsel %vm502_vm1, %v8988_v31, -inf }
 0x433   : > { %v8990_v29 = vpop.f32.mrf.mxu1 }
 0x434   : > { %v2114_v58 = vsel %vm504_vm2, %v8990_v29, -inf }
 0x435   : > { %v2115_v15 = vmax.f32 %v2113_v55, %v2114_v58  ;;  %v7140_v55 = vld [vmem:[%s8524_s17 + $0x1b8] sm:$0xff]  ;;  %v7139_v58 = vld [vmem:[%s8524_s17 + $0x1b0] sm:$0xff] }
 0x436   : > { %2239 = vmatpush1.msra.mxu1 %v7140_v55  ;;  %v7151_v55 = vld [vmem:[%s8524_s17 + $0x210] sm:$0xff] }
 0x437   : > { %2116 = vmax.xlane.f32.xlu0 %v2115_v15  ;;  %2240 = vmatprep.subr.mxu1 %v11308_v0  ;;  %v7138_v15 = vld [vmem:[%s8524_s17 + $0x1a8] sm:$0xff] }
 0x438   : > { %2241 = vmatpush1.msra.mxu1 %v7139_v58  ;;  %v7150_v58 = vld [vmem:[%s8524_s17 + $0x208] sm:$0xff] }
 0x439   : > { %2242 = vmatprep.subr.mxu1 %v11308_v0 }
 0x43a   : > { %2243 = vmatpush1.msra.mxu1 %v7138_v15  ;;  %v7149_v15 = vld [vmem:[%s8524_s17 + $0x200] sm:$0xff] }
 0x43b   : > { %2111 = vmax.xlane.f32.xlu0 %v2110_v10  ;;  %2244 = vmatprep.subr.mxu1 %v11308_v0  ;;  %v7134_v10 = vld [vmem:[%s8524_s17 + $0x188] sm:$0xff] }
 0x43c   : > { %2245 = vmatpush1.msra.mxu1 %v7137_v16 }
 0x43d   : > { %2246 = vmatprep.subr.mxu1 %v11308_v0 }
 0x43e   : > { %2247 = vmatpush1.msra.mxu1 %v7136_v3  ;;  %v7132_v3 = vld [vmem:[%s9050_s6 + $0xe8] sm:$0xf] }
 0x43f   : > { %2248 = vmatprep.subr.mxu1 %v11308_v0 }
 0x440   : > { %2249 = vmatpush1.msra.mxu1 %v7135_v5 }
 0x441   : > { %2250 = vmatprep.subr.mxu1 %v11308_v0 }
 0x442   : > { %2251 = vmatpush1.msra.mxu1 %v7134_v10 }
 0x443   : > { %2252 = vmatprep.subr.mxu1 %v11308_v0 }
 0x444   : > { %2253 = vmatpush1.msra.mxu1 %v7133_v27 }
 0x445   : > { %2270 = vmatprep.subr.mxu1 %v11308_v0 }
 0x446   : > { %2271 = vmatpush2.msra.mxu1 %v7156_v21 }
 0x447   : > { %2272 = vmatprep.subr.mxu1 %v11308_v0 }
 0x448   : > { %2273 = vmatpush2.msra.mxu1 %v7155_v30 }
 0x449   : > { %2274 = vmatprep.subr.mxu1 %v11308_v0 }
 0x44a   : > { %2275 = vmatpush2.msra.mxu1 %v7154_v38 }
 0x44b   : > { %2276 = vmatprep.subr.mxu1 %v11308_v0 }
 0x44c   : > { %2277 = vmatpush2.msra.mxu1 %v7153_v40 }
 0x44d   : > { %2278 = vmatprep.subr.mxu1 %v11308_v0 }
 0x44e   : > { %2279 = vmatpush2.msra.mxu1 %v7152_v22 }
 0x44f   : > { %2280 = vmatprep.subr.mxu1 %v11308_v0 }
 0x450   : > { %2281 = vmatpush2.msra.mxu1 %v7151_v55 }
 0x451   : > { %2282 = vmatprep.subr.mxu1 %v11308_v0 }
 0x452   : > { %2283 = vmatpush2.msra.mxu1 %v7150_v58 }
 0x453   : > { %2284 = vmatprep.subr.mxu1 %v11308_v0 }
 0x454   : > { %2285 = vmatpush2.msra.mxu1 %v7149_v15 }
 0x455   : > { %7172 = vmatprep.subr.msk.mxu1 %vm502_vm1, %v7132_v3 }
 0x4b0   : > { %v2100_v5 = vpop.xlane.xlu1 %2099 }
 0x4b4   : > { %v2104_v16 = vpop.xlane.xlu0 %2103 }
 0x4b8   : > { %v2108_v30 = vpop.xlane.xlu1 %2107 }
 0x4c0   : > { %v2117_v10 = vpop.xlane.xlu0 %2116 }
 0x4c1   : > { %v2118_v27 = vsel %vm502_vm1, %v2117_v10, -inf }
 0x4c2   : > { %v2119_v21 = vmax.f32 %v2100_v5, %v2118_v27 }
 0x4c4   : > { %v2120_v38 = vmax.f32 %v2119_v21, %v2104_v16  ;;  %v2112_v40 = vpop.xlane.xlu0 %2111 }
 0x4c5   : > { %v2121_v22 = vmax.f32 %v2108_v30, %v2112_v40 }
 0x4c7   : > { %v2122_v55 = vmax.f32 %v2120_v38, %v2121_v22 }
 0x4c9   : > { %v2123_v58 = vrot.slane %v2122_v55, 4 }
 0x4cb   : > { %v2124_v15 = vmax.f32 %v2122_v55, %v2123_v58  ;;  %v7129_v55 = vld [vmem:[%s9050_s6 + $0xd0] sm:$0xff] }
 0x4cd   : > { %v2125_v0 = vrot.slane %v2124_v15, 2 }
 0x4cf   : > { %v2126_v42 = vmax.f32 %v2124_v15, %v2125_v0 }
 0x4d1   : > { %v2127_v7 = vrot.slane %v2126_v42, 1 }
 0x4d3   : > { %v2128_v60 = vmax.f32 %v2126_v42, %v2127_v7 }
 0x4d5   : > { %v2129_v57 = vsub.f32 %v8963_v43, %v2128_v60  ;;  %v2130_v3 = vsub.f32 %v8965_v12, %v2128_v60  ;;  %v2132_v44 = vsub.f32 %v8972_v24, %v2128_v60  ;;  %v2131_v10 = vsub.f32 %v8969_v20, %v2128_v60 }
 0x4d6   : > { %v2134_v5 = vsub.f32 %v8979_v39, %v2128_v60  ;;  %v2133_v16 = vsub.f32 %v8976_v32, %v2128_v60  ;;  %v2136_v38 = vsub.f32 %v8986_v25, %v2128_v60  ;;  %v2135_v7 = vsub.f32 %v8983_v23, %v2128_v60 }
 0x4d7   : > { %v2139_v27 = vmul.f32 1.442695, %v2129_v57  ;;  %v2141_v21 = vmul.f32 1.442695, %v2130_v3  ;;  %v2145_v30 = vmul.f32 1.442695, %v2132_v44  ;;  %v2138_v43 = vsub.f32 %v8990_v29, %v2128_v60 }
 0x4d8   : > { %v2143_v0 = vmul.f32 1.442695, %v2131_v10  ;;  %v2149_v42 = vmul.f32 1.442695, %v2134_v5  ;;  %v2147_v12 = vmul.f32 1.442695, %v2133_v16  ;;  %v2137_v20 = vsub.f32 %v8988_v31, %v2128_v60 }
 0x4d9   : > { %8077 = vpow2.f32 %v2139_v27  ;;  %v2153_v24 = vmul.f32 1.442695, %v2136_v38  ;;  %v2151_v57 = vmul.f32 1.442695, %v2135_v7  ;;  %v2157_v44 = vmul.f32 1.442695, %v2138_v43 }
 0x4da   : > { %8079 = vpow2.f32 %v2141_v21  ;;  %v2155_v32 = vmul.f32 1.442695, %v2137_v20  ;;  %v7131_v60 = vld [vmem:[%s9050_s6 + $0xe0] sm:$0xf]  ;;  %v7130_v29 = vld [vmem:[%s9050_s6 + $0xd8] sm:$0xff]  ;;  %v7128_v5 = vld [vmem:[%s9050_s6 + $0xc8] sm:$0xff] }
 0x4db   : > { %8081 = vpow2.f32 %v2145_v30  ;;  %v7127_v30 = vld [vmem:[%s9050_s6 + $0xc0] sm:$0xff] }
 0x4dc   : > { %8083 = vpow2.f32 %v2143_v0 }
 0x4dd   : > { %8085 = vpow2.f32 %v2149_v42  ;;  %v7126_v42 = vld [vmem:[%s9050_s6 + $0xb8] sm:$0xff] }
 0x4de   : > { %8087 = vpow2.f32 %v2147_v12 }
 0x4df   : > { %8089 = vpow2.f32 %v2153_v24  ;;  %v7125_v24 = vld [vmem:[%s9050_s6 + $0xb0] sm:$0xff] }
 0x4e0   : > { %8091 = vpow2.f32 %v2151_v57 }
 0x4e1   : > { %8093 = vpow2.f32 %v2157_v44 }
 0x4e2   : > { %8095 = vpow2.f32 %v2155_v32 }
 0x4e6   : > { %v9065_v39 = vpop.eup %8077 }
 0x4e7   : > { %v9067_v23 = vpop.eup %8079 }
 0x4e8   : > { %v9070_v25 = vpop.eup %8081  ;;  %v2159_v31 = vsel %vm375_vm0, %v9067_v23, 0.0  ;;  %7162 = vmatprep.mubr.msk.f32.mxu1 %vm375_vm0, %v9067_v23 }
 0x4e9   : > { %v9077_v40 = vpop.eup %8083  ;;  %2287 = vmatmul.mubr.f32.vlgmr.msra.gmra.mxu1 %v9065_v39  ;;  %v2163_v22 = vsel %vm375_vm0, %v9070_v25, 0.0  ;;  %v9084_v58 = vadd.f32 %v9065_v39, %v2159_v31 }
 0x4ea   : > { %v9086_v15 = vpop.eup %8085  ;;  %v2195_v3 = vadd.f32 %v2163_v22, %v2159_v31  ;;  %7163 = vmatprep.mubr.msk.f32.mxu1 %vm375_vm0, %v9070_v25  ;;  %v2185_v10 = vadd.f32 %v9077_v40, %v9065_v39  ;;  %7173 = vmatpush1.msk.msra.mxu1 %vm502_vm1, %v7131_v60  ;;  %v9095_v16 = vadd.f32 %v9077_v40, %v2163_v22  ;;  %v7124_v60 = vld [vmem:[%s9050_s6 + $0xa8] sm:$0xff] }
 0x4eb   : > { %v9097_v27 = vpop.eup %8087  ;;  %v2167_v21 = vsel %vm375_vm0, %v9086_v15, 0.0  ;;  %2499 = vmatprep.subr.mxu1 %v7130_v29 }
 0x4ec   : > { %11323 = vst [vmem:[#allocation12_spill] sm:$0xff] %v9095_v16  ;;  %v9102_v38 = vpop.eup %8089  ;;  %v2196_v0 = vadd.f32 %v2195_v3, %v2167_v21  ;;  %v2186_v7 = vadd.f32 %v9097_v27, %v2185_v10  ;;  %2500 = vmatpush1.msra.mxu1 %v7129_v55  ;;  %v9107_v43 = vadd.f32 %v9097_v27, %v2167_v21  ;;  %v7123_v55 = vld [vmem:[%s9050_s6 + $0xa0] sm:$0xff] }
 0x4ed   : > { %v8092_v12 = vpop.eup %8091  ;;  %2292 = vmatmul.mubr.f32.gmra.mxu1 %v9077_v40  ;;  %v2171_v20 = vsel %vm375_vm0, %v9102_v38, 0.0  ;;  %2501 = vmatprep.subr.mxu1 %v7128_v5  ;;  %v7266_v5 = vld [vmem:[%s8454_s9 + $0x1f8] sm:$0xff] }
 0x4ee   : > { %v8094_v57 = vpop.eup %8093  ;;  %7164 = vmatprep.mubr.msk.f32.mxu1 %vm375_vm0, %v9086_v15  ;;  %v2197_v44 = vadd.f32 %v2196_v0, %v2171_v20  ;;  %v2187_v32 = vadd.f32 %v8092_v12, %v2186_v7  ;;  %2502 = vmatpush1.msra.mxu1 %v7127_v30  ;;  %v9116_v31 = vadd.f32 %v8092_v12, %v2171_v20 }
 0x4ef   : > { %v8096_v29 = vpop.eup %8095  ;;  %v2176_v22 = vsel %vm504_vm2, %v8094_v57, 0.0  ;;  %2503 = vmatprep.subr.mxu1 %v7126_v42 }
 0x4f0   : > { %11324 = vst [vmem:[#allocation13_spill] sm:$0xff] %v9116_v31  ;;  %v2198_v3 = vadd.f32 %v2197_v44, %v2176_v22  ;;  %v2175_v10 = vsel %vm502_vm1, %v8096_v29, 0.0  ;;  %2504 = vmatpush1.msra.mxu1 %v7125_v24 }
 0x4f1   : > { %2297 = vmatmul.mubr.f32.gmra.mxu1 %v9097_v27  ;;  %v2188_v21 = vadd.f32 %v2187_v32, %v2175_v10  ;;  %2505 = vmatprep.subr.mxu1 %v7124_v60  ;;  %v9123_v0 = vadd.f32 %v2176_v22, %v2175_v10  ;;  %v11325_v60 = vmov 0.0  }
 0x4f2   : > { %7165 = vmatprep.mubr.msk.f32.mxu1 %vm375_vm0, %v9102_v38  ;;  %v2199_v30 = vrot.slane %v2198_v3, 4  ;;  %2506 = vmatpush1.msra.mxu1 %v7123_v55 }
 0x4f3   : > { %v2189_v7 = vrot.slane %v2188_v21, 4  ;;  %2823 = vmatprep.subr.mxu1 %v7266_v5 }
 0x4f4   : > { %v2200_v42 = vadd.f32 %v2199_v30, %v2198_v3 }
 0x4f5   : > { %2302 = vmatmul.mubr.f32.gmra.mxu1 %v8092_v12  ;;  %v2190_v20 = vadd.f32 %v2189_v7, %v2188_v21 }
 0x4f6   : > { %v2201_v44 = vrot.slane %v2200_v42, 2  ;;  %7166 = vmatprep.mubr.msk.f32.mxu1 %vm375_vm0, %v8094_v57 }
 0x4f7   : > { %v2191_v24 = vrot.slane %v2190_v20, 2 }
 0x4f8   : > { %v2202_v31 = vadd.f32 %v2201_v44, %v2200_v42  ;;  %v7254_v44 = vld [vmem:[%s8454_s9 + $0x198] sm:$0xff] }
 0x4f9   : > { %v2192_v16 = vadd.f32 %v2191_v24, %v2190_v20  ;;  %2307 = vmatmul.mubr.f32.gmra.mxu1 %v8096_v29  ;;  %v7255_v20 = vld [vmem:[%s8454_s9 + $0x1a0] sm:$0xff]  ;;  %v7253_v24 = vld [vmem:[%s8454_s9 + $0x190] sm:$0xff] }
 0x4fa   : > { %v2203_v32 = vrot.slane %v2202_v31, 1  ;;  %2539 = vmatprep.mubr.f32.mxu1 %v11325_v60 }
 0x4fb   : > { %v2193_v22 = vrot.slane %v2192_v16, 1 }
 0x4fc   : > { %v2204_v10 = vadd.f32 %v2203_v32, %v2202_v31 }
 0x4fd   : > { %v2194_v11 = vadd.f32 %v2193_v22, %v2192_v16  ;;  %v7252_v22 = vld [vmem:[%s8454_s9 + $0x188] sm:$0xff] }
 0x4fe   : > { %8097 = vrcp.f32 %v2204_v10  ;;  %v7251_v10 = vld [vmem:[%s8454_s9 + $0x180] sm:$0xff] }
 0x4ff   : > { %8099 = vrcp.f32 %v2194_v11 }
 0x50b   : > { %v8098_v55 = vpop.eup %8097 }
 0x50c   : > { %v8100_v5 = vpop.eup %8099  ;;  %v2324_v3 = vmul.f32 %v8098_v55, %v9067_v23  ;;  %v2326_v30 = vmul.f32 %v8098_v55, %v9070_v25  ;;  %v2328_v42 = vmul.f32 %v8098_v55, %v9086_v15  ;;  %v2330_v11 = vmul.f32 %v8098_v55, %v9102_v38  ;;  %v7263_v38 = vld [vmem:[%s8454_s9 + $0x1e0] sm:$0xff] }
 0x50d   : > { %v2323_v21 = vmul.f32 %v8100_v5, %v9065_v39  ;;  %v2325_v7 = vmul.f32 %v8100_v5, %v9077_v40  ;;  %v2327_v16 = vmul.f32 %v8100_v5, %v9097_v27  ;;  %v2329_v23 = vmul.f32 %v8100_v5, %v8092_v12  ;;  %v7265_v40 = vld [vmem:[%s8454_s9 + $0x1f0] sm:$0xff]  ;;  %v7264_v27 = vld [vmem:[%s8454_s9 + $0x1e8] sm:$0xff]  ;;  %v7258_v12 = vld [vmem:[%s8454_s9 + $0x1b8] sm:$0xff] }
 0x50e   : > { %2365 = vxpose.xlu0.b32.start [1/5] (short) (narrow) %v2324_v3, 64  ;;  %v2332_v39 = vmul.f32 %v8098_v55, %v8094_v57  ;;  %v2331_v25 = vmul.f32 %v8100_v5, %v8096_v29  ;;  %v7257_v57 = vld [vmem:[%s8454_s9 + $0x1b0] sm:$0xff]  ;;  %v7256_v29 = vld [vmem:[%s8454_s9 + $0x1a8] sm:$0xff] }
 0x50f   : > { %2333 = vxpose.xlu1.b32.start [1/5] (short) %v2323_v21, 128 }
 0x512   : > { %2366 = vxpose.xlu0.b32.cont [2/5] (short) (narrow) %v2326_v30, 64 }
 0x513   : > { %2334 = vxpose.xlu1.b32.cont [2/5] (short) %v2325_v7, 128 }
 0x516   : > { %2367 = vxpose.xlu0.b32.cont [3/5] (short) (narrow) %v2328_v42, 64 }
 0x517   : > { %2335 = vxpose.xlu1.b32.cont [3/5] (short) %v2327_v16, 128 }
 0x51a   : > { %2368 = vxpose.xlu0.b32.cont [4/5] (short) (narrow) %v2330_v11, 64 }
 0x51b   : > { %2336 = vxpose.xlu1.b32.cont [4/5] (short) %v2329_v23, 128 }
 0x51e   : > { %2369 = vxpose.xlu0.b32.end [5/5] (short) (narrow) %v2332_v39, 64 }
 0x51f   : > { %2337 = vxpose.xlu1.b32.end [5/5] (short) %v2331_v25, 128 }
 0x52b   : > { %723 = vxpose.xlu0.b32.start [1/5] (short) %v8705_v50, 128  ;;  %v7262_v50 = vld [vmem:[%s8454_s9 + $0x1d8] sm:$0xff] }
 0x52f   : > { %724 = vxpose.xlu0.b32.cont [2/5] (short) %v8708_v51, 128  ;;  %v7261_v51 = vld [vmem:[%s8454_s9 + $0x1d0] sm:$0xff] }
 0x533   : > { %725 = vxpose.xlu0.b32.cont [3/5] (short) %v8711_v53, 128 }
 0x537   : > { %726 = vxpose.xlu0.b32.cont [4/5] (short) %v8714_v33, 128  ;;  %v7260_v33 = vld [vmem:[%s8454_s9 + $0x1c8] sm:$0xff] }
 0x53b   : > { %727 = vxpose.xlu0.b32.end [5/5] (short) %v8717_v46, 128  ;;  %v7259_v46 = vld [vmem:[%s8454_s9 + $0x1c0] sm:$0xff] }
 0x58b   : > { %v2349_v15 = vpop.trf.xlu1 }
 0x58c   : > { %7174 = vmatmul.mubr.msk.f32.vlgmr.msra.gmra.mxu1 %vm787_vm3, %v2349_v15 }
 0x58d   : > { %2824 = vmatpush1.msra.mxu1 %v7265_v40  ;;  %2545 = vmatprep.mubr.f32.mxu1 %v11325_v60 }
 0x58e   : > { %2825 = vmatprep.subr.mxu1 %v7264_v27 }
 0x58f   : > { %v2350_v53 = vpop.trf.xlu1  ;;  %2826 = vmatpush1.msra.mxu1 %v7263_v38 }
 0x590   : > { %7175 = vmatmul.mubr.msk.f32.gmra.mxu1 %vm787_vm3, %v2350_v53  ;;  %2827 = vmatprep.subr.mxu1 %v7262_v50 }
 0x591   : > { %2551 = vmatprep.mubr.f32.mxu1 %v11325_v60  ;;  %2828 = vmatpush1.msra.mxu1 %v7261_v51  ;;  %v2381_v51 = vpop.trf.xlu0 }
 0x592   : > { %2829 = vmatprep.subr.mxu1 %v7260_v33 }
 0x593   : > { %v2351_v31 = vpop.trf.xlu1  ;;  %2830 = vmatpush1.msra.mxu1 %v7259_v46 }
 0x594   : > { %7176 = vmatmul.mubr.msk.f32.gmra.mxu1 %vm787_vm3, %v2351_v31  ;;  %2831 = vmatprep.subr.mxu1 %v7258_v12 }
 0x595   : > { %2557 = vmatprep.mubr.f32.mxu1 %v11325_v60  ;;  %2832 = vmatpush1.msra.mxu1 %v7257_v57  ;;  %v2382_v12 = vpop.trf.xlu0 }
 0x596   : > { %2833 = vmatprep.subr.mxu1 %v7256_v29 }
 0x597   : > { %v2352_v32 = vpop.trf.xlu1  ;;  %2834 = vmatpush1.msra.mxu1 %v7255_v20 }
 0x598   : > { %7177 = vmatmul.mubr.msk.f32.gmra.mxu1 %vm787_vm3, %v2352_v32  ;;  %2835 = vmatprep.subr.mxu1 %v7254_v44 }
 0x599   : > { %2563 = vmatprep.mubr.f32.mxu1 %v11325_v60  ;;  %2836 = vmatpush1.msra.mxu1 %v7253_v24  ;;  %v2383_v29 = vpop.trf.xlu0 }
 0x59a   : > { %2837 = vmatprep.subr.mxu1 %v7252_v22 }
 0x59b   : > { %v2353_v55 = vpop.trf.xlu1  ;;  %2838 = vmatpush1.msra.mxu1 %v7251_v10  ;;  %v7246_v10 = vld [vmem:[%s8476_s13 + $0x78] sm:$0xff] }
 0x59c   : > { %7178 = vmatmul.mubr.msk.f32.gmra.mxu1 %vm787_vm3, %v2353_v55  ;;  %v7247_v55 = vld [vmem:[%s8476_s13 + $0x80] sm:$0xff] }
 0x59d   : > { %2569 = vmatprep.mubr.f32.mxu1 %v11325_v60  ;;  %v2384_v20 = vpop.trf.xlu0 }
 0x59f   : > { %v2354_v5 = vpop.trf.xlu1 }
 0x5a0   : > { %7179 = vmatmul.mubr.msk.f32.gmra.mxu1 %vm787_vm3, %v2354_v5  ;;  %v7248_v5 = vld [vmem:[%s8476_s13 + $0x88] sm:$0xff] }
 0x5a1   : > { %2575 = vmatprep.mubr.f32.mxu1 %v11325_v60  ;;  %v2385_v44 = vpop.trf.xlu0 }
 0x5a3   : > { %v2355_v3 = vpop.trf.xlu1 }
 0x5a4   : > { %7180 = vmatmul.mubr.msk.f32.gmra.mxu1 %vm787_vm3, %v2355_v3  ;;  %v7249_v3 = vld [vmem:[%s8476_s13 + $0x90] sm:$0xff] }
 0x5a5   : > { %2581 = vmatprep.mubr.f32.mxu1 %v11325_v60  ;;  %v2386_v24 = vpop.trf.xlu0 }
 0x5a7   : > { %v2356_v21 = vpop.trf.xlu1 }
 0x5a8   : > { %7181 = vmatmul.mubr.msk.f32.gmra.mxu1 %vm787_vm3, %v2356_v21  ;;  %v7250_v21 = vld [vmem:[%s8476_s13 + $0x98] sm:$0xf] }
 0x5a9   : > { %2587 = vmatprep.mubr.f32.mxu1 %v11325_v60  ;;  %v9172_v30 = vpop.f32.mrf.mxu1  ;;  %v2387_v32 = vpop.trf.xlu0 }
 0x5ab   : > { %v2357_v7 = vpop.trf.xlu1  ;;  %v2290_v42 = vpop.f32.mrf.mxu1 }
 0x5ac   : > { %7182 = vmatmul.mubr.msk.f32.gmra.mxu1 %vm787_vm3, %v2357_v7 }
 0x5ad   : > { %2593 = vmatprep.mubr.f32.mxu1 %v11325_v60  ;;  %v9176_v16 = vpop.f32.mrf.mxu1  ;;  %v2388_v22 = vpop.trf.xlu0 }
 0x5ae   : > { %11326 = vst [vmem:[#allocation14_spill] sm:$0xff] %v9176_v16 }
 0x5af   : > { %v2358_v11 = vpop.trf.xlu1  ;;  %v2295_v23 = vpop.f32.mrf.mxu1 }
 0x5b0   : > { %7183 = vmatmul.mubr.msk.f32.gmra.mxu1 %vm787_vm3, %v2358_v11 }
 0x5b1   : > { %2599 = vmatprep.mubr.f32.mxu1 %v11325_v60  ;;  %v9180_v39 = vpop.f32.mrf.mxu1 }
 0x5b3   : > { %v2359_v25 = vpop.trf.xlu1  ;;  %v2300_v40 = vpop.f32.mrf.mxu1 }
 0x5b4   : > { %7184 = vmatmul.mubr.msk.f32.gmra.mxu1 %vm787_vm3, %v2359_v25 }
 0x5b5   : > { %2605 = vmatprep.mubr.f32.mxu1 %v11325_v60  ;;  %v9184_v15 = vpop.f32.mrf.mxu1 }
 0x5b6   : > { %11327 = vst [vmem:[#allocation15_spill] sm:$0xff] %v9184_v15 }
 0x5b7   : > { %v2360_v27 = vpop.trf.xlu1  ;;  %v2305_v38 = vpop.f32.mrf.mxu1 }
 0x5b8   : > { %7185 = vmatmul.mubr.msk.f32.gmra.mxu1 %vm787_vm3, %v2360_v27 }
 0x5b9   : > { %2611 = vmatprep.mubr.f32.mxu1 %v11325_v60  ;;  %v9188_v50 = vpop.f32.mrf.mxu1 }
 0x5ba   : > { %11328 = vst [vmem:[#allocation16_spill] sm:$0xff] %v9188_v50 }
 0x5bb   : > { %v2361_v53 = vpop.trf.xlu1  ;;  %v2310_v33 = vpop.f32.mrf.mxu1 }
 0x5bc   : > { %7186 = vmatmul.mubr.msk.f32.gmra.mxu1 %vm787_vm3, %v2361_v53 }
 0x5bd   : > { %2617 = vmatprep.mubr.f32.mxu1 %v11325_v60 }
 0x5bf   : > { %v2362_v46 = vpop.trf.xlu1 }
 0x5c0   : > { %7187 = vmatmul.mubr.msk.f32.gmra.mxu1 %vm787_vm3, %v2362_v46 }
 0x5c1   : > { %2623 = vmatprep.mubr.f32.mxu1 %v11325_v60 }
 0x5c3   : > { %v2363_v57 = vpop.trf.xlu1 }
 0x5c4   : > { %7188 = vmatmul.mubr.msk.f32.gmra.mxu1 %vm787_vm3, %v2363_v57 }
 0x5c5   : > { %2629 = vmatprep.mubr.f32.mxu1 %v11325_v60 }
 0x5c7   : > { %v2364_v31 = vpop.trf.xlu1 }
 0x5c8   : > { %7189 = vmatmul.mubr.msk.f32.gmra.mxu1 %vm787_vm3, %v2364_v31 }
 0x5c9   : > { %2635 = vmatprep.mubr.f32.mxu1 %v11325_v60 }
 0x5cc   : > { %7190 = vmatmul.mubr.msk.f32.gmra.mxu1 %vm787_vm3, %v2381_v51 }
 0x5cd   : > { %2641 = vmatprep.mubr.f32.mxu1 %v11325_v60 }
 0x5d0   : > { %7191 = vmatmul.mubr.msk.f32.gmra.mxu1 %vm787_vm3, %v2382_v12 }
 0x5d1   : > { %2647 = vmatprep.mubr.f32.mxu1 %v11325_v60 }
 0x5d4   : > { %7192 = vmatmul.mubr.msk.f32.gmra.mxu1 %vm787_vm3, %v2383_v29 }
 0x5d5   : > { %2653 = vmatprep.mubr.f32.mxu1 %v11325_v60 }
 0x5d8   : > { %7193 = vmatmul.mubr.msk.f32.gmra.mxu1 %vm787_vm3, %v2384_v20 }
 0x5d9   : > { %2659 = vmatprep.mubr.f32.mxu1 %v11325_v60 }
 0x5dc   : > { %7194 = vmatmul.mubr.msk.f32.gmra.mxu1 %vm787_vm3, %v2385_v44 }
 0x5dd   : > { %2665 = vmatprep.mubr.f32.mxu1 %v11325_v60 }
 0x5e0   : > { %7195 = vmatmul.mubr.msk.f32.gmra.mxu1 %vm787_vm3, %v2386_v24 }
 0x5e1   : > { %2671 = vmatprep.mubr.f32.mxu1 %v11325_v60 }
 0x5e4   : > { %7196 = vmatmul.mubr.msk.f32.gmra.mxu1 %vm787_vm3, %v2387_v32 }
 0x5e5   : > { %2677 = vmatprep.mubr.f32.mxu1 %v11325_v60 }
 0x5e8   : > { %7197 = vmatmul.mubr.msk.f32.gmra.mxu1 %vm787_vm3, %v2388_v22 }
 0x5e9   : > { %2871 = vmatprep.mubr.f32.mxu1 %v11325_v60 }
 0x5ec   : > { %7301 = vmatmul.mubr.msk.f32.vlgmr.msra.gmra.mxu1 %vm375_vm0, %v7246_v10  ;;  %v350_v10 = vld [vmem:[%s9050_s6 + $0x48] sm:$0xf] }
 0x5ed   : > { %2877 = vmatprep.mubr.f32.mxu1 %v11325_v60  ;;  %6932 = vmatprep.subr.msk.mxu0 %vm502_vm1, %v350_v10 }
 0x5f0   : > { %7302 = vmatmul.mubr.msk.f32.gmra.mxu1 %vm375_vm0, %v7247_v55 }
 0x5f1   : > { %2883 = vmatprep.mubr.f32.mxu1 %v11325_v60 }
 0x5f4   : > { %7303 = vmatmul.mubr.msk.f32.gmra.mxu1 %vm375_vm0, %v7248_v5  ;;  %v349_v5 = vld [vmem:[%s9050_s6 + $0x40] sm:$0xf] }
 0x5f5   : > { %2889 = vmatprep.mubr.f32.mxu1 %v11325_v60  ;;  %6933 = vmatpush1.msk.msra.mxu0 %vm502_vm1, %v349_v5 }
 0x5f8   : > { %7304 = vmatmul.mubr.msk.f32.gmra.mxu1 %vm375_vm0, %v7249_v3  ;;  %v348_v3 = vld [vmem:[%s9050_s6 + $0x38] sm:$0xff] }
 0x5f9   : > { %2895 = vmatprep.mubr.f32.mxu1 %v11325_v60  ;;  %890 = vmatprep.subr.mxu0 %v348_v3 }
 0x5fc   : > { %7305 = vmatmul.mubr.msk.f32.gmra.mxu1 %vm375_vm0, %v7250_v21 }
 0x5fd   : > { %3676 = vmatprep.mubr.f32.mxu1 %v11325_v60 }
 0x64c   : > { %v2541_v7 = vpop.f32.mrf.mxu1 }
 0x64d   : > { %7198 = vst [vmem:[%s9232_s11 + $0x300] sm:$0xff] %v2541_v7  ;;  %v347_v7 = vld [vmem:[%s9050_s6 + $0x30] sm:$0xff] }
 0x64e   : > { %v2543_v42 = vpop.f32.mrf.mxu1  ;;  %891 = vmatpush1.msra.mxu0 %v347_v7 }
 0x64f   : > { %7199 = vst [vmem:[%s9232_s11 + $0x308] sm:$0xff] %v2543_v42  ;;  %v346_v42 = vld [vmem:[%s9050_s6 + $0x28] sm:$0xff] }
 0x650   : > { %v2547_v11 = vpop.f32.mrf.mxu1  ;;  %892 = vmatprep.subr.mxu0 %v346_v42 }
 0x651   : > { %7200 = vst [vmem:[%s9232_s11 + $0x310] sm:$0xff] %v2547_v11 }
 0x652   : > { %v2549_v23 = vpop.f32.mrf.mxu1 }
 0x653   : > { %7201 = vst [vmem:[%s9232_s11 + $0x318] sm:$0xff] %v2549_v23  ;;  %v739_v23 = vpop.trf.xlu0 }
 0x654   : > { %v2553_v25 = vpop.f32.mrf.mxu1 }
 0x655   : > { %7202 = vst [vmem:[%s9232_s11 + $0x320] sm:$0xff] %v2553_v25  ;;  %v345_v25 = vld [vmem:[%s9050_s6 + $0x20] sm:$0xff] }
 0x656   : > { %v2555_v40 = vpop.f32.mrf.mxu1  ;;  %893 = vmatpush1.msra.mxu0 %v345_v25 }
 0x657   : > { %7203 = vst [vmem:[%s9232_s11 + $0x328] sm:$0xff] %v2555_v40  ;;  %v344_v40 = vld [vmem:[%s9050_s6 + $0x18] sm:$0xff] }
 0x658   : > { %v2559_v27 = vpop.f32.mrf.mxu1  ;;  %894 = vmatprep.subr.mxu0 %v344_v40 }
 0x659   : > { %7204 = vst [vmem:[%s9232_s11 + $0x330] sm:$0xff] %v2559_v27 }
 0x65a   : > { %v2561_v38 = vpop.f32.mrf.mxu1 }
 0x65b   : > { %7205 = vst [vmem:[%s9232_s11 + $0x338] sm:$0xff] %v2561_v38  ;;  %v343_v38 = vld [vmem:[%s9050_s6 + $0x10] sm:$0xff] }
 0x65c   : > { %v2565_v51 = vpop.f32.mrf.mxu1  ;;  %895 = vmatpush1.msra.mxu0 %v343_v38 }
 0x65d   : > { %7206 = vst [vmem:[%s9232_s11 + $0x340] sm:$0xff] %v2565_v51  ;;  %v342_v51 = vld [vmem:[%s9050_s6 + $0x8] sm:$0xff] }
 0x65e   : > { %v2567_v53 = vpop.f32.mrf.mxu1  ;;  %896 = vmatprep.subr.mxu0 %v342_v51 }
 0x65f   : > { %7207 = vst [vmem:[%s9232_s11 + $0x348] sm:$0xff] %v2567_v53  ;;  %v341_v53 = vld [vmem:[%s9050_s6] sm:$0xff] }
 0x660   : > { %v2571_v33 = vpop.f32.mrf.mxu1  ;;  %897 = vmatpush1.msra.mxu0 %v341_v53 }
 0x661   : > { %7208 = vst [vmem:[%s9232_s11 + $0x350] sm:$0xff] %v2571_v33  ;;  %6934 = vmatmul.mubr.msk.f32.vlgmr.msra.gmra.mxu0 %vm787_vm3, %v739_v23 }
 0x662   : > { %v2573_v46 = vpop.f32.mrf.mxu1  ;;  %936 = vmatprep.mubr.f32.mxu0 %v11325_v60 }
 0x663   : > { %7209 = vst [vmem:[%s9232_s11 + $0x358] sm:$0xff] %v2573_v46  ;;  %v740_v46 = vpop.trf.xlu0 }
 0x664   : > { %v2577_v12 = vpop.f32.mrf.mxu1 }
 0x665   : > { %7210 = vst [vmem:[%s9232_s11 + $0x360] sm:$0xff] %v2577_v12  ;;  %6935 = vmatmul.mubr.msk.f32.gmra.mxu0 %vm787_vm3, %v740_v46 }
 0x666   : > { %v2579_v57 = vpop.f32.mrf.mxu1  ;;  %942 = vmatprep.mubr.f32.mxu0 %v11325_v60 }
 0x667   : > { %7211 = vst [vmem:[%s9232_s11 + $0x368] sm:$0xff] %v2579_v57 }
 0x668   : > { %v2583_v31 = vpop.f32.mrf.mxu1 }
 0x669   : > { %7212 = vst [vmem:[%s9232_s11 + $0x370] sm:$0xff] %v2583_v31  ;;  %v741_v31 = vpop.trf.xlu0 }
 0x66a   : > { %v2585_v29 = vpop.f32.mrf.mxu1  ;;  %6936 = vmatmul.mubr.msk.f32.gmra.mxu0 %vm787_vm3, %v741_v31 }
 0x66b   : > { %7213 = vst [vmem:[%s9232_s11 + $0x378] sm:$0xff] %v2585_v29  ;;  %948 = vmatprep.mubr.f32.mxu0 %v11325_v60 }
 0x66c   : > { %v2589_v20 = vpop.f32.mrf.mxu1 }
 0x66d   : > { %7214 = vst [vmem:[%s9232_s11 + $0x380] sm:$0xff] %v2589_v20 }
 0x66e   : > { %v2591_v44 = vpop.f32.mrf.mxu1 }
 0x66f   : > { %7215 = vst [vmem:[%s9232_s11 + $0x388] sm:$0xff] %v2591_v44  ;;  %v742_v44 = vpop.trf.xlu0 }
 0x670   : > { %v2595_v24 = vpop.f32.mrf.mxu1  ;;  %6937 = vmatmul.mubr.msk.f32.gmra.mxu0 %vm787_vm3, %v742_v44 }
 0x671   : > { %7216 = vst [vmem:[%s9232_s11 + $0x390] sm:$0xff] %v2595_v24  ;;  %954 = vmatprep.mubr.f32.mxu0 %v11325_v60 }
 0x672   : > { %v2597_v32 = vpop.f32.mrf.mxu1 }
 0x673   : > { %7217 = vst [vmem:[%s9232_s11 + $0x398] sm:$0xff] %v2597_v32 }
 0x674   : > { %v2601_v22 = vpop.f32.mrf.mxu1 }
 0x675   : > { %7218 = vst [vmem:[%s9232_s11 + $0x3a0] sm:$0xff] %v2601_v22  ;;  %v743_v22 = vpop.trf.xlu0 }
 0x676   : > { %v2603_v55 = vpop.f32.mrf.mxu1  ;;  %6938 = vmatmul.mubr.msk.f32.gmra.mxu0 %vm787_vm3, %v743_v22 }
 0x677   : > { %7219 = vst [vmem:[%s9232_s11 + $0x3a8] sm:$0xff] %v2603_v55  ;;  %960 = vmatprep.mubr.f32.mxu0 %v11325_v60 }
 0x678   : > { %v2607_v21 = vpop.f32.mrf.mxu1 }
 0x679   : > { %7220 = vst [vmem:[%s9232_s11 + $0x3b0] sm:$0xff] %v2607_v21  ;;  %v744_v5 = vpop.trf.xlu0 }
 0x67a   : > { %v2609_v11 = vpop.f32.mrf.mxu1  ;;  %6939 = vmatmul.mubr.msk.f32.gmra.mxu0 %vm787_vm3, %v744_v5 }
 0x67b   : > { %7221 = vst [vmem:[%s9232_s11 + $0x3b8] sm:$0xff] %v2609_v11  ;;  %966 = vmatprep.mubr.f32.mxu0 %v11325_v60 }
 0x67c   : > { %v2613_v27 = vpop.f32.mrf.mxu1 }
 0x67d   : > { %7222 = vst [vmem:[%s9232_s11 + $0x3c0] sm:$0xff] %v2613_v27  ;;  %v745_v7 = vpop.trf.xlu0 }
 0x67e   : > { %v2615_v33 = vpop.f32.mrf.mxu1  ;;  %6940 = vmatmul.mubr.msk.f32.gmra.mxu0 %vm787_vm3, %v745_v7 }
 0x67f   : > { %7223 = vst [vmem:[%s9232_s11 + $0x3c8] sm:$0xff] %v2615_v33  ;;  %972 = vmatprep.mubr.f32.mxu0 %v11325_v60 }
 0x680   : > { %v2619_v12 = vpop.f32.mrf.mxu1 }
 0x681   : > { %7224 = vst [vmem:[%s9232_s11 + $0x3d0] sm:$0xff] %v2619_v12  ;;  %v746_v23 = vpop.trf.xlu0 }
 0x682   : > { %v2621_v57 = vpop.f32.mrf.mxu1  ;;  %6941 = vmatmul.mubr.msk.f32.gmra.mxu0 %vm787_vm3, %v746_v23 }
 0x683   : > { %7225 = vst [vmem:[%s9232_s11 + $0x3d8] sm:$0xff] %v2621_v57  ;;  %978 = vmatprep.mubr.f32.mxu0 %v11325_v60 }
 0x684   : > { %v2625_v29 = vpop.f32.mrf.mxu1 }
 0x685   : > { %7226 = vst [vmem:[%s9232_s11 + $0x3e0] sm:$0xff] %v2625_v29  ;;  %v747_v27 = vpop.trf.xlu0 }
 0x686   : > { %v2627_v20 = vpop.f32.mrf.mxu1  ;;  %6942 = vmatmul.mubr.msk.f32.gmra.mxu0 %vm787_vm3, %v747_v27 }
 0x687   : > { %7227 = vst [vmem:[%s9232_s11 + $0x3e8] sm:$0xff] %v2627_v20  ;;  %984 = vmatprep.mubr.f32.mxu0 %v11325_v60 }
 0x688   : > { %v2631_v24 = vpop.f32.mrf.mxu1 }
 0x689   : > { %7228 = vst [vmem:[%s9232_s11 + $0x3f0] sm:$0xff] %v2631_v24  ;;  %v748_v53 = vpop.trf.xlu0 }
 0x68a   : > { %v2633_v32 = vpop.f32.mrf.mxu1  ;;  %6943 = vmatmul.mubr.msk.f32.gmra.mxu0 %vm787_vm3, %v748_v53 }
 0x68b   : > { %7229 = vst [vmem:[%s9232_s11 + $0x3f8] sm:$0xff] %v2633_v32  ;;  %990 = vmatprep.mubr.f32.mxu0 %v11325_v60 }
 0x68c   : > { %v2637_v10 = vpop.f32.mrf.mxu1 }
 0x68d   : > { %7230 = vst [vmem:[%s9232_s11 + $0x400] sm:$0xff] %v2637_v10  ;;  %v749_v12 = vpop.trf.xlu0 }
 0x68e   : > { %v2639_v55 = vpop.f32.mrf.mxu1  ;;  %6944 = vmatmul.mubr.msk.f32.gmra.mxu0 %vm787_vm3, %v749_v12 }
 0x68f   : > { %7231 = vst [vmem:[%s9232_s11 + $0x408] sm:$0xff] %v2639_v55  ;;  %996 = vmatprep.mubr.f32.mxu0 %v11325_v60 }
 0x690   : > { %v2643_v3 = vpop.f32.mrf.mxu1 }
 0x691   : > { %7232 = vst [vmem:[%s9232_s11 + $0x410] sm:$0xff] %v2643_v3  ;;  %v750_v29 = vpop.trf.xlu0 }
 0x692   : > { %v2645_v21 = vpop.f32.mrf.mxu1  ;;  %6945 = vmatmul.mubr.msk.f32.gmra.mxu0 %vm787_vm3, %v750_v29 }
 0x693   : > { %7233 = vst [vmem:[%s9232_s11 + $0x418] sm:$0xff] %v2645_v21  ;;  %1002 = vmatprep.mubr.f32.mxu0 %v11325_v60 }
 0x694   : > { %v2649_v42 = vpop.f32.mrf.mxu1 }
 0x695   : > { %7234 = vst [vmem:[%s9232_s11 + $0x420] sm:$0xff] %v2649_v42  ;;  %v751_v24 = vpop.trf.xlu0 }
 0x696   : > { %v2651_v11 = vpop.f32.mrf.mxu1  ;;  %6946 = vmatmul.mubr.msk.f32.gmra.mxu0 %vm787_vm3, %v751_v24 }
 0x697   : > { %7235 = vst [vmem:[%s9232_s11 + $0x428] sm:$0xff] %v2651_v11  ;;  %1008 = vmatprep.mubr.f32.mxu0 %v11325_v60 }
 0x698   : > { %v2655_v25 = vpop.f32.mrf.mxu1 }
 0x699   : > { %7236 = vst [vmem:[%s9232_s11 + $0x430] sm:$0xff] %v2655_v25  ;;  %v752_v3 = vpop.trf.xlu0 }
 0x69a   : > { %v2657_v40 = vpop.f32.mrf.mxu1  ;;  %6947 = vmatmul.mubr.msk.f32.gmra.mxu0 %vm787_vm3, %v752_v3  ;;  %v7408_v3 = vld [vmem:[%s8454_s9 + $0x268] sm:$0xff] }
 0x69b   : > { %7237 = vst [vmem:[%s9232_s11 + $0x438] sm:$0xff] %v2657_v40  ;;  %1014 = vmatprep.mubr.f32.mxu0 %v11325_v60 }
 0x69c   : > { %v2661_v38 = vpop.f32.mrf.mxu1 }
 0x69d   : > { %7238 = vst [vmem:[%s9232_s11 + $0x440] sm:$0xff] %v2661_v38  ;;  %v753_v25 = vpop.trf.xlu0 }
 0x69e   : > { %v2663_v51 = vpop.f32.mrf.mxu1  ;;  %6948 = vmatmul.mubr.msk.f32.gmra.mxu0 %vm787_vm3, %v753_v25  ;;  %v6983_v25 = vld [vmem:[%s9050_s6 + $0x70] sm:$0xff] }
 0x69f   : > { %7239 = vst [vmem:[%s9232_s11 + $0x448] sm:$0xff] %v2663_v51  ;;  %1020 = vmatprep.mubr.f32.mxu0 %v11325_v60 }
 0x6a0   : > { %v2667_v33 = vpop.f32.mrf.mxu1 }
 0x6a1   : > { %7240 = vst [vmem:[%s9232_s11 + $0x450] sm:$0xff] %v2667_v33  ;;  %v6988_v33 = vld [vmem:[%s9050_s6 + $0x98] sm:$0xf] }
 0x6a2   : > { %v2669_v46 = vpop.f32.mrf.mxu1  ;;  %7028 = vmatprep.subr.msk.mxu0 %vm502_vm1, %v6988_v33  ;;  %v6981_v33 = vld [vmem:[%s9050_s6 + $0x60] sm:$0xff] }
 0x6a3   : > { %7241 = vst [vmem:[%s9232_s11 + $0x458] sm:$0xff] %v2669_v46  ;;  %v6987_v46 = vld [vmem:[%s9050_s6 + $0x90] sm:$0xf] }
 0x6a4   : > { %v2673_v57 = vpop.f32.mrf.mxu1  ;;  %7029 = vmatpush1.msk.msra.mxu0 %vm502_vm1, %v6987_v46  ;;  %v7401_v46 = vld [vmem:[%s8454_s9 + $0x230] sm:$0xff] }
 0x6a5   : > { %7242 = vst [vmem:[%s9232_s11 + $0x460] sm:$0xff] %v2673_v57 }
 0x6a6   : > { %v2675_v31 = vpop.f32.mrf.mxu1 }
 0x6a7   : > { %7243 = vst [vmem:[%s9232_s11 + $0x468] sm:$0xff] %v2675_v31  ;;  %v754_v31 = vpop.trf.xlu0 }
 0x6a8   : > { %v2679_v20 = vpop.f32.mrf.mxu1  ;;  %6949 = vmatmul.mubr.msk.f32.gmra.mxu0 %vm787_vm3, %v754_v31  ;;  %v7398_v31 = vld [vmem:[%s8454_s9 + $0x218] sm:$0xff] }
 0x6a9   : > { %7244 = vst [vmem:[%s9232_s11 + $0x470] sm:$0xff] %v2679_v20  ;;  %1026 = vmatprep.mubr.f32.mxu0 %v11325_v60 }
 0x6aa   : > { %v2681_v44 = vpop.f32.mrf.mxu1 }
 0x6ab   : > { %7245 = vst [vmem:[%s9232_s11 + $0x478] sm:$0xff] %v2681_v44 }
 0x6ac   : > { %v9316_v32 = vpop.f32.mrf.mxu1 }
 0x6ae   : > { %v9319_v22 = vpop.f32.mrf.mxu1 }
 0x6af   : > { %v2902_v10 = vsel %vm375_vm0, %v9319_v22, -inf }
 0x6b0   : > { %v9324_v55 = vpop.f32.mrf.mxu1  ;;  %v2903_v5 = vmax.f32 %v9316_v32, %v2902_v10  ;;  %v7410_v10 = vld [vmem:[%s8454_s9 + $0x278] sm:$0xff] }
 0x6b1   : > { %3628 = vmatprep.subr.mxu1 %v7410_v10  ;;  %v6979_v10 = vld [vmem:[%s9050_s6 + $0x50] sm:$0xff] }
 0x6b2   : > { %v9328_v21 = vpop.f32.mrf.mxu1  ;;  %2904 = vmax.xlane.f32.xlu0 %v2903_v5  ;;  %v7409_v5 = vld [vmem:[%s8454_s9 + $0x270] sm:$0xff] }
 0x6b3   : > { %v2906_v7 = vsel %vm375_vm0, %v9328_v21, -inf  ;;  %3629 = vmatpush1.msra.mxu1 %v7409_v5  ;;  %v7392_v5 = vld [vmem:[%s8476_s13 + $0xb0] sm:$0xff] }
 0x6b4   : > { %v9333_v42 = vpop.f32.mrf.mxu1  ;;  %v2907_v11 = vmax.f32 %v9324_v55, %v2906_v7  ;;  %3630 = vmatprep.subr.mxu1 %v7408_v3  ;;  %v7407_v7 = vld [vmem:[%s8454_s9 + $0x260] sm:$0xff] }
 0x6b5   : > { %3631 = vmatpush1.msra.mxu1 %v7407_v7  ;;  %v7394_v3 = vld [vmem:[%s8476_s13 + $0xc0] sm:$0xf] }
 0x6b6   : > { %v9337_v23 = vpop.f32.mrf.mxu1  ;;  %2908 = vmax.xlane.f32.xlu0 %v2907_v11  ;;  %v6984_v11 = vld [vmem:[%s9050_s6 + $0x78] sm:$0xff] }
 0x6b7   : > { %v2910_v40 = vsel %vm375_vm0, %v9337_v23, -inf }
 0x6b8   : > { %v9342_v27 = vpop.f32.mrf.mxu1  ;;  %v2911_v38 = vmax.f32 %v9333_v42, %v2910_v40  ;;  %v7405_v40 = vld [vmem:[%s8454_s9 + $0x250] sm:$0xff] }
 0x6ba   : > { %v9346_v51 = vpop.f32.mrf.mxu1  ;;  %2912 = vmax.xlane.f32.xlu0 %v2911_v38  ;;  %v7403_v38 = vld [vmem:[%s8454_s9 + $0x240] sm:$0xff] }
 0x6bb   : > { %v2914_v53 = vsel %vm375_vm0, %v9346_v51, -inf }
 0x6bc   : > { %v9353_v12 = vpop.f32.mrf.mxu1  ;;  %v2915_v57 = vmax.f32 %v9342_v27, %v2914_v53  ;;  %v7402_v53 = vld [vmem:[%s8454_s9 + $0x238] sm:$0xff] }
 0x6bd   : > { %v2918_v20 = vsel %vm502_vm1, %v9353_v12, -inf }
 0x6be   : > { %v9358_v29 = vpop.f32.mrf.mxu1  ;;  %2916 = vmax.xlane.f32.xlu0 %v2915_v57  ;;  %v7399_v57 = vld [vmem:[%s8454_s9 + $0x220] sm:$0xff] }
 0x6bf   : > { %v2919_v44 = vsel %vm504_vm2, %v9358_v29, -inf }
 0x6c0   : > { %v2920_v24 = vmax.f32 %v2918_v20, %v2919_v44  ;;  %v7396_v20 = vld [vmem:[%s8454_s9 + $0x208] sm:$0xff]  ;;  %v7390_v44 = vld [vmem:[%s8476_s13 + $0xa0] sm:$0xff] }
 0x6c2   : > { %2921 = vmax.xlane.f32.xlu1 %v2920_v24  ;;  %v6980_v24 = vld [vmem:[%s9050_s6 + $0x58] sm:$0xff] }
 0x6eb   : > { %1528 = vxpose.xlu0.b32.start [1/5] (short) %v8936_v4, 128  ;;  %v7406_v4 = vld [vmem:[%s8454_s9 + $0x258] sm:$0xff] }
 0x6ec   : > { %3632 = vmatprep.subr.mxu1 %v7406_v4 }
 0x6ed   : > { %3633 = vmatpush1.msra.mxu1 %v7405_v40 }
 0x6ef   : > { %1529 = vxpose.xlu0.b32.cont [2/5] (short) %v8939_v8, 128  ;;  %v6986_v8 = vld [vmem:[%s9050_s6 + $0x88] sm:$0xff] }
 0x6f0   : > { %1694 = vmatprep.subr.mxu0 %v6986_v8 }
 0x6f3   : > { %1530 = vxpose.xlu0.b32.cont [3/5] (short) %v8942_v17, 128  ;;  %v6985_v17 = vld [vmem:[%s9050_s6 + $0x80] sm:$0xff] }
 0x6f4   : > { %1695 = vmatpush1.msra.mxu0 %v6985_v17 }
 0x6f5   : > { %755 = vxpose.xlu1.b32.start [1/5] (short) (narrow) %v8693_v37, 64  ;;  %v7404_v37 = vld [vmem:[%s8454_s9 + $0x248] sm:$0xff]  ;;  %1696 = vmatprep.subr.mxu0 %v6984_v11 }
 0x6f6   : > { %1697 = vmatpush1.msra.mxu0 %v6983_v25  ;;  %3634 = vmatprep.subr.mxu1 %v7404_v37 }
 0x6f7   : > { %1531 = vxpose.xlu0.b32.cont [4/5] (short) %v8945_v62, 128  ;;  %v6982_v62 = vld [vmem:[%s9050_s6 + $0x68] sm:$0xff]  ;;  %3635 = vmatpush1.msra.mxu1 %v7403_v38 }
 0x6f8   : > { %1698 = vmatprep.subr.mxu0 %v6982_v62  ;;  %3636 = vmatprep.subr.mxu1 %v7402_v53 }
 0x6f9   : > { %756 = vxpose.xlu1.b32.cont [2/5] (short) (narrow) %v8696_v36, 64  ;;  %v7400_v36 = vld [vmem:[%s8454_s9 + $0x228] sm:$0xff]  ;;  %1699 = vmatpush1.msra.mxu0 %v6981_v33 }
 0x6fa   : > { %3637 = vmatpush1.msra.mxu1 %v7401_v46  ;;  %1700 = vmatprep.subr.mxu0 %v6980_v24 }
 0x6fb   : > { %1532 = vxpose.xlu0.b32.end [5/5] (short) %v8948_v19, 128  ;;  %3638 = vmatprep.subr.mxu1 %v7400_v36  ;;  %v7397_v19 = vld [vmem:[%s8454_s9 + $0x210] sm:$0xff] }
 0x6fc   : > { %3639 = vmatpush1.msra.mxu1 %v7399_v57  ;;  %1701 = vmatpush1.msra.mxu0 %v6979_v10 }
 0x6fd   : > { %757 = vxpose.xlu1.b32.cont [3/5] (short) (narrow) %v8699_v45, 64  ;;  %3640 = vmatprep.subr.mxu1 %v7398_v31  ;;  %v7395_v45 = vld [vmem:[%s8454_s9 + $0x200] sm:$0xff] }
 0x6fe   : > { %3641 = vmatpush1.msra.mxu1 %v7397_v19  ;;  %3027 = vmatprep.subr.mxu0 %v11325_v60 }
 0x6ff   : > { %3642 = vmatprep.subr.mxu1 %v7396_v20 }
 0x700   : > { %3643 = vmatpush1.msra.mxu1 %v7395_v45 }
 0x701   : > { %758 = vxpose.xlu1.b32.cont [4/5] (short) (narrow) %v8702_v47, 64  ;;  %7445 = vmatmul.mubr.msk.f32.vlgmr.msra.gmra.mxu1 %vm375_vm0, %v7390_v44  ;;  %v7391_v47 = vld [vmem:[%s8476_s13 + $0xa8] sm:$0xff] }
 0x702   : > { %3832 = vmatprep.subr.mxu1 %v11325_v60  ;;  %3682 = vmatprep.mubr.f32.mxu1 %v11325_v60 }
 0x705   : > { %759 = vxpose.xlu1.b32.end [5/5] (short) (narrow) %v8720_v52, 64  ;;  %7446 = vmatmul.mubr.msk.f32.gmra.mxu1 %vm375_vm0, %v7391_v47  ;;  %v7393_v52 = vld [vmem:[%s8476_s13 + $0xb8] sm:$0xff] }
 0x706   : > { %3688 = vmatprep.mubr.f32.mxu1 %v11325_v60 }
 0x709   : > { %7447 = vmatmul.mubr.msk.f32.gmra.mxu1 %vm375_vm0, %v7392_v5 }
 0x70a   : > { %3694 = vmatprep.mubr.f32.mxu1 %v11325_v60 }
 0x70d   : > { %7448 = vmatmul.mubr.msk.f32.gmra.mxu1 %vm375_vm0, %v7393_v52 }
 0x70e   : > { %3700 = vmatprep.mubr.f32.mxu1 %v11325_v60 }
 0x711   : > { %7449 = vmatmul.mubr.msk.f32.gmra.mxu1 %vm375_vm0, %v7394_v3 }
 0x712   : > { %1560 = vxpose.xlu1.b32.start [1/5] (short) (narrow) %v8923_v59, 64 }
 0x716   : > { %1561 = vxpose.xlu1.b32.cont [2/5] (short) (narrow) %v8926_v63, 64 }
 0x71a   : > { %1562 = vxpose.xlu1.b32.cont [3/5] (short) (narrow) %v8929_v2, 64 }
 0x71e   : > { %1563 = vxpose.xlu1.b32.cont [4/5] (short) (narrow) %v8932_v6, 64 }
 0x721   : > { %v932_v4 = vpop.f32.mrf.mxu0 }
 0x722   : > { %1564 = vxpose.xlu1.b32.end [5/5] (short) (narrow) %v8951_v34, 64  ;;  %1075 = vst [vmem:[%s9232_s11] sm:$0xff] %v932_v4 }
 0x723   : > { %v934_v8 = vpop.f32.mrf.mxu0 }
 0x724   : > { %1076 = vst [vmem:[%s9232_s11 + $0x8] sm:$0xff] %v934_v8 }
 0x725   : > { %v938_v17 = vpop.f32.mrf.mxu0 }
 0x726   : > { %1077 = vst [vmem:[%s9232_s11 + $0x10] sm:$0xff] %v938_v17 }
 0x727   : > { %v940_v63 = vpop.f32.mrf.mxu0 }
 0x728   : > { %1078 = vst [vmem:[%s9232_s11 + $0x18] sm:$0xff] %v940_v63 }
 0x72a   : > { %v944_v25 = vpop.f32.mrf.mxu0 }
 0x72b   : > { %1079 = vst [vmem:[%s9232_s11 + $0x20] sm:$0xff] %v944_v25 }
 0x72c   : > { %v946_v6 = vpop.f32.mrf.mxu0 }
 0x72d   : > { %1080 = vst [vmem:[%s9232_s11 + $0x28] sm:$0xff] %v946_v6 }
 0x730   : > { %v950_v38 = vpop.f32.mrf.mxu0 }
 0x731   : > { %1081 = vst [vmem:[%s9232_s11 + $0x30] sm:$0xff] %v950_v38 }
 0x732   : > { %v952_v33 = vpop.f32.mrf.mxu0 }
 0x733   : > { %1082 = vst [vmem:[%s9232_s11 + $0x38] sm:$0xff] %v952_v33 }
 0x736   : > { %v956_v36 = vpop.f32.mrf.mxu0 }
 0x737   : > { %1083 = vst [vmem:[%s9232_s11 + $0x40] sm:$0xff] %v956_v36 }
 0x738   : > { %v958_v31 = vpop.f32.mrf.mxu0 }
 0x739   : > { %1084 = vst [vmem:[%s9232_s11 + $0x48] sm:$0xff] %v958_v31 }
 0x73a   : > { %v962_v20 = vpop.f32.mrf.mxu0 }
 0x73b   : > { %v2905_v7 = vpop.xlane.xlu0 %2904  ;;  %1085 = vst [vmem:[%s9232_s11 + $0x50] sm:$0xff] %v962_v20 }
 0x73c   : > { %v964_v44 = vpop.f32.mrf.mxu0 }
 0x73d   : > { %1086 = vst [vmem:[%s9232_s11 + $0x58] sm:$0xff] %v964_v44 }
 0x73e   : > { %v968_v24 = vpop.f32.mrf.mxu0 }
 0x73f   : > { %v2909_v59 = vpop.xlane.xlu0 %2908  ;;  %1087 = vst [vmem:[%s9232_s11 + $0x60] sm:$0xff] %v968_v24 }
 0x740   : > { %v970_v5 = vpop.f32.mrf.mxu0 }
 0x741   : > { %1088 = vst [vmem:[%s9232_s11 + $0x68] sm:$0xff] %v970_v5 }
 0x742   : > { %v974_v3 = vpop.f32.mrf.mxu0 }
 0x743   : > { %v2913_v11 = vpop.xlane.xlu0 %2912  ;;  %1089 = vst [vmem:[%s9232_s11 + $0x70] sm:$0xff] %v974_v3 }
 0x744   : > { %v976_v4 = vpop.f32.mrf.mxu0 }
 0x745   : > { %1090 = vst [vmem:[%s9232_s11 + $0x78] sm:$0xff] %v976_v4 }
 0x747   : > { %v2917_v34 = vpop.xlane.xlu0 %2916 }
 0x748   : > { %v2926_v62 = vmax.f32 %v2913_v11, %v2917_v34  ;;  %v980_v11 = vpop.f32.mrf.mxu0 }
 0x749   : > { %1091 = vst [vmem:[%s9232_s11 + $0x80] sm:$0xff] %v980_v11 }
 0x74a   : > { %v982_v34 = vpop.f32.mrf.mxu0 }
 0x74b   : > { %v2922_v2 = vpop.xlane.xlu1 %2921  ;;  %1092 = vst [vmem:[%s9232_s11 + $0x88] sm:$0xff] %v982_v34 }
 0x74c   : > { %v2923_v40 = vsel %vm502_vm1, %v2922_v2, -inf }
 0x74d   : > { %v2924_v37 = vmax.f32 %v2905_v7, %v2923_v40 }
 0x74f   : > { %v2925_v53 = vmax.f32 %v2924_v37, %v2909_v59  ;;  %v986_v37 = vpop.f32.mrf.mxu0 }
 0x750   : > { %1093 = vst [vmem:[%s9232_s11 + $0x90] sm:$0xff] %v986_v37 }
 0x751   : > { %v2927_v46 = vmax.f32 %v2925_v53, %v2926_v62  ;;  %v988_v62 = vpop.f32.mrf.mxu0 }
 0x752   : > { %1094 = vst [vmem:[%s9232_s11 + $0x98] sm:$0xff] %v988_v62 }
 0x753   : > { %v2928_v57 = vrot.slane %v2927_v46, 4 }
 0x755   : > { %v2929_v19 = vmax.f32 %v2927_v46, %v2928_v57 }
 0x757   : > { %v2930_v45 = vrot.slane %v2929_v19, 2 }
 0x759   : > { %v2931_v47 = vmax.f32 %v2929_v19, %v2930_v45 }
 0x75b   : > { %v2932_v10 = vrot.slane %v2931_v47, 1 }
 0x75d   : > { %v2933_v52 = vmax.f32 %v2931_v47, %v2932_v10 }
 0x75f   : > { %v2936_v7 = vsub.f32 %v9324_v55, %v2933_v52  ;;  %v2937_v59 = vsub.f32 %v9328_v21, %v2933_v52  ;;  %v2939_v8 = vsub.f32 %v9337_v23, %v2933_v52  ;;  %v2942_v17 = vsub.f32 %v9353_v12, %v2933_v52 }
 0x760   : > { %v2943_v63 = vsub.f32 %v9358_v29, %v2933_v52  ;;  %v2934_v6 = vsub.f32 %v9316_v32, %v2933_v52  ;;  %v2935_v55 = vsub.f32 %v9319_v22, %v2933_v52  ;;  %v2938_v21 = vsub.f32 %v9333_v42, %v2933_v52  ;;  %v992_v42 = vpop.f32.mrf.mxu0 }
 0x761   : > { %v2948_v25 = vmul.f32 1.442695, %v2936_v7  ;;  %v2950_v2 = vmul.f32 1.442695, %v2937_v59  ;;  %v2954_v40 = vmul.f32 1.442695, %v2939_v8  ;;  %v2941_v12 = vsub.f32 %v9346_v51, %v2933_v52 }
 0x762   : > { %v2960_v23 = vmul.f32 1.442695, %v2942_v17  ;;  %v2962_v29 = vmul.f32 1.442695, %v2943_v63  ;;  %v2940_v38 = vsub.f32 %v9342_v27, %v2933_v52  ;;  %v2944_v32 = vmul.f32 1.442695, %v2934_v6  ;;  %v994_v46 = vpop.f32.mrf.mxu0 }
 0x763   : > { %8101 = vpow2.f32 %v2948_v25  ;;  %v2946_v53 = vmul.f32 1.442695, %v2935_v55  ;;  %v2952_v22 = vmul.f32 1.442695, %v2938_v21  ;;  %v2958_v33 = vmul.f32 1.442695, %v2941_v12 }
 0x764   : > { %8103 = vpow2.f32 %v2950_v2  ;;  %1095 = vst [vmem:[%s9232_s11 + $0xa0] sm:$0xff] %v992_v42  ;;  %v2956_v51 = vmul.f32 1.442695, %v2940_v38  ;;  %1096 = vst [vmem:[%s9232_s11 + $0xa8] sm:$0xff] %v994_v46  ;;  %v998_v27 = vpop.f32.mrf.mxu0 }
 0x765   : > { %8105 = vpow2.f32 %v2954_v40  ;;  %1097 = vst [vmem:[%s9232_s11 + $0xb0] sm:$0xff] %v998_v27 }
 0x766   : > { %8107 = vpow2.f32 %v2960_v23  ;;  %v1000_v36 = vpop.f32.mrf.mxu0 }
 0x767   : > { %8109 = vpow2.f32 %v2962_v29  ;;  %v9455_v57 = vpop.trf.xlu0  ;;  %1098 = vst [vmem:[%s9232_s11 + $0xb8] sm:$0xff] %v1000_v36 }
 0x768   : > { %8111 = vpow2.f32 %v2944_v32  ;;  %v1004_v19 = vpop.f32.mrf.mxu0 }
 0x769   : > { %8113 = vpow2.f32 %v2946_v53  ;;  %1099 = vst [vmem:[%s9232_s11 + $0xc0] sm:$0xff] %v1004_v19 }
 0x76a   : > { %8115 = vpow2.f32 %v2952_v22  ;;  %v1006_v45 = vpop.f32.mrf.mxu0 }
 0x76b   : > { %8117 = vpow2.f32 %v2958_v33  ;;  %1100 = vst [vmem:[%s9232_s11 + $0xc8] sm:$0xff] %v1006_v45  ;;  %v9471_v52 = vpop.trf.xlu0 }
 0x76c   : > { %8119 = vpow2.f32 %v2956_v51  ;;  %v1010_v10 = vpop.f32.mrf.mxu0 }
 0x76d   : > { %1101 = vst [vmem:[%s9232_s11 + $0xd0] sm:$0xff] %v1010_v10 }
 0x76e   : > { %v1012_v59 = vpop.f32.mrf.mxu0 }
 0x76f   : > { %1102 = vst [vmem:[%s9232_s11 + $0xd8] sm:$0xff] %v1012_v59  ;;  %v1546_v38 = vpop.trf.xlu0 }
 0x770   : > { %v9460_v20 = vpop.eup %8101  ;;  %v1016_v2 = vpop.f32.mrf.mxu0 }
 0x771   : > { %v771_v31 = vpop.trf.xlu1  ;;  %v9463_v44 = vpop.eup %8103  ;;  %1103 = vst [vmem:[%s9232_s11 + $0xe0] sm:$0xff] %v1016_v2 }
 0x772   : > { %6950 = vmatmul.mubr.msk.f32.gmra.mxu0 %vm787_vm3, %v771_v31  ;;  %v9466_v47 = vpop.eup %8105  ;;  %v9483_v8 = vsel %vm375_vm0, %v9463_v44, 0.0  ;;  %v1018_v37 = vpop.f32.mrf.mxu0 }
 0x773   : > { %1032 = vmatprep.mubr.f32.mxu0 %v11325_v60  ;;  %v9468_v5 = vpop.eup %8107  ;;  %v9512_v29 = vsel %vm375_vm0, %v9466_v47, 0.0  ;;  %1104 = vst [vmem:[%s9232_s11 + $0xe8] sm:$0xff] %v1018_v37 }
 0x774   : > { %v9474_v3 = vpop.eup %8109  ;;  %v2980_v7 = vsel %vm502_vm1, %v9468_v5, 0.0  ;;  %11333 = vst [vmem:[#allocation21_spill] sm:$0xff] %v9512_v29  ;;  %v1022_v22 = vpop.f32.mrf.mxu0 }
 0x775   : > { %v772_v24 = vpop.trf.xlu1  ;;  %v9479_v4 = vpop.eup %8111  ;;  %v2981_v17 = vsel %vm504_vm2, %v9474_v3, 0.0  ;;  %1105 = vst [vmem:[%s9232_s11 + $0xf0] sm:$0xff] %v1022_v22 }
 0x776   : > { %6951 = vmatmul.mubr.msk.f32.gmra.mxu0 %vm787_vm3, %v772_v24  ;;  %11329 = vst [vmem:[#allocation17_spill] sm:$0xff] %v9479_v4  ;;  %v9488_v11 = vpop.eup %8113  ;;  %v2990_v25 = vadd.f32 %v9479_v4, %v9460_v20  ;;  %v9492_v6 = vadd.f32 %v2981_v17, %v2980_v7  ;;  %v1024_v46 = vpop.f32.mrf.mxu0 }
 0x777   : > { %1038 = vmatprep.mubr.f32.mxu0 %v11325_v60  ;;  %v9494_v34 = vpop.eup %8115  ;;  %v9499_v40 = vsel %vm375_vm0, %v9488_v11, 0.0  ;;  %1106 = vst [vmem:[%s9232_s11 + $0xf8] sm:$0xff] %v1024_v46  ;;  %v1547_v24 = vpop.trf.xlu0  ;;  %v7290_v46 = vld [vmem:[%s8524_s17 + $0x2a8] sm:$0xff] }
 0x778   : > { %11330 = vst [vmem:[#allocation18_spill] sm:$0xff] %v9492_v6  ;;  %11331 = vst [vmem:[#allocation19_spill] sm:$0xff] %v9494_v34  ;;  %v9502_v55 = vpop.eup %8117  ;;  %v2991_v21 = vadd.f32 %v9494_v34, %v2990_v25  ;;  %v3000_v23 = vadd.f32 %v9483_v8, %v9499_v40 }
 0x779   : > { %v773_v63 = vpop.trf.xlu1  ;;  %11332 = vst [vmem:[#allocation20_spill] sm:$0xff] %v9499_v40  ;;  %v9508_v12 = vpop.eup %8119  ;;  %v9520_v42 = vsel %vm375_vm0, %v9502_v55, 0.0 }
 0x77a   : > { %6952 = vmatmul.mubr.msk.f32.gmra.mxu0 %vm787_vm3, %v773_v63  ;;  %v2992_v62 = vadd.f32 %v9508_v12, %v2991_v21  ;;  %v3001_v53 = vadd.f32 %v3000_v23, %v9512_v29 }
 0x77b   : > { %1044 = vmatprep.mubr.f32.mxu0 %v11325_v60  ;;  %v1548_v23 = vpop.trf.xlu0 }
 0x77c   : > { %v2993_v33 = vadd.f32 %v2992_v62, %v2980_v7  ;;  %v3002_v51 = vadd.f32 %v3001_v53, %v9520_v42 }
 0x77d   : > { %v774_v32 = vpop.trf.xlu1 }
 0x77e   : > { %6953 = vmatmul.mubr.msk.f32.gmra.mxu0 %vm787_vm3, %v774_v32  ;;  %v2994_v36 = vrot.slane %v2993_v33, 4  ;;  %v3003_v31 = vadd.f32 %v3002_v51, %v2981_v17  ;;  %v7291_v51 = vld [vmem:[%s8524_s17 + $0x2b0] sm:$0xff] }
 0x77f   : > { %1050 = vmatprep.mubr.f32.mxu0 %v11325_v60  ;;  %v1549_v22 = vpop.trf.xlu0 }
 0x780   : > { %v2995_v19 = vadd.f32 %v2994_v36, %v2993_v33  ;;  %v3004_v45 = vrot.slane %v3003_v31, 4  ;;  %v7292_v33 = vld [vmem:[%s8524_s17 + $0x2b8] sm:$0xff]  ;;  %v7289_v36 = vld [vmem:[%s8524_s17 + $0x2a0] sm:$0xff] }
 0x781   : > { %v775_v27 = vpop.trf.xlu1 }
 0x782   : > { %6954 = vmatmul.mubr.msk.f32.gmra.mxu0 %vm787_vm3, %v775_v27  ;;  %v2996_v59 = vrot.slane %v2995_v19, 2  ;;  %v3005_v63 = vadd.f32 %v3004_v45, %v3003_v31 }
 0x783   : > { %1056 = vmatprep.mubr.f32.mxu0 %v11325_v60  ;;  %v1550_v27 = vpop.trf.xlu0 }
 0x784   : > { %v2997_v7 = vadd.f32 %v2996_v59, %v2995_v19  ;;  %v3006_v25 = vrot.slane %v3005_v63, 2  ;;  %v7287_v59 = vld [vmem:[%s8524_s17 + $0x290] sm:$0xff] }
 0x785   : > { %v776_v10 = vpop.trf.xlu1 }
 0x786   : > { %6955 = vmatmul.mubr.msk.f32.gmra.mxu0 %vm787_vm3, %v776_v10  ;;  %v2998_v21 = vrot.slane %v2997_v7, 1  ;;  %v3007_v17 = vadd.f32 %v3006_v25, %v3005_v63  ;;  %v7286_v25 = vld [vmem:[%s8524_s17 + $0x288] sm:$0xff] }
 0x787   : > { %1062 = vmatprep.mubr.f32.mxu0 %v11325_v60 }
 0x788   : > { %v2999_v37 = vadd.f32 %v2998_v21, %v2997_v7  ;;  %v3008_v32 = vrot.slane %v3007_v17, 1  ;;  %v7285_v21 = vld [vmem:[%s8524_s17 + $0x280] sm:$0xff] }
 0x789   : > { %v777_v2 = vpop.trf.xlu1 }
 0x78a   : > { %6956 = vmatmul.mubr.msk.f32.gmra.mxu0 %vm787_vm3, %v777_v2  ;;  %8121 = vrcp.f32 %v2999_v37  ;;  %v3009_v53 = vadd.f32 %v3008_v32, %v3007_v17  ;;  %v7284_v32 = vld [vmem:[%s8524_s17 + $0x278] sm:$0xff] }
 0x78b   : > { %1068 = vmatprep.mubr.f32.mxu0 %v11325_v60 }
 0x78c   : > { %8123 = vrcp.f32 %v3009_v53 }
 0x78d   : > { %v778_v62 = vpop.trf.xlu1 }
 0x78e   : > { %6957 = vmatmul.mubr.msk.f32.gmra.mxu0 %vm787_vm3, %v778_v62 }
 0x78f   : > { %1734 = vmatprep.mubr.f32.mxu0 %v11325_v60 }
 0x792   : > { %7030 = vmatmul.mubr.msk.f32.vlgmr.msra.gmra.mxu0 %vm787_vm3, %v9455_v57  ;;  %v7288_v57 = vld [vmem:[%s8524_s17 + $0x298] sm:$0xff] }
 0x793   : > { %1740 = vmatprep.mubr.f32.mxu0 %v11325_v60  ;;  %3028 = vmatpush1.msra.mxu0 %v7292_v33  ;;  %v7283_v33 = vld [vmem:[%s8524_s17 + $0x270] sm:$0xff] }
 0x794   : > { %3029 = vmatprep.subr.mxu0 %v11325_v60 }
 0x795   : > { %3030 = vmatpush1.msra.mxu0 %v7291_v51  ;;  %v7282_v51 = vld [vmem:[%s8524_s17 + $0x268] sm:$0xff] }
 0x796   : > { %7031 = vmatmul.mubr.msk.f32.gmra.mxu0 %vm787_vm3, %v9471_v52  ;;  %3031 = vmatprep.subr.mxu0 %v11325_v60  ;;  %v1551_v52 = vpop.trf.xlu0 }
 0x797   : > { %1746 = vmatprep.mubr.f32.mxu0 %v11325_v60  ;;  %3032 = vmatpush1.msra.mxu0 %v7290_v46  ;;  %v8122_v31 = vpop.eup %8121  ;;  %v7281_v46 = vld [vmem:[%s8524_s17 + $0x260] sm:$0xff] }
 0x798   : > { %3033 = vmatprep.subr.mxu0 %v11325_v60  ;;  %v3128_v19 = vmul.f32 %v8122_v31, %v9479_v4  ;;  %v3134_v17 = vmul.f32 %v8122_v31, %v9508_v12  ;;  %v3136_v62 = vmul.f32 %v8122_v31, %v9468_v5 }
 0x799   : > { %3034 = vmatpush1.msra.mxu0 %v7289_v36  ;;  %v8124_v45 = vpop.eup %8123  ;;  %v7280_v36 = vld [vmem:[%s8524_s17 + $0x258] sm:$0xff] }
 0x79a   : > { %7032 = vmatmul.mubr.msk.f32.gmra.mxu0 %vm787_vm3, %v1546_v38  ;;  %3035 = vmatprep.subr.mxu0 %v11325_v60  ;;  %v3129_v10 = vmul.f32 %v8124_v45, %v9488_v11  ;;  %v3130_v38 = vmul.f32 %v8122_v31, %v9460_v20  ;;  %v3131_v63 = vmul.f32 %v8124_v45, %v9463_v44  ;;  %v1552_v7 = vpop.trf.xlu0 }
 0x79b   : > { %1752 = vmatprep.mubr.f32.mxu0 %v11325_v60  ;;  %3036 = vmatpush1.msra.mxu0 %v7288_v57  ;;  %v3133_v2 = vmul.f32 %v8124_v45, %v9466_v47  ;;  %v3135_v37 = vmul.f32 %v8124_v45, %v9502_v55  ;;  %v3137_v53 = vmul.f32 %v8124_v45, %v9474_v3  ;;  %v7279_v57 = vld [vmem:[%s8524_s17 + $0x250] sm:$0xff]  ;;  %v7300_v45 = vld [vmem:[%s8524_s17 + $0x2f8] sm:$0xff] }
 0x79c   : > { %3138 = vxpose.xlu1.b32.start [1/5] (short) %v3128_v19, 128  ;;  %3037 = vmatprep.subr.mxu0 %v11325_v60 }
 0x79d   : > { %3170 = vxpose.xlu0.b32.start [1/5] (short) (narrow) %v3129_v10, 64  ;;  %3038 = vmatpush1.msra.mxu0 %v7287_v59  ;;  %v7299_v10 = vld [vmem:[%s8524_s17 + $0x2f0] sm:$0xff] }
 0x79e   : > { %7033 = vmatmul.mubr.msk.f32.gmra.mxu0 %vm787_vm3, %v1547_v24  ;;  %3039 = vmatprep.subr.mxu0 %v11325_v60  ;;  %v3132_v24 = vmul.f32 %v8122_v31, %v9494_v34  ;;  %v7278_v31 = vld [vmem:[%s8524_s17 + $0x248] sm:$0xff] }
 0x79f   : > { %1758 = vmatprep.mubr.f32.mxu0 %v11325_v60  ;;  %3040 = vmatpush1.msra.mxu0 %v7286_v25  ;;  %v7296_v25 = vld [vmem:[%s8524_s17 + $0x2d8] sm:$0xff] }
 0x7a0   : > { %3139 = vxpose.xlu1.b32.cont [2/5] (short) %v3130_v38, 128  ;;  %3041 = vmatprep.subr.mxu0 %v11325_v60  ;;  %v7298_v38 = vld [vmem:[%s8524_s17 + $0x2e8] sm:$0xff] }
 0x7a1   : > { %3171 = vxpose.xlu0.b32.cont [2/5] (short) (narrow) %v3131_v63, 64  ;;  %3042 = vmatpush1.msra.mxu0 %v7285_v21  ;;  %v1576_v63 = vpop.trf.xlu1 }
 0x7a2   : > { %7034 = vmatmul.mubr.msk.f32.gmra.mxu0 %vm787_vm3, %v1548_v23  ;;  %v1553_v23 = vpop.trf.xlu0  ;;  %3043 = vmatprep.subr.mxu0 %v11325_v60 }
 0x7a3   : > { %1764 = vmatprep.mubr.f32.mxu0 %v11325_v60  ;;  %3044 = vmatpush1.msra.mxu0 %v7284_v32  ;;  %v7276_v32 = vld [vmem:[%s9050_s6 + $0x138] sm:$0xf] }
 0x7a4   : > { %3140 = vxpose.xlu1.b32.cont [3/5] (short) %v3132_v24, 128  ;;  %3045 = vmatprep.subr.mxu0 %v11325_v60 }
 0x7a5   : > { %3172 = vxpose.xlu0.b32.cont [3/5] (short) (narrow) %v3133_v2, 64  ;;  %3046 = vmatpush1.msra.mxu0 %v7283_v33  ;;  %v7295_v2 = vld [vmem:[%s8524_s17 + $0x2d0] sm:$0xff]  ;;  %v1577_v21 = vpop.trf.xlu1 }
 0x7a6   : > { %7035 = vmatmul.mubr.msk.f32.gmra.mxu0 %vm787_vm3, %v1549_v22  ;;  %v1554_v22 = vpop.trf.xlu0  ;;  %3047 = vmatprep.subr.mxu0 %v11325_v60 }
 0x7a7   : > { %1770 = vmatprep.mubr.f32.mxu0 %v11325_v60  ;;  %3048 = vmatpush1.msra.mxu0 %v7282_v51 }
 0x7a8   : > { %3141 = vxpose.xlu1.b32.cont [4/5] (short) %v3134_v17, 128  ;;  %3049 = vmatprep.subr.mxu0 %v11325_v60  ;;  %v7294_v17 = vld [vmem:[%s8524_s17 + $0x2c8] sm:$0xff] }
 0x7a9   : > { %3173 = vxpose.xlu0.b32.cont [4/5] (short) (narrow) %v3135_v37, 64  ;;  %3050 = vmatpush1.msra.mxu0 %v7281_v46 }
 0x7aa   : > { %7036 = vmatmul.mubr.msk.f32.gmra.mxu0 %vm787_vm3, %v1550_v27  ;;  %v1555_v27 = vpop.trf.xlu0  ;;  %3051 = vmatprep.subr.mxu0 %v11325_v60 }
 0x7ab   : > { %1776 = vmatprep.mubr.f32.mxu0 %v11325_v60  ;;  %3052 = vmatpush1.msra.mxu0 %v7280_v36 }
 0x7ac   : > { %3142 = vxpose.xlu1.b32.end [5/5] (short) %v3136_v62, 128  ;;  %3053 = vmatprep.subr.mxu0 %v11325_v60  ;;  %v1578_v62 = vpop.trf.xlu1 }
 0x7ad   : > { %3174 = vxpose.xlu0.b32.end [5/5] (short) (narrow) %v3137_v53, 64  ;;  %3054 = vmatpush1.msra.mxu0 %v7279_v57 }
 0x7ae   : > { %7037 = vmatmul.mubr.msk.f32.gmra.mxu0 %vm787_vm3, %v1551_v52  ;;  %v1556_v19 = vpop.trf.xlu0  ;;  %3055 = vmatprep.subr.mxu0 %v11325_v60  ;;  %v7277_v52 = vld [vmem:[%s8524_s17 + $0x240] sm:$0xff] }
 0x7af   : > { %1782 = vmatprep.mubr.f32.mxu0 %v11325_v60  ;;  %3056 = vmatpush1.msra.mxu0 %v7278_v31 }
 0x7b0   : > { %3057 = vmatprep.subr.mxu0 %v11325_v60 }
 0x7b1   : > { %3058 = vmatpush1.msra.mxu0 %v7277_v52 }
 0x7b2   : > { %7038 = vmatmul.mubr.msk.f32.gmra.mxu0 %vm787_vm3, %v1552_v7  ;;  %3075 = vmatprep.subr.mxu0 %v11325_v60  ;;  %v1557_v59 = vpop.trf.xlu0  ;;  %v7297_v7 = vld [vmem:[%s8524_s17 + $0x2e0] sm:$0xff] }
 0x7b3   : > { %1788 = vmatprep.mubr.f32.mxu0 %v11325_v60  ;;  %3076 = vmatpush2.msra.mxu0 %v7300_v45 }
 0x7b4   : > { %3077 = vmatprep.subr.mxu0 %v11325_v60 }
 0x7b5   : > { %3078 = vmatpush2.msra.mxu0 %v7299_v10 }
 0x7b6   : > { %7039 = vmatmul.mubr.msk.f32.gmra.mxu0 %vm787_vm3, %v1553_v23  ;;  %3079 = vmatprep.subr.mxu0 %v11325_v60  ;;  %v1558_v24 = vpop.trf.xlu0  ;;  %v7293_v23 = vld [vmem:[%s8524_s17 + $0x2c0] sm:$0xff] }
 0x7b7   : > { %1794 = vmatprep.mubr.f32.mxu0 %v11325_v60  ;;  %3080 = vmatpush2.msra.mxu0 %v7298_v38 }
 0x7b8   : > { %3081 = vmatprep.subr.mxu0 %v11325_v60 }
 0x7b9   : > { %3082 = vmatpush2.msra.mxu0 %v7297_v7  ;;  %v7274_v7 = vld [vmem:[%s9050_s6 + $0x128] sm:$0xff] }
 0x7ba   : > { %7040 = vmatmul.mubr.msk.f32.gmra.mxu0 %vm787_vm3, %v1554_v22  ;;  %3083 = vmatprep.subr.mxu0 %v11325_v60  ;;  %v1559_v37 = vpop.trf.xlu0  ;;  %v1579_v22 = vpop.trf.xlu1 }
 0x7bb   : > { %1800 = vmatprep.mubr.f32.mxu0 %v11325_v60  ;;  %3084 = vmatpush2.msra.mxu0 %v7296_v25  ;;  %v7273_v25 = vld [vmem:[%s9050_s6 + $0x120] sm:$0xff] }
 0x7bc   : > { %3085 = vmatprep.subr.mxu0 %v11325_v60 }
 0x7bd   : > { %3086 = vmatpush2.msra.mxu0 %v7295_v2  ;;  %v7272_v2 = vld [vmem:[%s9050_s6 + $0x118] sm:$0xff] }
 0x7be   : > { %7041 = vmatmul.mubr.msk.f32.gmra.mxu0 %vm787_vm3, %v1555_v27  ;;  %3087 = vmatprep.subr.mxu0 %v11325_v60  ;;  %v1580_v51 = vpop.trf.xlu1 }
 0x7bf   : > { %1806 = vmatprep.mubr.f32.mxu0 %v11325_v60  ;;  %3088 = vmatpush2.msra.mxu0 %v7294_v17  ;;  %v7269_v17 = vld [vmem:[%s9050_s6 + $0x100] sm:$0xff] }
 0x7c0   : > { %3089 = vmatprep.subr.mxu0 %v11325_v60 }
 0x7c1   : > { %3090 = vmatpush2.msra.mxu0 %v7293_v23  ;;  %v9628_v53 = vpop.f32.mrf.mxu1 }
 0x7c2   : > { %7042 = vmatmul.mubr.msk.f32.gmra.mxu0 %vm787_vm3, %v1556_v19  ;;  %7316 = vmatprep.subr.msk.mxu0 %vm502_vm1, %v7276_v32  ;;  %v1581_v36 = vpop.trf.xlu1  ;;  %v7554_v32 = vld [vmem:[%s8454_s9 + $0x2f8] sm:$0xff] }
 0x7c3   : > { %1812 = vmatprep.mubr.f32.mxu0 %v11325_v60  ;;  %v9632_v33 = vpop.f32.mrf.mxu1 }
 0x7c4   : > { %v3707_v57 = vsel %vm375_vm0, %v9632_v33, -inf }
 0x7c5   : > { %v9636_v46 = vpop.f32.mrf.mxu1  ;;  %v3708_v19 = vmax.f32 %v9628_v53, %v3707_v57 }
 0x7c6   : > { %7043 = vmatmul.mubr.msk.f32.gmra.mxu0 %vm787_vm3, %v1557_v59  ;;  %v1582_v52 = vpop.trf.xlu1 }
 0x7c7   : > { %1818 = vmatprep.mubr.f32.mxu0 %v11325_v60  ;;  %v9640_v27 = vpop.f32.mrf.mxu1 }
 0x7c9   : > { %v9646_v31 = vpop.f32.mrf.mxu1 }
 0x7ca   : > { %7044 = vmatmul.mubr.msk.f32.gmra.mxu0 %vm787_vm3, %v1558_v24  ;;  %v1583_v59 = vpop.trf.xlu1 }
 0x7cb   : > { %1824 = vmatprep.mubr.f32.mxu0 %v11325_v60  ;;  %v9651_v45 = vpop.f32.mrf.mxu1 }
 0x7cd   : > { %v9655_v10 = vpop.f32.mrf.mxu1 }
 0x7ce   : > { %7045 = vmatmul.mubr.msk.f32.gmra.mxu0 %vm787_vm3, %v1559_v37  ;;  %v7268_v37 = vld [vmem:[%s9050_s6 + $0xf8] sm:$0xff] }
 0x7cf   : > { %1830 = vmatprep.mubr.f32.mxu0 %v11325_v60  ;;  %v9659_v38 = vpop.f32.mrf.mxu1 }
 0x7d1   : > { %v9667_v24 = vpop.f32.mrf.mxu1 }
 0x7d2   : > { %7046 = vmatmul.mubr.msk.f32.gmra.mxu0 %vm787_vm3, %v1576_v63  ;;  %v7275_v63 = vld [vmem:[%s9050_s6 + $0x130] sm:$0xf] }
 0x7d3   : > { %1836 = vmatprep.mubr.f32.mxu0 %v11325_v60  ;;  %v9677_v23 = vpop.f32.mrf.mxu1 }
 0x7d6   : > { %7047 = vmatmul.mubr.msk.f32.gmra.mxu0 %vm787_vm3, %v1577_v21  ;;  %v7271_v21 = vld [vmem:[%s9050_s6 + $0x110] sm:$0xff] }
 0x7d7   : > { %1842 = vmatprep.mubr.f32.mxu0 %v11325_v60 }
 0x7da   : > { %7048 = vmatmul.mubr.msk.f32.gmra.mxu0 %vm787_vm3, %v1578_v62  ;;  %v3723_v62 = vsel %vm502_vm1, %v9667_v24, -inf }
 0x7db   : > { %1848 = vmatprep.mubr.f32.mxu0 %v11325_v60 }
 0x7de   : > { %7049 = vmatmul.mubr.msk.f32.gmra.mxu0 %vm787_vm3, %v1579_v22  ;;  %v3724_v22 = vsel %vm504_vm2, %v9677_v23, -inf }
 0x7df   : > { %1854 = vmatprep.mubr.f32.mxu0 %v11325_v60 }
 0x7e2   : > { %7050 = vmatmul.mubr.msk.f32.gmra.mxu0 %vm787_vm3, %v1580_v51  ;;  %v3711_v51 = vsel %vm375_vm0, %v9640_v27, -inf }
 0x7e3   : > { %1860 = vmatprep.mubr.f32.mxu0 %v11325_v60 }
 0x7e6   : > { %7051 = vmatmul.mubr.msk.f32.gmra.mxu0 %vm787_vm3, %v1581_v36  ;;  %3709 = vmax.xlane.f32.xlu0 %v3708_v19  ;;  %v3712_v36 = vmax.f32 %v9636_v46, %v3711_v51  ;;  %v3719_v19 = vsel %vm375_vm0, %v9659_v38, -inf }
 0x7e7   : > { %1866 = vmatprep.mubr.f32.mxu0 %v11325_v60 }
 0x7ea   : > { %7052 = vmatmul.mubr.msk.f32.gmra.mxu0 %vm787_vm3, %v1582_v52  ;;  %v7553_v52 = vld [vmem:[%s8454_s9 + $0x2f0] sm:$0xff] }
 0x7eb   : > { %1872 = vmatprep.mubr.f32.mxu0 %v11325_v60 }
 0x7ee   : > { %7053 = vmatmul.mubr.msk.f32.gmra.mxu0 %vm787_vm3, %v1583_v59 }
 0x7ef   : > { %7306 = vmatprep.mubr.msk.f32.mxu0 %vm375_vm0, %v9488_v11  ;;  %v7270_v11 = vld [vmem:[%s9050_s6 + $0x108] sm:$0xff] }
 0x7f2   : > { %3092 = vmatmul.mubr.f32.vlgmr.msra.gmra.mxu0 %v9479_v4 }
 0x7f3   : > { %7307 = vmatprep.mubr.msk.f32.mxu0 %vm375_vm0, %v9463_v44  ;;  %7317 = vmatpush1.msk.msra.mxu0 %vm502_vm1, %v7275_v63  ;;  %v7267_v44 = vld [vmem:[%s9050_s6 + $0xf0] sm:$0xff]  ;;  %v7552_v63 = vld [vmem:[%s8454_s9 + $0x2e8] sm:$0xff] }
 0x7f4   : > { %3304 = vmatprep.subr.mxu0 %v7274_v7  ;;  %v7550_v7 = vld [vmem:[%s8454_s9 + $0x2d8] sm:$0xff] }
 0x7f5   : > { %3305 = vmatpush1.msra.mxu0 %v7273_v25  ;;  %v7549_v25 = vld [vmem:[%s8454_s9 + $0x2d0] sm:$0xff] }
 0x7f6   : > { %3097 = vmatmul.mubr.f32.gmra.mxu0 %v9460_v20  ;;  %3306 = vmatprep.subr.mxu0 %v7272_v2 }
 0x7f7   : > { %7308 = vmatprep.mubr.msk.f32.mxu0 %vm375_vm0, %v9466_v47  ;;  %3307 = vmatpush1.msra.mxu0 %v7271_v21  ;;  %v3725_v47 = vmax.f32 %v3723_v62, %v3724_v22  ;;  %v7548_v21 = vld [vmem:[%s8454_s9 + $0x2c8] sm:$0xff]  ;;  %v7543_v62 = vld [vmem:[%s8454_s9 + $0x2a0] sm:$0xff]  ;;  %v7542_v22 = vld [vmem:[%s8454_s9 + $0x298] sm:$0xff] }
 0x7f8   : > { %3308 = vmatprep.subr.mxu0 %v7270_v11  ;;  %v7547_v11 = vld [vmem:[%s8454_s9 + $0x2c0] sm:$0xff] }
 0x7f9   : > { %3309 = vmatpush1.msra.mxu0 %v7269_v17  ;;  %v7546_v17 = vld [vmem:[%s8454_s9 + $0x2b8] sm:$0xff] }
 0x7fa   : > { %3102 = vmatmul.mubr.f32.gmra.mxu0 %v9494_v34  ;;  %3310 = vmatprep.subr.mxu0 %v7268_v37  ;;  %v7545_v37 = vld [vmem:[%s8454_s9 + $0x2b0] sm:$0xff] }
 0x7fb   : > { %7309 = vmatprep.mubr.msk.f32.mxu0 %vm375_vm0, %v9502_v55  ;;  %3311 = vmatpush1.msra.mxu0 %v7267_v44  ;;  %v3715_v55 = vsel %vm375_vm0, %v9651_v45, -inf }
 0x7fc   : > { %4433 = vmatprep.subr.mxu0 %v7554_v32  ;;  %v3716_v57 = vmax.f32 %v9646_v31, %v3715_v55  ;;  %v7544_v32 = vld [vmem:[%s8454_s9 + $0x2a8] sm:$0xff]  ;;  %v7539_v55 = vld [vmem:[%s8454_s9 + $0x280] sm:$0xff] }
 0x7fe   : > { %3107 = vmatmul.mubr.f32.gmra.mxu0 %v9508_v12 }
 0x7ff   : > { %7310 = vmatprep.mubr.msk.f32.mxu0 %vm375_vm0, %v9474_v3  ;;  %3726 = vmax.xlane.f32.xlu1 %v3725_v47  ;;  %v3720_v3 = vmax.f32 %v9655_v10, %v3719_v19  ;;  %v7541_v47 = vld [vmem:[%s8454_s9 + $0x290] sm:$0xff] }
 0x802   : > { %3112 = vmatmul.mubr.f32.gmra.mxu0 %v9468_v5  ;;  %v7551_v5 = vld [vmem:[%s8454_s9 + $0x2e0] sm:$0xff] }
 0x803   : > { %3344 = vmatprep.mubr.f32.mxu0 %v11325_v60  ;;  %3713 = vmax.xlane.f32.xlu1 %v3712_v36  ;;  %v7540_v36 = vld [vmem:[%s8454_s9 + $0x288] sm:$0xff] }
 0x807   : > { %3717 = vmax.xlane.f32.xlu1 %v3716_v57 }
 0x80b   : > { %3721 = vmax.xlane.f32.xlu1 %v3720_v3 }
 0x818   : > { %v3154_v59 = vpop.trf.xlu1 }
 0x819   : > { %7318 = vmatmul.mubr.msk.f32.vlgmr.msra.gmra.mxu0 %vm787_vm3, %v3154_v59 }
 0x81a   : > { %4434 = vmatpush1.msra.mxu0 %v7553_v52  ;;  %3350 = vmatprep.mubr.f32.mxu0 %v11325_v60 }
 0x81b   : > { %4435 = vmatprep.subr.mxu0 %v7552_v63 }
 0x81c   : > { %v3155_v2 = vpop.trf.xlu1  ;;  %4436 = vmatpush1.msra.mxu0 %v7551_v5 }
 0x81d   : > { %7319 = vmatmul.mubr.msk.f32.gmra.mxu0 %vm787_vm3, %v3155_v2  ;;  %4437 = vmatprep.subr.mxu0 %v7550_v7 }
 0x81e   : > { %3356 = vmatprep.mubr.f32.mxu0 %v11325_v60  ;;  %4438 = vmatpush1.msra.mxu0 %v7549_v25 }
 0x81f   : > { %4439 = vmatprep.subr.mxu0 %v7548_v21 }
 0x820   : > { %v3156_v44 = vpop.trf.xlu1  ;;  %4440 = vmatpush1.msra.mxu0 %v7547_v11 }
 0x821   : > { %7320 = vmatmul.mubr.msk.f32.gmra.mxu0 %vm787_vm3, %v3156_v44  ;;  %4441 = vmatprep.subr.mxu0 %v7546_v17 }
 0x822   : > { %3362 = vmatprep.mubr.f32.mxu0 %v11325_v60  ;;  %4442 = vmatpush1.msra.mxu0 %v7545_v37 }
 0x823   : > { %4443 = vmatprep.subr.mxu0 %v7544_v32 }
 0x824   : > { %v3157_v51 = vpop.trf.xlu1  ;;  %4444 = vmatpush1.msra.mxu0 %v7543_v62 }
 0x825   : > { %7321 = vmatmul.mubr.msk.f32.gmra.mxu0 %vm787_vm3, %v3157_v51  ;;  %4445 = vmatprep.subr.mxu0 %v7542_v22 }
 0x826   : > { %3368 = vmatprep.mubr.f32.mxu0 %v11325_v60  ;;  %4446 = vmatpush1.msra.mxu0 %v7541_v47 }
 0x827   : > { %4447 = vmatprep.subr.mxu0 %v7540_v36 }
 0x828   : > { %v3158_v57 = vpop.trf.xlu1  ;;  %4448 = vmatpush1.msra.mxu0 %v7539_v55  ;;  %v3186_v55 = vpop.trf.xlu0 }
 0x829   : > { %7322 = vmatmul.mubr.msk.f32.gmra.mxu0 %vm787_vm3, %v3158_v57  ;;  %4637 = vmatprep.subr.mxu0 %v11325_v60 }
 0x82a   : > { %3374 = vmatprep.mubr.f32.mxu0 %v11325_v60 }
 0x82c   : > { %v3159_v19 = vpop.trf.xlu1 }
 0x82d   : > { %7323 = vmatmul.mubr.msk.f32.gmra.mxu0 %vm787_vm3, %v3159_v19 }
 0x82e   : > { %3380 = vmatprep.mubr.f32.mxu0 %v11325_v60 }
 0x830   : > { %v3160_v3 = vpop.trf.xlu1 }
 0x831   : > { %7324 = vmatmul.mubr.msk.f32.gmra.mxu0 %vm787_vm3, %v3160_v3 }
 0x832   : > { %v1028_v52 = vpop.f32.mrf.mxu0  ;;  %3386 = vmatprep.mubr.f32.mxu0 %v11325_v60 }
 0x833   : > { %1107 = vst [vmem:[%s9232_s11 + $0x100] sm:$0xff] %v1028_v52 }
 0x834   : > { %v1030_v59 = vpop.f32.mrf.mxu0  ;;  %v3161_v63 = vpop.trf.xlu1 }
 0x835   : > { %1108 = vst [vmem:[%s9232_s11 + $0x108] sm:$0xff] %v1030_v59  ;;  %7325 = vmatmul.mubr.msk.f32.gmra.mxu0 %vm787_vm3, %v3161_v63  ;;  %v3187_v59 = vpop.trf.xlu0 }
 0x836   : > { %v1034_v5 = vpop.f32.mrf.mxu0  ;;  %3392 = vmatprep.mubr.f32.mxu0 %v11325_v60 }
 0x837   : > { %1109 = vst [vmem:[%s9232_s11 + $0x110] sm:$0xff] %v1034_v5 }
 0x838   : > { %v1036_v7 = vpop.f32.mrf.mxu0  ;;  %v3162_v25 = vpop.trf.xlu1 }
 0x839   : > { %1110 = vst [vmem:[%s9232_s11 + $0x118] sm:$0xff] %v1036_v7  ;;  %7326 = vmatmul.mubr.msk.f32.gmra.mxu0 %vm787_vm3, %v3162_v25 }
 0x83a   : > { %v1040_v2 = vpop.f32.mrf.mxu0  ;;  %3398 = vmatprep.mubr.f32.mxu0 %v11325_v60 }
 0x83b   : > { %1111 = vst [vmem:[%s9232_s11 + $0x120] sm:$0xff] %v1040_v2 }
 0x83c   : > { %v1042_v21 = vpop.f32.mrf.mxu0  ;;  %v3163_v11 = vpop.trf.xlu1 }
 0x83d   : > { %1112 = vst [vmem:[%s9232_s11 + $0x128] sm:$0xff] %v1042_v21  ;;  %7327 = vmatmul.mubr.msk.f32.gmra.mxu0 %vm787_vm3, %v3163_v11  ;;  %v3188_v21 = vpop.trf.xlu0 }
 0x83e   : > { %v1046_v17 = vpop.f32.mrf.mxu0  ;;  %3404 = vmatprep.mubr.f32.mxu0 %v11325_v60 }
 0x83f   : > { %1113 = vst [vmem:[%s9232_s11 + $0x130] sm:$0xff] %v1046_v17 }
 0x840   : > { %v1048_v37 = vpop.f32.mrf.mxu0  ;;  %v3164_v44 = vpop.trf.xlu1 }
 0x841   : > { %1114 = vst [vmem:[%s9232_s11 + $0x138] sm:$0xff] %v1048_v37  ;;  %7328 = vmatmul.mubr.msk.f32.gmra.mxu0 %vm787_vm3, %v3164_v44  ;;  %v3189_v44 = vpop.trf.xlu0 }
 0x842   : > { %v1052_v32 = vpop.f32.mrf.mxu0  ;;  %3410 = vmatprep.mubr.f32.mxu0 %v11325_v60 }
 0x843   : > { %1115 = vst [vmem:[%s9232_s11 + $0x140] sm:$0xff] %v1052_v32 }
 0x844   : > { %v1054_v62 = vpop.f32.mrf.mxu0  ;;  %v3165_v22 = vpop.trf.xlu1 }
 0x845   : > { %1116 = vst [vmem:[%s9232_s11 + $0x148] sm:$0xff] %v1054_v62  ;;  %7329 = vmatmul.mubr.msk.f32.gmra.mxu0 %vm787_vm3, %v3165_v22 }
 0x846   : > { %v1058_v47 = vpop.f32.mrf.mxu0  ;;  %3416 = vmatprep.mubr.f32.mxu0 %v11325_v60 }
 0x847   : > { %1117 = vst [vmem:[%s9232_s11 + $0x150] sm:$0xff] %v1058_v47  ;;  %v3190_v47 = vpop.trf.xlu0 }
 0x848   : > { %v1060_v51 = vpop.f32.mrf.mxu0  ;;  %v3166_v36 = vpop.trf.xlu1 }
 0x849   : > { %1118 = vst [vmem:[%s9232_s11 + $0x158] sm:$0xff] %v1060_v51  ;;  %7330 = vmatmul.mubr.msk.f32.gmra.mxu0 %vm787_vm3, %v3166_v36 }
 0x84a   : > { %v1064_v57 = vpop.f32.mrf.mxu0  ;;  %3422 = vmatprep.mubr.f32.mxu0 %v11325_v60 }
 0x84b   : > { %1119 = vst [vmem:[%s9232_s11 + $0x160] sm:$0xff] %v1064_v57  ;;  %v3191_v57 = vpop.trf.xlu0 }
 0x84c   : > { %v1066_v19 = vpop.f32.mrf.mxu0  ;;  %v3167_v3 = vpop.trf.xlu1 }
 0x84d   : > { %1120 = vst [vmem:[%s9232_s11 + $0x168] sm:$0xff] %v1066_v19  ;;  %7331 = vmatmul.mubr.msk.f32.gmra.mxu0 %vm787_vm3, %v3167_v3 }
 0x84e   : > { %v1070_v52 = vpop.f32.mrf.mxu0  ;;  %3428 = vmatprep.mubr.f32.mxu0 %v11325_v60 }
 0x84f   : > { %1121 = vst [vmem:[%s9232_s11 + $0x170] sm:$0xff] %v1070_v52 }
 0x850   : > { %v1072_v63 = vpop.f32.mrf.mxu0  ;;  %v3168_v5 = vpop.trf.xlu1 }
 0x851   : > { %1122 = vst [vmem:[%s9232_s11 + $0x178] sm:$0xff] %v1072_v63  ;;  %7332 = vmatmul.mubr.msk.f32.gmra.mxu0 %vm787_vm3, %v3168_v5 }
 0x852   : > { %v1736_v7 = vpop.f32.mrf.mxu0  ;;  %3434 = vmatprep.mubr.f32.mxu0 %v11325_v60 }
 0x853   : > { %7054 = vst [vmem:[%s9232_s11 + $0x180] sm:$0xff] %v1736_v7 }
 0x854   : > { %v1738_v25 = vpop.f32.mrf.mxu0  ;;  %v3169_v2 = vpop.trf.xlu1 }
 0x855   : > { %7055 = vst [vmem:[%s9232_s11 + $0x188] sm:$0xff] %v1738_v25  ;;  %7333 = vmatmul.mubr.msk.f32.gmra.mxu0 %vm787_vm3, %v3169_v2 }
 0x856   : > { %v1742_v11 = vpop.f32.mrf.mxu0  ;;  %3440 = vmatprep.mubr.f32.mxu0 %v11325_v60 }
 0x857   : > { %7056 = vst [vmem:[%s9232_s11 + $0x190] sm:$0xff] %v1742_v11  ;;  %v7534_v11 = vld [vmem:[%s8476_s13 + $0xc8] sm:$0xff] }
 0x858   : > { %v1744_v17 = vpop.f32.mrf.mxu0 }
 0x859   : > { %7057 = vst [vmem:[%s9232_s11 + $0x198] sm:$0xff] %v1744_v17  ;;  %7334 = vmatmul.mubr.msk.f32.gmra.mxu0 %vm787_vm3, %v3186_v55 }
 0x85a   : > { %v1748_v37 = vpop.f32.mrf.mxu0  ;;  %3446 = vmatprep.mubr.f32.mxu0 %v11325_v60 }
 0x85b   : > { %7058 = vst [vmem:[%s9232_s11 + $0x1a0] sm:$0xff] %v1748_v37 }
 0x85c   : > { %v1750_v32 = vpop.f32.mrf.mxu0 }
 0x85d   : > { %7059 = vst [vmem:[%s9232_s11 + $0x1a8] sm:$0xff] %v1750_v32  ;;  %7335 = vmatmul.mubr.msk.f32.gmra.mxu0 %vm787_vm3, %v3187_v59  ;;  %v3192_v59 = vpop.trf.xlu0 }
 0x85e   : > { %v1754_v62 = vpop.f32.mrf.mxu0  ;;  %3452 = vmatprep.mubr.f32.mxu0 %v11325_v60 }
 0x85f   : > { %7060 = vst [vmem:[%s9232_s11 + $0x1b0] sm:$0xff] %v1754_v62 }
 0x860   : > { %v1756_v22 = vpop.f32.mrf.mxu0 }
 0x861   : > { %7061 = vst [vmem:[%s9232_s11 + $0x1b8] sm:$0xff] %v1756_v22  ;;  %7336 = vmatmul.mubr.msk.f32.gmra.mxu0 %vm787_vm3, %v3188_v21  ;;  %v3193_v25 = vpop.trf.xlu0  ;;  %v7536_v22 = vld [vmem:[%s8476_s13 + $0xd8] sm:$0xff] }
 0x862   : > { %v1760_v51 = vpop.f32.mrf.mxu0  ;;  %3458 = vmatprep.mubr.f32.mxu0 %v11325_v60 }
 0x863   : > { %7062 = vst [vmem:[%s9232_s11 + $0x1c0] sm:$0xff] %v1760_v51 }
 0x864   : > { %v1762_v36 = vpop.f32.mrf.mxu0 }
 0x865   : > { %7063 = vst [vmem:[%s9232_s11 + $0x1c8] sm:$0xff] %v1762_v36  ;;  %7337 = vmatmul.mubr.msk.f32.gmra.mxu0 %vm787_vm3, %v3189_v44  ;;  %v7535_v44 = vld [vmem:[%s8476_s13 + $0xd0] sm:$0xff]  ;;  %v7537_v36 = vld [vmem:[%s8476_s13 + $0xe0] sm:$0xff] }
 0x866   : > { %v1766_v55 = vpop.f32.mrf.mxu0  ;;  %3464 = vmatprep.mubr.f32.mxu0 %v11325_v60 }
 0x867   : > { %7064 = vst [vmem:[%s9232_s11 + $0x1d0] sm:$0xff] %v1766_v55 }
 0x868   : > { %v1768_v19 = vpop.f32.mrf.mxu0 }
 0x869   : > { %7065 = vst [vmem:[%s9232_s11 + $0x1d8] sm:$0xff] %v1768_v19  ;;  %7338 = vmatmul.mubr.msk.f32.gmra.mxu0 %vm787_vm3, %v3190_v47 }
 0x86a   : > { %v1772_v3 = vpop.f32.mrf.mxu0  ;;  %3470 = vmatprep.mubr.f32.mxu0 %v11325_v60 }
 0x86b   : > { %7066 = vst [vmem:[%s9232_s11 + $0x1e0] sm:$0xff] %v1772_v3  ;;  %v7538_v3 = vld [vmem:[%s8476_s13 + $0xe8] sm:$0xf] }
 0x86c   : > { %v1774_v52 = vpop.f32.mrf.mxu0 }
 0x86d   : > { %7067 = vst [vmem:[%s9232_s11 + $0x1e8] sm:$0xff] %v1774_v52  ;;  %7339 = vmatmul.mubr.msk.f32.gmra.mxu0 %vm787_vm3, %v3191_v57  ;;  %v7436_v57 = vld [vmem:[%s8524_s17 + $0x378] sm:$0xff]  ;;  %v7435_v52 = vld [vmem:[%s8524_s17 + $0x370] sm:$0xff] }
 0x86e   : > { %v1778_v63 = vpop.f32.mrf.mxu0  ;;  %3476 = vmatprep.mubr.f32.mxu0 %v11325_v60  ;;  %3833 = vmatpush1.msra.mxu1 %v7436_v57 }
 0x86f   : > { %7068 = vst [vmem:[%s9232_s11 + $0x1f0] sm:$0xff] %v1778_v63  ;;  %3834 = vmatprep.subr.mxu1 %v11325_v60 }
 0x870   : > { %v1780_v5 = vpop.f32.mrf.mxu0  ;;  %3835 = vmatpush1.msra.mxu1 %v7435_v52  ;;  %v7428_v52 = vld [vmem:[%s8524_s17 + $0x338] sm:$0xff] }
 0x871   : > { %7069 = vst [vmem:[%s9232_s11 + $0x1f8] sm:$0xff] %v1780_v5  ;;  %7340 = vmatmul.mubr.msk.f32.gmra.mxu0 %vm787_vm3, %v3192_v59  ;;  %3836 = vmatprep.subr.mxu1 %v11325_v60  ;;  %v7434_v5 = vld [vmem:[%s8524_s17 + $0x368] sm:$0xff] }
 0x872   : > { %v1784_v7 = vpop.f32.mrf.mxu0  ;;  %3482 = vmatprep.mubr.f32.mxu0 %v11325_v60  ;;  %3837 = vmatpush1.msra.mxu1 %v7434_v5  ;;  %v7427_v5 = vld [vmem:[%s8524_s17 + $0x330] sm:$0xff] }
 0x873   : > { %7070 = vst [vmem:[%s9232_s11 + $0x200] sm:$0xff] %v1784_v7  ;;  %3838 = vmatprep.subr.mxu1 %v11325_v60 }
 0x874   : > { %v1786_v2 = vpop.f32.mrf.mxu0 }
 0x875   : > { %7071 = vst [vmem:[%s9232_s11 + $0x208] sm:$0xff] %v1786_v2  ;;  %7341 = vmatmul.mubr.msk.f32.gmra.mxu0 %vm787_vm3, %v3193_v25  ;;  %v7433_v25 = vld [vmem:[%s8524_s17 + $0x360] sm:$0xff] }
 0x876   : > { %v1790_v21 = vpop.f32.mrf.mxu0  ;;  %4481 = vmatprep.mubr.f32.mxu0 %v11325_v60  ;;  %3839 = vmatpush1.msra.mxu1 %v7433_v25 }
 0x877   : > { %7072 = vst [vmem:[%s9232_s11 + $0x210] sm:$0xff] %v1790_v21  ;;  %3840 = vmatprep.subr.mxu1 %v11325_v60 }
 0x878   : > { %v1792_v17 = vpop.f32.mrf.mxu0 }
 0x879   : > { %7073 = vst [vmem:[%s9232_s11 + $0x218] sm:$0xff] %v1792_v17  ;;  %7589 = vmatmul.mubr.msk.f32.vlgmr.msra.gmra.mxu0 %vm375_vm0, %v7534_v11  ;;  %v3710_v17 = vpop.xlane.xlu0 %3709 }
 0x87a   : > { %v1796_v37 = vpop.f32.mrf.mxu0  ;;  %4487 = vmatprep.mubr.f32.mxu0 %v11325_v60 }
 0x87b   : > { %7074 = vst [vmem:[%s9232_s11 + $0x220] sm:$0xff] %v1796_v37  ;;  %v7432_v37 = vld [vmem:[%s8524_s17 + $0x358] sm:$0xff] }
 0x87c   : > { %v1798_v32 = vpop.f32.mrf.mxu0  ;;  %3841 = vmatpush1.msra.mxu1 %v7432_v37 }
 0x87d   : > { %7075 = vst [vmem:[%s9232_s11 + $0x228] sm:$0xff] %v1798_v32  ;;  %7590 = vmatmul.mubr.msk.f32.gmra.mxu0 %vm375_vm0, %v7535_v44  ;;  %3842 = vmatprep.subr.mxu1 %v11325_v60  ;;  %v7431_v32 = vld [vmem:[%s8524_s17 + $0x350] sm:$0xff] }
 0x87e   : > { %v1802_v62 = vpop.f32.mrf.mxu0  ;;  %4493 = vmatprep.mubr.f32.mxu0 %v11325_v60  ;;  %3843 = vmatpush1.msra.mxu1 %v7431_v32  ;;  %v7424_v32 = vld [vmem:[%s8524_s17 + $0x318] sm:$0xff] }
 0x87f   : > { %7076 = vst [vmem:[%s9232_s11 + $0x230] sm:$0xff] %v1802_v62  ;;  %3844 = vmatprep.subr.mxu1 %v11325_v60 }
 0x880   : > { %v1804_v47 = vpop.f32.mrf.mxu0 }
 0x881   : > { %7077 = vst [vmem:[%s9232_s11 + $0x238] sm:$0xff] %v1804_v47  ;;  %7591 = vmatmul.mubr.msk.f32.gmra.mxu0 %vm375_vm0, %v7536_v22 }
 0x882   : > { %v1808_v51 = vpop.f32.mrf.mxu0  ;;  %4499 = vmatprep.mubr.f32.mxu0 %v11325_v60 }
 0x883   : > { %7078 = vst [vmem:[%s9232_s11 + $0x240] sm:$0xff] %v1808_v51  ;;  %v7430_v51 = vld [vmem:[%s8524_s17 + $0x348] sm:$0xff] }
 0x884   : > { %v1810_v55 = vpop.f32.mrf.mxu0  ;;  %3845 = vmatpush1.msra.mxu1 %v7430_v51 }
 0x885   : > { %7079 = vst [vmem:[%s9232_s11 + $0x248] sm:$0xff] %v1810_v55  ;;  %7592 = vmatmul.mubr.msk.f32.gmra.mxu0 %vm375_vm0, %v7537_v36  ;;  %3846 = vmatprep.subr.mxu1 %v11325_v60  ;;  %v7429_v55 = vld [vmem:[%s8524_s17 + $0x340] sm:$0xff] }
 0x886   : > { %v1814_v19 = vpop.f32.mrf.mxu0  ;;  %4505 = vmatprep.mubr.f32.mxu0 %v11325_v60  ;;  %3847 = vmatpush1.msra.mxu1 %v7429_v55  ;;  %v7422_v55 = vld [vmem:[%s8524_s17 + $0x308] sm:$0xff] }
 0x887   : > { %7080 = vst [vmem:[%s9232_s11 + $0x250] sm:$0xff] %v1814_v19  ;;  %3848 = vmatprep.subr.mxu1 %v11325_v60 }
 0x888   : > { %v1816_v59 = vpop.f32.mrf.mxu0  ;;  %v3727_v63 = vpop.xlane.xlu1 %3726  ;;  %3849 = vmatpush1.msra.mxu1 %v7428_v52 }
 0x889   : > { %7081 = vst [vmem:[%s9232_s11 + $0x258] sm:$0xff] %v1816_v59  ;;  %7593 = vmatmul.mubr.msk.f32.gmra.mxu0 %vm375_vm0, %v7538_v3  ;;  %v3728_v21 = vsel %vm502_vm1, %v3727_v63, -inf  ;;  %3850 = vmatprep.subr.mxu1 %v11325_v60 }
 0x88a   : > { %v1820_v7 = vpop.f32.mrf.mxu0  ;;  %v3729_v22 = vmax.f32 %v3710_v17, %v3728_v21  ;;  %3851 = vmatpush1.msra.mxu1 %v7427_v5  ;;  %v7425_v17 = vld [vmem:[%s8524_s17 + $0x320] sm:$0xff] }
 0x88b   : > { %7082 = vst [vmem:[%s9232_s11 + $0x260] sm:$0xff] %v1820_v7  ;;  %3852 = vmatprep.subr.mxu1 %v11325_v60 }
 0x88c   : > { %v1822_v2 = vpop.f32.mrf.mxu0  ;;  %v3714_v11 = vpop.xlane.xlu1 %3713 }
 0x88d   : > { %7083 = vst [vmem:[%s9232_s11 + $0x268] sm:$0xff] %v1822_v2  ;;  %v3730_v19 = vmax.f32 %v3729_v22, %v3714_v11  ;;  %v7426_v2 = vld [vmem:[%s8524_s17 + $0x328] sm:$0xff] }
 0x88e   : > { %v1826_v44 = vpop.f32.mrf.mxu0  ;;  %3853 = vmatpush1.msra.mxu1 %v7426_v2 }
 0x88f   : > { %7084 = vst [vmem:[%s9232_s11 + $0x270] sm:$0xff] %v1826_v44  ;;  %3854 = vmatprep.subr.mxu1 %v11325_v60 }
 0x890   : > { %v1828_v62 = vpop.f32.mrf.mxu0  ;;  %v3718_v47 = vpop.xlane.xlu1 %3717  ;;  %3855 = vmatpush1.msra.mxu1 %v7425_v17 }
 0x891   : > { %7085 = vst [vmem:[%s9232_s11 + $0x278] sm:$0xff] %v1828_v62  ;;  %3856 = vmatprep.subr.mxu1 %v11325_v60 }
 0x892   : > { %v1832_v36 = vpop.f32.mrf.mxu0  ;;  %3857 = vmatpush1.msra.mxu1 %v7424_v32 }
 0x893   : > { %7086 = vst [vmem:[%s9232_s11 + $0x280] sm:$0xff] %v1832_v36  ;;  %3858 = vmatprep.subr.mxu1 %v11325_v60 }
 0x894   : > { %v1834_v57 = vpop.f32.mrf.mxu0  ;;  %v3722_v3 = vpop.xlane.xlu1 %3721 }
 0x895   : > { %7087 = vst [vmem:[%s9232_s11 + $0x288] sm:$0xff] %v1834_v57  ;;  %v3731_v63 = vmax.f32 %v3718_v47, %v3722_v3  ;;  %v7423_v47 = vld [vmem:[%s8524_s17 + $0x310] sm:$0xff]  ;;  %v7421_v3 = vld [vmem:[%s8524_s17 + $0x300] sm:$0xff] }
 0x896   : > { %v1838_v59 = vpop.f32.mrf.mxu0  ;;  %3859 = vmatpush1.msra.mxu1 %v7423_v47 }
 0x897   : > { %7088 = vst [vmem:[%s9232_s11 + $0x290] sm:$0xff] %v1838_v59  ;;  %v3732_v25 = vmax.f32 %v3730_v19, %v3731_v63  ;;  %3860 = vmatprep.subr.mxu1 %v11325_v60  ;;  %v7444_v63 = vld [vmem:[%s8524_s17 + $0x3b8] sm:$0xff] }
 0x898   : > { %v1840_v7 = vpop.f32.mrf.mxu0  ;;  %3861 = vmatpush1.msra.mxu1 %v7422_v55 }
 0x899   : > { %7089 = vst [vmem:[%s9232_s11 + $0x298] sm:$0xff] %v1840_v7  ;;  %v3733_v11 = vrot.slane %v3732_v25, 4  ;;  %3862 = vmatprep.subr.mxu1 %v11325_v60 }
 0x89a   : > { %v1844_v21 = vpop.f32.mrf.mxu0  ;;  %3863 = vmatpush1.msra.mxu1 %v7421_v3 }
 0x89b   : > { %7090 = vst [vmem:[%s9232_s11 + $0x2a0] sm:$0xff] %v1844_v21  ;;  %v3734_v44 = vmax.f32 %v3732_v25, %v3733_v11  ;;  %3880 = vmatprep.subr.mxu1 %v11325_v60  ;;  %v7443_v11 = vld [vmem:[%s8524_s17 + $0x3b0] sm:$0xff] }
 0x89c   : > { %v1846_v37 = vpop.f32.mrf.mxu0  ;;  %3881 = vmatpush2.msra.mxu1 %v7444_v63  ;;  %v7438_v63 = vld [vmem:[%s8524_s17 + $0x388] sm:$0xff] }
 0x89d   : > { %7091 = vst [vmem:[%s9232_s11 + $0x2a8] sm:$0xff] %v1846_v37  ;;  %v3735_v22 = vrot.slane %v3734_v44, 2  ;;  %3882 = vmatprep.subr.mxu1 %v11325_v60 }
 0x89e   : > { %v1850_v62 = vpop.f32.mrf.mxu0  ;;  %3883 = vmatpush2.msra.mxu1 %v7443_v11 }
 0x89f   : > { %7092 = vst [vmem:[%s9232_s11 + $0x2b0] sm:$0xff] %v1850_v62  ;;  %v3736_v36 = vmax.f32 %v3734_v44, %v3735_v22  ;;  %3884 = vmatprep.subr.mxu1 %v11325_v60 }
 0x8a0   : > { %v1852_v51 = vpop.f32.mrf.mxu0 }
 0x8a1   : > { %7093 = vst [vmem:[%s9232_s11 + $0x2b8] sm:$0xff] %v1852_v51  ;;  %v3737_v19 = vrot.slane %v3736_v36, 1  ;;  %v7441_v51 = vld [vmem:[%s8524_s17 + $0x3a0] sm:$0xff] }
 0x8a2   : > { %v1856_v57 = vpop.f32.mrf.mxu0 }
 0x8a3   : > { %7094 = vst [vmem:[%s9232_s11 + $0x2c0] sm:$0xff] %v1856_v57  ;;  %v3738_v59 = vmax.f32 %v3736_v36, %v3737_v19  ;;  %v7440_v57 = vld [vmem:[%s8524_s17 + $0x398] sm:$0xff] }
 0x8a4   : > { %v1858_v52 = vpop.f32.mrf.mxu0 }
 0x8a5   : > { %7095 = vst [vmem:[%s9232_s11 + $0x2c8] sm:$0xff] %v1858_v52  ;;  %v3739_v7 = vsub.f32 %v9628_v53, %v3738_v59  ;;  %v3740_v25 = vsub.f32 %v9632_v33, %v3738_v59  ;;  %v3742_v2 = vsub.f32 %v9640_v27, %v3738_v59  ;;  %v3741_v21 = vsub.f32 %v9636_v46, %v3738_v59  ;;  %v7442_v46 = vld [vmem:[%s8524_s17 + $0x3a8] sm:$0xff] }
 0x8a6   : > { %v1862_v5 = vpop.f32.mrf.mxu0  ;;  %v3744_v17 = vsub.f32 %v9651_v45, %v3738_v59  ;;  %v3743_v37 = vsub.f32 %v9646_v31, %v3738_v59  ;;  %v3746_v62 = vsub.f32 %v9659_v38, %v3738_v59  ;;  %v3745_v22 = vsub.f32 %v9655_v10, %v3738_v59  ;;  %3885 = vmatpush2.msra.mxu1 %v7442_v46 }
 0x8a7   : > { %7096 = vst [vmem:[%s9232_s11 + $0x2d0] sm:$0xff] %v1862_v5  ;;  %v3749_v53 = vmul.f32 1.442695, %v3739_v7  ;;  %v3751_v32 = vmul.f32 1.442695, %v3740_v25  ;;  %v3748_v47 = vsub.f32 %v9677_v23, %v3738_v59  ;;  %3886 = vmatprep.subr.mxu1 %v11325_v60  ;;  %v3747_v36 = vsub.f32 %v9667_v24, %v3738_v59  ;;  %v7439_v24 = vld [vmem:[%s8524_s17 + $0x390] sm:$0xff] }
 0x8a8   : > { %v1864_v44 = vpop.f32.mrf.mxu0  ;;  %v3755_v33 = vmul.f32 1.442695, %v3742_v2  ;;  %v3753_v27 = vmul.f32 1.442695, %v3741_v21  ;;  %v3759_v31 = vmul.f32 1.442695, %v3744_v17  ;;  %3887 = vmatpush2.msra.mxu1 %v7441_v51 }
 0x8a9   : > { %7097 = vst [vmem:[%s9232_s11 + $0x2d8] sm:$0xff] %v1864_v44  ;;  %8125 = vpow2.f32 %v3749_v53  ;;  %v3757_v38 = vmul.f32 1.442695, %v3743_v37  ;;  %v3763_v10 = vmul.f32 1.442695, %v3746_v62  ;;  %3888 = vmatprep.subr.mxu1 %v11325_v60  ;;  %v7437_v7 = vld [vmem:[%s8524_s17 + $0x380] sm:$0xff] }
 0x8aa   : > { %v1868_v45 = vpop.f32.mrf.mxu0  ;;  %8127 = vpow2.f32 %v3751_v32  ;;  %v3761_v23 = vmul.f32 1.442695, %v3745_v22  ;;  %3889 = vmatpush2.msra.mxu1 %v7440_v57  ;;  %v3767_v3 = vmul.f32 1.442695, %v3748_v47  ;;  %v3765_v52 = vmul.f32 1.442695, %v3747_v36 }
 0x8ab   : > { %7098 = vst [vmem:[%s9232_s11 + $0x2e0] sm:$0xff] %v1868_v45  ;;  %8129 = vpow2.f32 %v3755_v33  ;;  %3890 = vmatprep.subr.mxu1 %v11325_v60 }
 0x8ac   : > { %v1870_v55 = vpop.f32.mrf.mxu0  ;;  %8131 = vpow2.f32 %v3753_v27  ;;  %3891 = vmatpush2.msra.mxu1 %v7439_v24 }
 0x8ad   : > { %7099 = vst [vmem:[%s9232_s11 + $0x2e8] sm:$0xff] %v1870_v55  ;;  %8133 = vpow2.f32 %v3759_v31  ;;  %3892 = vmatprep.subr.mxu1 %v11325_v60 }
 0x8ae   : > { %v1874_v19 = vpop.f32.mrf.mxu0  ;;  %8135 = vpow2.f32 %v3757_v38  ;;  %3893 = vmatpush2.msra.mxu1 %v7438_v63 }
 0x8af   : > { %7100 = vst [vmem:[%s9232_s11 + $0x2f0] sm:$0xff] %v1874_v19  ;;  %8137 = vpow2.f32 %v3763_v10  ;;  %3894 = vmatprep.subr.mxu1 %v11325_v60 }
 0x8b0   : > { %v1876_v59 = vpop.f32.mrf.mxu0  ;;  %8139 = vpow2.f32 %v3761_v23  ;;  %3895 = vmatpush2.msra.mxu1 %v7437_v7 }
 0x8b1   : > { %7101 = vst [vmem:[%s9232_s11 + $0x2f8] sm:$0xff] %v1876_v59  ;;  %8141 = vpow2.f32 %v3767_v3 }
 0x8b2   : > { %v9903_v5 = vpop.f32.mrf.mxu0  ;;  %8143 = vpow2.f32 %v3765_v52 }
 0x8b3   : > { %11334 = vst [vmem:[#allocation22_spill] sm:$0xff] %v9903_v5 }
 0x8b4   : > { %v3095_v25 = vpop.f32.mrf.mxu0 }
 0x8b6   : > { %v9907_v2 = vpop.f32.mrf.mxu0  ;;  %v9909_v21 = vpop.eup %8125 }
 0x8b7   : > { %11335 = vst [vmem:[#allocation23_spill] sm:$0xff] %v9907_v2  ;;  %v9911_v11 = vpop.eup %8127 }
 0x8b8   : > { %v3100_v17 = vpop.f32.mrf.mxu0  ;;  %v9913_v37 = vpop.eup %8129  ;;  %v3769_v44 = vsel %vm375_vm0, %v9911_v11, 0.0  ;;  %7450 = vmatprep.mubr.msk.f32.mxu1 %vm375_vm0, %v9911_v11 }
 0x8b9   : > { %v9919_v53 = vpop.eup %8131  ;;  %3897 = vmatmul.mubr.f32.vlgmr.msra.gmra.mxu1 %v9909_v21  ;;  %v3773_v33 = vsel %vm375_vm0, %v9913_v37, 0.0  ;;  %v9941_v17 = vadd.f32 %v9909_v21, %v3769_v44 }
 0x8ba   : > { %v9921_v32 = vpop.f32.mrf.mxu0  ;;  %v8134_v62 = vpop.eup %8133  ;;  %v3805_v46 = vadd.f32 %v3773_v33, %v3769_v44  ;;  %7451 = vmatprep.mubr.msk.f32.mxu1 %vm375_vm0, %v9913_v37  ;;  %v3795_v27 = vadd.f32 %v9919_v53, %v9909_v21 }
 0x8bb   : > { %11336 = vst [vmem:[#allocation24_spill] sm:$0xff] %v9921_v32  ;;  %v8136_v22 = vpop.eup %8135  ;;  %v3777_v31 = vsel %vm375_vm0, %v8134_v62, 0.0 }
 0x8bc   : > { %v3105_v45 = vpop.f32.mrf.mxu0  ;;  %v8138_v47 = vpop.eup %8137  ;;  %v3806_v51 = vadd.f32 %v3805_v46, %v3777_v31  ;;  %v3796_v38 = vadd.f32 %v8136_v22, %v3795_v27  ;;  %v9948_v44 = vadd.f32 %v8136_v22, %v3777_v31 }
 0x8bd   : > { %v8140_v36 = vpop.eup %8139  ;;  %3902 = vmatmul.mubr.f32.gmra.mxu1 %v9919_v53  ;;  %v3781_v10 = vsel %vm375_vm0, %v8138_v47, 0.0 }
 0x8be   : > { %v9931_v55 = vpop.f32.mrf.mxu0  ;;  %v8142_v57 = vpop.eup %8141  ;;  %7452 = vmatprep.mubr.msk.f32.mxu1 %vm375_vm0, %v8134_v62  ;;  %v3807_v23 = vadd.f32 %v3806_v51, %v3781_v10  ;;  %v3797_v19 = vadd.f32 %v8140_v36, %v3796_v38 }
 0x8bf   : > { %11337 = vst [vmem:[#allocation25_spill] sm:$0xff] %v9931_v55  ;;  %v8144_v3 = vpop.eup %8143  ;;  %v3786_v52 = vsel %vm504_vm2, %v8142_v57, 0.0 }
 0x8c0   : > { %v3110_v24 = vpop.f32.mrf.mxu0  ;;  %v3808_v59 = vadd.f32 %v3807_v23, %v3786_v52  ;;  %v3785_v63 = vsel %vm502_vm1, %v8144_v3, 0.0 }
 0x8c1   : > { %3907 = vmatmul.mubr.f32.gmra.mxu1 %v8136_v22  ;;  %v3798_v25 = vadd.f32 %v3797_v19, %v3785_v63  ;;  %v9945_v24 = vadd.f32 %v9919_v53, %v3773_v33  ;;  %v9953_v33 = vadd.f32 %v3786_v52, %v3785_v63 }
 0x8c2   : > { %v9938_v7 = vpop.f32.mrf.mxu0  ;;  %7453 = vmatprep.mubr.msk.f32.mxu1 %vm375_vm0, %v8138_v47  ;;  %v3809_v46 = vrot.slane %v3808_v59, 4 }
 0x8c3   : > { %11338 = vst [vmem:[#allocation26_spill] sm:$0xff] %v9938_v7  ;;  %v3799_v45 = vrot.slane %v3798_v25, 4  ;;  %11339 = vst [vmem:[#allocation27_spill] sm:$0xff] %v9945_v24 }
 0x8c4   : > { %v3115_v27 = vpop.f32.mrf.mxu0  ;;  %v3810_v51 = vadd.f32 %v3809_v46, %v3808_v59 }
 0x8c5   : > { %3912 = vmatmul.mubr.f32.gmra.mxu1 %v8140_v36  ;;  %v3800_v38 = vadd.f32 %v3799_v45, %v3798_v25  ;;  %v9951_v27 = vadd.f32 %v8140_v36, %v3781_v10 }
 0x8c6   : > { %v3811_v23 = vrot.slane %v3810_v51, 2  ;;  %7454 = vmatprep.mubr.msk.f32.mxu1 %vm375_vm0, %v8142_v57 }
 0x8c7   : > { %v3801_v7 = vrot.slane %v3800_v38, 2  ;;  %11340 = vst [vmem:[#allocation28_spill] sm:$0xff] %v9951_v27  ;;  %v7578_v27 = vld [vmem:[%s8524_s17 + $0x428] sm:$0xff] }
 0x8c8   : > { %v3812_v19 = vadd.f32 %v3811_v23, %v3810_v51 }
 0x8c9   : > { %v3802_v32 = vadd.f32 %v3801_v7, %v3800_v38  ;;  %3917 = vmatmul.mubr.f32.gmra.mxu1 %v8144_v3 }
 0x8ca   : > { %v3813_v5 = vrot.slane %v3812_v19, 1  ;;  %4149 = vmatprep.mubr.f32.mxu1 %v11325_v60 }
 0x8cb   : > { %v3803_v59 = vrot.slane %v3802_v32, 1 }
 0x8cc   : > { %v3814_v46 = vadd.f32 %v3813_v5, %v3812_v19 }
 0x8cd   : > { %v3804_v25 = vadd.f32 %v3803_v59, %v3802_v32 }
 0x8ce   : > { %8145 = vrcp.f32 %v3814_v46 }
 0x8cf   : > { %8147 = vrcp.f32 %v3804_v25 }
 0x8d9   : > { %v3346_v45 = vpop.f32.mrf.mxu0 }
 0x8da   : > { %7342 = vst [vmem:[%s9232_s11 + $0x480] sm:$0xff] %v3346_v45 }
 0x8db   : > { %v8146_v7 = vpop.eup %8145  ;;  %v3348_v51 = vpop.f32.mrf.mxu0 }
 0x8dc   : > { %v8148_v31 = vpop.eup %8147  ;;  %7343 = vst [vmem:[%s9232_s11 + $0x488] sm:$0xff] %v3348_v51  ;;  %v9958_v38 = vmul.f32 %v8146_v7, %v9911_v11  ;;  %v9961_v5 = vmul.f32 %v8146_v7, %v9913_v37  ;;  %v9963_v32 = vmul.f32 %v8146_v7, %v8134_v62  ;;  %v9965_v10 = vmul.f32 %v8146_v7, %v8138_v47 }
 0x8dd   : > { %v3352_v52 = vpop.f32.mrf.mxu0  ;;  %v9968_v63 = vmul.f32 %v8148_v31, %v9909_v21  ;;  %v9971_v23 = vmul.f32 %v8148_v31, %v9919_v53  ;;  %v9973_v19 = vmul.f32 %v8148_v31, %v8136_v22  ;;  %v9975_v11 = vmul.f32 %v8148_v31, %v8140_v36 }
 0x8de   : > { %7344 = vst [vmem:[%s9232_s11 + $0x490] sm:$0xff] %v3352_v52  ;;  %v9978_v37 = vmul.f32 %v8148_v31, %v8144_v3  ;;  %v9980_v62 = vmul.f32 %v8146_v7, %v8142_v57 }
 0x8df   : > { %v3354_v47 = vpop.f32.mrf.mxu0 }
 0x8e0   : > { %7345 = vst [vmem:[%s9232_s11 + $0x498] sm:$0xff] %v3354_v47 }
 0x8e1   : > { %v3358_v21 = vpop.f32.mrf.mxu0 }
 0x8e2   : > { %7346 = vst [vmem:[%s9232_s11 + $0x4a0] sm:$0xff] %v3358_v21 }
 0x8e3   : > { %v3360_v53 = vpop.f32.mrf.mxu0 }
 0x8e4   : > { %7347 = vst [vmem:[%s9232_s11 + $0x4a8] sm:$0xff] %v3360_v53 }
 0x8e5   : > { %v3364_v22 = vpop.f32.mrf.mxu0 }
 0x8e6   : > { %7348 = vst [vmem:[%s9232_s11 + $0x4b0] sm:$0xff] %v3364_v22 }
 0x8e7   : > { %v3366_v36 = vpop.f32.mrf.mxu0 }
 0x8e8   : > { %7349 = vst [vmem:[%s9232_s11 + $0x4b8] sm:$0xff] %v3366_v36 }
 0x8e9   : > { %v3370_v3 = vpop.f32.mrf.mxu0 }
 0x8ea   : > { %7350 = vst [vmem:[%s9232_s11 + $0x4c0] sm:$0xff] %v3370_v3 }
 0x8eb   : > { %v3372_v57 = vpop.f32.mrf.mxu0 }
 0x8ec   : > { %7351 = vst [vmem:[%s9232_s11 + $0x4c8] sm:$0xff] %v3372_v57 }
 0x8ed   : > { %v3376_v59 = vpop.f32.mrf.mxu0 }
 0x8ee   : > { %7352 = vst [vmem:[%s9232_s11 + $0x4d0] sm:$0xff] %v3376_v59 }
 0x8ef   : > { %v3378_v46 = vpop.f32.mrf.mxu0 }
 0x8f0   : > { %7353 = vst [vmem:[%s9232_s11 + $0x4d8] sm:$0xff] %v3378_v46 }
 0x8f1   : > { %v3382_v25 = vpop.f32.mrf.mxu0 }
 0x8f2   : > { %7354 = vst [vmem:[%s9232_s11 + $0x4e0] sm:$0xff] %v3382_v25 }
 0x8f3   : > { %v3384_v45 = vpop.f32.mrf.mxu0 }
 0x8f4   : > { %7355 = vst [vmem:[%s9232_s11 + $0x4e8] sm:$0xff] %v3384_v45 }
 0x8f5   : > { %v3388_v7 = vpop.f32.mrf.mxu0 }
 0x8f6   : > { %7356 = vst [vmem:[%s9232_s11 + $0x4f0] sm:$0xff] %v3388_v7 }
 0x8f7   : > { %v3390_v51 = vpop.f32.mrf.mxu0 }
 0x8f8   : > { %7357 = vst [vmem:[%s9232_s11 + $0x4f8] sm:$0xff] %v3390_v51 }
 0x8f9   : > { %v3394_v31 = vpop.f32.mrf.mxu0 }
 0x8fa   : > { %7358 = vst [vmem:[%s9232_s11 + $0x500] sm:$0xff] %v3394_v31 }
 0x8fb   : > { %v3396_v52 = vpop.f32.mrf.mxu0 }
 0x8fc   : > { %7359 = vst [vmem:[%s9232_s11 + $0x508] sm:$0xff] %v3396_v52 }
 0x8fd   : > { %v3400_v47 = vpop.f32.mrf.mxu0 }
 0x8fe   : > { %7360 = vst [vmem:[%s9232_s11 + $0x510] sm:$0xff] %v3400_v47 }
 0x8ff   : > { %v3402_v21 = vpop.f32.mrf.mxu0 }
 0x900   : > { %7361 = vst [vmem:[%s9232_s11 + $0x518] sm:$0xff] %v3402_v21 }
 0x901   : > { %v3406_v53 = vpop.f32.mrf.mxu0 }
 0x902   : > { %7362 = vst [vmem:[%s9232_s11 + $0x520] sm:$0xff] %v3406_v53 }
 0x903   : > { %v3408_v22 = vpop.f32.mrf.mxu0 }
 0x904   : > { %7363 = vst [vmem:[%s9232_s11 + $0x528] sm:$0xff] %v3408_v22 }
 0x905   : > { %v3412_v36 = vpop.f32.mrf.mxu0 }
 0x906   : > { %7364 = vst [vmem:[%s9232_s11 + $0x530] sm:$0xff] %v3412_v36 }
 0x907   : > { %v3414_v3 = vpop.f32.mrf.mxu0 }
 0x908   : > { %7365 = vst [vmem:[%s9232_s11 + $0x538] sm:$0xff] %v3414_v3 }
 0x909   : > { %v3418_v57 = vpop.f32.mrf.mxu0 }
 0x90a   : > { %7366 = vst [vmem:[%s9232_s11 + $0x540] sm:$0xff] %v3418_v57 }
 0x90b   : > { %v3420_v59 = vpop.f32.mrf.mxu0 }
 0x90c   : > { %7367 = vst [vmem:[%s9232_s11 + $0x548] sm:$0xff] %v3420_v59 }
 0x90d   : > { %v3424_v46 = vpop.f32.mrf.mxu0 }
 0x90e   : > { %7368 = vst [vmem:[%s9232_s11 + $0x550] sm:$0xff] %v3424_v46 }
 0x90f   : > { %v3426_v25 = vpop.f32.mrf.mxu0 }
 0x910   : > { %7369 = vst [vmem:[%s9232_s11 + $0x558] sm:$0xff] %v3426_v25 }
 0x911   : > { %v3430_v45 = vpop.f32.mrf.mxu0 }
 0x912   : > { %7370 = vst [vmem:[%s9232_s11 + $0x560] sm:$0xff] %v3430_v45 }
 0x913   : > { %v3432_v7 = vpop.f32.mrf.mxu0 }
 0x914   : > { %7371 = vst [vmem:[%s9232_s11 + $0x568] sm:$0xff] %v3432_v7 }
 0x915   : > { %v3436_v51 = vpop.f32.mrf.mxu0 }
 0x916   : > { %7372 = vst [vmem:[%s9232_s11 + $0x570] sm:$0xff] %v3436_v51 }
 0x917   : > { %v3438_v31 = vpop.f32.mrf.mxu0 }
 0x918   : > { %7373 = vst [vmem:[%s9232_s11 + $0x578] sm:$0xff] %v3438_v31 }
 0x919   : > { %v3442_v52 = vpop.f32.mrf.mxu0 }
 0x91a   : > { %7374 = vst [vmem:[%s9232_s11 + $0x580] sm:$0xff] %v3442_v52 }
 0x91b   : > { %v3444_v47 = vpop.f32.mrf.mxu0 }
 0x91c   : > { %7375 = vst [vmem:[%s9232_s11 + $0x588] sm:$0xff] %v3444_v47 }
 0x91d   : > { %v3448_v21 = vpop.f32.mrf.mxu0 }
 0x91e   : > { %7376 = vst [vmem:[%s9232_s11 + $0x590] sm:$0xff] %v3448_v21 }
 0x91f   : > { %v3450_v53 = vpop.f32.mrf.mxu0 }
 0x920   : > { %7377 = vst [vmem:[%s9232_s11 + $0x598] sm:$0xff] %v3450_v53 }
 0x921   : > { %v3454_v22 = vpop.f32.mrf.mxu0 }
 0x922   : > { %7378 = vst [vmem:[%s9232_s11 + $0x5a0] sm:$0xff] %v3454_v22 }
 0x923   : > { %v3456_v36 = vpop.f32.mrf.mxu0 }
 0x924   : > { %7379 = vst [vmem:[%s9232_s11 + $0x5a8] sm:$0xff] %v3456_v36 }
 0x925   : > { %v3460_v3 = vpop.f32.mrf.mxu0 }
 0x926   : > { %7380 = vst [vmem:[%s9232_s11 + $0x5b0] sm:$0xff] %v3460_v3 }
 0x927   : > { %v3462_v57 = vpop.f32.mrf.mxu0 }
 0x928   : > { %7381 = vst [vmem:[%s9232_s11 + $0x5b8] sm:$0xff] %v3462_v57 }
 0x929   : > { %v3466_v59 = vpop.f32.mrf.mxu0 }
 0x92a   : > { %7382 = vst [vmem:[%s9232_s11 + $0x5c0] sm:$0xff] %v3466_v59 }
 0x92b   : > { %v3468_v46 = vpop.f32.mrf.mxu0 }
 0x92c   : > { %7383 = vst [vmem:[%s9232_s11 + $0x5c8] sm:$0xff] %v3468_v46 }
 0x92d   : > { %v3472_v25 = vpop.f32.mrf.mxu0 }
 0x92e   : > { %7384 = vst [vmem:[%s9232_s11 + $0x5d0] sm:$0xff] %v3472_v25 }
 0x92f   : > { %v3474_v45 = vpop.f32.mrf.mxu0 }
 0x930   : > { %7385 = vst [vmem:[%s9232_s11 + $0x5d8] sm:$0xff] %v3474_v45 }
 0x931   : > { %v3478_v7 = vpop.f32.mrf.mxu0 }
 0x932   : > { %7386 = vst [vmem:[%s9232_s11 + $0x5e0] sm:$0xff] %v3478_v7 }
 0x933   : > { %v3480_v51 = vpop.f32.mrf.mxu0 }
 0x934   : > { %7387 = vst [vmem:[%s9232_s11 + $0x5e8] sm:$0xff] %v3480_v51 }
 0x935   : > { %v3484_v31 = vpop.f32.mrf.mxu0 }
 0x936   : > { %7388 = vst [vmem:[%s9232_s11 + $0x5f0] sm:$0xff] %v3484_v31 }
 0x937   : > { %v3486_v52 = vpop.f32.mrf.mxu0 }
 0x938   : > { %7389 = vst [vmem:[%s9232_s11 + $0x5f8] sm:$0xff] %v3486_v52 }
 0x939   : > { %v10027_v47 = vpop.f32.mrf.mxu0 }
 0x93b   : > { %v10029_v21 = vpop.f32.mrf.mxu0 }
 0x93c   : > { %v4512_v53 = vsel %vm375_vm0, %v10029_v21, -inf }
 0x93d   : > { %v10033_v22 = vpop.f32.mrf.mxu0  ;;  %v4513_v36 = vmax.f32 %v10027_v47, %v4512_v53 }
 0x93f   : > { %4514 = vmax.xlane.f32.xlu0 %v4513_v36  ;;  %v10036_v3 = vpop.f32.mrf.mxu0 }
 0x940   : > { %v4516_v57 = vsel %vm375_vm0, %v10036_v3, -inf }
 0x941   : > { %v10040_v59 = vpop.f32.mrf.mxu0  ;;  %v4517_v46 = vmax.f32 %v10033_v22, %v4516_v57 }
 0x943   : > { %4518 = vmax.xlane.f32.xlu1 %v4517_v46  ;;  %v10043_v25 = vpop.f32.mrf.mxu0 }
 0x944   : > { %v4520_v45 = vsel %vm375_vm0, %v10043_v25, -inf }
 0x945   : > { %v10047_v7 = vpop.f32.mrf.mxu0  ;;  %v4521_v51 = vmax.f32 %v10040_v59, %v4520_v45  ;;  %v7580_v45 = vld [vmem:[%s8524_s17 + $0x438] sm:$0xff] }
 0x946   : > { %4638 = vmatpush1.msra.mxu0 %v7580_v45  ;;  %v7571_v45 = vld [vmem:[%s8524_s17 + $0x3f0] sm:$0xff] }
 0x947   : > { %4522 = vmax.xlane.f32.xlu0 %v4521_v51  ;;  %v10050_v31 = vpop.f32.mrf.mxu0  ;;  %v7579_v51 = vld [vmem:[%s8524_s17 + $0x430] sm:$0xff]  ;;  %4639 = vmatprep.subr.mxu0 %v11325_v60 }
 0x948   : > { %v4524_v15 = vsel %vm375_vm0, %v10050_v31, -inf  ;;  %4640 = vmatpush1.msra.mxu0 %v7579_v51  ;;  %v7570_v51 = vld [vmem:[%s8524_s17 + $0x3e8] sm:$0xff] }
 0x949   : > { %v10052_v52 = vpop.f32.mrf.mxu0  ;;  %v4525_v16 = vmax.f32 %v10047_v7, %v4524_v15  ;;  %4641 = vmatprep.subr.mxu0 %v11325_v60  ;;  %v7576_v15 = vld [vmem:[%s8524_s17 + $0x418] sm:$0xff] }
 0x94a   : > { %v4528_v36 = vsel %vm502_vm1, %v10052_v52, -inf  ;;  %4642 = vmatpush1.msra.mxu0 %v7578_v27  ;;  %v7573_v27 = vld [vmem:[%s8524_s17 + $0x400] sm:$0xff] }
 0x94b   : > { %v10054_v53 = vpop.f32.mrf.mxu0  ;;  %4643 = vmatprep.subr.mxu0 %v11325_v60 }
 0x94c   : > { %v4529_v57 = vsel %vm504_vm2, %v10054_v53, -inf }
 0x94d   : > { %v4530_v46 = vmax.f32 %v4528_v36, %v4529_v57  ;;  %v7577_v36 = vld [vmem:[%s8524_s17 + $0x420] sm:$0xff]  ;;  %v7575_v57 = vld [vmem:[%s8524_s17 + $0x410] sm:$0xff] }
 0x94e   : > { %4644 = vmatpush1.msra.mxu0 %v7577_v36  ;;  %v7420_v36 = vld [vmem:[%s9050_s6 + $0x188] sm:$0xf] }
 0x94f   : > { %4531 = vmax.xlane.f32.xlu1 %v4530_v46  ;;  %4645 = vmatprep.subr.mxu0 %v11325_v60  ;;  %v7572_v46 = vld [vmem:[%s8524_s17 + $0x3f8] sm:$0xff] }
 0x950   : > { %4646 = vmatpush1.msra.mxu0 %v7576_v15  ;;  %v7569_v15 = vld [vmem:[%s8524_s17 + $0x3e0] sm:$0xff]  ;;  %7460 = vmatprep.subr.msk.mxu1 %vm502_vm1, %v7420_v36 }
 0x951   : > { %4647 = vmatprep.subr.mxu0 %v11325_v60  ;;  %v7415_v36 = vld [vmem:[%s9050_s6 + $0x160] sm:$0xff] }
 0x952   : > { %4648 = vmatpush1.msra.mxu0 %v7575_v57  ;;  %v7419_v57 = vld [vmem:[%s9050_s6 + $0x180] sm:$0xf] }
 0x953   : > { %4526 = vmax.xlane.f32.xlu1 %v4525_v16  ;;  %4649 = vmatprep.subr.mxu0 %v11325_v60  ;;  %v7574_v16 = vld [vmem:[%s8524_s17 + $0x408] sm:$0xff] }
 0x954   : > { %4650 = vmatpush1.msra.mxu0 %v7574_v16  ;;  %7461 = vmatpush1.msk.msra.mxu1 %vm502_vm1, %v7419_v57  ;;  %v7418_v16 = vld [vmem:[%s9050_s6 + $0x178] sm:$0xff]  ;;  %v7566_v57 = vld [vmem:[%s8524_s17 + $0x3c8] sm:$0xff] }
 0x955   : > { %4651 = vmatprep.subr.mxu0 %v11325_v60  ;;  %4109 = vmatprep.subr.mxu1 %v7418_v16  ;;  %v7413_v16 = vld [vmem:[%s9050_s6 + $0x150] sm:$0xff] }
 0x956   : > { %4652 = vmatpush1.msra.mxu0 %v7573_v27  ;;  %v7568_v27 = vld [vmem:[%s8524_s17 + $0x3d8] sm:$0xff] }
 0x957   : > { %4653 = vmatprep.subr.mxu0 %v11325_v60 }
 0x958   : > { %4654 = vmatpush1.msra.mxu0 %v7572_v46  ;;  %v7417_v46 = vld [vmem:[%s9050_s6 + $0x170] sm:$0xff] }
 0x959   : > { %4655 = vmatprep.subr.mxu0 %v11325_v60  ;;  %4110 = vmatpush1.msra.mxu1 %v7417_v46  ;;  %v7565_v46 = vld [vmem:[%s8524_s17 + $0x3c0] sm:$0xff] }
 0x95a   : > { %4656 = vmatpush1.msra.mxu0 %v7571_v45  ;;  %v7416_v45 = vld [vmem:[%s9050_s6 + $0x168] sm:$0xff] }
 0x95b   : > { %4657 = vmatprep.subr.mxu0 %v11325_v60  ;;  %4111 = vmatprep.subr.mxu1 %v7416_v45  ;;  %v7411_v45 = vld [vmem:[%s9050_s6 + $0x140] sm:$0xff] }
 0x95c   : > { %4658 = vmatpush1.msra.mxu0 %v7570_v51  ;;  %v7567_v51 = vld [vmem:[%s8524_s17 + $0x3d0] sm:$0xff]  ;;  %4112 = vmatpush1.msra.mxu1 %v7415_v36 }
 0x95d   : > { %4659 = vmatprep.subr.mxu0 %v11325_v60  ;;  %v7587_v36 = vld [vmem:[%s8524_s17 + $0x470] sm:$0xff] }
 0x95e   : > { %4660 = vmatpush1.msra.mxu0 %v7569_v15  ;;  %v7414_v15 = vld [vmem:[%s9050_s6 + $0x158] sm:$0xff] }
 0x95f   : > { %4661 = vmatprep.subr.mxu0 %v11325_v60  ;;  %4113 = vmatprep.subr.mxu1 %v7414_v15  ;;  %v7586_v15 = vld [vmem:[%s8524_s17 + $0x468] sm:$0xff] }
 0x960   : > { %4662 = vmatpush1.msra.mxu0 %v7568_v27  ;;  %4114 = vmatpush1.msra.mxu1 %v7413_v16  ;;  %v7412_v27 = vld [vmem:[%s9050_s6 + $0x148] sm:$0xff] }
 0x961   : > { %4663 = vmatprep.subr.mxu0 %v11325_v60  ;;  %4115 = vmatprep.subr.mxu1 %v7412_v27  ;;  %v7584_v27 = vld [vmem:[%s8524_s17 + $0x458] sm:$0xff] }
 0x962   : > { %4664 = vmatpush1.msra.mxu0 %v7567_v51  ;;  %v7588_v51 = vld [vmem:[%s8524_s17 + $0x478] sm:$0xff]  ;;  %4116 = vmatpush1.msra.mxu1 %v7411_v45 }
 0x963   : > { %4665 = vmatprep.subr.mxu0 %v11325_v60 }
 0x964   : > { %4666 = vmatpush1.msra.mxu0 %v7566_v57  ;;  %v7585_v57 = vld [vmem:[%s8524_s17 + $0x460] sm:$0xff] }
 0x965   : > { %4667 = vmatprep.subr.mxu0 %v11325_v60 }
 0x966   : > { %4668 = vmatpush1.msra.mxu0 %v7565_v46 }
 0x967   : > { %4685 = vmatprep.subr.mxu0 %v11325_v60 }
 0x968   : > { %4686 = vmatpush2.msra.mxu0 %v7588_v51  ;;  %v7582_v51 = vld [vmem:[%s8524_s17 + $0x448] sm:$0xff] }
 0x969   : > { %4687 = vmatprep.subr.mxu0 %v11325_v60 }
 0x96a   : > { %4688 = vmatpush2.msra.mxu0 %v7587_v36 }
 0x96b   : > { %4689 = vmatprep.subr.mxu0 %v11325_v60 }
 0x96c   : > { %4690 = vmatpush2.msra.mxu0 %v7586_v15 }
 0x96d   : > { %4691 = vmatprep.subr.mxu0 %v11325_v60 }
 0x96e   : > { %4692 = vmatpush2.msra.mxu0 %v7585_v57 }
 0x96f   : > { %4693 = vmatprep.subr.mxu0 %v11325_v60 }
 0x970   : > { %4694 = vmatpush2.msra.mxu0 %v7584_v27 }
 0x971   : > { %4695 = vmatprep.subr.mxu0 %v11325_v60 }
 0x974   : > { %3943 = vxpose.xlu0.b32.start [1/5] (short) %v9968_v63, 128  ;;  %v7583_v63 = vld [vmem:[%s8524_s17 + $0x450] sm:$0xff] }
 0x975   : > { %4696 = vmatpush2.msra.mxu0 %v7583_v63 }
 0x976   : > { %4697 = vmatprep.subr.mxu0 %v11325_v60 }
 0x977   : > { %4698 = vmatpush2.msra.mxu0 %v7582_v51 }
 0x978   : > { %3944 = vxpose.xlu0.b32.cont [2/5] (short) %v9971_v23, 128  ;;  %v7581_v23 = vld [vmem:[%s8524_s17 + $0x440] sm:$0xff]  ;;  %4699 = vmatprep.subr.mxu0 %v11325_v60 }
 0x979   : > { %v10116_v16 = vpop.f32.mrf.mxu1  ;;  %4700 = vmatpush2.msra.mxu0 %v7581_v23 }
 0x97a   : > { %11341 = vst [vmem:[#allocation29_spill] sm:$0xff] %v10116_v16 }
 0x97b   : > { %v3900_v46 = vpop.f32.mrf.mxu1 }
 0x97c   : > { %3945 = vxpose.xlu0.b32.cont [3/5] (short) %v9973_v19, 128 }
 0x97d   : > { %v10123_v45 = vpop.f32.mrf.mxu1 }
 0x97e   : > { %11342 = vst [vmem:[#allocation30_spill] sm:$0xff] %v10123_v45 }
 0x97f   : > { %v3905_v36 = vpop.f32.mrf.mxu1 }
 0x980   : > { %3946 = vxpose.xlu0.b32.cont [4/5] (short) %v9975_v11, 128  ;;  %v7698_v11 = vld [vmem:[%s8454_s9 + $0x378] sm:$0xff] }
 0x981   : > { %v10130_v15 = vpop.f32.mrf.mxu1  ;;  %5238 = vmatprep.subr.mxu1 %v7698_v11 }
 0x982   : > { %11343 = vst [vmem:[#allocation31_spill] sm:$0xff] %v10130_v15 }
 0x983   : > { %v3910_v19 = vpop.f32.mrf.mxu1 }
 0x984   : > { %3947 = vxpose.xlu0.b32.end [5/5] (short) %v9978_v37, 128 }
 0x985   : > { %v10133_v57 = vpop.f32.mrf.mxu1 }
 0x986   : > { %11344 = vst [vmem:[#allocation32_spill] sm:$0xff] %v10133_v57 }
 0x987   : > { %v3915_v27 = vpop.f32.mrf.mxu1 }
 0x989   : > { %v10135_v63 = vpop.f32.mrf.mxu1 }
 0x98a   : > { %11345 = vst [vmem:[#allocation33_spill] sm:$0xff] %v10135_v63 }
 0x98b   : > { %v3920_v46 = vpop.f32.mrf.mxu1 }
 0x9b1   : > { %3975 = vxpose.xlu0.b32.start [1/5] (short) (narrow) %v9958_v38, 64 }
 0x9b5   : > { %3976 = vxpose.xlu0.b32.cont [2/5] (short) (narrow) %v9961_v5, 64 }
 0x9b9   : > { %3977 = vxpose.xlu0.b32.cont [3/5] (short) (narrow) %v9963_v32, 64 }
 0x9bd   : > { %3978 = vxpose.xlu0.b32.cont [4/5] (short) (narrow) %v9965_v10, 64 }
 0x9c1   : > { %3979 = vxpose.xlu0.b32.end [5/5] (short) (narrow) %v9980_v62, 64 }
 0x9c8   : > { %v4515_v37 = vpop.xlane.xlu0 %4514 }
 0x9cc   : > { %v4519_v51 = vpop.xlane.xlu1 %4518 }
 0x9d0   : > { %v4523_v27 = vpop.xlane.xlu0 %4522 }
 0x9d8   : > { %v4532_v23 = vpop.xlane.xlu1 %4531 }
 0x9d9   : > { %v4533_v36 = vsel %vm502_vm1, %v4532_v23, -inf }
 0x9da   : > { %v4534_v19 = vmax.f32 %v4515_v37, %v4533_v36  ;;  %v7697_v36 = vld [vmem:[%s8454_s9 + $0x370] sm:$0xff] }
 0x9dc   : > { %v4535_v46 = vmax.f32 %v4534_v19, %v4519_v51  ;;  %v4527_v38 = vpop.xlane.xlu1 %4526 }
 0x9dd   : > { %v4536_v57 = vmax.f32 %v4523_v27, %v4527_v38  ;;  %v7693_v38 = vld [vmem:[%s8454_s9 + $0x350] sm:$0xff] }
 0x9df   : > { %v4537_v5 = vmax.f32 %v4535_v46, %v4536_v57 }
 0x9e1   : > { %v4538_v45 = vrot.slane %v4537_v5, 4 }
 0x9e3   : > { %v4539_v32 = vmax.f32 %v4537_v5, %v4538_v45 }
 0x9e5   : > { %v4540_v24 = vrot.slane %v4539_v32, 2 }
 0x9e7   : > { %v4541_v10 = vmax.f32 %v4539_v32, %v4540_v24  ;;  %v7692_v32 = vld [vmem:[%s8454_s9 + $0x348] sm:$0xff] }
 0x9e9   : > { %v4542_v6 = vrot.slane %v4541_v10, 1 }
 0x9eb   : > { %v4543_v62 = vmax.f32 %v4541_v10, %v4542_v6  ;;  %v7564_v10 = vld [vmem:[%s9050_s6 + $0x1d8] sm:$0xf] }
 0x9ec   : > { %7604 = vmatprep.subr.msk.mxu0 %vm502_vm1, %v7564_v10 }
 0x9ed   : > { %v4544_v11 = vsub.f32 %v10027_v47, %v4543_v62  ;;  %v4545_v63 = vsub.f32 %v10029_v21, %v4543_v62  ;;  %v4547_v23 = vsub.f32 %v10036_v3, %v4543_v62  ;;  %v4546_v37 = vsub.f32 %v10033_v22, %v4543_v62  ;;  %v7696_v3 = vld [vmem:[%s8454_s9 + $0x368] sm:$0xff] }
 0x9ee   : > { %v4549_v51 = vsub.f32 %v10043_v25, %v4543_v62  ;;  %v4548_v57 = vsub.f32 %v10040_v59, %v4543_v62  ;;  %v4551_v6 = vsub.f32 %v10050_v31, %v4543_v62  ;;  %v4550_v21 = vsub.f32 %v10047_v7, %v4543_v62  ;;  %v7695_v59 = vld [vmem:[%s8454_s9 + $0x360] sm:$0xff]  ;;  %v7694_v7 = vld [vmem:[%s8454_s9 + $0x358] sm:$0xff] }
 0x9ef   : > { %v4554_v45 = vmul.f32 1.442695, %v4544_v11  ;;  %v4556_v19 = vmul.f32 1.442695, %v4545_v63  ;;  %v4560_v24 = vmul.f32 1.442695, %v4547_v23  ;;  %v4553_v25 = vsub.f32 %v10054_v53, %v4543_v62 }
 0x9f0   : > { %v3959_v27 = vpop.trf.xlu0  ;;  %v4558_v47 = vmul.f32 1.442695, %v4546_v37  ;;  %v4564_v22 = vmul.f32 1.442695, %v4549_v51  ;;  %v4562_v63 = vmul.f32 1.442695, %v4548_v57  ;;  %v4552_v31 = vsub.f32 %v10052_v52, %v4543_v62 }
 0x9f1   : > { %8149 = vpow2.f32 %v4554_v45  ;;  %7462 = vmatmul.mubr.msk.f32.vlgmr.msra.gmra.mxu1 %vm787_vm3, %v3959_v27  ;;  %v4568_v46 = vmul.f32 1.442695, %v4551_v6  ;;  %v4566_v53 = vmul.f32 1.442695, %v4550_v21  ;;  %v4572_v52 = vmul.f32 1.442695, %v4553_v25 }
 0x9f2   : > { %4155 = vmatprep.mubr.f32.mxu1 %v11325_v60  ;;  %8151 = vpow2.f32 %v4556_v19  ;;  %5239 = vmatpush1.msra.mxu1 %v7697_v36  ;;  %v7691_v62 = vld [vmem:[%s8454_s9 + $0x340] sm:$0xff]  ;;  %v4570_v11 = vmul.f32 1.442695, %v4552_v31  ;;  %v7690_v23 = vld [vmem:[%s8454_s9 + $0x338] sm:$0xff]  ;;  %v7689_v37 = vld [vmem:[%s8454_s9 + $0x330] sm:$0xff] }
 0x9f3   : > { %8153 = vpow2.f32 %v4560_v24  ;;  %5240 = vmatprep.subr.mxu1 %v7696_v3  ;;  %v7688_v57 = vld [vmem:[%s8454_s9 + $0x328] sm:$0xff]  ;;  %v7687_v36 = vld [vmem:[%s8454_s9 + $0x320] sm:$0xff]  ;;  %v7686_v45 = vld [vmem:[%s8454_s9 + $0x318] sm:$0xff] }
 0x9f4   : > { %v3960_v5 = vpop.trf.xlu0  ;;  %8155 = vpow2.f32 %v4558_v47  ;;  %5241 = vmatpush1.msra.mxu1 %v7695_v59  ;;  %v7685_v19 = vld [vmem:[%s8454_s9 + $0x310] sm:$0xff]  ;;  %v7684_v6 = vld [vmem:[%s8454_s9 + $0x308] sm:$0xff]  ;;  %v7683_v27 = vld [vmem:[%s8454_s9 + $0x300] sm:$0xff] }
 0x9f5   : > { %7463 = vmatmul.mubr.msk.f32.gmra.mxu1 %vm787_vm3, %v3960_v5  ;;  %8157 = vpow2.f32 %v4564_v22  ;;  %5242 = vmatprep.subr.mxu1 %v7694_v7  ;;  %v7563_v59 = vld [vmem:[%s9050_s6 + $0x1d0] sm:$0xf]  ;;  %v7562_v7 = vld [vmem:[%s9050_s6 + $0x1c8] sm:$0xff] }
 0x9f6   : > { %4161 = vmatprep.mubr.f32.mxu1 %v11325_v60  ;;  %8159 = vpow2.f32 %v4562_v63  ;;  %5243 = vmatpush1.msra.mxu1 %v7693_v38 }
 0x9f7   : > { %8161 = vpow2.f32 %v4568_v46  ;;  %5244 = vmatprep.subr.mxu1 %v7692_v32 }
 0x9f8   : > { %v3961_v51 = vpop.trf.xlu0  ;;  %8163 = vpow2.f32 %v4566_v53  ;;  %5245 = vmatpush1.msra.mxu1 %v7691_v62 }
 0x9f9   : > { %7464 = vmatmul.mubr.msk.f32.gmra.mxu1 %vm787_vm3, %v3961_v51  ;;  %8165 = vpow2.f32 %v4572_v52  ;;  %5246 = vmatprep.subr.mxu1 %v7690_v23  ;;  %v7561_v51 = vld [vmem:[%s9050_s6 + $0x1c0] sm:$0xff] }
 0x9fa   : > { %4167 = vmatprep.mubr.f32.mxu1 %v11325_v60  ;;  %8167 = vpow2.f32 %v4570_v11  ;;  %5247 = vmatpush1.msra.mxu1 %v7689_v37 }
 0x9fb   : > { %5248 = vmatprep.subr.mxu1 %v7688_v57 }
 0x9fc   : > { %v3962_v24 = vpop.trf.xlu0  ;;  %5249 = vmatpush1.msra.mxu1 %v7687_v36 }
 0x9fd   : > { %7465 = vmatmul.mubr.msk.f32.gmra.mxu1 %vm787_vm3, %v3962_v24  ;;  %5250 = vmatprep.subr.mxu1 %v7686_v45 }
 0x9fe   : > { %v10178_v47 = vpop.eup %8149  ;;  %4173 = vmatprep.mubr.f32.mxu1 %v11325_v60  ;;  %5251 = vmatpush1.msra.mxu1 %v7685_v19  ;;  %v7560_v19 = vld [vmem:[%s9050_s6 + $0x1b8] sm:$0xff] }
 0x9ff   : > { %v10181_v21 = vpop.eup %8151  ;;  %5252 = vmatprep.subr.mxu1 %v7684_v6 }
 0xa00   : > { %v10183_v3 = vpop.eup %8153  ;;  %v4574_v22 = vsel %vm375_vm0, %v10181_v21, 0.0  ;;  %7594 = vmatprep.mubr.msk.f32.mxu0 %vm375_vm0, %v10181_v21  ;;  %v3963_v25 = vpop.trf.xlu0  ;;  %5253 = vmatpush1.msra.mxu1 %v7683_v27 }
 0xa01   : > { %v10190_v63 = vpop.eup %8155  ;;  %4702 = vmatmul.mubr.f32.vlgmr.msra.gmra.mxu0 %v10178_v47  ;;  %7466 = vmatmul.mubr.msk.f32.gmra.mxu1 %vm787_vm3, %v3963_v25  ;;  %v4578_v31 = vsel %vm375_vm0, %v10183_v3, 0.0  ;;  %v10198_v46 = vadd.f32 %v10178_v47, %v4574_v22 }
 0xa02   : > { %v10200_v38 = vpop.eup %8157  ;;  %v4610_v5 = vadd.f32 %v4578_v31, %v4574_v22  ;;  %7595 = vmatprep.mubr.msk.f32.mxu0 %vm375_vm0, %v10183_v3  ;;  %4179 = vmatprep.mubr.f32.mxu1 %v11325_v60  ;;  %v4600_v53 = vadd.f32 %v10190_v63, %v10178_v47  ;;  %v10208_v32 = vadd.f32 %v10190_v63, %v4578_v31 }
 0xa03   : > { %11346 = vst [vmem:[#allocation34_spill] sm:$0xff] %v10198_v46  ;;  %v10210_v10 = vpop.eup %8159  ;;  %v4582_v52 = vsel %vm375_vm0, %v10200_v38, 0.0  ;;  %7605 = vmatpush1.msk.msra.mxu0 %vm502_vm1, %v7563_v59  ;;  %5442 = vmatprep.subr.mxu1 %v11325_v60 }
 0xa04   : > { %v10216_v62 = vpop.eup %8161  ;;  %v3964_v11 = vpop.trf.xlu0  ;;  %v4611_v23 = vadd.f32 %v4610_v5, %v4582_v52  ;;  %v4601_v37 = vadd.f32 %v10210_v10, %v4600_v53  ;;  %4914 = vmatprep.subr.mxu0 %v7562_v7  ;;  %v10221_v57 = vadd.f32 %v10210_v10, %v4582_v52  ;;  %v7559_v53 = vld [vmem:[%s9050_s6 + $0x1b0] sm:$0xff] }
 0xa05   : > { %v10223_v36 = vpop.eup %8163  ;;  %4707 = vmatmul.mubr.f32.gmra.mxu0 %v10190_v63  ;;  %7467 = vmatmul.mubr.msk.f32.gmra.mxu1 %vm787_vm3, %v3964_v11  ;;  %v4586_v45 = vsel %vm375_vm0, %v10216_v62, 0.0  ;;  %v7558_v11 = vld [vmem:[%s9050_s6 + $0x1a8] sm:$0xff] }
 0xa06   : > { %11347 = vst [vmem:[#allocation35_spill] sm:$0xff] %v10221_v57  ;;  %v10230_v24 = vpop.eup %8165  ;;  %7596 = vmatprep.mubr.msk.f32.mxu0 %vm375_vm0, %v10200_v38  ;;  %4185 = vmatprep.mubr.f32.mxu1 %v11325_v60  ;;  %v4612_v6 = vadd.f32 %v4611_v23, %v4586_v45  ;;  %v4602_v27 = vadd.f32 %v10223_v36, %v4601_v37 }
 0xa07   : > { %v10237_v22 = vadd.f32 %v10223_v36, %v4586_v45  ;;  %v10239_v25 = vpop.eup %8167  ;;  %v4591_v59 = vsel %vm504_vm2, %v10230_v24, 0.0  ;;  %4915 = vmatpush1.msra.mxu0 %v7561_v51 }
 0xa08   : > { %v3965_v31 = vpop.trf.xlu0  ;;  %v4613_v7 = vadd.f32 %v4612_v6, %v4591_v59  ;;  %v4590_v5 = vsel %vm502_vm1, %v10239_v25, 0.0  ;;  %4916 = vmatprep.subr.mxu0 %v7560_v19  ;;  %v7557_v6 = vld [vmem:[%s9050_s6 + $0x1a0] sm:$0xff] }
 0xa09   : > { %4712 = vmatmul.mubr.f32.gmra.mxu0 %v10210_v10  ;;  %7468 = vmatmul.mubr.msk.f32.gmra.mxu1 %vm787_vm3, %v3965_v31  ;;  %v4603_v52 = vadd.f32 %v4602_v27, %v4590_v5  ;;  %v10249_v23 = vadd.f32 %v4591_v59, %v4590_v5  ;;  %v7556_v59 = vld [vmem:[%s9050_s6 + $0x198] sm:$0xff] }
 0xa0a   : > { %7597 = vmatprep.mubr.msk.f32.mxu0 %vm375_vm0, %v10216_v62  ;;  %4191 = vmatprep.mubr.f32.mxu1 %v11325_v60  ;;  %v4614_v37 = vrot.slane %v4613_v7, 4 }
 0xa0b   : > { %11348 = vst [vmem:[#allocation36_spill] sm:$0xff] %v10249_v23  ;;  %v4604_v51 = vrot.slane %v4603_v52, 4  ;;  %4917 = vmatpush1.msra.mxu0 %v7559_v53  ;;  %v7555_v53 = vld [vmem:[%s9050_s6 + $0x190] sm:$0xff] }
 0xa0c   : > { %v3966_v45 = vpop.trf.xlu0  ;;  %v4615_v19 = vadd.f32 %v4614_v37, %v4613_v7  ;;  %4918 = vmatprep.subr.mxu0 %v7558_v11  ;;  %v7842_v11 = vld [vmem:[%s8454_s9 + $0x3f8] sm:$0xff] }
 0xa0d   : > { %4717 = vmatmul.mubr.f32.gmra.mxu0 %v10223_v36  ;;  %7469 = vmatmul.mubr.msk.f32.gmra.mxu1 %vm787_vm3, %v3966_v45  ;;  %v4605_v27 = vadd.f32 %v4604_v51, %v4603_v52 }
 0xa0e   : > { %v4616_v31 = vrot.slane %v4615_v19, 2  ;;  %7598 = vmatprep.mubr.msk.f32.mxu0 %vm375_vm0, %v10230_v24  ;;  %4197 = vmatprep.mubr.f32.mxu1 %v11325_v60 }
 0xa0f   : > { %v4606_v5 = vrot.slane %v4605_v27, 2  ;;  %4919 = vmatpush1.msra.mxu0 %v7557_v6 }
 0xa10   : > { %v4617_v23 = vadd.f32 %v4616_v31, %v4615_v19  ;;  %v3967_v7 = vpop.trf.xlu0  ;;  %4920 = vmatprep.subr.mxu0 %v7556_v59 }
 0xa11   : > { %v4607_v37 = vadd.f32 %v4606_v5, %v4605_v27  ;;  %4722 = vmatmul.mubr.f32.gmra.mxu0 %v10239_v25  ;;  %7470 = vmatmul.mubr.msk.f32.gmra.mxu1 %vm787_vm3, %v3967_v7 }
 0xa12   : > { %4203 = vmatprep.mubr.f32.mxu1 %v11325_v60  ;;  %v4618_v52 = vrot.slane %v4617_v23, 1  ;;  %4921 = vmatpush1.msra.mxu0 %v7555_v53 }
 0xa13   : > { %v4608_v51 = vrot.slane %v4607_v37, 1  ;;  %4954 = vmatprep.mubr.f32.mxu0 %v11325_v60  ;;  %6043 = vmatprep.subr.mxu0 %v7842_v11 }
 0xa14   : > { %v3968_v45 = vpop.trf.xlu0  ;;  %v4619_v6 = vadd.f32 %v4618_v52, %v4617_v23 }
 0xa15   : > { %v4609_v57 = vadd.f32 %v4608_v51, %v4607_v37  ;;  %7471 = vmatmul.mubr.msk.f32.gmra.mxu1 %vm787_vm3, %v3968_v45 }
 0xa16   : > { %4209 = vmatprep.mubr.f32.mxu1 %v11325_v60  ;;  %8169 = vrcp.f32 %v4619_v6 }
 0xa17   : > { %8171 = vrcp.f32 %v4609_v57 }
 0xa18   : > { %v3969_v19 = vpop.trf.xlu0 }
 0xa19   : > { %7472 = vmatmul.mubr.msk.f32.gmra.mxu1 %vm787_vm3, %v3969_v19 }
 0xa1a   : > { %4215 = vmatprep.mubr.f32.mxu1 %v11325_v60 }
 0xa1c   : > { %v3970_v27 = vpop.trf.xlu0 }
 0xa1d   : > { %7473 = vmatmul.mubr.msk.f32.gmra.mxu1 %vm787_vm3, %v3970_v27  ;;  %v7678_v27 = vld [vmem:[%s8476_s13 + $0xf0] sm:$0xff] }
 0xa1e   : > { %4221 = vmatprep.mubr.f32.mxu1 %v11325_v60 }
 0xa20   : > { %v3971_v59 = vpop.trf.xlu0 }
 0xa21   : > { %7474 = vmatmul.mubr.msk.f32.gmra.mxu1 %vm787_vm3, %v3971_v59  ;;  %v7679_v59 = vld [vmem:[%s8476_s13 + $0xf8] sm:$0xff] }
 0xa22   : > { %4227 = vmatprep.mubr.f32.mxu1 %v11325_v60 }
 0xa23   : > { %v8170_v23 = vpop.eup %8169 }
 0xa24   : > { %v8172_v31 = vpop.eup %8171  ;;  %v3972_v5 = vpop.trf.xlu0  ;;  %v4739_v57 = vmul.f32 %v8170_v23, %v10181_v21  ;;  %v4741_v53 = vmul.f32 %v8170_v23, %v10183_v3  ;;  %v4743_v7 = vmul.f32 %v8170_v23, %v10200_v38  ;;  %v4745_v11 = vmul.f32 %v8170_v23, %v10216_v62 }
 0xa25   : > { %v4738_v37 = vmul.f32 %v8172_v31, %v10178_v47  ;;  %7475 = vmatmul.mubr.msk.f32.gmra.mxu1 %vm787_vm3, %v3972_v5  ;;  %v4747_v52 = vmul.f32 %v8170_v23, %v10230_v24  ;;  %v4740_v45 = vmul.f32 %v8172_v31, %v10190_v63  ;;  %v4742_v3 = vmul.f32 %v8172_v31, %v10210_v10  ;;  %v7680_v23 = vld [vmem:[%s8476_s13 + $0x100] sm:$0xff]  ;;  %v7682_v5 = vld [vmem:[%s8476_s13 + $0x110] sm:$0xf] }
 0xa26   : > { %4233 = vmatprep.mubr.f32.mxu1 %v11325_v60  ;;  %v4744_v38 = vmul.f32 %v8172_v31, %v10223_v36  ;;  %v4746_v62 = vmul.f32 %v8172_v31, %v10239_v25  ;;  %v7681_v31 = vld [vmem:[%s8476_s13 + $0x108] sm:$0xff] }
 0xa27   : > { %4748 = vxpose.xlu1.b32.start [1/5] (short) %v4738_v37, 128  ;;  %v7841_v37 = vld [vmem:[%s8454_s9 + $0x3f0] sm:$0xff] }
 0xa28   : > { %v3973_v51 = vpop.trf.xlu0 }
 0xa29   : > { %7476 = vmatmul.mubr.msk.f32.gmra.mxu1 %vm787_vm3, %v3973_v51 }
 0xa2a   : > { %4239 = vmatprep.mubr.f32.mxu1 %v11325_v60 }
 0xa2b   : > { %4749 = vxpose.xlu1.b32.cont [2/5] (short) %v4740_v45, 128  ;;  %v7840_v45 = vld [vmem:[%s8454_s9 + $0x3e8] sm:$0xff] }
 0xa2c   : > { %v3974_v21 = vpop.trf.xlu0 }
 0xa2d   : > { %7477 = vmatmul.mubr.msk.f32.gmra.mxu1 %vm787_vm3, %v3974_v21  ;;  %v7839_v21 = vld [vmem:[%s8454_s9 + $0x3e0] sm:$0xff] }
 0xa2e   : > { %4245 = vmatprep.mubr.f32.mxu1 %v11325_v60 }
 0xa2f   : > { %4750 = vxpose.xlu1.b32.cont [3/5] (short) %v4742_v3, 128  ;;  %v7838_v3 = vld [vmem:[%s8454_s9 + $0x3d8] sm:$0xff] }
 0xa30   : > { %v3991_v47 = vpop.trf.xlu0 }
 0xa31   : > { %7478 = vmatmul.mubr.msk.f32.gmra.mxu1 %vm787_vm3, %v3991_v47  ;;  %v7833_v47 = vld [vmem:[%s8454_s9 + $0x3b0] sm:$0xff] }
 0xa32   : > { %4251 = vmatprep.mubr.f32.mxu1 %v11325_v60 }
 0xa33   : > { %4751 = vxpose.xlu1.b32.cont [4/5] (short) %v4744_v38, 128 }
 0xa34   : > { %v3992_v63 = vpop.trf.xlu0 }
 0xa35   : > { %7479 = vmatmul.mubr.msk.f32.gmra.mxu1 %vm787_vm3, %v3992_v63  ;;  %v7832_v63 = vld [vmem:[%s8454_s9 + $0x3a8] sm:$0xff] }
 0xa36   : > { %4257 = vmatprep.mubr.f32.mxu1 %v11325_v60 }
 0xa37   : > { %4752 = vxpose.xlu1.b32.end [5/5] (short) %v4746_v62, 128  ;;  %v7831_v62 = vld [vmem:[%s8454_s9 + $0x3a0] sm:$0xff] }
 0xa38   : > { %v3993_v10 = vpop.trf.xlu0 }
 0xa39   : > { %7480 = vmatmul.mubr.msk.f32.gmra.mxu1 %vm787_vm3, %v3993_v10  ;;  %v7830_v10 = vld [vmem:[%s8454_s9 + $0x398] sm:$0xff] }
 0xa3a   : > { %4263 = vmatprep.mubr.f32.mxu1 %v11325_v60 }
 0xa3c   : > { %v3994_v36 = vpop.trf.xlu0 }
 0xa3d   : > { %7481 = vmatmul.mubr.msk.f32.gmra.mxu1 %vm787_vm3, %v3994_v36  ;;  %v7829_v36 = vld [vmem:[%s8454_s9 + $0x390] sm:$0xff] }
 0xa3e   : > { %4269 = vmatprep.mubr.f32.mxu1 %v11325_v60 }
 0xa40   : > { %v3995_v24 = vpop.trf.xlu0 }
 0xa41   : > { %7482 = vmatmul.mubr.msk.f32.gmra.mxu1 %vm787_vm3, %v3995_v24 }
 0xa42   : > { %4275 = vmatprep.mubr.f32.mxu1 %v11325_v60 }
 0xa44   : > { %v3996_v25 = vpop.trf.xlu0 }
 0xa45   : > { %7483 = vmatmul.mubr.msk.f32.gmra.mxu1 %vm787_vm3, %v3996_v25  ;;  %v7828_v25 = vld [vmem:[%s8454_s9 + $0x388] sm:$0xff] }
 0xa46   : > { %4281 = vmatprep.mubr.f32.mxu1 %v11325_v60 }
 0xa48   : > { %v3997_v6 = vpop.trf.xlu0 }
 0xa49   : > { %7484 = vmatmul.mubr.msk.f32.gmra.mxu1 %vm787_vm3, %v3997_v6  ;;  %v7827_v6 = vld [vmem:[%s8454_s9 + $0x380] sm:$0xff] }
 0xa4a   : > { %4287 = vmatprep.mubr.f32.mxu1 %v11325_v60 }
 0xa4c   : > { %v3998_v19 = vpop.trf.xlu0 }
 0xa4d   : > { %7485 = vmatmul.mubr.msk.f32.gmra.mxu1 %vm787_vm3, %v3998_v19 }
 0xa4e   : > { %5286 = vmatprep.mubr.f32.mxu1 %v11325_v60 }
 0xa51   : > { %7733 = vmatmul.mubr.msk.f32.vlgmr.msra.gmra.mxu1 %vm375_vm0, %v7678_v27 }
 0xa52   : > { %5292 = vmatprep.mubr.f32.mxu1 %v11325_v60 }
 0xa55   : > { %7734 = vmatmul.mubr.msk.f32.gmra.mxu1 %vm375_vm0, %v7679_v59 }
 0xa56   : > { %5298 = vmatprep.mubr.f32.mxu1 %v11325_v60 }
 0xa59   : > { %7735 = vmatmul.mubr.msk.f32.gmra.mxu1 %vm375_vm0, %v7680_v23 }
 0xa5a   : > { %5304 = vmatprep.mubr.f32.mxu1 %v11325_v60 }
 0xa5d   : > { %7736 = vmatmul.mubr.msk.f32.gmra.mxu1 %vm375_vm0, %v7681_v31 }
 0xa5e   : > { %5310 = vmatprep.mubr.f32.mxu1 %v11325_v60 }
 0xa61   : > { %7737 = vmatmul.mubr.msk.f32.gmra.mxu1 %vm375_vm0, %v7682_v5 }
 0xa64   : > { %4780 = vxpose.xlu1.b32.start [1/5] (short) (narrow) %v4739_v57, 64  ;;  %v7837_v57 = vld [vmem:[%s8454_s9 + $0x3d0] sm:$0xff] }
 0xa68   : > { %4781 = vxpose.xlu1.b32.cont [2/5] (short) (narrow) %v4741_v53, 64 }
 0xa6c   : > { %4782 = vxpose.xlu1.b32.cont [3/5] (short) (narrow) %v4743_v7, 64  ;;  %v7836_v7 = vld [vmem:[%s8454_s9 + $0x3c8] sm:$0xff] }
 0xa70   : > { %4783 = vxpose.xlu1.b32.cont [4/5] (short) (narrow) %v4745_v11, 64  ;;  %v7835_v11 = vld [vmem:[%s8454_s9 + $0x3c0] sm:$0xff] }
 0xa74   : > { %4784 = vxpose.xlu1.b32.end [5/5] (short) (narrow) %v4747_v52, 64  ;;  %v7834_v52 = vld [vmem:[%s8454_s9 + $0x3b8] sm:$0xff] }
 0xaa3   : > { %v4764_v51 = vpop.trf.xlu1 }
 0xaa4   : > { %7606 = vmatmul.mubr.msk.f32.vlgmr.msra.gmra.mxu0 %vm787_vm3, %v4764_v51 }
 0xaa5   : > { %6044 = vmatpush1.msra.mxu0 %v7841_v37  ;;  %4960 = vmatprep.mubr.f32.mxu0 %v11325_v60 }
 0xaa6   : > { %6045 = vmatprep.subr.mxu0 %v7840_v45 }
 0xaa7   : > { %v4765_v53 = vpop.trf.xlu1  ;;  %6046 = vmatpush1.msra.mxu0 %v7839_v21 }
 0xaa8   : > { %7607 = vmatmul.mubr.msk.f32.gmra.mxu0 %vm787_vm3, %v4765_v53  ;;  %6047 = vmatprep.subr.mxu0 %v7838_v3 }
 0xaa9   : > { %4966 = vmatprep.mubr.f32.mxu0 %v11325_v60  ;;  %6048 = vmatpush1.msra.mxu0 %v7837_v57 }
 0xaaa   : > { %6049 = vmatprep.subr.mxu0 %v7836_v7 }
 0xaab   : > { %v4766_v38 = vpop.trf.xlu1  ;;  %6050 = vmatpush1.msra.mxu0 %v7835_v11 }
 0xaac   : > { %7608 = vmatmul.mubr.msk.f32.gmra.mxu0 %vm787_vm3, %v4766_v38  ;;  %6051 = vmatprep.subr.mxu0 %v7834_v52 }
 0xaad   : > { %4972 = vmatprep.mubr.f32.mxu0 %v11325_v60  ;;  %6052 = vmatpush1.msra.mxu0 %v7833_v47 }
 0xaae   : > { %6053 = vmatprep.subr.mxu0 %v7832_v63 }
 0xaaf   : > { %v4767_v24 = vpop.trf.xlu1  ;;  %6054 = vmatpush1.msra.mxu0 %v7831_v62 }
 0xab0   : > { %7609 = vmatmul.mubr.msk.f32.gmra.mxu0 %vm787_vm3, %v4767_v24  ;;  %6055 = vmatprep.subr.mxu0 %v7830_v10 }
 0xab1   : > { %4978 = vmatprep.mubr.f32.mxu0 %v11325_v60  ;;  %v4151_v19 = vpop.f32.mrf.mxu1  ;;  %6056 = vmatpush1.msra.mxu0 %v7829_v36 }
 0xab2   : > { %7486 = vst [vmem:[%s9232_s11 + $0x600] sm:$0xff] %v4151_v19  ;;  %6057 = vmatprep.subr.mxu0 %v7828_v25 }
 0xab3   : > { %v4768_v27 = vpop.trf.xlu1  ;;  %v4153_v59 = vpop.f32.mrf.mxu1  ;;  %6058 = vmatpush1.msra.mxu0 %v7827_v6 }
 0xab4   : > { %7610 = vmatmul.mubr.msk.f32.gmra.mxu0 %vm787_vm3, %v4768_v27  ;;  %7487 = vst [vmem:[%s9232_s11 + $0x608] sm:$0xff] %v4153_v59  ;;  %6247 = vmatprep.subr.mxu0 %v11325_v60 }
 0xab5   : > { %4984 = vmatprep.mubr.f32.mxu0 %v11325_v60  ;;  %v4157_v23 = vpop.f32.mrf.mxu1 }
 0xab6   : > { %7488 = vst [vmem:[%s9232_s11 + $0x610] sm:$0xff] %v4157_v23 }
 0xab7   : > { %v4769_v31 = vpop.trf.xlu1  ;;  %v4159_v5 = vpop.f32.mrf.mxu1 }
 0xab8   : > { %7611 = vmatmul.mubr.msk.f32.gmra.mxu0 %vm787_vm3, %v4769_v31  ;;  %7489 = vst [vmem:[%s9232_s11 + $0x618] sm:$0xff] %v4159_v5 }
 0xab9   : > { %4990 = vmatprep.mubr.f32.mxu0 %v11325_v60  ;;  %v4163_v37 = vpop.f32.mrf.mxu1 }
 0xaba   : > { %7490 = vst [vmem:[%s9232_s11 + $0x620] sm:$0xff] %v4163_v37 }
 0xabb   : > { %v4770_v51 = vpop.trf.xlu1  ;;  %v4165_v45 = vpop.f32.mrf.mxu1 }
 0xabc   : > { %7612 = vmatmul.mubr.msk.f32.gmra.mxu0 %vm787_vm3, %v4770_v51  ;;  %7491 = vst [vmem:[%s9232_s11 + $0x628] sm:$0xff] %v4165_v45 }
 0xabd   : > { %4996 = vmatprep.mubr.f32.mxu0 %v11325_v60  ;;  %v4169_v21 = vpop.f32.mrf.mxu1 }
 0xabe   : > { %7492 = vst [vmem:[%s9232_s11 + $0x630] sm:$0xff] %v4169_v21 }
 0xabf   : > { %v4771_v3 = vpop.trf.xlu1  ;;  %v4171_v57 = vpop.f32.mrf.mxu1 }
 0xac0   : > { %7613 = vmatmul.mubr.msk.f32.gmra.mxu0 %vm787_vm3, %v4771_v3  ;;  %7493 = vst [vmem:[%s9232_s11 + $0x638] sm:$0xff] %v4171_v57 }
 0xac1   : > { %5002 = vmatprep.mubr.f32.mxu0 %v11325_v60  ;;  %v10361_v53 = vpop.f32.mrf.mxu0  ;;  %v4175_v7 = vpop.f32.mrf.mxu1 }
 0xac2   : > { %11349 = vst [vmem:[#allocation37_spill] sm:$0xff] %v10361_v53  ;;  %7494 = vst [vmem:[%s9232_s11 + $0x640] sm:$0xff] %v4175_v7 }
 0xac3   : > { %v4772_v11 = vpop.trf.xlu1  ;;  %v4705_v52 = vpop.f32.mrf.mxu0 }
 0xac4   : > { %7614 = vmatmul.mubr.msk.f32.gmra.mxu0 %vm787_vm3, %v4772_v11  ;;  %v4177_v47 = vpop.f32.mrf.mxu1 }
 0xac5   : > { %5008 = vmatprep.mubr.f32.mxu0 %v11325_v60  ;;  %7495 = vst [vmem:[%s9232_s11 + $0x648] sm:$0xff] %v4177_v47  ;;  %v10367_v38 = vpop.f32.mrf.mxu0 }
 0xac6   : > { %11350 = vst [vmem:[#allocation38_spill] sm:$0xff] %v10367_v38  ;;  %v4181_v63 = vpop.f32.mrf.mxu1 }
 0xac7   : > { %v4773_v62 = vpop.trf.xlu1  ;;  %7496 = vst [vmem:[%s9232_s11 + $0x650] sm:$0xff] %v4181_v63  ;;  %v4710_v10 = vpop.f32.mrf.mxu0 }
 0xac8   : > { %7615 = vmatmul.mubr.msk.f32.gmra.mxu0 %vm787_vm3, %v4773_v62  ;;  %v4183_v36 = vpop.f32.mrf.mxu1 }
 0xac9   : > { %5014 = vmatprep.mubr.f32.mxu0 %v11325_v60  ;;  %7497 = vst [vmem:[%s9232_s11 + $0x658] sm:$0xff] %v4183_v36  ;;  %v10373_v24 = vpop.f32.mrf.mxu0 }
 0xaca   : > { %11351 = vst [vmem:[#allocation39_spill] sm:$0xff] %v10373_v24  ;;  %v4187_v25 = vpop.f32.mrf.mxu1 }
 0xacb   : > { %v4774_v6 = vpop.trf.xlu1  ;;  %7498 = vst [vmem:[%s9232_s11 + $0x660] sm:$0xff] %v4187_v25  ;;  %v4715_v19 = vpop.f32.mrf.mxu0 }
 0xacc   : > { %7616 = vmatmul.mubr.msk.f32.gmra.mxu0 %vm787_vm3, %v4774_v6  ;;  %v4189_v27 = vpop.f32.mrf.mxu1 }
 0xacd   : > { %5020 = vmatprep.mubr.f32.mxu0 %v11325_v60  ;;  %7499 = vst [vmem:[%s9232_s11 + $0x668] sm:$0xff] %v4189_v27  ;;  %v10379_v59 = vpop.f32.mrf.mxu0 }
 0xace   : > { %11352 = vst [vmem:[#allocation40_spill] sm:$0xff] %v10379_v59  ;;  %v4193_v23 = vpop.f32.mrf.mxu1 }
 0xacf   : > { %v4775_v31 = vpop.trf.xlu1  ;;  %7500 = vst [vmem:[%s9232_s11 + $0x670] sm:$0xff] %v4193_v23  ;;  %v4720_v5 = vpop.f32.mrf.mxu0 }
 0xad0   : > { %7617 = vmatmul.mubr.msk.f32.gmra.mxu0 %vm787_vm3, %v4775_v31  ;;  %v4195_v37 = vpop.f32.mrf.mxu1 }
 0xad1   : > { %5026 = vmatprep.mubr.f32.mxu0 %v11325_v60  ;;  %7501 = vst [vmem:[%s9232_s11 + $0x678] sm:$0xff] %v4195_v37  ;;  %v10385_v51 = vpop.f32.mrf.mxu0 }
 0xad2   : > { %11353 = vst [vmem:[#allocation41_spill] sm:$0xff] %v10385_v51  ;;  %v4199_v45 = vpop.f32.mrf.mxu1 }
 0xad3   : > { %v4776_v21 = vpop.trf.xlu1  ;;  %7502 = vst [vmem:[%s9232_s11 + $0x680] sm:$0xff] %v4199_v45  ;;  %v4725_v3 = vpop.f32.mrf.mxu0 }
 0xad4   : > { %7618 = vmatmul.mubr.msk.f32.gmra.mxu0 %vm787_vm3, %v4776_v21  ;;  %v4201_v57 = vpop.f32.mrf.mxu1 }
 0xad5   : > { %5032 = vmatprep.mubr.f32.mxu0 %v11325_v60  ;;  %7503 = vst [vmem:[%s9232_s11 + $0x688] sm:$0xff] %v4201_v57 }
 0xad6   : > { %v4205_v7 = vpop.f32.mrf.mxu1 }
 0xad7   : > { %v4777_v11 = vpop.trf.xlu1  ;;  %7504 = vst [vmem:[%s9232_s11 + $0x690] sm:$0xff] %v4205_v7 }
 0xad8   : > { %7619 = vmatmul.mubr.msk.f32.gmra.mxu0 %vm787_vm3, %v4777_v11  ;;  %v4207_v52 = vpop.f32.mrf.mxu1 }
 0xad9   : > { %5038 = vmatprep.mubr.f32.mxu0 %v11325_v60  ;;  %7505 = vst [vmem:[%s9232_s11 + $0x698] sm:$0xff] %v4207_v52 }
 0xada   : > { %v4211_v47 = vpop.f32.mrf.mxu1 }
 0xadb   : > { %v4778_v63 = vpop.trf.xlu1  ;;  %7506 = vst [vmem:[%s9232_s11 + $0x6a0] sm:$0xff] %v4211_v47 }
 0xadc   : > { %7620 = vmatmul.mubr.msk.f32.gmra.mxu0 %vm787_vm3, %v4778_v63  ;;  %v4213_v62 = vpop.f32.mrf.mxu1 }
 0xadd   : > { %5044 = vmatprep.mubr.f32.mxu0 %v11325_v60  ;;  %7507 = vst [vmem:[%s9232_s11 + $0x6a8] sm:$0xff] %v4213_v62 }
 0xade   : > { %v4217_v10 = vpop.f32.mrf.mxu1 }
 0xadf   : > { %v4779_v36 = vpop.trf.xlu1  ;;  %7508 = vst [vmem:[%s9232_s11 + $0x6b0] sm:$0xff] %v4217_v10 }
 0xae0   : > { %7621 = vmatmul.mubr.msk.f32.gmra.mxu0 %vm787_vm3, %v4779_v36  ;;  %v4219_v25 = vpop.f32.mrf.mxu1 }
 0xae1   : > { %5050 = vmatprep.mubr.f32.mxu0 %v11325_v60  ;;  %7509 = vst [vmem:[%s9232_s11 + $0x6b8] sm:$0xff] %v4219_v25 }
 0xae2   : > { %v4223_v6 = vpop.f32.mrf.mxu1 }
 0xae3   : > { %v4796_v19 = vpop.trf.xlu1  ;;  %7510 = vst [vmem:[%s9232_s11 + $0x6c0] sm:$0xff] %v4223_v6 }
 0xae4   : > { %7622 = vmatmul.mubr.msk.f32.gmra.mxu0 %vm787_vm3, %v4796_v19  ;;  %v4225_v27 = vpop.f32.mrf.mxu1 }
 0xae5   : > { %5056 = vmatprep.mubr.f32.mxu0 %v11325_v60  ;;  %7511 = vst [vmem:[%s9232_s11 + $0x6c8] sm:$0xff] %v4225_v27 }
 0xae6   : > { %v4229_v23 = vpop.f32.mrf.mxu1 }
 0xae7   : > { %v4797_v31 = vpop.trf.xlu1  ;;  %7512 = vst [vmem:[%s9232_s11 + $0x6d0] sm:$0xff] %v4229_v23 }
 0xae8   : > { %7623 = vmatmul.mubr.msk.f32.gmra.mxu0 %vm787_vm3, %v4797_v31  ;;  %v4231_v5 = vpop.f32.mrf.mxu1  ;;  %v7822_v31 = vld [vmem:[%s8476_s13 + $0x118] sm:$0xff] }
 0xae9   : > { %5062 = vmatprep.mubr.f32.mxu0 %v11325_v60  ;;  %7513 = vst [vmem:[%s9232_s11 + $0x6d8] sm:$0xff] %v4231_v5 }
 0xaea   : > { %v4235_v37 = vpop.f32.mrf.mxu1 }
 0xaeb   : > { %v4798_v45 = vpop.trf.xlu1  ;;  %7514 = vst [vmem:[%s9232_s11 + $0x6e0] sm:$0xff] %v4235_v37 }
 0xaec   : > { %7624 = vmatmul.mubr.msk.f32.gmra.mxu0 %vm787_vm3, %v4798_v45  ;;  %v4237_v21 = vpop.f32.mrf.mxu1  ;;  %v7823_v45 = vld [vmem:[%s8476_s13 + $0x120] sm:$0xff] }
 0xaed   : > { %5068 = vmatprep.mubr.f32.mxu0 %v11325_v60  ;;  %7515 = vst [vmem:[%s9232_s11 + $0x6e8] sm:$0xff] %v4237_v21 }
 0xaee   : > { %v4241_v3 = vpop.f32.mrf.mxu1 }
 0xaef   : > { %v4799_v57 = vpop.trf.xlu1  ;;  %7516 = vst [vmem:[%s9232_s11 + $0x6f0] sm:$0xff] %v4241_v3 }
 0xaf0   : > { %7625 = vmatmul.mubr.msk.f32.gmra.mxu0 %vm787_vm3, %v4799_v57  ;;  %v4243_v7 = vpop.f32.mrf.mxu1  ;;  %v7824_v57 = vld [vmem:[%s8476_s13 + $0x128] sm:$0xff] }
 0xaf1   : > { %5074 = vmatprep.mubr.f32.mxu0 %v11325_v60  ;;  %7517 = vst [vmem:[%s9232_s11 + $0x6f8] sm:$0xff] %v4243_v7 }
 0xaf2   : > { %v4247_v11 = vpop.f32.mrf.mxu1 }
 0xaf3   : > { %v4800_v52 = vpop.trf.xlu1  ;;  %7518 = vst [vmem:[%s9232_s11 + $0x700] sm:$0xff] %v4247_v11 }
 0xaf4   : > { %7626 = vmatmul.mubr.msk.f32.gmra.mxu0 %vm787_vm3, %v4800_v52  ;;  %v4249_v47 = vpop.f32.mrf.mxu1  ;;  %v7825_v52 = vld [vmem:[%s8476_s13 + $0x130] sm:$0xff] }
 0xaf5   : > { %5080 = vmatprep.mubr.f32.mxu0 %v11325_v60  ;;  %7519 = vst [vmem:[%s9232_s11 + $0x708] sm:$0xff] %v4249_v47 }
 0xaf6   : > { %v4253_v63 = vpop.f32.mrf.mxu1 }
 0xaf7   : > { %v4801_v62 = vpop.trf.xlu1  ;;  %7520 = vst [vmem:[%s9232_s11 + $0x710] sm:$0xff] %v4253_v63 }
 0xaf8   : > { %7627 = vmatmul.mubr.msk.f32.gmra.mxu0 %vm787_vm3, %v4801_v62  ;;  %v4255_v10 = vpop.f32.mrf.mxu1  ;;  %v7826_v62 = vld [vmem:[%s8476_s13 + $0x138] sm:$0xf]  ;;  %s10998_s13 = scalar_lea.vmem %s11306_s4, %s7983_s10  ;;  %s6783_s10 = sshll.u32 %s9232_s11, 4  ;;  %s11257_s10 = int_to_ptr.vmem [resolvable:$true] %s6783_s10 }
 0xaf9   : > { %5086 = vmatprep.mubr.f32.mxu0 %v11325_v60  ;;  %7521 = vst [vmem:[%s9232_s11 + $0x718] sm:$0xff] %v4255_v10  ;;  %p8308_p0 = scmp.lt.s32.totalorder %s11257_s10, %s8306_s25 }
 0xafa   : > { %v4259_v36 = vpop.f32.mrf.mxu1 }
 0xafb   : > { %v4802_v25 = vpop.trf.xlu1  ;;  %7522 = vst [vmem:[%s9232_s11 + $0x720] sm:$0xff] %v4259_v36 }
 0xafc   : > { %7628 = vmatmul.mubr.msk.f32.gmra.mxu0 %vm787_vm3, %v4802_v25  ;;  %v4261_v6 = vpop.f32.mrf.mxu1 }
 0xafd   : > { %5092 = vmatprep.mubr.f32.mxu0 %v11325_v60  ;;  %7523 = vst [vmem:[%s9232_s11 + $0x728] sm:$0xff] %v4261_v6 }
 0xafe   : > { %v4265_v19 = vpop.f32.mrf.mxu1 }
 0xaff   : > { %v4803_v27 = vpop.trf.xlu1  ;;  %7524 = vst [vmem:[%s9232_s11 + $0x730] sm:$0xff] %v4265_v19 }
 0xb00   : > { %7629 = vmatmul.mubr.msk.f32.gmra.mxu0 %vm787_vm3, %v4803_v27  ;;  %v4267_v23 = vpop.f32.mrf.mxu1 }
 0xb01   : > { %7525 = vst [vmem:[%s9232_s11 + $0x738] sm:$0xff] %v4267_v23  ;;  %6091 = vmatprep.mubr.f32.mxu0 %v11325_v60 }
 0xb02   : > { %v4271_v5 = vpop.f32.mrf.mxu1 }
 0xb03   : > { %7526 = vst [vmem:[%s9232_s11 + $0x740] sm:$0xff] %v4271_v5 }
 0xb04   : > { %7877 = vmatmul.mubr.msk.f32.vlgmr.msra.gmra.mxu0 %vm375_vm0, %v7822_v31  ;;  %v4273_v37 = vpop.f32.mrf.mxu1 }
 0xb05   : > { %7527 = vst [vmem:[%s9232_s11 + $0x748] sm:$0xff] %v4273_v37  ;;  %6097 = vmatprep.mubr.f32.mxu0 %v11325_v60 }
 0xb06   : > { %v4277_v21 = vpop.f32.mrf.mxu1 }
 0xb07   : > { %7528 = vst [vmem:[%s9232_s11 + $0x750] sm:$0xff] %v4277_v21 }
 0xb08   : > { %7878 = vmatmul.mubr.msk.f32.gmra.mxu0 %vm375_vm0, %v7823_v45  ;;  %v4279_v3 = vpop.f32.mrf.mxu1 }
 0xb09   : > { %7529 = vst [vmem:[%s9232_s11 + $0x758] sm:$0xff] %v4279_v3  ;;  %6103 = vmatprep.mubr.f32.mxu0 %v11325_v60 }
 0xb0a   : > { %v4283_v7 = vpop.f32.mrf.mxu1 }
 0xb0b   : > { %7530 = vst [vmem:[%s9232_s11 + $0x760] sm:$0xff] %v4283_v7 }
 0xb0c   : > { %7879 = vmatmul.mubr.msk.f32.gmra.mxu0 %vm375_vm0, %v7824_v57  ;;  %v4285_v11 = vpop.f32.mrf.mxu1 }
 0xb0d   : > { %7531 = vst [vmem:[%s9232_s11 + $0x768] sm:$0xff] %v4285_v11  ;;  %6109 = vmatprep.mubr.f32.mxu0 %v11325_v60 }
 0xb0e   : > { %v4289_v47 = vpop.f32.mrf.mxu1 }
 0xb0f   : > { %7532 = vst [vmem:[%s9232_s11 + $0x770] sm:$0xff] %v4289_v47 }
 0xb10   : > { %7880 = vmatmul.mubr.msk.f32.gmra.mxu0 %vm375_vm0, %v7825_v52  ;;  %v4291_v63 = vpop.f32.mrf.mxu1 }
 0xb11   : > { %7533 = vst [vmem:[%s9232_s11 + $0x778] sm:$0xff] %v4291_v63  ;;  %6115 = vmatprep.mubr.f32.mxu0 %v11325_v60 }
 0xb12   : > { %v10456_v10 = vpop.f32.mrf.mxu1 }
 0xb14   : > { %7881 = vmatmul.mubr.msk.f32.gmra.mxu0 %vm375_vm0, %v7826_v62  ;;  %v10459_v36 = vpop.f32.mrf.mxu1 }
 0xb15   : > { %v5317_v25 = vsel %vm375_vm0, %v10459_v36, -inf }
 0xb16   : > { %v5318_v6 = vmax.f32 %v10456_v10, %v5317_v25  ;;  %v10464_v19 = vpop.f32.mrf.mxu1 }
 0xb18   : > { %v10466_v27 = vpop.f32.mrf.mxu1  ;;  %5319 = vmax.xlane.f32.xlu1 %v5318_v6  ;;  %v7724_v6 = vld [vmem:[%s8524_s17 + $0x4f8] sm:$0xff] }
 0xb19   : > { %v5321_v11 = vsel %vm375_vm0, %v10466_v27, -inf  ;;  %5443 = vmatpush1.msra.mxu1 %v7724_v6  ;;  %v7714_v6 = vld [vmem:[%s8524_s17 + $0x4a8] sm:$0xff] }
 0xb1a   : > { %v10468_v23 = vpop.f32.mrf.mxu1  ;;  %v5322_v63 = vmax.f32 %v10464_v19, %v5321_v11  ;;  %5444 = vmatprep.subr.mxu1 %v11325_v60  ;;  %v7720_v11 = vld [vmem:[%s8524_s17 + $0x4d8] sm:$0xff] }
 0xb1c   : > { %v10470_v31 = vpop.f32.mrf.mxu1 }
 0xb1d   : > { %v5325_v5 = vsel %vm375_vm0, %v10470_v31, -inf }
 0xb1e   : > { %v5326_v37 = vmax.f32 %v10468_v23, %v5325_v5  ;;  %v10475_v45 = vpop.f32.mrf.mxu1  ;;  %v7723_v5 = vld [vmem:[%s8524_s17 + $0x4f0] sm:$0xff] }
 0xb1f   : > { %5445 = vmatpush1.msra.mxu1 %v7723_v5  ;;  %v7713_v5 = vld [vmem:[%s8524_s17 + $0x4a0] sm:$0xff] }
 0xb20   : > { %v10477_v21 = vpop.f32.mrf.mxu1  ;;  %5327 = vmax.xlane.f32.xlu1 %v5326_v37  ;;  %5446 = vmatprep.subr.mxu1 %v11325_v60  ;;  %v7722_v37 = vld [vmem:[%s8524_s17 + $0x4e8] sm:$0xff] }
 0xb21   : > { %v5329_v62 = vsel %vm375_vm0, %v10477_v21, -inf  ;;  %5447 = vmatpush1.msra.mxu1 %v7722_v37  ;;  %v7712_v37 = vld [vmem:[%s8524_s17 + $0x498] sm:$0xff] }
 0xb22   : > { %v10479_v3 = vpop.f32.mrf.mxu1  ;;  %v5330_v25 = vmax.f32 %v10475_v45, %v5329_v62  ;;  %5448 = vmatprep.subr.mxu1 %v11325_v60  ;;  %v7716_v62 = vld [vmem:[%s8524_s17 + $0x4b8] sm:$0xff] }
 0xb23   : > { %v5333_v57 = vsel %vm502_vm1, %v10479_v3, -inf }
 0xb24   : > { %v10483_v7 = vpop.f32.mrf.mxu1 }
 0xb25   : > { %v5334_v52 = vsel %vm504_vm2, %v10483_v7, -inf }
 0xb26   : > { %v5335_v47 = vmax.f32 %v5333_v57, %v5334_v52  ;;  %v7721_v57 = vld [vmem:[%s8524_s17 + $0x4e0] sm:$0xff]  ;;  %v7719_v52 = vld [vmem:[%s8524_s17 + $0x4d0] sm:$0xff] }
 0xb27   : > { %5449 = vmatpush1.msra.mxu1 %v7721_v57  ;;  %v7711_v57 = vld [vmem:[%s8524_s17 + $0x490] sm:$0xff] }
 0xb28   : > { %5336 = vmax.xlane.f32.xlu0 %v5335_v47  ;;  %5450 = vmatprep.subr.mxu1 %v11325_v60  ;;  %v7718_v47 = vld [vmem:[%s8524_s17 + $0x4c8] sm:$0xff] }
 0xb29   : > { %5451 = vmatpush1.msra.mxu1 %v7720_v11  ;;  %v7710_v11 = vld [vmem:[%s8524_s17 + $0x488] sm:$0xff] }
 0xb2a   : > { %5452 = vmatprep.subr.mxu1 %v11325_v60 }
 0xb2b   : > { %5453 = vmatpush1.msra.mxu1 %v7719_v52  ;;  %v7709_v52 = vld [vmem:[%s8524_s17 + $0x480] sm:$0xff] }
 0xb2c   : > { %5323 = vmax.xlane.f32.xlu0 %v5322_v63  ;;  %5454 = vmatprep.subr.mxu1 %v11325_v60  ;;  %v7717_v63 = vld [vmem:[%s8524_s17 + $0x4c0] sm:$0xff] }
 0xb2d   : > { %5455 = vmatpush1.msra.mxu1 %v7718_v47  ;;  %v7732_v47 = vld [vmem:[%s8524_s17 + $0x538] sm:$0xff] }
 0xb2e   : > { %5456 = vmatprep.subr.mxu1 %v11325_v60 }
 0xb2f   : > { %5457 = vmatpush1.msra.mxu1 %v7717_v63  ;;  %v7731_v63 = vld [vmem:[%s8524_s17 + $0x530] sm:$0xff] }
 0xb30   : > { %5331 = vmax.xlane.f32.xlu0 %v5330_v25  ;;  %5458 = vmatprep.subr.mxu1 %v11325_v60  ;;  %v7715_v25 = vld [vmem:[%s8524_s17 + $0x4b0] sm:$0xff] }
 0xb31   : > { %5459 = vmatpush1.msra.mxu1 %v7716_v62  ;;  %v7730_v62 = vld [vmem:[%s8524_s17 + $0x528] sm:$0xff] }
 0xb32   : > { %5460 = vmatprep.subr.mxu1 %v11325_v60 }
 0xb33   : > { %5461 = vmatpush1.msra.mxu1 %v7715_v25  ;;  %v7729_v25 = vld [vmem:[%s8524_s17 + $0x520] sm:$0xff] }
 0xb34   : > { %5462 = vmatprep.subr.mxu1 %v11325_v60 }
 0xb35   : > { %5463 = vmatpush1.msra.mxu1 %v7714_v6  ;;  %v7728_v6 = vld [vmem:[%s8524_s17 + $0x518] sm:$0xff] }
 0xb36   : > { %5464 = vmatprep.subr.mxu1 %v11325_v60 }
 0xb37   : > { %5465 = vmatpush1.msra.mxu1 %v7713_v5  ;;  %v7727_v5 = vld [vmem:[%s8524_s17 + $0x510] sm:$0xff] }
 0xb38   : > { %5466 = vmatprep.subr.mxu1 %v11325_v60 }
 0xb39   : > { %5467 = vmatpush1.msra.mxu1 %v7712_v37  ;;  %v7726_v37 = vld [vmem:[%s8524_s17 + $0x508] sm:$0xff] }
 0xb3a   : > { %5468 = vmatprep.subr.mxu1 %v11325_v60 }
 0xb3b   : > { %5469 = vmatpush1.msra.mxu1 %v7711_v57  ;;  %v7725_v57 = vld [vmem:[%s8524_s17 + $0x500] sm:$0xff] }
 0xb3c   : > { %5470 = vmatprep.subr.mxu1 %v11325_v60 }
 0xb3d   : > { %5471 = vmatpush1.msra.mxu1 %v7710_v11 }
 0xb3e   : > { %5472 = vmatprep.subr.mxu1 %v11325_v60 }
 0xb3f   : > { %5473 = vmatpush1.msra.mxu1 %v7709_v52 }
 0xb40   : > { %5490 = vmatprep.subr.mxu1 %v11325_v60 }
 0xb41   : > { %5491 = vmatpush2.msra.mxu1 %v7732_v47 }
 0xb42   : > { %5492 = vmatprep.subr.mxu1 %v11325_v60 }
 0xb43   : > { %5493 = vmatpush2.msra.mxu1 %v7731_v63 }
 0xb44   : > { %5494 = vmatprep.subr.mxu1 %v11325_v60 }
 0xb45   : > { %5495 = vmatpush2.msra.mxu1 %v7730_v62 }
 0xb46   : > { %5496 = vmatprep.subr.mxu1 %v11325_v60 }
 0xb47   : > { %5497 = vmatpush2.msra.mxu1 %v7729_v25 }
 0xb48   : > { %5498 = vmatprep.subr.mxu1 %v11325_v60 }
 0xb49   : > { %5499 = vmatpush2.msra.mxu1 %v7728_v6 }
 0xb4a   : > { %5500 = vmatprep.subr.mxu1 %v11325_v60 }
 0xb4b   : > { %5501 = vmatpush2.msra.mxu1 %v7727_v5 }
 0xb4c   : > { %5502 = vmatprep.subr.mxu1 %v11325_v60 }
 0xb4d   : > { %5503 = vmatpush2.msra.mxu1 %v7726_v37 }
 0xb4e   : > { %5504 = vmatprep.subr.mxu1 %v11325_v60 }
 0xb4f   : > { %5505 = vmatpush2.msra.mxu1 %v7725_v57 }
 0xb64   : > { %v4956_v11 = vpop.f32.mrf.mxu0 }
 0xb65   : > { %7630 = vst [vmem:[%s9232_s11 + $0x780] sm:$0xff] %v4956_v11 }
 0xb66   : > { %v4958_v52 = vpop.f32.mrf.mxu0 }
 0xb67   : > { %7631 = vst [vmem:[%s9232_s11 + $0x788] sm:$0xff] %v4958_v52 }
 0xb68   : > { %v4962_v47 = vpop.f32.mrf.mxu0 }
 0xb69   : > { %7632 = vst [vmem:[%s9232_s11 + $0x790] sm:$0xff] %v4962_v47 }
 0xb6a   : > { %v4964_v63 = vpop.f32.mrf.mxu0 }
 0xb6b   : > { %7633 = vst [vmem:[%s9232_s11 + $0x798] sm:$0xff] %v4964_v63 }
 0xb6c   : > { %v4968_v62 = vpop.f32.mrf.mxu0 }
 0xb6d   : > { %7634 = vst [vmem:[%s9232_s11 + $0x7a0] sm:$0xff] %v4968_v62 }
 0xb6e   : > { %v4970_v25 = vpop.f32.mrf.mxu0 }
 0xb6f   : > { %7635 = vst [vmem:[%s9232_s11 + $0x7a8] sm:$0xff] %v4970_v25 }
 0xb70   : > { %v4974_v6 = vpop.f32.mrf.mxu0 }
 0xb71   : > { %7636 = vst [vmem:[%s9232_s11 + $0x7b0] sm:$0xff] %v4974_v6 }
 0xb72   : > { %v4976_v5 = vpop.f32.mrf.mxu0 }
 0xb73   : > { %7637 = vst [vmem:[%s9232_s11 + $0x7b8] sm:$0xff] %v4976_v5 }
 0xb74   : > { %v4980_v37 = vpop.f32.mrf.mxu0 }
 0xb75   : > { %7638 = vst [vmem:[%s9232_s11 + $0x7c0] sm:$0xff] %v4980_v37 }
 0xb76   : > { %v4982_v57 = vpop.f32.mrf.mxu0 }
 0xb77   : > { %7639 = vst [vmem:[%s9232_s11 + $0x7c8] sm:$0xff] %v4982_v57 }
 0xb78   : > { %v4986_v11 = vpop.f32.mrf.mxu0 }
 0xb79   : > { %7640 = vst [vmem:[%s9232_s11 + $0x7d0] sm:$0xff] %v4986_v11 }
 0xb7a   : > { %v4988_v52 = vpop.f32.mrf.mxu0 }
 0xb7b   : > { %7641 = vst [vmem:[%s9232_s11 + $0x7d8] sm:$0xff] %v4988_v52 }
 0xb7c   : > { %v4992_v47 = vpop.f32.mrf.mxu0 }
 0xb7d   : > { %7642 = vst [vmem:[%s9232_s11 + $0x7e0] sm:$0xff] %v4992_v47 }
 0xb7e   : > { %v4994_v63 = vpop.f32.mrf.mxu0 }
 0xb7f   : > { %7643 = vst [vmem:[%s9232_s11 + $0x7e8] sm:$0xff] %v4994_v63 }
 0xb80   : > { %v4998_v62 = vpop.f32.mrf.mxu0 }
 0xb81   : > { %7644 = vst [vmem:[%s9232_s11 + $0x7f0] sm:$0xff] %v4998_v62 }
 0xb82   : > { %v5000_v25 = vpop.f32.mrf.mxu0 }
 0xb83   : > { %7645 = vst [vmem:[%s9232_s11 + $0x7f8] sm:$0xff] %v5000_v25 }
 0xb84   : > { %v5004_v6 = vpop.f32.mrf.mxu0 }
 0xb85   : > { %7646 = vst [vmem:[%s9232_s11 + $0x800] sm:$0xff] %v5004_v6 }
 0xb86   : > { %v5006_v5 = vpop.f32.mrf.mxu0 }
 0xb87   : > { %7647 = vst [vmem:[%s9232_s11 + $0x808] sm:$0xff] %v5006_v5 }
 0xb88   : > { %v5010_v37 = vpop.f32.mrf.mxu0 }
 0xb89   : > { %7648 = vst [vmem:[%s9232_s11 + $0x810] sm:$0xff] %v5010_v37 }
 0xb8a   : > { %v5012_v57 = vpop.f32.mrf.mxu0 }
 0xb8b   : > { %7649 = vst [vmem:[%s9232_s11 + $0x818] sm:$0xff] %v5012_v57 }
 0xb8c   : > { %v5016_v11 = vpop.f32.mrf.mxu0 }
 0xb8d   : > { %7650 = vst [vmem:[%s9232_s11 + $0x820] sm:$0xff] %v5016_v11 }
 0xb8e   : > { %v5018_v52 = vpop.f32.mrf.mxu0 }
 0xb8f   : > { %7651 = vst [vmem:[%s9232_s11 + $0x828] sm:$0xff] %v5018_v52 }
 0xb90   : > { %v5022_v47 = vpop.f32.mrf.mxu0 }
 0xb91   : > { %7652 = vst [vmem:[%s9232_s11 + $0x830] sm:$0xff] %v5022_v47 }
 0xb92   : > { %v5024_v63 = vpop.f32.mrf.mxu0 }
 0xb93   : > { %7653 = vst [vmem:[%s9232_s11 + $0x838] sm:$0xff] %v5024_v63 }
 0xb94   : > { %v5028_v62 = vpop.f32.mrf.mxu0 }
 0xb95   : > { %7654 = vst [vmem:[%s9232_s11 + $0x840] sm:$0xff] %v5028_v62 }
 0xb96   : > { %v5030_v25 = vpop.f32.mrf.mxu0 }
 0xb97   : > { %7655 = vst [vmem:[%s9232_s11 + $0x848] sm:$0xff] %v5030_v25 }
 0xb98   : > { %v5034_v6 = vpop.f32.mrf.mxu0 }
 0xb99   : > { %7656 = vst [vmem:[%s9232_s11 + $0x850] sm:$0xff] %v5034_v6 }
 0xb9a   : > { %v5036_v5 = vpop.f32.mrf.mxu0 }
 0xb9b   : > { %7657 = vst [vmem:[%s9232_s11 + $0x858] sm:$0xff] %v5036_v5 }
 0xb9c   : > { %v5040_v37 = vpop.f32.mrf.mxu0 }
 0xb9d   : > { %7658 = vst [vmem:[%s9232_s11 + $0x860] sm:$0xff] %v5040_v37 }
 0xb9e   : > { %v5042_v57 = vpop.f32.mrf.mxu0 }
 0xb9f   : > { %7659 = vst [vmem:[%s9232_s11 + $0x868] sm:$0xff] %v5042_v57 }
 0xba0   : > { %v5046_v11 = vpop.f32.mrf.mxu0 }
 0xba1   : > { %7660 = vst [vmem:[%s9232_s11 + $0x870] sm:$0xff] %v5046_v11  ;;  %v5320_v11 = vpop.xlane.xlu1 %5319 }
 0xba2   : > { %v5048_v52 = vpop.f32.mrf.mxu0 }
 0xba3   : > { %7661 = vst [vmem:[%s9232_s11 + $0x878] sm:$0xff] %v5048_v52 }
 0xba4   : > { %v5052_v47 = vpop.f32.mrf.mxu0 }
 0xba5   : > { %7662 = vst [vmem:[%s9232_s11 + $0x880] sm:$0xff] %v5052_v47 }
 0xba6   : > { %v5054_v63 = vpop.f32.mrf.mxu0 }
 0xba7   : > { %7663 = vst [vmem:[%s9232_s11 + $0x888] sm:$0xff] %v5054_v63 }
 0xba8   : > { %v5058_v62 = vpop.f32.mrf.mxu0 }
 0xba9   : > { %7664 = vst [vmem:[%s9232_s11 + $0x890] sm:$0xff] %v5058_v62 }
 0xbaa   : > { %v5060_v25 = vpop.f32.mrf.mxu0 }
 0xbab   : > { %7665 = vst [vmem:[%s9232_s11 + $0x898] sm:$0xff] %v5060_v25 }
 0xbac   : > { %v5064_v6 = vpop.f32.mrf.mxu0 }
 0xbad   : > { %7666 = vst [vmem:[%s9232_s11 + $0x8a0] sm:$0xff] %v5064_v6  ;;  %v5328_v6 = vpop.xlane.xlu1 %5327 }
 0xbae   : > { %v5066_v5 = vpop.f32.mrf.mxu0 }
 0xbaf   : > { %7667 = vst [vmem:[%s9232_s11 + $0x8a8] sm:$0xff] %v5066_v5 }
 0xbb0   : > { %v5070_v37 = vpop.f32.mrf.mxu0 }
 0xbb1   : > { %7668 = vst [vmem:[%s9232_s11 + $0x8b0] sm:$0xff] %v5070_v37  ;;  %v5337_v57 = vpop.xlane.xlu0 %5336 }
 0xbb2   : > { %v5072_v52 = vpop.f32.mrf.mxu0  ;;  %v5338_v47 = vsel %vm502_vm1, %v5337_v57, -inf }
 0xbb3   : > { %7669 = vst [vmem:[%s9232_s11 + $0x8b8] sm:$0xff] %v5072_v52  ;;  %v5339_v62 = vmax.f32 %v5320_v11, %v5338_v47 }
 0xbb4   : > { %v5076_v63 = vpop.f32.mrf.mxu0 }
 0xbb5   : > { %7670 = vst [vmem:[%s9232_s11 + $0x8c0] sm:$0xff] %v5076_v63  ;;  %v5324_v25 = vpop.xlane.xlu0 %5323 }
 0xbb6   : > { %v5078_v51 = vpop.f32.mrf.mxu0  ;;  %v5340_v24 = vmax.f32 %v5339_v62, %v5324_v25 }
 0xbb7   : > { %7671 = vst [vmem:[%s9232_s11 + $0x8c8] sm:$0xff] %v5078_v51 }
 0xbb8   : > { %v5082_v5 = vpop.f32.mrf.mxu0 }
 0xbb9   : > { %7672 = vst [vmem:[%s9232_s11 + $0x8d0] sm:$0xff] %v5082_v5  ;;  %v5332_v37 = vpop.xlane.xlu0 %5331 }
 0xbba   : > { %v5084_v53 = vpop.f32.mrf.mxu0  ;;  %v5341_v46 = vmax.f32 %v5328_v6, %v5332_v37 }
 0xbbb   : > { %7673 = vst [vmem:[%s9232_s11 + $0x8d8] sm:$0xff] %v5084_v53 }
 0xbbc   : > { %v5088_v57 = vpop.f32.mrf.mxu0  ;;  %v5342_v52 = vmax.f32 %v5340_v24, %v5341_v46 }
 0xbbd   : > { %7674 = vst [vmem:[%s9232_s11 + $0x8e0] sm:$0xff] %v5088_v57 }
 0xbbe   : > { %v5343_v59 = vrot.slane %v5342_v52, 4  ;;  %v5090_v11 = vpop.f32.mrf.mxu0 }
 0xbbf   : > { %7675 = vst [vmem:[%s9232_s11 + $0x8e8] sm:$0xff] %v5090_v11 }
 0xbc0   : > { %v5344_v47 = vmax.f32 %v5342_v52, %v5343_v59  ;;  %v5094_v63 = vpop.f32.mrf.mxu0 }
 0xbc1   : > { %7676 = vst [vmem:[%s9232_s11 + $0x8f0] sm:$0xff] %v5094_v63 }
 0xbc2   : > { %v5345_v51 = vrot.slane %v5344_v47, 2  ;;  %v5096_v38 = vpop.f32.mrf.mxu0 }
 0xbc3   : > { %7677 = vst [vmem:[%s9232_s11 + $0x8f8] sm:$0xff] %v5096_v38 }
 0xbc4   : > { %v5346_v34 = vmax.f32 %v5344_v47, %v5345_v51  ;;  %v10589_v62 = vpop.f32.mrf.mxu0 }
 0xbc6   : > { %v5347_v25 = vrot.slane %v5346_v34, 1  ;;  %v10591_v5 = vpop.f32.mrf.mxu0 }
 0xbc7   : > { %v6122_v53 = vsel %vm375_vm0, %v10591_v5, -inf }
 0xbc8   : > { %v5348_v46 = vmax.f32 %v5346_v34, %v5347_v25  ;;  %v6123_v24 = vmax.f32 %v10589_v62, %v6122_v53  ;;  %v10596_v6 = vpop.f32.mrf.mxu0 }
 0xbca   : > { %v5349_v59 = vsub.f32 %v10456_v10, %v5348_v46  ;;  %v10599_v37 = vpop.f32.mrf.mxu0  ;;  %6124 = vmax.xlane.f32.xlu0 %v6123_v24  ;;  %v5350_v38 = vsub.f32 %v10459_v36, %v5348_v46  ;;  %v5352_v57 = vsub.f32 %v10466_v27, %v5348_v46  ;;  %v5351_v52 = vsub.f32 %v10464_v19, %v5348_v46 }
 0xbcb   : > { %v6126_v11 = vsel %vm375_vm0, %v10599_v37, -inf  ;;  %v5354_v34 = vsub.f32 %v10470_v31, %v5348_v46  ;;  %v5353_v47 = vsub.f32 %v10468_v23, %v5348_v46  ;;  %v5356_v63 = vsub.f32 %v10477_v21, %v5348_v46 }
 0xbcc   : > { %v5359_v51 = vmul.f32 1.442695, %v5349_v59  ;;  %v6127_v10 = vmax.f32 %v10596_v6, %v6126_v11  ;;  %v10610_v25 = vpop.f32.mrf.mxu0  ;;  %v5361_v53 = vmul.f32 1.442695, %v5350_v38  ;;  %v5365_v36 = vmul.f32 1.442695, %v5352_v57 }
 0xbcd   : > { %v5363_v24 = vmul.f32 1.442695, %v5351_v52  ;;  %v5355_v27 = vsub.f32 %v10475_v45, %v5348_v46  ;;  %v5369_v29 = vmul.f32 1.442695, %v5354_v34  ;;  %v5358_v31 = vsub.f32 %v10483_v7, %v5348_v46 }
 0xbce   : > { %8173 = vpow2.f32 %v5359_v51  ;;  %v10613_v19 = vpop.f32.mrf.mxu0  ;;  %6128 = vmax.xlane.f32.xlu1 %v6127_v10  ;;  %v5367_v21 = vmul.f32 1.442695, %v5353_v47  ;;  %v5357_v59 = vsub.f32 %v10479_v3, %v5348_v46  ;;  %v5373_v45 = vmul.f32 1.442695, %v5356_v63 }
 0xbcf   : > { %v6130_v23 = vsel %vm375_vm0, %v10613_v19, -inf  ;;  %8175 = vpow2.f32 %v5361_v53  ;;  %v5371_v52 = vmul.f32 1.442695, %v5355_v27  ;;  %v5377_v7 = vmul.f32 1.442695, %v5358_v31  ;;  %v7868_v53 = vld [vmem:[%s8524_s17 + $0x5b8] sm:$0xff] }
 0xbd0   : > { %v6131_v38 = vmax.f32 %v10610_v25, %v6130_v23  ;;  %v10620_v57 = vpop.f32.mrf.mxu0  ;;  %8177 = vpow2.f32 %v5365_v36  ;;  %v5375_v34 = vmul.f32 1.442695, %v5357_v59  ;;  %6248 = vmatpush1.msra.mxu0 %v7868_v53  ;;  %v7867_v27 = vld [vmem:[%s8524_s17 + $0x5b0] sm:$0xff] }
 0xbd1   : > { %8179 = vpow2.f32 %v5363_v24  ;;  %6249 = vmatprep.subr.mxu0 %v11325_v60 }
 0xbd2   : > { %v10622_v11 = vpop.f32.mrf.mxu0  ;;  %6132 = vmax.xlane.f32.xlu0 %v6131_v38  ;;  %8181 = vpow2.f32 %v5369_v29  ;;  %v7866_v38 = vld [vmem:[%s8524_s17 + $0x5a8] sm:$0xff]  ;;  %6250 = vmatpush1.msra.mxu0 %v7867_v27 }
 0xbd3   : > { %8183 = vpow2.f32 %v5367_v21  ;;  %v6134_v63 = vsel %vm375_vm0, %v10622_v11, -inf  ;;  %6251 = vmatprep.subr.mxu0 %v11325_v60 }
 0xbd4   : > { %v10624_v51 = vpop.f32.mrf.mxu0  ;;  %8185 = vpow2.f32 %v5373_v45  ;;  %v6135_v24 = vmax.f32 %v10620_v57, %v6134_v63  ;;  %v7865_v63 = vld [vmem:[%s8524_s17 + $0x5a0] sm:$0xff]  ;;  %6252 = vmatpush1.msra.mxu0 %v7866_v38 }
 0xbd5   : > { %8187 = vpow2.f32 %v5371_v52  ;;  %v6138_v46 = vsel %vm502_vm1, %v10624_v51, -inf  ;;  %6253 = vmatprep.subr.mxu0 %v11325_v60 }
 0xbd6   : > { %v10626_v3 = vpop.f32.mrf.mxu0  ;;  %8189 = vpow2.f32 %v5377_v7  ;;  %6254 = vmatpush1.msra.mxu0 %v7865_v63 }
 0xbd7   : > { %v6139_v47 = vsel %vm504_vm2, %v10626_v3, -inf  ;;  %8191 = vpow2.f32 %v5375_v34  ;;  %6255 = vmatprep.subr.mxu0 %v11325_v60 }
 0xbd8   : > { %v6140_v29 = vmax.f32 %v6138_v46, %v6139_v47 }
 0xbda   : > { %6141 = vmax.xlane.f32.xlu1 %v6140_v29 }
 0xbdb   : > { %v10634_v10 = vpop.eup %8173 }
 0xbdc   : > { %v10637_v36 = vpop.eup %8175 }
 0xbdd   : > { %v10641_v31 = vpop.eup %8177  ;;  %v5379_v23 = vsel %vm375_vm0, %v10637_v36, 0.0  ;;  %7738 = vmatprep.mubr.msk.f32.mxu1 %vm375_vm0, %v10637_v36 }
 0xbde   : > { %v10648_v21 = vpop.eup %8179  ;;  %6136 = vmax.xlane.f32.xlu1 %v6135_v24  ;;  %5507 = vmatmul.mubr.f32.vlgmr.msra.gmra.mxu1 %v10634_v10  ;;  %v5383_v59 = vsel %vm375_vm0, %v10641_v31, 0.0  ;;  %v10655_v45 = vadd.f32 %v10634_v10, %v5379_v23 }
 0xbdf   : > { %v10657_v52 = vpop.eup %8181  ;;  %v5415_v7 = vadd.f32 %v5383_v59, %v5379_v23  ;;  %7739 = vmatprep.mubr.msk.f32.mxu1 %vm375_vm0, %v10641_v31  ;;  %v5405_v34 = vadd.f32 %v10648_v21, %v10634_v10  ;;  %v10664_v46 = vadd.f32 %v10648_v21, %v5383_v59 }
 0xbe0   : > { %v10666_v47 = vpop.eup %8183  ;;  %v5387_v29 = vsel %vm375_vm0, %v10657_v52, 0.0 }
 0xbe1   : > { %11354 = vst [vmem:[#allocation42_spill] sm:$0xff] %v10664_v46  ;;  %v10672_v53 = vpop.eup %8185  ;;  %v5416_v24 = vadd.f32 %v5415_v7, %v5387_v29  ;;  %v5406_v23 = vadd.f32 %v10666_v47, %v5405_v34  ;;  %v10676_v15 = vadd.f32 %v10666_v47, %v5387_v29 }
 0xbe2   : > { %v10678_v27 = vpop.eup %8187  ;;  %5512 = vmatmul.mubr.f32.gmra.mxu1 %v10648_v21  ;;  %v5391_v59 = vsel %vm375_vm0, %v10672_v53, 0.0 }
 0xbe3   : > { %v10684_v46 = vpop.eup %8189  ;;  %7740 = vmatprep.mubr.msk.f32.mxu1 %vm375_vm0, %v10657_v52  ;;  %v5417_v38 = vadd.f32 %v5416_v24, %v5391_v59  ;;  %v5407_v7 = vadd.f32 %v10678_v27, %v5406_v23  ;;  %v10690_v34 = vadd.f32 %v10678_v27, %v5391_v59  ;;  %v7864_v23 = vld [vmem:[%s8524_s17 + $0x598] sm:$0xff]  ;;  %v7863_v59 = vld [vmem:[%s8524_s17 + $0x590] sm:$0xff] }
 0xbe4   : > { %v10692_v29 = vpop.eup %8191  ;;  %v5396_v4 = vsel %vm504_vm2, %v10684_v46, 0.0  ;;  %6256 = vmatpush1.msra.mxu0 %v7864_v23 }
 0xbe5   : > { %11355 = vst [vmem:[#allocation43_spill] sm:$0xff] %v10690_v34  ;;  %v5418_v40 = vadd.f32 %v5417_v38, %v5396_v4  ;;  %v5395_v16 = vsel %vm502_vm1, %v10692_v29, 0.0  ;;  %6257 = vmatprep.subr.mxu0 %v11325_v60 }
 0xbe6   : > { %5517 = vmatmul.mubr.f32.gmra.mxu1 %v10666_v47  ;;  %v5408_v24 = vadd.f32 %v5407_v7, %v5395_v16  ;;  %v10700_v55 = vadd.f32 %v5396_v4, %v5395_v16  ;;  %6258 = vmatpush1.msra.mxu0 %v7863_v59  ;;  %v7858_v59 = vld [vmem:[%s8524_s17 + $0x568] sm:$0xff] }
 0xbe7   : > { %7741 = vmatprep.mubr.msk.f32.mxu1 %vm375_vm0, %v10672_v53  ;;  %v5419_v63 = vrot.slane %v5418_v40, 4  ;;  %6259 = vmatprep.subr.mxu0 %v11325_v60 }
 0xbe8   : > { %v5409_v34 = vrot.slane %v5408_v24, 4  ;;  %6260 = vmatpush1.msra.mxu0 %v7862_v41  ;;  %v7859_v41 = vld [vmem:[%s8524_s17 + $0x570] sm:$0xff] }
 0xbe9   : > { %v5420_v2 = vadd.f32 %v5419_v63, %v5418_v40  ;;  %6261 = vmatprep.subr.mxu0 %v11325_v60 }
 0xbea   : > { %5522 = vmatmul.mubr.f32.gmra.mxu1 %v10678_v27  ;;  %v5410_v38 = vadd.f32 %v5409_v34, %v5408_v24  ;;  %v7861_v34 = vld [vmem:[%s8524_s17 + $0x580] sm:$0xff] }
 0xbeb   : > { %v5421_v7 = vrot.slane %v5420_v2, 2  ;;  %7742 = vmatprep.mubr.msk.f32.mxu1 %vm375_vm0, %v10684_v46  ;;  %6262 = vmatpush1.msra.mxu0 %v7861_v34 }
 0xbec   : > { %v5411_v4 = vrot.slane %v5410_v38, 2  ;;  %6263 = vmatprep.subr.mxu0 %v11325_v60 }
 0xbed   : > { %v5422_v16 = vadd.f32 %v5421_v7, %v5420_v2  ;;  %v7860_v2 = vld [vmem:[%s8524_s17 + $0x578] sm:$0xff]  ;;  %v7855_v7 = vld [vmem:[%s8524_s17 + $0x550] sm:$0xff] }
 0xbee   : > { %v5412_v50 = vadd.f32 %v5411_v4, %v5410_v38  ;;  %5527 = vmatmul.mubr.f32.gmra.mxu1 %v10692_v29  ;;  %6264 = vmatpush1.msra.mxu0 %v7860_v2  ;;  %v7857_v38 = vld [vmem:[%s8524_s17 + $0x560] sm:$0xff]  ;;  %v7854_v4 = vld [vmem:[%s8524_s17 + $0x548] sm:$0xff] }
 0xbef   : > { %v5423_v40 = vrot.slane %v5422_v16, 1  ;;  %5759 = vmatprep.mubr.f32.mxu1 %v11325_v60  ;;  %6265 = vmatprep.subr.mxu0 %v11325_v60 }
 0xbf0   : > { %v5413_v24 = vrot.slane %v5412_v50, 1  ;;  %6266 = vmatpush1.msra.mxu0 %v7859_v41 }
 0xbf1   : > { %v5424_v63 = vadd.f32 %v5423_v40, %v5422_v16  ;;  %6267 = vmatprep.subr.mxu0 %v11325_v60  ;;  %v7853_v16 = vld [vmem:[%s8524_s17 + $0x540] sm:$0xff]  ;;  %v7876_v40 = vld [vmem:[%s8524_s17 + $0x5f8] sm:$0xff] }
 0xbf2   : > { %v5414_v23 = vadd.f32 %v5413_v24, %v5412_v50  ;;  %6268 = vmatpush1.msra.mxu0 %v7858_v59  ;;  %v7856_v50 = vld [vmem:[%s8524_s17 + $0x558] sm:$0xff]  ;;  %v7875_v59 = vld [vmem:[%s8524_s17 + $0x5f0] sm:$0xff] }
 0xbf3   : > { %8193 = vrcp.f32 %v5424_v63  ;;  %6269 = vmatprep.subr.mxu0 %v11325_v60 }
 0xbf4   : > { %8195 = vrcp.f32 %v5414_v23  ;;  %6270 = vmatpush1.msra.mxu0 %v7857_v38 }
 0xbf5   : > { %6271 = vmatprep.subr.mxu0 %v11325_v60 }
 0xbf6   : > { %6272 = vmatpush1.msra.mxu0 %v7856_v50 }
 0xbf7   : > { %6273 = vmatprep.subr.mxu0 %v11325_v60 }
 0xbf8   : > { %6274 = vmatpush1.msra.mxu0 %v7855_v7  ;;  %v7874_v7 = vld [vmem:[%s8524_s17 + $0x5e8] sm:$0xff] }
 0xbf9   : > { %6275 = vmatprep.subr.mxu0 %v11325_v60 }
 0xbfa   : > { %6276 = vmatpush1.msra.mxu0 %v7854_v4 }
 0xbfb   : > { %6277 = vmatprep.subr.mxu0 %v11325_v60 }
 0xbfc   : > { %6278 = vmatpush1.msra.mxu0 %v7853_v16 }
 0xbfd   : > { %6295 = vmatprep.subr.mxu0 %v11325_v60 }
 0xbfe   : > { %6296 = vmatpush2.msra.mxu0 %v7876_v40 }
 0xbff   : > { %6297 = vmatprep.subr.mxu0 %v11325_v60 }
 0xc00   : > { %v8194_v34 = vpop.eup %8193  ;;  %6298 = vmatpush2.msra.mxu0 %v7875_v59 }
 0xc01   : > { %v8196_v24 = vpop.eup %8195  ;;  %v5544_v63 = vmul.f32 %v8194_v34, %v10637_v36  ;;  %v5546_v2 = vmul.f32 %v8194_v34, %v10641_v31  ;;  %v5548_v23 = vmul.f32 %v8194_v34, %v10657_v52  ;;  %v5550_v41 = vmul.f32 %v8194_v34, %v10672_v53  ;;  %6299 = vmatprep.subr.mxu0 %v11325_v60  ;;  %v7873_v36 = vld [vmem:[%s8524_s17 + $0x5e0] sm:$0xff]  ;;  %v7871_v52 = vld [vmem:[%s8524_s17 + $0x5d0] sm:$0xff]  ;;  %v7870_v53 = vld [vmem:[%s8524_s17 + $0x5c8] sm:$0xff] }
 0xc02   : > { %v5543_v38 = vmul.f32 %v8196_v24, %v10634_v10  ;;  %v5552_v50 = vmul.f32 %v8194_v34, %v10684_v46  ;;  %v5545_v31 = vmul.f32 %v8196_v24, %v10648_v21  ;;  %6300 = vmatpush2.msra.mxu0 %v7874_v7  ;;  %v7872_v10 = vld [vmem:[%s8524_s17 + $0x5d8] sm:$0xff]  ;;  %v5547_v46 = vmul.f32 %v8196_v24, %v10666_v47  ;;  %v7869_v21 = vld [vmem:[%s8524_s17 + $0x5c0] sm:$0xff]  ;;  %s8301_s17 = scalar_lea.vmem %s11257_s10, 49152 }
 0xc03   : > { %6301 = vmatprep.subr.mxu0 %v11325_v60  ;;  %v5549_v4 = vmul.f32 %v8196_v24, %v10678_v27  ;;  %v5551_v16 = vmul.f32 %v8196_v24, %v10692_v29  ;;  %p8302_p11 = scmp.ne.s32.totalorder %s11257_s10, %s8301_s17  ;;  %p8309_p1 = scmp.lt.s32.totalorder %s8307_s26, %s8301_s17 }
 0xc04   : > { %5553 = vxpose.xlu0.b32.start [1/5] (short) %v5543_v38, 128  ;;  %6302 = vmatpush2.msra.mxu0 %v7873_v36 }
 0xc05   : > { %6303 = vmatprep.subr.mxu0 %v11325_v60  ;;  %p8303_p12 = pnand %p8302_p11, %p8435_p5  ;;  %p8310_p2 = por %p8309_p1, %p8308_p0 }
 0xc06   : > { %6304 = vmatpush2.msra.mxu0 %v7872_v10 }
 0xc07   : > { %6305 = vmatprep.subr.mxu0 %v11325_v60  ;;  %p8304_p13 = pneg %p8303_p12 }
 0xc08   : > { %5554 = vxpose.xlu0.b32.cont [2/5] (short) %v5545_v31, 128  ;;  %6306 = vmatpush2.msra.mxu0 %v7871_v52 }
 0xc09   : > { %6307 = vmatprep.subr.mxu0 %v11325_v60  ;;  %p8311_p3 = pnand %p8310_p2, %p8304_p13 }
 0xc0a   : > { %6308 = vmatpush2.msra.mxu0 %v7870_v53 }
 0xc0b   : > { %6309 = vmatprep.subr.mxu0 %v11325_v60 }
 0xc0c   : > { %5555 = vxpose.xlu0.b32.cont [3/5] (short) %v5547_v46, 128  ;;  %6310 = vmatpush2.msra.mxu0 %v7869_v21 }
 0xc10   : > { %5556 = vxpose.xlu0.b32.cont [4/5] (short) %v5549_v4, 128 }
 0xc14   : > { %5557 = vxpose.xlu0.b32.end [5/5] (short) %v5551_v16, 128 }
 0xc41   : > { %5585 = vxpose.xlu0.b32.start [1/5] (short) (narrow) %v5544_v63, 64 }
 0xc45   : > { %5586 = vxpose.xlu0.b32.cont [2/5] (short) (narrow) %v5546_v2, 64 }
 0xc49   : > { %5587 = vxpose.xlu0.b32.cont [3/5] (short) (narrow) %v5548_v23, 64 }
 0xc4d   : > { %5588 = vxpose.xlu0.b32.cont [4/5] (short) (narrow) %v5550_v41, 64 }
 0xc51   : > { %5589 = vxpose.xlu0.b32.end [5/5] (short) (narrow) %v5552_v50, 64 }
 0xc53   : > { %v6125_v40 = vpop.xlane.xlu0 %6124 }
 0xc57   : > { %v6129_v47 = vpop.xlane.xlu1 %6128 }
 0xc5b   : > { %v6133_v27 = vpop.xlane.xlu0 %6132 }
 0xc63   : > { %v6142_v34 = vpop.xlane.xlu1 %6141 }
 0xc64   : > { %v6143_v59 = vsel %vm502_vm1, %v6142_v34, -inf }
 0xc65   : > { %v6144_v38 = vmax.f32 %v6125_v40, %v6143_v59 }
 0xc67   : > { %v6145_v7 = vmax.f32 %v6144_v38, %v6129_v47  ;;  %v6137_v36 = vpop.xlane.xlu1 %6136  ;;  %v7708_v38 = vld [vmem:[%s9050_s6 + $0x228] sm:$0xf] }
 0xc68   : > { %v6146_v31 = vmax.f32 %v6133_v27, %v6137_v36  ;;  %v7707_v27 = vld [vmem:[%s9050_s6 + $0x220] sm:$0xf]  ;;  %7748 = vmatprep.subr.msk.mxu1 %vm502_vm1, %v7708_v38 }
 0xc69   : > { %7749 = vmatpush1.msk.msra.mxu1 %vm502_vm1, %v7707_v27 }
 0xc6a   : > { %v6147_v10 = vmax.f32 %v6145_v7, %v6146_v31  ;;  %v7706_v7 = vld [vmem:[%s9050_s6 + $0x218] sm:$0xff]  ;;  %v7705_v31 = vld [vmem:[%s9050_s6 + $0x210] sm:$0xff] }
 0xc6b   : > { %5719 = vmatprep.subr.mxu1 %v7706_v7 }
 0xc6c   : > { %v6148_v52 = vrot.slane %v6147_v10, 4  ;;  %5720 = vmatpush1.msra.mxu1 %v7705_v31 }
 0xc6e   : > { %v6149_v46 = vmax.f32 %v6147_v10, %v6148_v52 }
 0xc70   : > { %v6150_v29 = vrot.slane %v6149_v46, 2 }
 0xc72   : > { %v6151_v24 = vmax.f32 %v6149_v46, %v6150_v29 }
 0xc74   : > { %v6152_v63 = vrot.slane %v6151_v24, 1 }
 0xc76   : > { %v6153_v2 = vmax.f32 %v6151_v24, %v6152_v63 }
 0xc78   : > { %v6154_v23 = vsub.f32 %v10589_v62, %v6153_v2  ;;  %v6155_v41 = vsub.f32 %v10591_v5, %v6153_v2  ;;  %v6157_v50 = vsub.f32 %v10599_v37, %v6153_v2  ;;  %v6156_v53 = vsub.f32 %v10596_v6, %v6153_v2 }
 0xc79   : > { %v6159_v21 = vsub.f32 %v10613_v19, %v6153_v2  ;;  %v6158_v4 = vsub.f32 %v10610_v25, %v6153_v2  ;;  %v6161_v16 = vsub.f32 %v10622_v11, %v6153_v2  ;;  %v6160_v62 = vsub.f32 %v10620_v57, %v6153_v2 }
 0xc7a   : > { %v6164_v47 = vmul.f32 1.442695, %v6154_v23  ;;  %v6166_v40 = vmul.f32 1.442695, %v6155_v41  ;;  %v6170_v34 = vmul.f32 1.442695, %v6157_v50  ;;  %v6163_v6 = vsub.f32 %v10626_v3, %v6153_v2 }
 0xc7b   : > { %v6168_v59 = vmul.f32 1.442695, %v6156_v53  ;;  %v6174_v5 = vmul.f32 1.442695, %v6159_v21  ;;  %v6172_v37 = vmul.f32 1.442695, %v6158_v4  ;;  %v6162_v25 = vsub.f32 %v10624_v51, %v6153_v2 }
 0xc7c   : > { %8197 = vpow2.f32 %v6164_v47  ;;  %v6178_v19 = vmul.f32 1.442695, %v6161_v16  ;;  %v6176_v11 = vmul.f32 1.442695, %v6160_v62  ;;  %v6182_v57 = vmul.f32 1.442695, %v6163_v6 }
 0xc7d   : > { %8199 = vpow2.f32 %v6166_v40  ;;  %v6180_v3 = vmul.f32 1.442695, %v6162_v25  ;;  %v7704_v51 = vld [vmem:[%s9050_s6 + $0x208] sm:$0xff] }
 0xc7e   : > { %8201 = vpow2.f32 %v6170_v34  ;;  %5721 = vmatprep.subr.mxu1 %v7704_v51 }
 0xc7f   : > { %8203 = vpow2.f32 %v6168_v59 }
 0xc80   : > { %8205 = vpow2.f32 %v6174_v5  ;;  %v10772_v36 = vpop.trf.xlu0 }
 0xc81   : > { %8207 = vpow2.f32 %v6172_v37 }
 0xc82   : > { %8209 = vpow2.f32 %v6178_v19 }
 0xc83   : > { %8211 = vpow2.f32 %v6176_v11 }
 0xc84   : > { %8213 = vpow2.f32 %v6182_v57  ;;  %v10778_v10 = vpop.trf.xlu0 }
 0xc85   : > { %8215 = vpow2.f32 %v6180_v3 }
 0xc88   : > { %v10780_v52 = vpop.trf.xlu0 }
 0xc89   : > { %v10782_v46 = vpop.eup %8197 }
 0xc8a   : > { %v10784_v29 = vpop.eup %8199  ;;  %552 = vadd.xlane.f32.xlu0 %v8611_v48 }
 0xc8b   : > { %v10787_v24 = vpop.eup %8201  ;;  %7882 = vmatprep.mubr.msk.f32.mxu0 %vm375_vm0, %v10784_v29  ;;  %v6184_v63 = vsel %vm375_vm0, %v10784_v29, 0.0 }
 0xc8c   : > { %v10793_v2 = vpop.eup %8203  ;;  %6312 = vmatmul.mubr.f32.vlgmr.msra.gmra.mxu0 %v10782_v46  ;;  %v10796_v23 = vpop.trf.xlu0  ;;  %v6188_v41 = vsel %vm375_vm0, %v10787_v24, 0.0  ;;  %v10801_v50 = vadd.f32 %v10782_v46, %v6184_v63 }
 0xc8d   : > { %v10803_v48 = vpop.eup %8205  ;;  %7883 = vmatprep.mubr.msk.f32.mxu0 %vm375_vm0, %v10787_v24  ;;  %v6210_v53 = vadd.f32 %v10793_v2, %v10782_v46  ;;  %v10810_v21 = vadd.f32 %v10793_v2, %v6188_v41  ;;  %v6220_v4 = vadd.f32 %v6188_v41, %v6184_v63 }
 0xc8e   : > { %v10812_v16 = vpop.eup %8207  ;;  %560 = vadd.xlane.f32.xlu0 %v8639_v1  ;;  %v6192_v47 = vsel %vm375_vm0, %v10803_v48, 0.0 }
 0xc8f   : > { %v10817_v40 = vpop.eup %8209  ;;  %v6211_v34 = vadd.f32 %v10812_v16, %v6210_v53  ;;  %v6221_v62 = vadd.f32 %v6220_v4, %v6192_v47  ;;  %v10821_v59 = vadd.f32 %v10812_v16, %v6192_v47 }
 0xc90   : > { %v10823_v5 = vpop.eup %8211  ;;  %6317 = vmatmul.mubr.f32.gmra.mxu0 %v10793_v2  ;;  %v6196_v6 = vsel %vm375_vm0, %v10817_v40, 0.0  ;;  %v10833_v25 = vpop.trf.xlu0 }
 0xc91   : > { %v10828_v37 = vpop.eup %8213  ;;  %7884 = vmatprep.mubr.msk.f32.mxu0 %vm375_vm0, %v10803_v48  ;;  %v6212_v1 = vadd.f32 %v10823_v5, %v6211_v34  ;;  %v10836_v19 = vadd.f32 %v10823_v5, %v6196_v6  ;;  %v6222_v11 = vadd.f32 %v6221_v62, %v6196_v6 }
 0xc92   : > { %v10838_v38 = vpop.eup %8215  ;;  %569 = vadd.xlane.f32.xlu0 %v8667_v18  ;;  %v6201_v27 = vsel %vm504_vm2, %v10828_v37, 0.0 }
 0xc93   : > { %v6200_v7 = vsel %vm502_vm1, %v10838_v38, 0.0  ;;  %v6223_v57 = vadd.f32 %v6222_v11, %v6201_v27 }
 0xc94   : > { %6322 = vmatmul.mubr.f32.gmra.mxu0 %v10812_v16  ;;  %v6213_v31 = vadd.f32 %v6212_v1, %v6200_v7  ;;  %v10846_v3 = vadd.f32 %v6201_v27, %v6200_v7  ;;  %v10851_v18 = vpop.trf.xlu0 }
 0xc95   : > { %7885 = vmatprep.mubr.msk.f32.mxu0 %vm375_vm0, %v10817_v40  ;;  %v6224_v51 = vrot.slane %v6223_v57, 4 }
 0xc96   : > { %1360 = vadd.xlane.f32.xlu0 %v8856_v26  ;;  %v6214_v63 = vrot.slane %v6213_v31, 4 }
 0xc97   : > { %v6225_v41 = vadd.f32 %v6224_v51, %v6223_v57  ;;  %v7703_v57 = vld [vmem:[%s9050_s6 + $0x200] sm:$0xff] }
 0xc98   : > { %6327 = vmatmul.mubr.f32.gmra.mxu0 %v10823_v5  ;;  %v6215_v53 = vadd.f32 %v6214_v63, %v6213_v31  ;;  %v10858_v26 = vpop.trf.xlu0  ;;  %5722 = vmatpush1.msra.mxu1 %v7703_v57  ;;  %v7702_v31 = vld [vmem:[%s9050_s6 + $0x1f8] sm:$0xff]  ;;  %v7701_v63 = vld [vmem:[%s9050_s6 + $0x1f0] sm:$0xff] }
 0xc99   : > { %7886 = vmatprep.mubr.msk.f32.mxu0 %vm375_vm0, %v10828_v37  ;;  %v6226_v4 = vrot.slane %v6225_v41, 2  ;;  %5723 = vmatprep.subr.mxu1 %v7702_v31  ;;  %v7847_v31 = vld [vmem:[%s9050_s6 + $0x250] sm:$0xff] }
 0xc9a   : > { %1368 = vadd.xlane.f32.xlu0 %v8883_v35  ;;  %v6216_v47 = vrot.slane %v6215_v53, 2  ;;  %5724 = vmatpush1.msra.mxu1 %v7701_v63 }
 0xc9b   : > { %v6227_v34 = vadd.f32 %v6226_v4, %v6225_v41  ;;  %v7700_v41 = vld [vmem:[%s9050_s6 + $0x1e8] sm:$0xff]  ;;  %v7699_v4 = vld [vmem:[%s9050_s6 + $0x1e0] sm:$0xff] }
 0xc9c   : > { %v6217_v62 = vadd.f32 %v6216_v47, %v6215_v53  ;;  %6332 = vmatmul.mubr.f32.gmra.mxu0 %v10838_v38  ;;  %5725 = vmatprep.subr.mxu1 %v7700_v41 }
 0xc9d   : > { %v6228_v6 = vrot.slane %v6227_v34, 1  ;;  %6564 = vmatprep.mubr.f32.mxu0 %v11325_v60  ;;  %5726 = vmatpush1.msra.mxu1 %v7699_v4 }
 0xc9e   : > { %v6218_v1 = vrot.slane %v6217_v62, 1  ;;  %2161 = vadd.xlane.f32.xlu0 %v9084_v58  ;;  %v10862_v11 = vpop.f32.mrf.mxu1  ;;  %v10870_v58 = vpop.trf.xlu0  ;;  %7750 = vmatmul.mubr.msk.f32.vlgmr.msra.gmra.mxu1 %vm787_vm3, %v10772_v36  ;;  %v7850_v36 = vld [vmem:[%s9050_s6 + $0x268] sm:$0xff] }
 0xc9f   : > { %v6229_v27 = vadd.f32 %v6228_v6, %v6227_v34  ;;  %5765 = vmatprep.mubr.f32.mxu1 %v11325_v60  ;;  %v7852_v6 = vld [vmem:[%s9050_s6 + $0x278] sm:$0xf] }
 0xca0   : > { %v6219_v35 = vadd.f32 %v6218_v1, %v6217_v62  ;;  %v5510_v7 = vpop.f32.mrf.mxu1  ;;  %7972 = vmatprep.subr.msk.mxu1 %vm502_vm1, %v7852_v6  ;;  %7892 = vmatprep.subr.msk.mxu0 %vm502_vm1, %v7852_v6 }
 0xca1   : > { %8217 = vrcp.f32 %v6229_v27  ;;  %v7849_v27 = vld [vmem:[%s9050_s6 + $0x260] sm:$0xff] }
 0xca2   : > { %8219 = vrcp.f32 %v6219_v35  ;;  %2169 = vadd.xlane.f32.xlu0 %v9107_v43  ;;  %v10867_v51 = vpop.f32.mrf.mxu1  ;;  %v2969_v43 = vadd.f32 %v9460_v20, %v9483_v8  ;;  %v10882_v62 = vpop.trf.xlu0  ;;  %v2977_v20 = vadd.f32 %v9508_v12, %v9520_v42  ;;  %7751 = vmatmul.mubr.msk.f32.gmra.mxu1 %vm787_vm3, %v10778_v10  ;;  %v7848_v35 = vld [vmem:[%s9050_s6 + $0x258] sm:$0xff] }
 0xca3   : > { %5771 = vmatprep.mubr.f32.mxu1 %v11325_v60 }
 0xca4   : > { %v5515_v53 = vpop.f32.mrf.mxu1 }
 0xca6   : > { %2178 = vadd.xlane.f32.xlu0 %v9123_v0  ;;  %v10875_v47 = vpop.f32.mrf.mxu1  ;;  %v7851_v0 = vld [vmem:[%s9050_s6 + $0x270] sm:$0xf]  ;;  %v5578_v42 = vpop.trf.xlu0  ;;  %7752 = vmatmul.mubr.msk.f32.gmra.mxu1 %vm787_vm3, %v10780_v52 }
 0xca7   : > { %7977 = vmatpush1.msk.msra.mxu1 %vm502_vm1, %v7851_v0  ;;  %7893 = vmatpush1.msk.msra.mxu0 %vm502_vm1, %v7851_v0  ;;  %v7843_v52 = vld [vmem:[%s9050_s6 + $0x230] sm:$0xff] }
 0xca8   : > { %v5520_v34 = vpop.f32.mrf.mxu1  ;;  %6524 = vmatprep.subr.mxu0 %v7850_v36  ;;  %5777 = vmatprep.mubr.f32.mxu1 %v11325_v60 }
 0xca9   : > { %6525 = vmatpush1.msra.mxu0 %v7849_v27  ;;  %v7846_v34 = vld [vmem:[%s9050_s6 + $0x248] sm:$0xff]  ;;  %7973 = vmatprep.subr.mxu1 %v7850_v36 }
 0xcaa   : > { %2970 = vadd.xlane.f32.xlu0 %v2969_v43  ;;  %v10885_v1 = vpop.f32.mrf.mxu1  ;;  %6526 = vmatprep.subr.mxu0 %v7848_v35 }
 0xcab   : > { %6527 = vmatpush1.msra.mxu0 %v7847_v31  ;;  %7753 = vmatmul.mubr.msk.f32.gmra.mxu1 %vm787_vm3, %v10796_v23 }
 0xcac   : > { %v5525_v8 = vpop.f32.mrf.mxu1  ;;  %6528 = vmatprep.subr.mxu0 %v7846_v34  ;;  %5783 = vmatprep.mubr.f32.mxu1 %v11325_v60 }
 0xcad   : > { %7978 = vmatpush1.msra.mxu1 %v7849_v27 }
 0xcae   : > { %v8218_v7 = vpop.eup %8217  ;;  %2978 = vadd.xlane.f32.xlu0 %v2977_v20  ;;  %v10900_v57 = vpop.f32.mrf.mxu1  ;;  %7974 = vmatprep.subr.mxu1 %v7848_v35 }
 0xcaf   : > { %v8220_v12 = vpop.eup %8219  ;;  %v10904_v10 = vmul.f32 %v8218_v7, %v10784_v29  ;;  %v10907_v63 = vmul.f32 %v8218_v7, %v10787_v24  ;;  %v10910_v41 = vmul.f32 %v8218_v7, %v10803_v48  ;;  %v10913_v53 = vmul.f32 %v8218_v7, %v10817_v40  ;;  %v7845_v24 = vld [vmem:[%s9050_s6 + $0x240] sm:$0xff]  ;;  %v7844_v48 = vld [vmem:[%s9050_s6 + $0x238] sm:$0xff]  ;;  %v5579_v40 = vpop.trf.xlu0  ;;  %7754 = vmatmul.mubr.msk.f32.gmra.mxu1 %vm787_vm3, %v10833_v25 }
 0xcb0   : > { %v6348_v4 = vmul.f32 %v8220_v12, %v10782_v46  ;;  %v5530_v43 = vpop.f32.mrf.mxu1  ;;  %v10920_v29 = vmul.f32 %v8218_v7, %v10828_v37  ;;  %v6350_v46 = vmul.f32 %v8220_v12, %v10793_v2  ;;  %6529 = vmatpush1.msra.mxu0 %v7845_v24  ;;  %5789 = vmatprep.mubr.f32.mxu1 %v11325_v60 }
 0xcb1   : > { %6530 = vmatprep.subr.mxu0 %v7844_v48  ;;  %7979 = vmatpush1.msra.mxu1 %v7847_v31  ;;  %v6354_v23 = vmul.f32 %v8220_v12, %v10823_v5 }
 0xcb2   : > { %6358 = vxpose.xlu1.b32.start [1/5] (short) %v6348_v4, 128  ;;  %3771 = vadd.xlane.f32.xlu0 %v9941_v17  ;;  %v6352_v17 = vmul.f32 %v8220_v12, %v10812_v16 }
 0xcb3   : > { %6531 = vmatpush1.msra.mxu0 %v7843_v52  ;;  %v5580_v2 = vpop.trf.xlu0  ;;  %7975 = vmatprep.subr.mxu1 %v7846_v34  ;;  %v11356_v34 = vld [vmem:[#allocation16_spill] sm:$0xff] }
 0xcb4   : > { %7755 = vmatmul.mubr.msk.f32.gmra.mxu1 %vm787_vm3, %v10851_v18 }
 0xcb5   : > { %5795 = vmatprep.mubr.f32.mxu1 %v11325_v60  ;;  %7980 = vmatpush1.msra.mxu1 %v7845_v24  ;;  %v11357_v24 = vld [vmem:[#allocation7_spill] sm:$0xff] }
 0xcb6   : > { %6359 = vxpose.xlu1.b32.cont [2/5] (short) %v6350_v46, 128  ;;  %3779 = vadd.xlane.f32.xlu0 %v9948_v44  ;;  %v6356_v44 = vmul.f32 %v8220_v12, %v10838_v38  ;;  %v11358_v46 = vld [vmem:[#allocation23_spill] sm:$0xff] }
 0xcb7   : > { %7976 = vmatprep.subr.mxu1 %v7844_v48 }
 0xcb8   : > { %7756 = vmatmul.mubr.msk.f32.gmra.mxu1 %vm787_vm3, %v10858_v26 }
 0xcb9   : > { %5801 = vmatprep.mubr.f32.mxu1 %v11325_v60  ;;  %7981 = vmatpush1.msra.mxu1 %v7843_v52 }
 0xcba   : > { %6360 = vxpose.xlu1.b32.cont [3/5] (short) %v6352_v17, 128  ;;  %3788 = vadd.xlane.f32.xlu0 %v9953_v33  ;;  %v5581_v33 = vpop.trf.xlu0 }
 0xcbc   : > { %7757 = vmatmul.mubr.msk.f32.gmra.mxu1 %vm787_vm3, %v10870_v58 }
 0xcbd   : > { %5807 = vmatprep.mubr.f32.mxu1 %v11325_v60 }
 0xcbe   : > { %6361 = vxpose.xlu1.b32.cont [4/5] (short) %v6354_v23, 128  ;;  %4580 = vadd.xlane.f32.xlu0 %v10208_v32  ;;  %v5582_v32 = vpop.trf.xlu0 }
 0xcc0   : > { %7758 = vmatmul.mubr.msk.f32.gmra.mxu1 %vm787_vm3, %v10882_v62 }
 0xcc1   : > { %5813 = vmatprep.mubr.f32.mxu1 %v11325_v60 }
 0xcc2   : > { %6362 = vxpose.xlu1.b32.end [5/5] (short) %v6356_v44, 128  ;;  %4588 = vadd.xlane.f32.xlu0 %v10237_v22  ;;  %v5583_v16 = vpop.trf.xlu0  ;;  %v11360_v44 = vld [vmem:[#allocation25_spill] sm:$0xff] }
 0xcc4   : > { %7759 = vmatmul.mubr.msk.f32.gmra.mxu1 %vm787_vm3, %v5578_v42 }
 0xcc5   : > { %5819 = vmatprep.mubr.f32.mxu1 %v11325_v60 }
 0xcc6   : > { %5381 = vadd.xlane.f32.xlu0 %v10655_v45  ;;  %v5584_v22 = vpop.trf.xlu0 }
 0xcc8   : > { %7760 = vmatmul.mubr.msk.f32.gmra.mxu1 %vm787_vm3, %v5579_v40  ;;  %v11359_v40 = vld [vmem:[#allocation8_spill] sm:$0xff] }
 0xcc9   : > { %5825 = vmatprep.mubr.f32.mxu1 %v11325_v60 }
 0xcca   : > { %5389 = vadd.xlane.f32.xlu0 %v10676_v15  ;;  %v5601_v15 = vpop.trf.xlu0 }
 0xccc   : > { %7761 = vmatmul.mubr.msk.f32.gmra.mxu1 %vm787_vm3, %v5580_v2 }
 0xccd   : > { %5831 = vmatprep.mubr.f32.mxu1 %v11325_v60 }
 0xcce   : > { %5398 = vadd.xlane.f32.xlu0 %v10700_v55  ;;  %v5602_v55 = vpop.trf.xlu0 }
 0xcd0   : > { %7762 = vmatmul.mubr.msk.f32.gmra.mxu1 %vm787_vm3, %v5581_v33 }
 0xcd1   : > { %5837 = vmatprep.mubr.f32.mxu1 %v11325_v60 }
 0xcd2   : > { %6190 = vadd.xlane.f32.xlu0 %v10810_v21  ;;  %v5603_v45 = vpop.trf.xlu0 }
 0xcd4   : > { %7763 = vmatmul.mubr.msk.f32.gmra.mxu1 %vm787_vm3, %v5582_v32  ;;  %v11361_v32 = vld [vmem:[#allocation12_spill] sm:$0xff] }
 0xcd5   : > { %5843 = vmatprep.mubr.f32.mxu1 %v11325_v60 }
 0xcd6   : > { %6198 = vadd.xlane.f32.xlu0 %v10836_v19  ;;  %v5604_v21 = vpop.trf.xlu0 }
 0xcd8   : > { %7764 = vmatmul.mubr.msk.f32.gmra.mxu1 %vm787_vm3, %v5583_v16 }
 0xcd9   : > { %5849 = vmatprep.mubr.f32.mxu1 %v11325_v60 }
 0xcda   : > { %v5605_v5 = vpop.trf.xlu0 }
 0xcdc   : > { %7765 = vmatmul.mubr.msk.f32.gmra.mxu1 %vm787_vm3, %v5584_v22 }
 0xcdd   : > { %5855 = vmatprep.mubr.f32.mxu1 %v11325_v60 }
 0xcde   : > { %v5606_v37 = vpop.trf.xlu0 }
 0xce0   : > { %7766 = vmatmul.mubr.msk.f32.gmra.mxu1 %vm787_vm3, %v5601_v15 }
 0xce1   : > { %5861 = vmatprep.mubr.f32.mxu1 %v11325_v60 }
 0xce2   : > { %v5607_v25 = vpop.trf.xlu0 }
 0xce4   : > { %7767 = vmatmul.mubr.msk.f32.gmra.mxu1 %vm787_vm3, %v5602_v55  ;;  %v11362_v55 = vld [vmem:[#allocation29_spill] sm:$0xff] }
 0xce5   : > { %5867 = vmatprep.mubr.f32.mxu1 %v11325_v60 }
 0xce6   : > { %v5608_v19 = vpop.trf.xlu0 }
 0xce8   : > { %7768 = vmatmul.mubr.msk.f32.gmra.mxu1 %vm787_vm3, %v5603_v45 }
 0xce9   : > { %5873 = vmatprep.mubr.f32.mxu1 %v11325_v60 }
 0xcec   : > { %7769 = vmatmul.mubr.msk.f32.gmra.mxu1 %vm787_vm3, %v5604_v21  ;;  %v11363_v21 = vld [vmem:[#allocation13_spill] sm:$0xff] }
 0xced   : > { %5879 = vmatprep.mubr.f32.mxu1 %v11325_v60 }
 0xcef   : > { %6390 = vxpose.xlu1.b32.start [1/5] (short) (narrow) %v10904_v10, 64 }
 0xcf0   : > { %7770 = vmatmul.mubr.msk.f32.gmra.mxu1 %vm787_vm3, %v5605_v5 }
 0xcf1   : > { %5885 = vmatprep.mubr.f32.mxu1 %v11325_v60 }
 0xcf3   : > { %6391 = vxpose.xlu1.b32.cont [2/5] (short) (narrow) %v10907_v63, 64 }
 0xcf4   : > { %7771 = vmatmul.mubr.msk.f32.gmra.mxu1 %vm787_vm3, %v5606_v37 }
 0xcf5   : > { %5891 = vmatprep.mubr.f32.mxu1 %v11325_v60 }
 0xcf7   : > { %6392 = vxpose.xlu1.b32.cont [3/5] (short) (narrow) %v10910_v41, 64 }
 0xcf8   : > { %7772 = vmatmul.mubr.msk.f32.gmra.mxu1 %vm787_vm3, %v5607_v25  ;;  %v11364_v25 = vld [vmem:[#allocation20_spill] sm:$0xff] }
 0xcf9   : > { %5897 = vmatprep.mubr.f32.mxu1 %v11325_v60 }
 0xcfb   : > { %6393 = vxpose.xlu1.b32.cont [4/5] (short) (narrow) %v10913_v53, 64 }
 0xcfc   : > { %7773 = vmatmul.mubr.msk.f32.gmra.mxu1 %vm787_vm3, %v5608_v19  ;;  %v11365_v19 = vld [vmem:[#allocation17_spill] sm:$0xff] }
 0xcfd   : > { %6690 = vmatprep.mubr.f32.mxu1 %v11325_v60 }
 0xcff   : > { %6394 = vxpose.xlu1.b32.end [5/5] (short) (narrow) %v10920_v29, 64 }
 0xd13   : > { %v553_v38 = vpop.xlane.xlu0 %552 }
 0xd14   : > { %8221 = vrcp.f32 %v553_v38  ;;  %v2965_v38 = vadd.f32 %v11365_v19, %v11364_v25 }
 0xd17   : > { %v561_v18 = vpop.xlane.xlu0 %560 }
 0xd18   : > { %8223 = vrcp.f32 %v561_v18 }
 0xd1b   : > { %v570_v26 = vpop.xlane.xlu0 %569 }
 0xd1c   : > { %8225 = vrcp.f32 %v570_v26 }
 0xd1f   : > { %v1361_v58 = vpop.xlane.xlu0 %1360 }
 0xd20   : > { %8227 = vrcp.f32 %v1361_v58  ;;  %v11366_v58 = vld [vmem:[#allocation31_spill] sm:$0xff] }
 0xd21   : > { %v8222_v62 = vpop.eup %8221 }
 0xd22   : > { %v703_v6 = vmul.f32 %v8222_v62, %v8722_v54 }
 0xd23   : > { %v1369_v0 = vpop.xlane.xlu0 %1368 }
 0xd24   : > { %708 = vst [vmem:[%s10998_s13] sm:$0xff] %v703_v6  ;;  %8229 = vrcp.f32 %v1369_v0 }
 0xd25   : > { %v8224_v36 = vpop.eup %8223 }
 0xd26   : > { %v705_v20 = vmul.f32 %v8224_v36, %v8726_v49 }
 0xd27   : > { %v2162_v8 = vpop.xlane.xlu0 %2161 }
 0xd28   : > { %710 = vst [vmem:[%s10998_s13 + $0x10] sm:$0xff] %v705_v20  ;;  %8231 = vrcp.f32 %v2162_v8  ;;  %v11367_v20 = vld [vmem:[#allocation21_spill] sm:$0xff]  ;;  %v11368_v8 = vld [vmem:[#allocation19_spill] sm:$0xff] }
 0xd29   : > { %v8226_v27 = vpop.eup %8225 }
 0xd2a   : > { %v707_v35 = vmul.f32 %v8226_v27, %v8730_v61  ;;  %v2973_v27 = vadd.f32 %v11368_v8, %v11367_v20 }
 0xd2b   : > { %v2170_v7 = vpop.xlane.xlu0 %2169 }
 0xd2c   : > { %712 = vst [vmem:[%s10998_s13 + $0x20] sm:$0xf] %v707_v35  ;;  %8233 = vrcp.f32 %v2170_v7 }
 0xd2d   : > { %v8228_v31 = vpop.eup %8227 }
 0xd2e   : > { %v1508_v54 = vmul.f32 %v8228_v31, %v8955_v13  ;;  %v6374_v12 = vpop.trf.xlu1  ;;  %v11369_v31 = vld [vmem:[#allocation33_spill] sm:$0xff] }
 0xd2f   : > { %7894 = vmatmul.mubr.msk.f32.vlgmr.msra.gmra.mxu0 %vm787_vm3, %v6374_v12  ;;  %v2179_v42 = vpop.xlane.xlu0 %2178 }
 0xd30   : > { %7024 = vst [vmem:[%s10998_s13 + $0x30] sm:$0xff] %v1508_v54  ;;  %6570 = vmatprep.mubr.f32.mxu0 %v11325_v60  ;;  %8235 = vrcp.f32 %v2179_v42 }
 0xd31   : > { %v8230_v49 = vpop.eup %8229 }
 0xd32   : > { %v1510_v10 = vmul.f32 %v8230_v49, %v8959_v28  ;;  %556 = vadd.xlane.f32.xlu1 %v8626_v56  ;;  %v6375_v61 = vpop.trf.xlu1 }
 0xd33   : > { %7895 = vmatmul.mubr.msk.f32.gmra.mxu0 %vm787_vm3, %v6375_v61  ;;  %v2971_v63 = vpop.xlane.xlu0 %2970 }
 0xd34   : > { %7026 = vst [vmem:[%s10998_s13 + $0x40] sm:$0xff] %v1510_v10  ;;  %6576 = vmatprep.mubr.f32.mxu0 %v11325_v60  ;;  %8237 = vrcp.f32 %v2971_v63  ;;  %v11370_v63 = vld [vmem:[#allocation38_spill] sm:$0xff] }
 0xd35   : > { %v8232_v13 = vpop.eup %8231 }
 0xd36   : > { %v2312_v41 = vmul.f32 %v8232_v13, %v9172_v30  ;;  %564 = vadd.xlane.f32.xlu1 %v8653_v9  ;;  %v6376_v53 = vpop.trf.xlu1 }
 0xd37   : > { %7896 = vmatmul.mubr.msk.f32.gmra.mxu0 %vm787_vm3, %v6376_v53  ;;  %v2979_v28 = vpop.xlane.xlu0 %2978 }
 0xd38   : > { %7167 = vst [vmem:[%s10998_s13 + $0x50] sm:$0xff] %v2312_v41  ;;  %6582 = vmatprep.mubr.f32.mxu0 %v11325_v60  ;;  %8239 = vrcp.f32 %v2979_v28  ;;  %v11371_v41 = vld [vmem:[#allocation18_spill] sm:$0xff] }
 0xd39   : > { %v8234_v56 = vpop.eup %8233 }
 0xd3a   : > { %v2314_v4 = vmul.f32 %v8234_v56, %v9180_v39  ;;  %1356 = vadd.xlane.f32.xlu1 %v8846_v14  ;;  %v6377_v43 = vpop.trf.xlu1 }
 0xd3b   : > { %7897 = vmatmul.mubr.msk.f32.gmra.mxu0 %vm787_vm3, %v6377_v43  ;;  %v3772_v30 = vpop.xlane.xlu0 %3771 }
 0xd3c   : > { %7169 = vst [vmem:[%s10998_s13 + $0x60] sm:$0xff] %v2314_v4  ;;  %6588 = vmatprep.mubr.f32.mxu0 %v11325_v60  ;;  %8241 = vrcp.f32 %v3772_v30  ;;  %v11372_v30 = vld [vmem:[#allocation40_spill] sm:$0xff] }
 0xd3d   : > { %v8236_v9 = vpop.eup %8235 }
 0xd3e   : > { %v2316_v29 = vmul.f32 %v8236_v9, %v11356_v34  ;;  %1364 = vadd.xlane.f32.xlu1 %v11357_v24  ;;  %v6378_v48 = vpop.trf.xlu1  ;;  %v11373_v34 = vld [vmem:[#allocation27_spill] sm:$0xff] }
 0xd3f   : > { %7898 = vmatmul.mubr.msk.f32.gmra.mxu0 %vm787_vm3, %v6378_v48  ;;  %v3780_v39 = vpop.xlane.xlu0 %3779 }
 0xd40   : > { %7171 = vst [vmem:[%s10998_s13 + $0x70] sm:$0xf] %v2316_v29  ;;  %6594 = vmatprep.mubr.f32.mxu0 %v11325_v60  ;;  %8243 = vrcp.f32 %v3780_v39 }
 0xd41   : > { %v8238_v14 = vpop.eup %8237 }
 0xd42   : > { %v3118_v52 = vmul.f32 %v8238_v14, %v11358_v46  ;;  %1373 = vadd.xlane.f32.xlu1 %v11359_v40  ;;  %v6379_v17 = vpop.trf.xlu1 }
 0xd43   : > { %7899 = vmatmul.mubr.msk.f32.gmra.mxu0 %vm787_vm3, %v6379_v17  ;;  %v3789_v2 = vpop.xlane.xlu0 %3788 }
 0xd44   : > { %7312 = vst [vmem:[%s10998_s13 + $0x80] sm:$0xff] %v3118_v52  ;;  %6600 = vmatprep.mubr.f32.mxu0 %v11325_v60  ;;  %8245 = vrcp.f32 %v3789_v2  ;;  %v11374_v52 = vld [vmem:[#allocation28_spill] sm:$0xff] }
 0xd45   : > { %v8240_v23 = vpop.eup %8239 }
 0xd46   : > { %v3120_v33 = vmul.f32 %v8240_v23, %v11360_v44  ;;  %2165 = vadd.xlane.f32.xlu1 %v11361_v32  ;;  %v6380_v16 = vpop.trf.xlu1 }
 0xd47   : > { %7900 = vmatmul.mubr.msk.f32.gmra.mxu0 %vm787_vm3, %v6380_v16  ;;  %v4581_v22 = vpop.xlane.xlu0 %4580 }
 0xd48   : > { %7314 = vst [vmem:[%s10998_s13 + $0x90] sm:$0xff] %v3120_v33  ;;  %6606 = vmatprep.mubr.f32.mxu0 %v11325_v60  ;;  %8247 = vrcp.f32 %v4581_v22  ;;  %v11375_v33 = vld [vmem:[#allocation34_spill] sm:$0xff]  ;;  %v11376_v22 = vld [vmem:[#allocation35_spill] sm:$0xff] }
 0xd49   : > { %v8242_v15 = vpop.eup %8241 }
 0xd4a   : > { %v3922_v45 = vmul.f32 %v8242_v15, %v11362_v55  ;;  %2173 = vadd.xlane.f32.xlu1 %v11363_v21  ;;  %v6381_v5 = vpop.trf.xlu1 }
 0xd4b   : > { %7901 = vmatmul.mubr.msk.f32.gmra.mxu0 %vm787_vm3, %v6381_v5  ;;  %v4589_v37 = vpop.xlane.xlu0 %4588  ;;  %v11377_v5 = vld [vmem:[#allocation36_spill] sm:$0xff] }
 0xd4c   : > { %7455 = vst [vmem:[%s10998_s13 + $0xa0] sm:$0xff] %v3922_v45  ;;  %6612 = vmatprep.mubr.f32.mxu0 %v11325_v60  ;;  %8249 = vrcp.f32 %v4589_v37  ;;  %v11047_v18 = vpop.f32.mrf.mxu0 }
 0xd4d   : > { %v8244_v26 = vpop.eup %8243 }
 0xd4e   : > { %v3924_v62 = vmul.f32 %v8244_v26, %v11366_v58  ;;  %2966 = vadd.xlane.f32.xlu1 %v2965_v38  ;;  %v6382_v6 = vpop.trf.xlu1  ;;  %v6315_v0 = vpop.f32.mrf.mxu0  ;;  %v11378_v38 = vld [vmem:[#allocation42_spill] sm:$0xff] }
 0xd4f   : > { %7902 = vmatmul.mubr.msk.f32.gmra.mxu0 %vm787_vm3, %v6382_v6  ;;  %v5382_v36 = vpop.xlane.xlu0 %5381  ;;  %v11379_v6 = vld [vmem:[#allocation43_spill] sm:$0xff] }
 0xd50   : > { %7457 = vst [vmem:[%s10998_s13 + $0xb0] sm:$0xff] %v3924_v62  ;;  %6618 = vmatprep.mubr.f32.mxu0 %v11325_v60  ;;  %8251 = vrcp.f32 %v5382_v36  ;;  %v11055_v35 = vpop.f32.mrf.mxu0 }
 0xd51   : > { %v8246_v7 = vpop.eup %8245 }
 0xd52   : > { %v3926_v54 = vmul.f32 %v8246_v7, %v11369_v31  ;;  %2974 = vadd.xlane.f32.xlu1 %v2973_v27  ;;  %v6383_v12 = vpop.trf.xlu1  ;;  %v6320_v42 = vpop.f32.mrf.mxu0 }
 0xd53   : > { %7903 = vmatmul.mubr.msk.f32.gmra.mxu0 %vm787_vm3, %v6383_v12  ;;  %v5390_v49 = vpop.xlane.xlu0 %5389 }
 0xd54   : > { %7459 = vst [vmem:[%s10998_s13 + $0xc0] sm:$0xf] %v3926_v54  ;;  %6624 = vmatprep.mubr.f32.mxu0 %v11325_v60  ;;  %8253 = vrcp.f32 %v5390_v49  ;;  %v11061_v10 = vpop.f32.mrf.mxu0 }
 0xd55   : > { %v8248_v61 = vpop.eup %8247 }
 0xd56   : > { %v4728_v13 = vmul.f32 %v8248_v61, %v11370_v63  ;;  %2983 = vadd.xlane.f32.xlu1 %v11371_v41  ;;  %v6384_v53 = vpop.trf.xlu1  ;;  %v6325_v28 = vpop.f32.mrf.mxu0 }
 0xd57   : > { %7904 = vmatmul.mubr.msk.f32.gmra.mxu0 %vm787_vm3, %v6384_v53  ;;  %v5399_v56 = vpop.xlane.xlu0 %5398 }
 0xd58   : > { %7600 = vst [vmem:[%s10998_s13 + $0xd0] sm:$0xff] %v4728_v13  ;;  %6630 = vmatprep.mubr.f32.mxu0 %v11325_v60  ;;  %8255 = vrcp.f32 %v5399_v56  ;;  %v6328_v4 = vpop.f32.mrf.mxu0 }
 0xd59   : > { %v8250_v43 = vpop.eup %8249 }
 0xd5a   : > { %v4730_v9 = vmul.f32 %v8250_v43, %v11372_v30  ;;  %3775 = vadd.xlane.f32.xlu1 %v11373_v34  ;;  %v6385_v29 = vpop.trf.xlu1  ;;  %v6330_v24 = vpop.f32.mrf.mxu0 }
 0xd5b   : > { %7905 = vmatmul.mubr.msk.f32.gmra.mxu0 %vm787_vm3, %v6385_v29  ;;  %v6191_v48 = vpop.xlane.xlu0 %6190 }
 0xd5c   : > { %7602 = vst [vmem:[%s10998_s13 + $0xe0] sm:$0xff] %v4730_v9  ;;  %6636 = vmatprep.mubr.f32.mxu0 %v11325_v60  ;;  %8257 = vrcp.f32 %v6191_v48  ;;  %v11073_v39 = vpop.f32.mrf.mxu0 }
 0xd5d   : > { %v8252_v14 = vpop.eup %8251 }
 0xd5e   : > { %v5532_v46 = vmul.f32 %v8252_v14, %v10862_v11  ;;  %3783 = vadd.xlane.f32.xlu1 %v11374_v52  ;;  %v6386_v40 = vpop.trf.xlu1  ;;  %v6335_v17 = vpop.f32.mrf.mxu0 }
 0xd5f   : > { %7906 = vmatmul.mubr.msk.f32.gmra.mxu0 %vm787_vm3, %v6386_v40  ;;  %v6199_v2 = vpop.xlane.xlu0 %6198  ;;  %v5761_v55 = vpop.f32.mrf.mxu1 }
 0xd60   : > { %7743 = vst [vmem:[%s10998_s13 + $0xf0] sm:$0xff] %v5532_v46  ;;  %6642 = vmatprep.mubr.f32.mxu0 %v11325_v60  ;;  %8259 = vrcp.f32 %v6199_v2  ;;  %7774 = vst [vmem:[%s9232_s11 + $0x900] sm:$0xff] %v5761_v55 }
 0xd61   : > { %v8254_v23 = vpop.eup %8253 }
 0xd62   : > { %v5534_v44 = vmul.f32 %v8254_v23, %v10875_v47  ;;  %4576 = vadd.xlane.f32.xlu1 %v11375_v33  ;;  %v6387_v11 = vpop.trf.xlu1  ;;  %v5763_v47 = vpop.f32.mrf.mxu1 }
 0xd63   : > { %7907 = vmatmul.mubr.msk.f32.gmra.mxu0 %vm787_vm3, %v6387_v11  ;;  %7775 = vst [vmem:[%s9232_s11 + $0x908] sm:$0xff] %v5763_v47 }
 0xd64   : > { %7745 = vst [vmem:[%s10998_s13 + $0x100] sm:$0xff] %v5534_v44  ;;  %6648 = vmatprep.mubr.f32.mxu0 %v11325_v60  ;;  %v5767_v37 = vpop.f32.mrf.mxu1 }
 0xd65   : > { %v8256_v32 = vpop.eup %8255  ;;  %7776 = vst [vmem:[%s9232_s11 + $0x910] sm:$0xff] %v5767_v37 }
 0xd66   : > { %v5536_v16 = vmul.f32 %v8256_v32, %v10900_v57  ;;  %4584 = vadd.xlane.f32.xlu1 %v11376_v22  ;;  %v6388_v15 = vpop.trf.xlu1  ;;  %v5769_v58 = vpop.f32.mrf.mxu1 }
 0xd67   : > { %7908 = vmatmul.mubr.msk.f32.gmra.mxu0 %vm787_vm3, %v6388_v15  ;;  %7777 = vst [vmem:[%s9232_s11 + $0x918] sm:$0xff] %v5769_v58 }
 0xd68   : > { %7747 = vst [vmem:[%s10998_s13 + $0x110] sm:$0xf] %v5536_v16  ;;  %6654 = vmatprep.mubr.f32.mxu0 %v11325_v60  ;;  %v5773_v62 = vpop.f32.mrf.mxu1 }
 0xd69   : > { %v8258_v45 = vpop.eup %8257  ;;  %7778 = vst [vmem:[%s9232_s11 + $0x920] sm:$0xff] %v5773_v62 }
 0xd6a   : > { %v6338_v21 = vmul.f32 %v8258_v45, %v11055_v35  ;;  %4593 = vadd.xlane.f32.xlu1 %v11377_v5  ;;  %v6389_v57 = vpop.trf.xlu1  ;;  %v5775_v36 = vpop.f32.mrf.mxu1 }
 0xd6b   : > { %7909 = vmatmul.mubr.msk.f32.gmra.mxu0 %vm787_vm3, %v6389_v57  ;;  %7779 = vst [vmem:[%s9232_s11 + $0x928] sm:$0xff] %v5775_v36 }
 0xd6c   : > { %7888 = vst [vmem:[%s10998_s13 + $0x120] sm:$0xff] %v6338_v21  ;;  %6660 = vmatprep.mubr.f32.mxu0 %v11325_v60  ;;  %v5779_v20 = vpop.f32.mrf.mxu1 }
 0xd6d   : > { %v8260_v25 = vpop.eup %8259  ;;  %7780 = vst [vmem:[%s9232_s11 + $0x930] sm:$0xff] %v5779_v20 }
 0xd6e   : > { %v6340_v19 = vmul.f32 %v8260_v25, %v6328_v4  ;;  %5385 = vadd.xlane.f32.xlu1 %v11378_v38  ;;  %v6406_v26 = vpop.trf.xlu1  ;;  %v5781_v27 = vpop.f32.mrf.mxu1 }
 0xd6f   : > { %7910 = vmatmul.mubr.msk.f32.gmra.mxu0 %vm787_vm3, %v6406_v26  ;;  %7781 = vst [vmem:[%s9232_s11 + $0x938] sm:$0xff] %v5781_v27  ;;  %v11380_v26 = vld [vmem:[#allocation5_spill] sm:$0xff] }
 0xd70   : > { %7890 = vst [vmem:[%s10998_s13 + $0x130] sm:$0xff] %v6340_v19  ;;  %6666 = vmatprep.mubr.f32.mxu0 %v11325_v60  ;;  %v5785_v35 = vpop.f32.mrf.mxu1  ;;  %v11382_v27 = vld [vmem:[#allocation9_spill] sm:$0xff] }
 0xd71   : > { %7782 = vst [vmem:[%s9232_s11 + $0x940] sm:$0xff] %v5785_v35 }
 0xd72   : > { %5393 = vadd.xlane.f32.xlu1 %v11379_v6  ;;  %v6407_v0 = vpop.trf.xlu1  ;;  %v5787_v31 = vpop.f32.mrf.mxu1 }
 0xd73   : > { %7911 = vmatmul.mubr.msk.f32.gmra.mxu0 %vm787_vm3, %v6407_v0  ;;  %7783 = vst [vmem:[%s9232_s11 + $0x948] sm:$0xff] %v5787_v31  ;;  %v11381_v0 = vld [vmem:[#allocation6_spill] sm:$0xff] }
 0xd74   : > { %6672 = vmatprep.mubr.f32.mxu0 %v11325_v60 }
 0xd76   : > { %v6408_v8 = vpop.trf.xlu1  ;;  %6186 = vadd.xlane.f32.xlu1 %v10801_v50  ;;  %v5791_v50 = vpop.f32.mrf.mxu1 }
 0xd77   : > { %7912 = vmatmul.mubr.msk.f32.gmra.mxu0 %vm787_vm3, %v6408_v8  ;;  %7784 = vst [vmem:[%s9232_s11 + $0x950] sm:$0xff] %v5791_v50  ;;  %v11383_v50 = vld [vmem:[#allocation10_spill] sm:$0xff] }
 0xd78   : > { %6678 = vmatprep.mubr.f32.mxu0 %v11325_v60  ;;  %v5793_v12 = vpop.f32.mrf.mxu1 }
 0xd79   : > { %7785 = vst [vmem:[%s9232_s11 + $0x958] sm:$0xff] %v5793_v12 }
 0xd7a   : > { %v6409_v7 = vpop.trf.xlu1  ;;  %6194 = vadd.xlane.f32.xlu1 %v10821_v59  ;;  %v5797_v59 = vpop.f32.mrf.mxu1 }
 0xd7b   : > { %7913 = vmatmul.mubr.msk.f32.gmra.mxu0 %vm787_vm3, %v6409_v7  ;;  %7786 = vst [vmem:[%s9232_s11 + $0x960] sm:$0xff] %v5797_v59 }
 0xd7c   : > { %6684 = vmatprep.mubr.f32.mxu0 %v11325_v60  ;;  %v5799_v49 = vpop.f32.mrf.mxu1 }
 0xd7d   : > { %7787 = vst [vmem:[%s9232_s11 + $0x968] sm:$0xff] %v5799_v49 }
 0xd7e   : > { %v6410_v54 = vpop.trf.xlu1  ;;  %6203 = vadd.xlane.f32.xlu1 %v10846_v3  ;;  %v5803_v61 = vpop.f32.mrf.mxu1 }
 0xd7f   : > { %7914 = vmatmul.mubr.msk.f32.gmra.mxu0 %vm787_vm3, %v6410_v54  ;;  %7788 = vst [vmem:[%s9232_s11 + $0x970] sm:$0xff] %v5803_v61 }
 0xd80   : > { %v5805_v63 = vpop.f32.mrf.mxu1 }
 0xd81   : > { %7789 = vst [vmem:[%s9232_s11 + $0x978] sm:$0xff] %v5805_v63  ;;  %v11385_v63 = vld [vmem:[#allocation14_spill] sm:$0xff] }
 0xd82   : > { %v6411_v42 = vpop.trf.xlu1  ;;  %v5809_v13 = vpop.f32.mrf.mxu1 }
 0xd83   : > { %7915 = vmatmul.mubr.msk.f32.vlgmr.msra.gmra.mxu1 %vm787_vm3, %v6411_v42  ;;  %7790 = vst [vmem:[%s9232_s11 + $0x980] sm:$0xff] %v5809_v13  ;;  %v11384_v42 = vld [vmem:[#allocation11_spill] sm:$0xff] }
 0xd84   : > { %6696 = vmatprep.mubr.f32.mxu1 %v11325_v60  ;;  %v5811_v53 = vpop.f32.mrf.mxu1 }
 0xd85   : > { %7791 = vst [vmem:[%s9232_s11 + $0x988] sm:$0xff] %v5811_v53 }
 0xd86   : > { %v6412_v3 = vpop.trf.xlu1  ;;  %v5815_v28 = vpop.f32.mrf.mxu1 }
 0xd87   : > { %7916 = vmatmul.mubr.msk.f32.gmra.mxu1 %vm787_vm3, %v6412_v3  ;;  %7792 = vst [vmem:[%s9232_s11 + $0x990] sm:$0xff] %v5815_v28  ;;  %v11386_v28 = vld [vmem:[#allocation15_spill] sm:$0xff] }
 0xd88   : > { %6702 = vmatprep.mubr.f32.mxu1 %v11325_v60  ;;  %v5817_v56 = vpop.f32.mrf.mxu1 }
 0xd89   : > { %7793 = vst [vmem:[%s9232_s11 + $0x998] sm:$0xff] %v5817_v56 }
 0xd8a   : > { %v6413_v41 = vpop.trf.xlu1  ;;  %v5821_v4 = vpop.f32.mrf.mxu1 }
 0xd8b   : > { %7917 = vmatmul.mubr.msk.f32.gmra.mxu1 %vm787_vm3, %v6413_v41  ;;  %7794 = vst [vmem:[%s9232_s11 + $0x9a0] sm:$0xff] %v5821_v4 }
 0xd8c   : > { %v5823_v60 = vpop.f32.mrf.mxu1 }
 0xd8d   : > { %7795 = vst [vmem:[%s9232_s11 + $0x9a8] sm:$0xff] %v5823_v60 }
 0xd8e   : > { %v5827_v43 = vpop.f32.mrf.mxu1 }
 0xd8f   : > { %7796 = vst [vmem:[%s9232_s11 + $0x9b0] sm:$0xff] %v5827_v43  ;;  %v11387_v43 = vld [vmem:[#allocation22_spill] sm:$0xff] }
 0xd90   : > { %v5829_v30 = vpop.f32.mrf.mxu1 }
 0xd91   : > { %7797 = vst [vmem:[%s9232_s11 + $0x9b8] sm:$0xff] %v5829_v30 }
 0xd92   : > { %v5833_v9 = vpop.f32.mrf.mxu1 }
 0xd93   : > { %7798 = vst [vmem:[%s9232_s11 + $0x9c0] sm:$0xff] %v5833_v9 }
 0xd94   : > { %v5835_v34 = vpop.f32.mrf.mxu1 }
 0xd95   : > { %7799 = vst [vmem:[%s9232_s11 + $0x9c8] sm:$0xff] %v5835_v34 }
 0xd96   : > { %v5839_v29 = vpop.f32.mrf.mxu1 }
 0xd97   : > { %7800 = vst [vmem:[%s9232_s11 + $0x9d0] sm:$0xff] %v5839_v29  ;;  %v11388_v29 = vld [vmem:[#allocation24_spill] sm:$0xff] }
 0xd98   : > { %v5841_v24 = vpop.f32.mrf.mxu1 }
 0xd99   : > { %7801 = vst [vmem:[%s9232_s11 + $0x9d8] sm:$0xff] %v5841_v24 }
 0xd9a   : > { %v5845_v48 = vpop.f32.mrf.mxu1 }
 0xd9b   : > { %7802 = vst [vmem:[%s9232_s11 + $0x9e0] sm:$0xff] %v5845_v48 }
 0xd9c   : > { %v5847_v14 = vpop.f32.mrf.mxu1 }
 0xd9d   : > { %7803 = vst [vmem:[%s9232_s11 + $0x9e8] sm:$0xff] %v5847_v14 }
 0xd9e   : > { %v5851_v46 = vpop.f32.mrf.mxu1 }
 0xd9f   : > { %7804 = vst [vmem:[%s9232_s11 + $0x9f0] sm:$0xff] %v5851_v46  ;;  %v11389_v46 = vld [vmem:[#allocation26_spill] sm:$0xff] }
 0xda0   : > { %v5853_v52 = vpop.f32.mrf.mxu1 }
 0xda1   : > { %7805 = vst [vmem:[%s9232_s11 + $0x9f8] sm:$0xff] %v5853_v52 }
 0xda2   : > { %v5857_v40 = vpop.f32.mrf.mxu1 }
 0xda3   : > { %7806 = vst [vmem:[%s9232_s11 + $0xa00] sm:$0xff] %v5857_v40 }
 0xda4   : > { %v5859_v17 = vpop.f32.mrf.mxu1 }
 0xda5   : > { %7807 = vst [vmem:[%s9232_s11 + $0xa08] sm:$0xff] %v5859_v17 }
 0xda6   : > { %v5863_v2 = vpop.f32.mrf.mxu1 }
 0xda7   : > { %7808 = vst [vmem:[%s9232_s11 + $0xa10] sm:$0xff] %v5863_v2 }
 0xda8   : > { %v5865_v23 = vpop.f32.mrf.mxu1 }
 0xda9   : > { %7809 = vst [vmem:[%s9232_s11 + $0xa18] sm:$0xff] %v5865_v23 }
 0xdaa   : > { %v5869_v44 = vpop.f32.mrf.mxu1 }
 0xdab   : > { %7810 = vst [vmem:[%s9232_s11 + $0xa20] sm:$0xff] %v5869_v44  ;;  %v11390_v44 = vld [vmem:[#allocation30_spill] sm:$0xff] }
 0xdac   : > { %v5871_v33 = vpop.f32.mrf.mxu1 }
 0xdad   : > { %7811 = vst [vmem:[%s9232_s11 + $0xa28] sm:$0xff] %v5871_v33 }
 0xdae   : > { %v5875_v11 = vpop.f32.mrf.mxu1 }
 0xdaf   : > { %7812 = vst [vmem:[%s9232_s11 + $0xa30] sm:$0xff] %v5875_v11 }
 0xdb0   : > { %v5877_v32 = vpop.f32.mrf.mxu1 }
 0xdb1   : > { %7813 = vst [vmem:[%s9232_s11 + $0xa38] sm:$0xff] %v5877_v32 }
 0xdb2   : > { %v5881_v16 = vpop.f32.mrf.mxu1 }
 0xdb3   : > { %7814 = vst [vmem:[%s9232_s11 + $0xa40] sm:$0xff] %v5881_v16 }
 0xdb4   : > { %v5883_v22 = vpop.f32.mrf.mxu1 }
 0xdb5   : > { %7815 = vst [vmem:[%s9232_s11 + $0xa48] sm:$0xff] %v5883_v22 }
 0xdb6   : > { %v5887_v55 = vpop.f32.mrf.mxu1 }
 0xdb7   : > { %7816 = vst [vmem:[%s9232_s11 + $0xa50] sm:$0xff] %v5887_v55 }
 0xdb8   : > { %v5889_v47 = vpop.f32.mrf.mxu1 }
 0xdb9   : > { %7817 = vst [vmem:[%s9232_s11 + $0xa58] sm:$0xff] %v5889_v47 }
 0xdba   : > { %v5893_v21 = vpop.f32.mrf.mxu1 }
 0xdbb   : > { %v557_v15 = vpop.xlane.xlu1 %556  ;;  %7818 = vst [vmem:[%s9232_s11 + $0xa60] sm:$0xff] %v5893_v21 }
 0xdbc   : > { %8261 = vrcp.f32 %v557_v15  ;;  %v5895_v5 = vpop.f32.mrf.mxu1  ;;  %v11391_v15 = vld [vmem:[#allocation32_spill] sm:$0xff] }
 0xdbd   : > { %7819 = vst [vmem:[%s9232_s11 + $0xa68] sm:$0xff] %v5895_v5 }
 0xdbe   : > { %v5899_v37 = vpop.f32.mrf.mxu1 }
 0xdbf   : > { %v565_v45 = vpop.xlane.xlu1 %564  ;;  %7820 = vst [vmem:[%s9232_s11 + $0xa70] sm:$0xff] %v5899_v37 }
 0xdc0   : > { %8263 = vrcp.f32 %v565_v45  ;;  %v5901_v25 = vpop.f32.mrf.mxu1 }
 0xdc1   : > { %7821 = vst [vmem:[%s9232_s11 + $0xa78] sm:$0xff] %v5901_v25 }
 0xdc3   : > { %v1357_v57 = vpop.xlane.xlu1 %1356 }
 0xdc4   : > { %8265 = vrcp.f32 %v1357_v57  ;;  %v11392_v57 = vld [vmem:[#allocation37_spill] sm:$0xff] }
 0xdc7   : > { %v1365_v19 = vpop.xlane.xlu1 %1364 }
 0xdc8   : > { %8267 = vrcp.f32 %v1365_v19 }
 0xdc9   : > { %v8262_v38 = vpop.eup %8261 }
 0xdca   : > { %v704_v58 = vmul.f32 %v8262_v38, %v11380_v26 }
 0xdcb   : > { %v1374_v62 = vpop.xlane.xlu1 %1373 }
 0xdcc   : > { %709 = vst [vmem:[%s10998_s13 + $0x8] sm:$0xff] %v704_v58  ;;  %8269 = vrcp.f32 %v1374_v62  ;;  %v11393_v58 = vld [vmem:[#allocation39_spill] sm:$0xff] }
 0xdcd   : > { %v8264_v6 = vpop.eup %8263 }
 0xdce   : > { %v706_v36 = vmul.f32 %v8264_v6, %v11381_v0 }
 0xdcf   : > { %v2166_v20 = vpop.xlane.xlu1 %2165 }
 0xdd0   : > { %711 = vst [vmem:[%s10998_s13 + $0x18] sm:$0xff] %v706_v36  ;;  %8271 = vrcp.f32 %v2166_v20 }
 0xdd1   : > { %v8266_v8 = vpop.eup %8265 }
 0xdd2   : > { %v1507_v35 = vmul.f32 %v8266_v8, %v11382_v27  ;;  %v11394_v8 = vld [vmem:[#allocation41_spill] sm:$0xff] }
 0xdd3   : > { %v2174_v7 = vpop.xlane.xlu1 %2173 }
 0xdd4   : > { %7023 = vst [vmem:[%s10998_s13 + $0x28] sm:$0xff] %v1507_v35  ;;  %8273 = vrcp.f32 %v2174_v7 }
 0xdd5   : > { %v8268_v31 = vpop.eup %8267 }
 0xdd6   : > { %v1509_v54 = vmul.f32 %v8268_v31, %v11383_v50 }
 0xdd7   : > { %v2967_v12 = vpop.xlane.xlu1 %2966 }
 0xdd8   : > { %7025 = vst [vmem:[%s10998_s13 + $0x38] sm:$0xff] %v1509_v54  ;;  %8275 = vrcp.f32 %v2967_v12 }
 0xdd9   : > { %v8270_v59 = vpop.eup %8269 }
 0xdda   : > { %v1511_v49 = vmul.f32 %v8270_v59, %v11384_v42 }
 0xddb   : > { %v2975_v61 = vpop.xlane.xlu1 %2974 }
 0xddc   : > { %7027 = vst [vmem:[%s10998_s13 + $0x48] sm:$0xf] %v1511_v49  ;;  %8277 = vrcp.f32 %v2975_v61 }
 0xddd   : > { %v8272_v3 = vpop.eup %8271 }
 0xdde   : > { %v2313_v13 = vmul.f32 %v8272_v3, %v11385_v63 }
 0xddf   : > { %v2984_v41 = vpop.xlane.xlu1 %2983 }
 0xde0   : > { %7168 = vst [vmem:[%s10998_s13 + $0x58] sm:$0xff] %v2313_v13  ;;  %8279 = vrcp.f32 %v2984_v41 }
 0xde1   : > { %v8274_v53 = vpop.eup %8273 }
 0xde2   : > { %v2315_v56 = vmul.f32 %v8274_v53, %v11386_v28 }
 0xde3   : > { %v3776_v4 = vpop.xlane.xlu1 %3775 }
 0xde4   : > { %7170 = vst [vmem:[%s10998_s13 + $0x68] sm:$0xff] %v2315_v56  ;;  %8281 = vrcp.f32 %v3776_v4 }
 0xde5   : > { %v8276_v60 = vpop.eup %8275 }
 0xde6   : > { %v3117_v30 = vmul.f32 %v8276_v60, %v11387_v43 }
 0xde7   : > { %v3784_v9 = vpop.xlane.xlu1 %3783 }
 0xde8   : > { %7311 = vst [vmem:[%s10998_s13 + $0x78] sm:$0xff] %v3117_v30  ;;  %8283 = vrcp.f32 %v3784_v9 }
 0xde9   : > { %v8278_v34 = vpop.eup %8277 }
 0xdea   : > { %v3119_v24 = vmul.f32 %v8278_v34, %v11388_v29 }
 0xdeb   : > { %v4577_v48 = vpop.xlane.xlu1 %4576 }
 0xdec   : > { %7313 = vst [vmem:[%s10998_s13 + $0x88] sm:$0xff] %v3119_v24  ;;  %8285 = vrcp.f32 %v4577_v48 }
 0xded   : > { %v8280_v14 = vpop.eup %8279 }
 0xdee   : > { %v3121_v52 = vmul.f32 %v8280_v14, %v11389_v46 }
 0xdef   : > { %v6566_v40 = vpop.f32.mrf.mxu0  ;;  %v4585_v17 = vpop.xlane.xlu1 %4584 }
 0xdf0   : > { %7315 = vst [vmem:[%s10998_s13 + $0x98] sm:$0xf] %v3121_v52  ;;  %7918 = vst [vmem:[%s9232_s11 + $0xa80] sm:$0xff] %v6566_v40  ;;  %8287 = vrcp.f32 %v4585_v17 }
 0xdf1   : > { %v8282_v2 = vpop.eup %8281  ;;  %v6568_v23 = vpop.f32.mrf.mxu0 }
 0xdf2   : > { %v3923_v33 = vmul.f32 %v8282_v2, %v11390_v44  ;;  %7919 = vst [vmem:[%s9232_s11 + $0xa88] sm:$0xff] %v6568_v23 }
 0xdf3   : > { %v6572_v11 = vpop.f32.mrf.mxu0  ;;  %v4594_v32 = vpop.xlane.xlu1 %4593 }
 0xdf4   : > { %7456 = vst [vmem:[%s10998_s13 + $0xa8] sm:$0xff] %v3923_v33  ;;  %7920 = vst [vmem:[%s9232_s11 + $0xa90] sm:$0xff] %v6572_v11  ;;  %8289 = vrcp.f32 %v4594_v32 }
 0xdf5   : > { %v8284_v16 = vpop.eup %8283  ;;  %v6574_v22 = vpop.f32.mrf.mxu0 }
 0xdf6   : > { %v3925_v55 = vmul.f32 %v8284_v16, %v11391_v15  ;;  %7921 = vst [vmem:[%s9232_s11 + $0xa98] sm:$0xff] %v6574_v22 }
 0xdf7   : > { %v6578_v47 = vpop.f32.mrf.mxu0  ;;  %v5386_v45 = vpop.xlane.xlu1 %5385 }
 0xdf8   : > { %7458 = vst [vmem:[%s10998_s13 + $0xb8] sm:$0xff] %v3925_v55  ;;  %7922 = vst [vmem:[%s9232_s11 + $0xaa0] sm:$0xff] %v6578_v47  ;;  %8291 = vrcp.f32 %v5386_v45 }
 0xdf9   : > { %v8286_v21 = vpop.eup %8285  ;;  %v6580_v5 = vpop.f32.mrf.mxu0 }
 0xdfa   : > { %v4727_v37 = vmul.f32 %v8286_v21, %v11392_v57  ;;  %7923 = vst [vmem:[%s9232_s11 + $0xaa8] sm:$0xff] %v6580_v5 }
 0xdfb   : > { %v6584_v25 = vpop.f32.mrf.mxu0  ;;  %v5394_v19 = vpop.xlane.xlu1 %5393 }
 0xdfc   : > { %7599 = vst [vmem:[%s10998_s13 + $0xc8] sm:$0xff] %v4727_v37  ;;  %7924 = vst [vmem:[%s9232_s11 + $0xab0] sm:$0xff] %v6584_v25  ;;  %8293 = vrcp.f32 %v5394_v19 }
 0xdfd   : > { %v8288_v38 = vpop.eup %8287  ;;  %v6586_v26 = vpop.f32.mrf.mxu0 }
 0xdfe   : > { %v4729_v62 = vmul.f32 %v8288_v38, %v11393_v58  ;;  %7925 = vst [vmem:[%s9232_s11 + $0xab8] sm:$0xff] %v6586_v26 }
 0xdff   : > { %v6590_v6 = vpop.f32.mrf.mxu0  ;;  %v6187_v0 = vpop.xlane.xlu1 %6186 }
 0xe00   : > { %7601 = vst [vmem:[%s10998_s13 + $0xd8] sm:$0xff] %v4729_v62  ;;  %7926 = vst [vmem:[%s9232_s11 + $0xac0] sm:$0xff] %v6590_v6  ;;  %8295 = vrcp.f32 %v6187_v0 }
 0xe01   : > { %v8290_v36 = vpop.eup %8289  ;;  %v6592_v20 = vpop.f32.mrf.mxu0 }
 0xe02   : > { %v4731_v27 = vmul.f32 %v8290_v36, %v11394_v8  ;;  %7927 = vst [vmem:[%s9232_s11 + $0xac8] sm:$0xff] %v6592_v20 }
 0xe03   : > { %v6596_v35 = vpop.f32.mrf.mxu0  ;;  %v6195_v7 = vpop.xlane.xlu1 %6194 }
 0xe04   : > { %7603 = vst [vmem:[%s10998_s13 + $0xe8] sm:$0xf] %v4731_v27  ;;  %7928 = vst [vmem:[%s9232_s11 + $0xad0] sm:$0xff] %v6596_v35  ;;  %8297 = vrcp.f32 %v6195_v7 }
 0xe05   : > { %v8292_v31 = vpop.eup %8291  ;;  %v6598_v50 = vpop.f32.mrf.mxu0 }
 0xe06   : > { %v5533_v54 = vmul.f32 %v8292_v31, %v10867_v51  ;;  %7929 = vst [vmem:[%s9232_s11 + $0xad8] sm:$0xff] %v6598_v50 }
 0xe07   : > { %v6602_v12 = vpop.f32.mrf.mxu0  ;;  %v6204_v59 = vpop.xlane.xlu1 %6203 }
 0xe08   : > { %7744 = vst [vmem:[%s10998_s13 + $0xf8] sm:$0xff] %v5533_v54  ;;  %7930 = vst [vmem:[%s9232_s11 + $0xae0] sm:$0xff] %v6602_v12  ;;  %8299 = vrcp.f32 %v6204_v59 }
 0xe09   : > { %v8294_v42 = vpop.eup %8293  ;;  %v6604_v49 = vpop.f32.mrf.mxu0 }
 0xe0a   : > { %v5535_v61 = vmul.f32 %v8294_v42, %v10885_v1  ;;  %7931 = vst [vmem:[%s9232_s11 + $0xae8] sm:$0xff] %v6604_v49 }
 0xe0b   : > { %v6608_v3 = vpop.f32.mrf.mxu0 }
 0xe0c   : > { %7746 = vst [vmem:[%s10998_s13 + $0x108] sm:$0xff] %v5535_v61  ;;  %7932 = vst [vmem:[%s9232_s11 + $0xaf0] sm:$0xff] %v6608_v3 }
 0xe0d   : > { %v8296_v51 = vpop.eup %8295  ;;  %v6610_v63 = vpop.f32.mrf.mxu0 }
 0xe0e   : > { %v6337_v13 = vmul.f32 %v8296_v51, %v11047_v18  ;;  %7933 = vst [vmem:[%s9232_s11 + $0xaf8] sm:$0xff] %v6610_v63 }
 0xe0f   : > { %v6614_v41 = vpop.f32.mrf.mxu0 }
 0xe10   : > { %7887 = vst [vmem:[%s10998_s13 + $0x118] sm:$0xff] %v6337_v13  ;;  %7934 = vst [vmem:[%s9232_s11 + $0xb00] sm:$0xff] %v6614_v41 }
 0xe11   : > { %v8298_v53 = vpop.eup %8297  ;;  %v6616_v1 = vpop.f32.mrf.mxu0 }
 0xe12   : > { %v6339_v28 = vmul.f32 %v8298_v53, %v11061_v10  ;;  %7935 = vst [vmem:[%s9232_s11 + $0xb08] sm:$0xff] %v6616_v1 }
 0xe13   : > { %v6620_v56 = vpop.f32.mrf.mxu0 }
 0xe14   : > { %7889 = vst [vmem:[%s10998_s13 + $0x128] sm:$0xff] %v6339_v28  ;;  %7936 = vst [vmem:[%s9232_s11 + $0xb10] sm:$0xff] %v6620_v56 }
 0xe15   : > { %v8300_v4 = vpop.eup %8299  ;;  %v6622_v18 = vpop.f32.mrf.mxu0 }
 0xe16   : > { %v6341_v60 = vmul.f32 %v8300_v4, %v11073_v39  ;;  %7937 = vst [vmem:[%s9232_s11 + $0xb18] sm:$0xff] %v6622_v18 }
 0xe17   : > { %v6626_v43 = vpop.f32.mrf.mxu0 }
 0xe18   : > { %7891 = vst [vmem:[%s10998_s13 + $0x138] sm:$0xf] %v6341_v60  ;;  %7938 = vst [vmem:[%s9232_s11 + $0xb20] sm:$0xff] %v6626_v43 }
 0xe19   : > { %v6628_v30 = vpop.f32.mrf.mxu0 }
 0xe1a   : > { %7939 = vst [vmem:[%s9232_s11 + $0xb28] sm:$0xff] %v6628_v30 }
 0xe1b   : > { %v6632_v10 = vpop.f32.mrf.mxu0 }
 0xe1c   : > { %7940 = vst [vmem:[%s9232_s11 + $0xb30] sm:$0xff] %v6632_v10 }
 0xe1d   : > { %v6634_v9 = vpop.f32.mrf.mxu0 }
 0xe1e   : > { %7941 = vst [vmem:[%s9232_s11 + $0xb38] sm:$0xff] %v6634_v9 }
 0xe1f   : > { %v6638_v34 = vpop.f32.mrf.mxu0 }
 0xe20   : > { %7942 = vst [vmem:[%s9232_s11 + $0xb40] sm:$0xff] %v6638_v34 }
 0xe21   : > { %v6640_v39 = vpop.f32.mrf.mxu0 }
 0xe22   : > { %7943 = vst [vmem:[%s9232_s11 + $0xb48] sm:$0xff] %v6640_v39 }
 0xe23   : > { %v6644_v29 = vpop.f32.mrf.mxu0 }
 0xe24   : > { %7944 = vst [vmem:[%s9232_s11 + $0xb50] sm:$0xff] %v6644_v29 }
 0xe25   : > { %v6646_v24 = vpop.f32.mrf.mxu0 }
 0xe26   : > { %7945 = vst [vmem:[%s9232_s11 + $0xb58] sm:$0xff] %v6646_v24 }
 0xe27   : > { %v6650_v48 = vpop.f32.mrf.mxu0 }
 0xe28   : > { %7946 = vst [vmem:[%s9232_s11 + $0xb60] sm:$0xff] %v6650_v48 }
 0xe29   : > { %v6652_v14 = vpop.f32.mrf.mxu0 }
 0xe2a   : > { %7947 = vst [vmem:[%s9232_s11 + $0xb68] sm:$0xff] %v6652_v14 }
 0xe2b   : > { %v6656_v46 = vpop.f32.mrf.mxu0 }
 0xe2c   : > { %7948 = vst [vmem:[%s9232_s11 + $0xb70] sm:$0xff] %v6656_v46 }
 0xe2d   : > { %v6658_v52 = vpop.f32.mrf.mxu0 }
 0xe2e   : > { %7949 = vst [vmem:[%s9232_s11 + $0xb78] sm:$0xff] %v6658_v52 }
 0xe2f   : > { %v6662_v40 = vpop.f32.mrf.mxu0 }
 0xe30   : > { %7950 = vst [vmem:[%s9232_s11 + $0xb80] sm:$0xff] %v6662_v40 }
 0xe31   : > { %v6664_v17 = vpop.f32.mrf.mxu0 }
 0xe32   : > { %7951 = vst [vmem:[%s9232_s11 + $0xb88] sm:$0xff] %v6664_v17 }
 0xe33   : > { %v6668_v2 = vpop.f32.mrf.mxu0 }
 0xe34   : > { %7952 = vst [vmem:[%s9232_s11 + $0xb90] sm:$0xff] %v6668_v2 }
 0xe35   : > { %v6670_v23 = vpop.f32.mrf.mxu0 }
 0xe36   : > { %7953 = vst [vmem:[%s9232_s11 + $0xb98] sm:$0xff] %v6670_v23 }
 0xe37   : > { %v6674_v44 = vpop.f32.mrf.mxu0 }
 0xe38   : > { %7954 = vst [vmem:[%s9232_s11 + $0xba0] sm:$0xff] %v6674_v44 }
 0xe39   : > { %v6676_v33 = vpop.f32.mrf.mxu0 }
 0xe3a   : > { %7955 = vst [vmem:[%s9232_s11 + $0xba8] sm:$0xff] %v6676_v33 }
 0xe3b   : > { %v6680_v11 = vpop.f32.mrf.mxu0 }
 0xe3c   : > { %7956 = vst [vmem:[%s9232_s11 + $0xbb0] sm:$0xff] %v6680_v11 }
 0xe3d   : > { %v6682_v32 = vpop.f32.mrf.mxu0 }
 0xe3e   : > { %7957 = vst [vmem:[%s9232_s11 + $0xbb8] sm:$0xff] %v6682_v32 }
 0xe3f   : > { %v6686_v16 = vpop.f32.mrf.mxu0 }
 0xe40   : > { %7958 = vst [vmem:[%s9232_s11 + $0xbc0] sm:$0xff] %v6686_v16 }
 0xe41   : > { %v6688_v22 = vpop.f32.mrf.mxu0 }
 0xe42   : > { %7959 = vst [vmem:[%s9232_s11 + $0xbc8] sm:$0xff] %v6688_v22 }
 0xe43   : > { %v6692_v15 = vpop.f32.mrf.mxu1 }
 0xe44   : > { %7960 = vst [vmem:[%s9232_s11 + $0xbd0] sm:$0xff] %v6692_v15 }
 0xe45   : > { %v6694_v55 = vpop.f32.mrf.mxu1 }
 0xe46   : > { %7961 = vst [vmem:[%s9232_s11 + $0xbd8] sm:$0xff] %v6694_v55 }
 0xe47   : > { %v6698_v47 = vpop.f32.mrf.mxu1 }
 0xe48   : > { %7962 = vst [vmem:[%s9232_s11 + $0xbe0] sm:$0xff] %v6698_v47 }
 0xe49   : > { %v6700_v45 = vpop.f32.mrf.mxu1 }
 0xe4a   : > { %7963 = vst [vmem:[%s9232_s11 + $0xbe8] sm:$0xff] %v6700_v45 }
 0xe4b   : > { %v6704_v21 = vpop.f32.mrf.mxu1 }
 0xe4c   : > { %7964 = vst [vmem:[%s9232_s11 + $0xbf0] sm:$0xff] %v6704_v21 }
 0xe4d   : > { %v6706_v5 = vpop.f32.mrf.mxu1 }
 0xe4e   : > { %7965 = vst [vmem:[%s9232_s11 + $0xbf8] sm:$0xff] %v6706_v5 }
 0xe4f   : > { %8314 = shalt.err (!%p8311_p3)
}
 0xe50   : > { %s8315_s6 = scalar_lea.hbm %s11254_s16, 49152  ;;  %s8319_s11 = scalar_lea.hbm %s11307_s5, 98304 }
 0xe51   : > { %p8316_p4 = scmp.ne.s32.totalorder %s11254_s16, %s8315_s6  ;;  %p8320_p9 = scmp.lt.s32.totalorder %s11254_s16, %s11307_s5 }
 0xe52   : > { %p8321_p10 = scmp.lt.s32.totalorder %s8319_s11, %s8315_s6 }
 0xe53   : > { %p8317_p7 = pnand %p8316_p4, %p8435_p5 }
 0xe54   : > { %p8322_p11 = por %p8321_p10, %p8320_p9 }
 0xe55   : > { %p8318_p8 = pneg %p8317_p7 }
 0xe57   : > { %p8323_p12 = pnand %p8322_p11, %p8318_p8 }
 0xe59   : > { %8326 = shalt.err (!%p8323_p12)
}
 0xe5a   : > { %s8365_s13 = smov 256   ;;  %s8366_s30 = smov 16  }
 0xe5b   : > { %7987 = dma.vmem_to_hbm [thread:$0]  (%p8435_p5), %s11257_s10, 49152, %s11254_s16, %s11262_s22, %s8365_s13, %s8365_s13, %s8366_s30  }
 0xe5c PF: > { %p7993_p13 = scmp.ge.s32.totalorder %s8361_s21, 2  ;;  %s6807_s14 = sand.u32 1, %s8349_s18  }
 0xe5d   : > { %s6808_s15 = scalar_lea.sflag [#allocation3], %s6807_s14 }
 0xe5e   : > { %p7990_p0 = pnand %p7993_p13, %p8439_p6 }
 0xe60   : > { %p7991_p1 = pneg %p7990_p0 }
 0xe62   : > { %8344 = dma.done.wait (%p7991_p1), %s6808_s15, 49152  }
 0xe63   : > { %8346 = vsyncadd (%p7991_p1), %s6808_s15, 4294918144  ;;  %p16_p2 = scmp.ge.s32.totalorder %s8422_s24, 4   ;;  %s11395_s18 = smov %s8353_s19 }
 0xe64   : > { %s11396_s19 = smov %s8357_s20  ;;  %s11397_s20 = smov %s8433_s27 }
 0xe65   : > { %s11398_s21 = smov %s8422_s24  ;;  %18 = sbr.rel (!%p16_p2) target bundleno = 3 (0x3), region = 134 }
 0xe6a   :  { %6813 = vsyncpa [#allocation3], 1 }
 0xe6b   :  { %6815 = vsyncpa [#allocation3 + $0x1], 1 }

</bundles_post_ra>
